<compile_context>
chip_gen: v6e
topology: v6e:2x2x1
jax: 0.10.0
libtpu: 0.0.40
codegen_flags: <defaults>
</compile_context>

<pallas_src>
import functools
import math

import jax
import jax.numpy as jnp
import numpy as np
from jax.experimental import pallas as pl
from jax.experimental.pallas import tpu as pltpu

# ---- architecture constants fixed by the PyTorch module ----
WIDTH = 100          # residual trunk width
N_BLOCKS = 9         # n_layers(10) - 1
KSIZE = 5            # circular-conv kernel size
PAD = KSIZE // 2
FC1_OUT = 128
LANE = 128           # TPU lane width
TARGET_LANES = 512   # lanes per grid step we aim for (amortize weight vld)


def _round_up(v, m):
    return ((v + m - 1) // m) * m


def _choose_batch_block(b, l):
    """Batch elements per grid step so bb*L is lane-dense and near TARGET_LANES."""
    bb_align = LANE // math.gcd(l, LANE)          # smallest lane-dense group
    want_groups = max(1, TARGET_LANES // (bb_align * l))
    have_groups = max(1, -(-b // bb_align))       # don't pad beyond one group
    return bb_align * min(want_groups, have_groups)


# ---------------------------------------------------------------------------
# Wrapper: parameter re-layout (glue) + pallas_call with a fused kernel.
# ---------------------------------------------------------------------------
def resnet1d_forward(x, params, *, compute_dtype=jnp.bfloat16):
    """x: (B, Cin, L) float32  ->  (B, out_channels, L) float32."""
    B, c_in, L = x.shape
    c_out, fc1_out = params["fc2_w"].shape
    width = params["fc0_w"].shape[0]
    n_blocks, _, _, ksize = params["conv_w"].shape
    pad = ksize // 2
    w_pad = _round_up(width, LANE)          # 100 -> 128 (MXU pads anyway)
    wp = w_pad - width

    # ---- parameter re-layout in f32 (weights cast to compute_dtype below) --
    # Fold the 1x1 shortcut into the center conv tap (tap `pad` reads the
    # unshifted activation, exactly like the shortcut).
    conv_w = params["conv_w"].at[:, :, :, pad].add(params["sc_w"][:, :, :, 0])
    conv_b = params["conv_b"] + params["sc_b"]

    fc0_w = jnp.pad(params["fc0_w"], ((0, wp), (0, 0)))             # (Wp, Cin)
    fc0_b = jnp.pad(params["fc0_b"], ((0, wp),))[:, None]           # (Wp, 1)
    conv_w = jnp.pad(conv_w, ((0, 0), (0, wp), (0, wp), (0, 0)))    # (NB,Wp,Wp,K)
    # Per-tap weight tiles, flat-indexed as layer*K + k: (NB*K, Wp, Wp).
    conv_w = conv_w.transpose(0, 3, 1, 2).reshape(n_blocks * ksize, w_pad, w_pad)
    conv_b = jnp.pad(conv_b, ((0, 0), (0, wp)))[:, :, None]         # (NB, Wp, 1)
    fc1_w = jnp.pad(params["fc1_w"], ((0, 0), (0, wp)))             # (F1, Wp)
    fc1_b = params["fc1_b"][:, None]                                # (F1, 1)
    fc2_w = params["fc2_w"]                                         # (Cout, F1)
    fc2_b = params["fc2_b"][:, None]                                # (Cout, 1)

    cdt = compute_dtype
    fc0_w = fc0_w.astype(cdt)
    conv_w = conv_w.astype(cdt)
    fc1_w = fc1_w.astype(cdt)
    fc2_w = fc2_w.astype(cdt)

    # ---- pack batch into the lane axis: lane = l * bb + b_local ----
    bb = _choose_batch_block(B, L)
    b_padded = _round_up(B, bb)
    if b_padded != B:
        x = jnp.pad(x, ((0, b_padded - B), (0, 0), (0, 0)))
    nb = b_padded // bb
    n_lanes = bb * L
    xk = (x.reshape(nb, bb, c_in, L)
            .transpose(0, 2, 3, 1)
            .reshape(nb, c_in, n_lanes))

    # Lane-axis roll that realizes a per-batch circular shift of l by (pad-k):
    #   h_shift_k[c, l, b] = h[c, (l + k - pad) mod L, b]
    # (batch is interleaved minor, shift is a multiple of bb -> never crosses
    #  batch boundaries).
    shifts = tuple(((pad - k) % L) * bb for k in range(ksize))

    def kernel(x_ref, fc0_w_ref, fc0_b_ref, conv_w_ref, conv_b_ref,
               fc1_w_ref, fc1_b_ref, fc2_w_ref, fc2_b_ref, o_ref):
        xv = x_ref[...]                                             # (Cin, N)
        # fc0 (position-wise Linear).
        if c_in == 1:
            # Contraction depth 1: VPU broadcast-multiply, skip the MXU.
            h = fc0_w_ref[...].astype(jnp.float32) * xv + fc0_b_ref[...]
        else:
            h = jnp.dot(fc0_w_ref[...], xv.astype(cdt),
                        preferred_element_type=jnp.float32) + fc0_b_ref[...]

        # 9 x Resnet1dBlock: shortcut folded into the center tap; K=5
        # accumulating matmuls over XLU-rolled activations (no stacked-operand
        # VMEM round trip).  Accumulation / bias / ReLU in f32.
        for layer in range(n_blocks):
            hc = h.astype(cdt)                     # cast once, before rolling
            acc = None
            for k, s in enumerate(shifts):
                piece = hc if s == 0 else pltpu.roll(hc, s, 1)
                d = jnp.dot(conv_w_ref[layer * ksize + k], piece,
                            preferred_element_type=jnp.float32)
                acc = d if acc is None else acc + d
            h = jnp.maximum(acc + conv_b_ref[layer], 0.0)           # ReLU

        # fc1 + ReLU
        h = jnp.dot(fc1_w_ref[...], h.astype(cdt),
                    preferred_element_type=jnp.float32) + fc1_b_ref[...]
        h = jnp.maximum(h, 0.0)
        # fc2
        o_ref[...] = (jnp.dot(fc2_w_ref[...], h.astype(cdt),
                              preferred_element_type=jnp.float32)
                      + fc2_b_ref[...])

    def const_spec(shape):
        # Whole array resident; same block every grid step.
        return pl.BlockSpec(shape, lambda b: (0,) * len(shape))

    out = pl.pallas_call(
        kernel,
        out_shape=jax.ShapeDtypeStruct((nb, c_out, n_lanes), jnp.float32),
        grid=(nb,),
        in_specs=[
            pl.BlockSpec((None, c_in, n_lanes), lambda b: (b, 0, 0)),  # x block
            const_spec((w_pad, c_in)), const_spec((w_pad, 1)),         # fc0
            const_spec((n_blocks * ksize, w_pad, w_pad)),              # conv w
            const_spec((n_blocks, w_pad, 1)),                          # conv b
            const_spec((fc1_out, w_pad)), const_spec((fc1_out, 1)),    # fc1
            const_spec((c_out, fc1_out)), const_spec((c_out, 1)),      # fc2
        ],
        out_specs=pl.BlockSpec((None, c_out, n_lanes), lambda b: (b, 0, 0)),
        compiler_params=pltpu.CompilerParams(
            dimension_semantics=("parallel",)),   # batch blocks: v7x 2-TC shard
    )(xk, fc0_w, fc0_b, conv_w, conv_b, fc1_w, fc1_b, fc2_w, fc2_b)

    # Unpack (nb, Cout, L*bb) -> (B, Cout, L).
    out = (out.reshape(nb, c_out, L, bb)
              .transpose(0, 3, 1, 2)
              .reshape(b_padded, c_out, L))
    return out[:B]


# ---------------------------------------------------------------------------
# Deterministic parameter init (PyTorch-shaped, uniform(+-1/sqrt(fan_in))).
# ---------------------------------------------------------------------------
def init_params(key, in_channels, out_channels):
    def u(k, shape, fan_in):
        bound = 1.0 / np.sqrt(fan_in)
        return jax.random.uniform(k, shape, jnp.float32, -bound, bound)

    it = iter(jax.random.split(key, 8 + 4 * N_BLOCKS))
    p = {}
    p["fc0_w"] = u(next(it), (WIDTH, in_channels), in_channels)
    p["fc0_b"] = u(next(it), (WIDTH,), in_channels)
    conv_w, conv_b, sc_w, sc_b = [], [], [], []
    for _ in range(N_BLOCKS):
        conv_w.append(u(next(it), (WIDTH, WIDTH, KSIZE), WIDTH * KSIZE))
        conv_b.append(u(next(it), (WIDTH,), WIDTH * KSIZE))
        sc_w.append(u(next(it), (WIDTH, WIDTH, 1), WIDTH))
        sc_b.append(u(next(it), (WIDTH,), WIDTH))
    p["conv_w"] = jnp.stack(conv_w)   # (NB, Cout, Cin, K) -- PyTorch layout
    p["conv_b"] = jnp.stack(conv_b)
    p["sc_w"] = jnp.stack(sc_w)       # (NB, Cout, Cin, 1)
    p["sc_b"] = jnp.stack(sc_b)
    p["fc1_w"] = u(next(it), (FC1_OUT, WIDTH), WIDTH)
    p["fc1_b"] = u(next(it), (FC1_OUT,), WIDTH)
    p["fc2_w"] = u(next(it), (out_channels, FC1_OUT), FC1_OUT)
    p["fc2_b"] = u(next(it), (out_channels,), FC1_OUT)
    return p


# ---------------------------------------------------------------------------
# Pure-JAX/XLA reference that mirrors the PyTorch forward (NCL layout).
# ---------------------------------------------------------------------------
def reference_forward(x, params):
    hp = jax.lax.Precision.HIGHEST
    h = jnp.einsum("bcl,wc->bwl", x, params["fc0_w"], precision=hp)
    h = h + params["fc0_b"][None, :, None]
    for i in range(N_BLOCKS):
        xp = jnp.pad(h, ((0, 0), (0, 0), (PAD, PAD)), mode="wrap")  # circular
        conv = jax.lax.conv_general_dilated(
            xp, params["conv_w"][i], window_strides=(1,), padding="VALID",
            dimension_numbers=("NCH", "OIH", "NCH"), precision=hp)
        conv = conv + params["conv_b"][i][None, :, None]
        sc = jnp.einsum("bcl,oc->bol", h, params["sc_w"][i][:, :, 0],
                        precision=hp) + params["sc_b"][i][None, :, None]
        h = jnp.maximum(conv + sc, 0.0)
    h = jnp.einsum("bcl,oc->bol", h, params["fc1_w"], precision=hp)
    h = jnp.maximum(h + params["fc1_b"][None, :, None], 0.0)
    h = jnp.einsum("bcl,oc->bol", h, params["fc2_w"], precision=hp)
    return h + params["fc2_b"][None, :, None]


if __name__ == "__main__":
    root = jax.random.PRNGKey(0)

    # ---- small shapes matching the module defaults (B=2, Cin=1, L=16) ----
    B, C_IN, L_SEQ, C_OUT = 2, 1, 16, 32
    pkey, xkey, pkey2, xkey2 = jax.random.split(root, 4)
    params = init_params(pkey, C_IN, C_OUT)
    x = jax.random.normal(xkey, (B, C_IN, L_SEQ), dtype=jnp.float32)
    ref = reference_forward(x, params)

    # f32-operand path: tight validation against the HIGHEST-precision ref.
    fwd_f32 = jax.jit(functools.partial(resnet1d_forward,
                                        compute_dtype=jnp.float32))
    out = jax.block_until_ready(fwd_f32(x, params))
    assert out.shape == (B, C_OUT, L_SEQ), out.shape
    np.testing.assert_allclose(np.asarray(out), np.asarray(ref),
                               rtol=1e-3, atol=1e-3)

    # Default path (bf16 MXU operands, f32 accumulation): loose sanity check.
    out16 = jax.block_until_ready(jax.jit(resnet1d_forward)(x, params))
    rel = (np.linalg.norm(np.asarray(out16) - np.asarray(ref))
           / np.linalg.norm(np.asarray(ref)))
    assert rel < 0.1, f"bf16 relative error too large: {rel}"

    # ---- a second config exercising nb>1 grid steps and n_lanes=384 ----
    B2, C_IN2, L2, C_OUT2 = 16, 3, 48, 32
    params2 = init_params(pkey2, C_IN2, C_OUT2)
    x2 = jax.random.normal(xkey2, (B2, C_IN2, L2), dtype=jnp.float32)
    ref2 = reference_forward(x2, params2)
    out2 = jax.block_until_ready(fwd_f32(x2, params2))
    assert out2.shape == (B2, C_OUT2, L2), out2.shape
    np.testing.assert_allclose(np.asarray(out2), np.asarray(ref2),
                               rtol=2e-3, atol=2e-3)

    print("KERNEL_OK")
</pallas_src>

<mosaic_0001>
module attributes {stable_mosaic.version = 11 : i64} {
  func.func @kernel(%arg0: i32, %arg1: memref<1x1x128xf32, #tpu.memory_space<vmem>>, %arg2: memref<128x1xf32, #tpu.memory_space<vmem>>, %arg3: memref<128x1xf32, #tpu.memory_space<vmem>>, %arg4: memref<45x128x128xf32, #tpu.memory_space<vmem>>, %arg5: memref<9x128x1xf32, #tpu.memory_space<vmem>>, %arg6: memref<128x128xf32, #tpu.memory_space<vmem>>, %arg7: memref<128x1xf32, #tpu.memory_space<vmem>>, %arg8: memref<32x128xf32, #tpu.memory_space<vmem>>, %arg9: memref<32x1xf32, #tpu.memory_space<vmem>>, %arg10: memref<1x32x128xf32, #tpu.memory_space<vmem>>) attributes {dimension_semantics = [#tpu.dimension_semantics<parallel>], iteration_bounds = array<i64: 1>, scalar_prefetch = 0 : i64, scratch_operands = 0 : i64, tpu.core_type = #tpu.core_type<tc>, window_params = [{transform_indices = @transform_0, window_bounds = array<i64: 1, 1, 128>}, {pipeline_mode = #tpu.pipeline_mode<synchronous>, transform_indices = @transform_1, window_bounds = array<i64: 128, 1>}, {pipeline_mode = #tpu.pipeline_mode<synchronous>, transform_indices = @transform_2, window_bounds = array<i64: 128, 1>}, {pipeline_mode = #tpu.pipeline_mode<synchronous>, transform_indices = @transform_3, window_bounds = array<i64: 45, 128, 128>}, {pipeline_mode = #tpu.pipeline_mode<synchronous>, transform_indices = @transform_4, window_bounds = array<i64: 9, 128, 1>}, {pipeline_mode = #tpu.pipeline_mode<synchronous>, transform_indices = @transform_5, window_bounds = array<i64: 128, 128>}, {pipeline_mode = #tpu.pipeline_mode<synchronous>, transform_indices = @transform_6, window_bounds = array<i64: 128, 1>}, {pipeline_mode = #tpu.pipeline_mode<synchronous>, transform_indices = @transform_7, window_bounds = array<i64: 32, 128>}, {pipeline_mode = #tpu.pipeline_mode<synchronous>, transform_indices = @transform_8, window_bounds = array<i64: 32, 1>}, {transform_indices = @transform_9, window_bounds = array<i64: 1, 32, 128>}]} {
    %c0 = arith.constant 0 : index
    %c0_0 = arith.constant 0 : index
    %c0_1 = arith.constant 0 : index
    %0 = vector.load %arg1[%c0, %c0_0, %c0_1] : memref<1x1x128xf32, #tpu.memory_space<vmem>>, vector<1x1x128xf32>
    %1 = vector.shape_cast %0 : vector<1x1x128xf32> to vector<1x128xf32>
    %c0_2 = arith.constant 0 : index
    %c0_3 = arith.constant 0 : index
    %2 = vector.load %arg2[%c0_2, %c0_3] : memref<128x1xf32, #tpu.memory_space<vmem>>, vector<128x1xf32>
    %3 = vector.broadcast %2 : vector<128x1xf32> to vector<128x128xf32>
    %4 = vector.broadcast %1 : vector<1x128xf32> to vector<128x128xf32>
    %5 = arith.mulf %3, %4 : vector<128x128xf32>
    %c0_4 = arith.constant 0 : index
    %c0_5 = arith.constant 0 : index
    %6 = vector.load %arg3[%c0_4, %c0_5] : memref<128x1xf32, #tpu.memory_space<vmem>>, vector<128x1xf32>
    %7 = vector.broadcast %6 : vector<128x1xf32> to vector<128x128xf32>
    %8 = arith.addf %5, %7 : vector<128x128xf32>
    %c16_i32 = arith.constant 16 : i32
    %9 = tpu.dynamic_rotate %8 by %c16_i32 dim 1 : vector<128x128xf32>, i32 -> vector<128x128xf32>
    %c0_6 = arith.constant 0 : index
    %c0_7 = arith.constant 0 : index
    %c0_8 = arith.constant 0 : index
    %10 = vector.load %arg4[%c0_6, %c0_7, %c0_8] : memref<45x128x128xf32, #tpu.memory_space<vmem>>, vector<1x128x128xf32>
    %11 = vector.shape_cast %10 : vector<1x128x128xf32> to vector<128x128xf32>
    %cst = arith.constant dense<0.000000e+00> : vector<128x128xf32>
    %12 = tpu.matmul %11, %9, %cst {dimension_numbers = #tpu.dot_dimension_numbers<[1], [0], [0], [1], [0, 0, 1, 1], [], []>} : vector<128x128xf32>, vector<128x128xf32>, vector<128x128xf32> -> vector<128x128xf32>
    %c8_i32 = arith.constant 8 : i32
    %13 = tpu.dynamic_rotate %8 by %c8_i32 dim 1 : vector<128x128xf32>, i32 -> vector<128x128xf32>
    %c1 = arith.constant 1 : index
    %c0_9 = arith.constant 0 : index
    %c0_10 = arith.constant 0 : index
    %14 = vector.load %arg4[%c1, %c0_9, %c0_10] : memref<45x128x128xf32, #tpu.memory_space<vmem>>, vector<1x128x128xf32>
    %15 = vector.shape_cast %14 : vector<1x128x128xf32> to vector<128x128xf32>
    %cst_11 = arith.constant dense<0.000000e+00> : vector<128x128xf32>
    %16 = tpu.matmul %15, %13, %cst_11 {dimension_numbers = #tpu.dot_dimension_numbers<[1], [0], [0], [1], [0, 0, 1, 1], [], []>} : vector<128x128xf32>, vector<128x128xf32>, vector<128x128xf32> -> vector<128x128xf32>
    %17 = arith.addf %12, %16 : vector<128x128xf32>
    %c2 = arith.constant 2 : index
    %c0_12 = arith.constant 0 : index
    %c0_13 = arith.constant 0 : index
    %18 = vector.load %arg4[%c2, %c0_12, %c0_13] : memref<45x128x128xf32, #tpu.memory_space<vmem>>, vector<1x128x128xf32>
    %19 = vector.shape_cast %18 : vector<1x128x128xf32> to vector<128x128xf32>
    %cst_14 = arith.constant dense<0.000000e+00> : vector<128x128xf32>
    %20 = tpu.matmul %19, %8, %cst_14 {dimension_numbers = #tpu.dot_dimension_numbers<[1], [0], [0], [1], [0, 0, 1, 1], [], []>} : vector<128x128xf32>, vector<128x128xf32>, vector<128x128xf32> -> vector<128x128xf32>
    %21 = arith.addf %17, %20 : vector<128x128xf32>
    %c120_i32 = arith.constant 120 : i32
    %22 = tpu.dynamic_rotate %8 by %c120_i32 dim 1 : vector<128x128xf32>, i32 -> vector<128x128xf32>
    %c3 = arith.constant 3 : index
    %c0_15 = arith.constant 0 : index
    %c0_16 = arith.constant 0 : index
    %23 = vector.load %arg4[%c3, %c0_15, %c0_16] : memref<45x128x128xf32, #tpu.memory_space<vmem>>, vector<1x128x128xf32>
    %24 = vector.shape_cast %23 : vector<1x128x128xf32> to vector<128x128xf32>
    %cst_17 = arith.constant dense<0.000000e+00> : vector<128x128xf32>
    %25 = tpu.matmul %24, %22, %cst_17 {dimension_numbers = #tpu.dot_dimension_numbers<[1], [0], [0], [1], [0, 0, 1, 1], [], []>} : vector<128x128xf32>, vector<128x128xf32>, vector<128x128xf32> -> vector<128x128xf32>
    %26 = arith.addf %21, %25 : vector<128x128xf32>
    %c112_i32 = arith.constant 112 : i32
    %27 = tpu.dynamic_rotate %8 by %c112_i32 dim 1 : vector<128x128xf32>, i32 -> vector<128x128xf32>
    %c4 = arith.constant 4 : index
    %c0_18 = arith.constant 0 : index
    %c0_19 = arith.constant 0 : index
    %28 = vector.load %arg4[%c4, %c0_18, %c0_19] : memref<45x128x128xf32, #tpu.memory_space<vmem>>, vector<1x128x128xf32>
    %29 = vector.shape_cast %28 : vector<1x128x128xf32> to vector<128x128xf32>
    %cst_20 = arith.constant dense<0.000000e+00> : vector<128x128xf32>
    %30 = tpu.matmul %29, %27, %cst_20 {dimension_numbers = #tpu.dot_dimension_numbers<[1], [0], [0], [1], [0, 0, 1, 1], [], []>} : vector<128x128xf32>, vector<128x128xf32>, vector<128x128xf32> -> vector<128x128xf32>
    %31 = arith.addf %26, %30 : vector<128x128xf32>
    %c0_21 = arith.constant 0 : index
    %c0_22 = arith.constant 0 : index
    %c0_23 = arith.constant 0 : index
    %32 = vector.load %arg5[%c0_21, %c0_22, %c0_23] : memref<9x128x1xf32, #tpu.memory_space<vmem>>, vector<1x128x1xf32>
    %33 = vector.shape_cast %32 : vector<1x128x1xf32> to vector<128x1xf32>
    %34 = vector.broadcast %33 : vector<128x1xf32> to vector<128x128xf32>
    %35 = arith.addf %31, %34 : vector<128x128xf32>
    %cst_24 = arith.constant 0.000000e+00 : f32
    %36 = vector.broadcast %cst_24 : f32 to vector<128x128xf32>
    %37 = arith.maximumf %35, %36 : vector<128x128xf32>
    %c16_i32_25 = arith.constant 16 : i32
    %38 = tpu.dynamic_rotate %37 by %c16_i32_25 dim 1 : vector<128x128xf32>, i32 -> vector<128x128xf32>
    %c5 = arith.constant 5 : index
    %c0_26 = arith.constant 0 : index
    %c0_27 = arith.constant 0 : index
    %39 = vector.load %arg4[%c5, %c0_26, %c0_27] : memref<45x128x128xf32, #tpu.memory_space<vmem>>, vector<1x128x128xf32>
    %40 = vector.shape_cast %39 : vector<1x128x128xf32> to vector<128x128xf32>
    %cst_28 = arith.constant dense<0.000000e+00> : vector<128x128xf32>
    %41 = tpu.matmul %40, %38, %cst_28 {dimension_numbers = #tpu.dot_dimension_numbers<[1], [0], [0], [1], [0, 0, 1, 1], [], []>} : vector<128x128xf32>, vector<128x128xf32>, vector<128x128xf32> -> vector<128x128xf32>
    %c8_i32_29 = arith.constant 8 : i32
    %42 = tpu.dynamic_rotate %37 by %c8_i32_29 dim 1 : vector<128x128xf32>, i32 -> vector<128x128xf32>
    %c6 = arith.constant 6 : index
    %c0_30 = arith.constant 0 : index
    %c0_31 = arith.constant 0 : index
    %43 = vector.load %arg4[%c6, %c0_30, %c0_31] : memref<45x128x128xf32, #tpu.memory_space<vmem>>, vector<1x128x128xf32>
    %44 = vector.shape_cast %43 : vector<1x128x128xf32> to vector<128x128xf32>
    %cst_32 = arith.constant dense<0.000000e+00> : vector<128x128xf32>
    %45 = tpu.matmul %44, %42, %cst_32 {dimension_numbers = #tpu.dot_dimension_numbers<[1], [0], [0], [1], [0, 0, 1, 1], [], []>} : vector<128x128xf32>, vector<128x128xf32>, vector<128x128xf32> -> vector<128x128xf32>
    %46 = arith.addf %41, %45 : vector<128x128xf32>
    %c7 = arith.constant 7 : index
    %c0_33 = arith.constant 0 : index
    %c0_34 = arith.constant 0 : index
    %47 = vector.load %arg4[%c7, %c0_33, %c0_34] : memref<45x128x128xf32, #tpu.memory_space<vmem>>, vector<1x128x128xf32>
    %48 = vector.shape_cast %47 : vector<1x128x128xf32> to vector<128x128xf32>
    %cst_35 = arith.constant dense<0.000000e+00> : vector<128x128xf32>
    %49 = tpu.matmul %48, %37, %cst_35 {dimension_numbers = #tpu.dot_dimension_numbers<[1], [0], [0], [1], [0, 0, 1, 1], [], []>} : vector<128x128xf32>, vector<128x128xf32>, vector<128x128xf32> -> vector<128x128xf32>
    %50 = arith.addf %46, %49 : vector<128x128xf32>
    %c120_i32_36 = arith.constant 120 : i32
    %51 = tpu.dynamic_rotate %37 by %c120_i32_36 dim 1 : vector<128x128xf32>, i32 -> vector<128x128xf32>
    %c8 = arith.constant 8 : index
    %c0_37 = arith.constant 0 : index
    %c0_38 = arith.constant 0 : index
    %52 = vector.load %arg4[%c8, %c0_37, %c0_38] : memref<45x128x128xf32, #tpu.memory_space<vmem>>, vector<1x128x128xf32>
    %53 = vector.shape_cast %52 : vector<1x128x128xf32> to vector<128x128xf32>
    %cst_39 = arith.constant dense<0.000000e+00> : vector<128x128xf32>
    %54 = tpu.matmul %53, %51, %cst_39 {dimension_numbers = #tpu.dot_dimension_numbers<[1], [0], [0], [1], [0, 0, 1, 1], [], []>} : vector<128x128xf32>, vector<128x128xf32>, vector<128x128xf32> -> vector<128x128xf32>
    %55 = arith.addf %50, %54 : vector<128x128xf32>
    %c112_i32_40 = arith.constant 112 : i32
    %56 = tpu.dynamic_rotate %37 by %c112_i32_40 dim 1 : vector<128x128xf32>, i32 -> vector<128x128xf32>
    %c9 = arith.constant 9 : index
    %c0_41 = arith.constant 0 : index
    %c0_42 = arith.constant 0 : index
    %57 = vector.load %arg4[%c9, %c0_41, %c0_42] : memref<45x128x128xf32, #tpu.memory_space<vmem>>, vector<1x128x128xf32>
    %58 = vector.shape_cast %57 : vector<1x128x128xf32> to vector<128x128xf32>
    %cst_43 = arith.constant dense<0.000000e+00> : vector<128x128xf32>
    %59 = tpu.matmul %58, %56, %cst_43 {dimension_numbers = #tpu.dot_dimension_numbers<[1], [0], [0], [1], [0, 0, 1, 1], [], []>} : vector<128x128xf32>, vector<128x128xf32>, vector<128x128xf32> -> vector<128x128xf32>
    %60 = arith.addf %55, %59 : vector<128x128xf32>
    %c1_44 = arith.constant 1 : index
    %c0_45 = arith.constant 0 : index
    %c0_46 = arith.constant 0 : index
    %61 = vector.load %arg5[%c1_44, %c0_45, %c0_46] : memref<9x128x1xf32, #tpu.memory_space<vmem>>, vector<1x128x1xf32>
    %62 = vector.shape_cast %61 : vector<1x128x1xf32> to vector<128x1xf32>
    %63 = vector.broadcast %62 : vector<128x1xf32> to vector<128x128xf32>
    %64 = arith.addf %60, %63 : vector<128x128xf32>
    %cst_47 = arith.constant 0.000000e+00 : f32
    %65 = vector.broadcast %cst_47 : f32 to vector<128x128xf32>
    %66 = arith.maximumf %64, %65 : vector<128x128xf32>
    %c16_i32_48 = arith.constant 16 : i32
    %67 = tpu.dynamic_rotate %66 by %c16_i32_48 dim 1 : vector<128x128xf32>, i32 -> vector<128x128xf32>
    %c10 = arith.constant 10 : index
    %c0_49 = arith.constant 0 : index
    %c0_50 = arith.constant 0 : index
    %68 = vector.load %arg4[%c10, %c0_49, %c0_50] : memref<45x128x128xf32, #tpu.memory_space<vmem>>, vector<1x128x128xf32>
    %69 = vector.shape_cast %68 : vector<1x128x128xf32> to vector<128x128xf32>
    %cst_51 = arith.constant dense<0.000000e+00> : vector<128x128xf32>
    %70 = tpu.matmul %69, %67, %cst_51 {dimension_numbers = #tpu.dot_dimension_numbers<[1], [0], [0], [1], [0, 0, 1, 1], [], []>} : vector<128x128xf32>, vector<128x128xf32>, vector<128x128xf32> -> vector<128x128xf32>
    %c8_i32_52 = arith.constant 8 : i32
    %71 = tpu.dynamic_rotate %66 by %c8_i32_52 dim 1 : vector<128x128xf32>, i32 -> vector<128x128xf32>
    %c11 = arith.constant 11 : index
    %c0_53 = arith.constant 0 : index
    %c0_54 = arith.constant 0 : index
    %72 = vector.load %arg4[%c11, %c0_53, %c0_54] : memref<45x128x128xf32, #tpu.memory_space<vmem>>, vector<1x128x128xf32>
    %73 = vector.shape_cast %72 : vector<1x128x128xf32> to vector<128x128xf32>
    %cst_55 = arith.constant dense<0.000000e+00> : vector<128x128xf32>
    %74 = tpu.matmul %73, %71, %cst_55 {dimension_numbers = #tpu.dot_dimension_numbers<[1], [0], [0], [1], [0, 0, 1, 1], [], []>} : vector<128x128xf32>, vector<128x128xf32>, vector<128x128xf32> -> vector<128x128xf32>
    %75 = arith.addf %70, %74 : vector<128x128xf32>
    %c12 = arith.constant 12 : index
    %c0_56 = arith.constant 0 : index
    %c0_57 = arith.constant 0 : index
    %76 = vector.load %arg4[%c12, %c0_56, %c0_57] : memref<45x128x128xf32, #tpu.memory_space<vmem>>, vector<1x128x128xf32>
    %77 = vector.shape_cast %76 : vector<1x128x128xf32> to vector<128x128xf32>
    %cst_58 = arith.constant dense<0.000000e+00> : vector<128x128xf32>
    %78 = tpu.matmul %77, %66, %cst_58 {dimension_numbers = #tpu.dot_dimension_numbers<[1], [0], [0], [1], [0, 0, 1, 1], [], []>} : vector<128x128xf32>, vector<128x128xf32>, vector<128x128xf32> -> vector<128x128xf32>
    %79 = arith.addf %75, %78 : vector<128x128xf32>
    %c120_i32_59 = arith.constant 120 : i32
    %80 = tpu.dynamic_rotate %66 by %c120_i32_59 dim 1 : vector<128x128xf32>, i32 -> vector<128x128xf32>
    %c13 = arith.constant 13 : index
    %c0_60 = arith.constant 0 : index
    %c0_61 = arith.constant 0 : index
    %81 = vector.load %arg4[%c13, %c0_60, %c0_61] : memref<45x128x128xf32, #tpu.memory_space<vmem>>, vector<1x128x128xf32>
    %82 = vector.shape_cast %81 : vector<1x128x128xf32> to vector<128x128xf32>
    %cst_62 = arith.constant dense<0.000000e+00> : vector<128x128xf32>
    %83 = tpu.matmul %82, %80, %cst_62 {dimension_numbers = #tpu.dot_dimension_numbers<[1], [0], [0], [1], [0, 0, 1, 1], [], []>} : vector<128x128xf32>, vector<128x128xf32>, vector<128x128xf32> -> vector<128x128xf32>
    %84 = arith.addf %79, %83 : vector<128x128xf32>
    %c112_i32_63 = arith.constant 112 : i32
    %85 = tpu.dynamic_rotate %66 by %c112_i32_63 dim 1 : vector<128x128xf32>, i32 -> vector<128x128xf32>
    %c14 = arith.constant 14 : index
    %c0_64 = arith.constant 0 : index
    %c0_65 = arith.constant 0 : index
    %86 = vector.load %arg4[%c14, %c0_64, %c0_65] : memref<45x128x128xf32, #tpu.memory_space<vmem>>, vector<1x128x128xf32>
    %87 = vector.shape_cast %86 : vector<1x128x128xf32> to vector<128x128xf32>
    %cst_66 = arith.constant dense<0.000000e+00> : vector<128x128xf32>
    %88 = tpu.matmul %87, %85, %cst_66 {dimension_numbers = #tpu.dot_dimension_numbers<[1], [0], [0], [1], [0, 0, 1, 1], [], []>} : vector<128x128xf32>, vector<128x128xf32>, vector<128x128xf32> -> vector<128x128xf32>
    %89 = arith.addf %84, %88 : vector<128x128xf32>
    %c2_67 = arith.constant 2 : index
    %c0_68 = arith.constant 0 : index
    %c0_69 = arith.constant 0 : index
    %90 = vector.load %arg5[%c2_67, %c0_68, %c0_69] : memref<9x128x1xf32, #tpu.memory_space<vmem>>, vector<1x128x1xf32>
    %91 = vector.shape_cast %90 : vector<1x128x1xf32> to vector<128x1xf32>
    %92 = vector.broadcast %91 : vector<128x1xf32> to vector<128x128xf32>
    %93 = arith.addf %89, %92 : vector<128x128xf32>
    %cst_70 = arith.constant 0.000000e+00 : f32
    %94 = vector.broadcast %cst_70 : f32 to vector<128x128xf32>
    %95 = arith.maximumf %93, %94 : vector<128x128xf32>
    %c16_i32_71 = arith.constant 16 : i32
    %96 = tpu.dynamic_rotate %95 by %c16_i32_71 dim 1 : vector<128x128xf32>, i32 -> vector<128x128xf32>
    %c15 = arith.constant 15 : index
    %c0_72 = arith.constant 0 : index
    %c0_73 = arith.constant 0 : index
    %97 = vector.load %arg4[%c15, %c0_72, %c0_73] : memref<45x128x128xf32, #tpu.memory_space<vmem>>, vector<1x128x128xf32>
    %98 = vector.shape_cast %97 : vector<1x128x128xf32> to vector<128x128xf32>
    %cst_74 = arith.constant dense<0.000000e+00> : vector<128x128xf32>
    %99 = tpu.matmul %98, %96, %cst_74 {dimension_numbers = #tpu.dot_dimension_numbers<[1], [0], [0], [1], [0, 0, 1, 1], [], []>} : vector<128x128xf32>, vector<128x128xf32>, vector<128x128xf32> -> vector<128x128xf32>
    %c8_i32_75 = arith.constant 8 : i32
    %100 = tpu.dynamic_rotate %95 by %c8_i32_75 dim 1 : vector<128x128xf32>, i32 -> vector<128x128xf32>
    %c16 = arith.constant 16 : index
    %c0_76 = arith.constant 0 : index
    %c0_77 = arith.constant 0 : index
    %101 = vector.load %arg4[%c16, %c0_76, %c0_77] : memref<45x128x128xf32, #tpu.memory_space<vmem>>, vector<1x128x128xf32>
    %102 = vector.shape_cast %101 : vector<1x128x128xf32> to vector<128x128xf32>
    %cst_78 = arith.constant dense<0.000000e+00> : vector<128x128xf32>
    %103 = tpu.matmul %102, %100, %cst_78 {dimension_numbers = #tpu.dot_dimension_numbers<[1], [0], [0], [1], [0, 0, 1, 1], [], []>} : vector<128x128xf32>, vector<128x128xf32>, vector<128x128xf32> -> vector<128x128xf32>
    %104 = arith.addf %99, %103 : vector<128x128xf32>
    %c17 = arith.constant 17 : index
    %c0_79 = arith.constant 0 : index
    %c0_80 = arith.constant 0 : index
    %105 = vector.load %arg4[%c17, %c0_79, %c0_80] : memref<45x128x128xf32, #tpu.memory_space<vmem>>, vector<1x128x128xf32>
    %106 = vector.shape_cast %105 : vector<1x128x128xf32> to vector<128x128xf32>
    %cst_81 = arith.constant dense<0.000000e+00> : vector<128x128xf32>
    %107 = tpu.matmul %106, %95, %cst_81 {dimension_numbers = #tpu.dot_dimension_numbers<[1], [0], [0], [1], [0, 0, 1, 1], [], []>} : vector<128x128xf32>, vector<128x128xf32>, vector<128x128xf32> -> vector<128x128xf32>
    %108 = arith.addf %104, %107 : vector<128x128xf32>
    %c120_i32_82 = arith.constant 120 : i32
    %109 = tpu.dynamic_rotate %95 by %c120_i32_82 dim 1 : vector<128x128xf32>, i32 -> vector<128x128xf32>
    %c18 = arith.constant 18 : index
    %c0_83 = arith.constant 0 : index
    %c0_84 = arith.constant 0 : index
    %110 = vector.load %arg4[%c18, %c0_83, %c0_84] : memref<45x128x128xf32, #tpu.memory_space<vmem>>, vector<1x128x128xf32>
    %111 = vector.shape_cast %110 : vector<1x128x128xf32> to vector<128x128xf32>
    %cst_85 = arith.constant dense<0.000000e+00> : vector<128x128xf32>
    %112 = tpu.matmul %111, %109, %cst_85 {dimension_numbers = #tpu.dot_dimension_numbers<[1], [0], [0], [1], [0, 0, 1, 1], [], []>} : vector<128x128xf32>, vector<128x128xf32>, vector<128x128xf32> -> vector<128x128xf32>
    %113 = arith.addf %108, %112 : vector<128x128xf32>
    %c112_i32_86 = arith.constant 112 : i32
    %114 = tpu.dynamic_rotate %95 by %c112_i32_86 dim 1 : vector<128x128xf32>, i32 -> vector<128x128xf32>
    %c19 = arith.constant 19 : index
    %c0_87 = arith.constant 0 : index
    %c0_88 = arith.constant 0 : index
    %115 = vector.load %arg4[%c19, %c0_87, %c0_88] : memref<45x128x128xf32, #tpu.memory_space<vmem>>, vector<1x128x128xf32>
    %116 = vector.shape_cast %115 : vector<1x128x128xf32> to vector<128x128xf32>
    %cst_89 = arith.constant dense<0.000000e+00> : vector<128x128xf32>
    %117 = tpu.matmul %116, %114, %cst_89 {dimension_numbers = #tpu.dot_dimension_numbers<[1], [0], [0], [1], [0, 0, 1, 1], [], []>} : vector<128x128xf32>, vector<128x128xf32>, vector<128x128xf32> -> vector<128x128xf32>
    %118 = arith.addf %113, %117 : vector<128x128xf32>
    %c3_90 = arith.constant 3 : index
    %c0_91 = arith.constant 0 : index
    %c0_92 = arith.constant 0 : index
    %119 = vector.load %arg5[%c3_90, %c0_91, %c0_92] : memref<9x128x1xf32, #tpu.memory_space<vmem>>, vector<1x128x1xf32>
    %120 = vector.shape_cast %119 : vector<1x128x1xf32> to vector<128x1xf32>
    %121 = vector.broadcast %120 : vector<128x1xf32> to vector<128x128xf32>
    %122 = arith.addf %118, %121 : vector<128x128xf32>
    %cst_93 = arith.constant 0.000000e+00 : f32
    %123 = vector.broadcast %cst_93 : f32 to vector<128x128xf32>
    %124 = arith.maximumf %122, %123 : vector<128x128xf32>
    %c16_i32_94 = arith.constant 16 : i32
    %125 = tpu.dynamic_rotate %124 by %c16_i32_94 dim 1 : vector<128x128xf32>, i32 -> vector<128x128xf32>
    %c20 = arith.constant 20 : index
    %c0_95 = arith.constant 0 : index
    %c0_96 = arith.constant 0 : index
    %126 = vector.load %arg4[%c20, %c0_95, %c0_96] : memref<45x128x128xf32, #tpu.memory_space<vmem>>, vector<1x128x128xf32>
    %127 = vector.shape_cast %126 : vector<1x128x128xf32> to vector<128x128xf32>
    %cst_97 = arith.constant dense<0.000000e+00> : vector<128x128xf32>
    %128 = tpu.matmul %127, %125, %cst_97 {dimension_numbers = #tpu.dot_dimension_numbers<[1], [0], [0], [1], [0, 0, 1, 1], [], []>} : vector<128x128xf32>, vector<128x128xf32>, vector<128x128xf32> -> vector<128x128xf32>
    %c8_i32_98 = arith.constant 8 : i32
    %129 = tpu.dynamic_rotate %124 by %c8_i32_98 dim 1 : vector<128x128xf32>, i32 -> vector<128x128xf32>
    %c21 = arith.constant 21 : index
    %c0_99 = arith.constant 0 : index
    %c0_100 = arith.constant 0 : index
    %130 = vector.load %arg4[%c21, %c0_99, %c0_100] : memref<45x128x128xf32, #tpu.memory_space<vmem>>, vector<1x128x128xf32>
    %131 = vector.shape_cast %130 : vector<1x128x128xf32> to vector<128x128xf32>
    %cst_101 = arith.constant dense<0.000000e+00> : vector<128x128xf32>
    %132 = tpu.matmul %131, %129, %cst_101 {dimension_numbers = #tpu.dot_dimension_numbers<[1], [0], [0], [1], [0, 0, 1, 1], [], []>} : vector<128x128xf32>, vector<128x128xf32>, vector<128x128xf32> -> vector<128x128xf32>
    %133 = arith.addf %128, %132 : vector<128x128xf32>
    %c22 = arith.constant 22 : index
    %c0_102 = arith.constant 0 : index
    %c0_103 = arith.constant 0 : index
    %134 = vector.load %arg4[%c22, %c0_102, %c0_103] : memref<45x128x128xf32, #tpu.memory_space<vmem>>, vector<1x128x128xf32>
    %135 = vector.shape_cast %134 : vector<1x128x128xf32> to vector<128x128xf32>
    %cst_104 = arith.constant dense<0.000000e+00> : vector<128x128xf32>
    %136 = tpu.matmul %135, %124, %cst_104 {dimension_numbers = #tpu.dot_dimension_numbers<[1], [0], [0], [1], [0, 0, 1, 1], [], []>} : vector<128x128xf32>, vector<128x128xf32>, vector<128x128xf32> -> vector<128x128xf32>
    %137 = arith.addf %133, %136 : vector<128x128xf32>
    %c120_i32_105 = arith.constant 120 : i32
    %138 = tpu.dynamic_rotate %124 by %c120_i32_105 dim 1 : vector<128x128xf32>, i32 -> vector<128x128xf32>
    %c23 = arith.constant 23 : index
    %c0_106 = arith.constant 0 : index
    %c0_107 = arith.constant 0 : index
    %139 = vector.load %arg4[%c23, %c0_106, %c0_107] : memref<45x128x128xf32, #tpu.memory_space<vmem>>, vector<1x128x128xf32>
    %140 = vector.shape_cast %139 : vector<1x128x128xf32> to vector<128x128xf32>
    %cst_108 = arith.constant dense<0.000000e+00> : vector<128x128xf32>
    %141 = tpu.matmul %140, %138, %cst_108 {dimension_numbers = #tpu.dot_dimension_numbers<[1], [0], [0], [1], [0, 0, 1, 1], [], []>} : vector<128x128xf32>, vector<128x128xf32>, vector<128x128xf32> -> vector<128x128xf32>
    %142 = arith.addf %137, %141 : vector<128x128xf32>
    %c112_i32_109 = arith.constant 112 : i32
    %143 = tpu.dynamic_rotate %124 by %c112_i32_109 dim 1 : vector<128x128xf32>, i32 -> vector<128x128xf32>
    %c24 = arith.constant 24 : index
    %c0_110 = arith.constant 0 : index
    %c0_111 = arith.constant 0 : index
    %144 = vector.load %arg4[%c24, %c0_110, %c0_111] : memref<45x128x128xf32, #tpu.memory_space<vmem>>, vector<1x128x128xf32>
    %145 = vector.shape_cast %144 : vector<1x128x128xf32> to vector<128x128xf32>
    %cst_112 = arith.constant dense<0.000000e+00> : vector<128x128xf32>
    %146 = tpu.matmul %145, %143, %cst_112 {dimension_numbers = #tpu.dot_dimension_numbers<[1], [0], [0], [1], [0, 0, 1, 1], [], []>} : vector<128x128xf32>, vector<128x128xf32>, vector<128x128xf32> -> vector<128x128xf32>
    %147 = arith.addf %142, %146 : vector<128x128xf32>
    %c4_113 = arith.constant 4 : index
    %c0_114 = arith.constant 0 : index
    %c0_115 = arith.constant 0 : index
    %148 = vector.load %arg5[%c4_113, %c0_114, %c0_115] : memref<9x128x1xf32, #tpu.memory_space<vmem>>, vector<1x128x1xf32>
    %149 = vector.shape_cast %148 : vector<1x128x1xf32> to vector<128x1xf32>
    %150 = vector.broadcast %149 : vector<128x1xf32> to vector<128x128xf32>
    %151 = arith.addf %147, %150 : vector<128x128xf32>
    %cst_116 = arith.constant 0.000000e+00 : f32
    %152 = vector.broadcast %cst_116 : f32 to vector<128x128xf32>
    %153 = arith.maximumf %151, %152 : vector<128x128xf32>
    %c16_i32_117 = arith.constant 16 : i32
    %154 = tpu.dynamic_rotate %153 by %c16_i32_117 dim 1 : vector<128x128xf32>, i32 -> vector<128x128xf32>
    %c25 = arith.constant 25 : index
    %c0_118 = arith.constant 0 : index
    %c0_119 = arith.constant 0 : index
    %155 = vector.load %arg4[%c25, %c0_118, %c0_119] : memref<45x128x128xf32, #tpu.memory_space<vmem>>, vector<1x128x128xf32>
    %156 = vector.shape_cast %155 : vector<1x128x128xf32> to vector<128x128xf32>
    %cst_120 = arith.constant dense<0.000000e+00> : vector<128x128xf32>
    %157 = tpu.matmul %156, %154, %cst_120 {dimension_numbers = #tpu.dot_dimension_numbers<[1], [0], [0], [1], [0, 0, 1, 1], [], []>} : vector<128x128xf32>, vector<128x128xf32>, vector<128x128xf32> -> vector<128x128xf32>
    %c8_i32_121 = arith.constant 8 : i32
    %158 = tpu.dynamic_rotate %153 by %c8_i32_121 dim 1 : vector<128x128xf32>, i32 -> vector<128x128xf32>
    %c26 = arith.constant 26 : index
    %c0_122 = arith.constant 0 : index
    %c0_123 = arith.constant 0 : index
    %159 = vector.load %arg4[%c26, %c0_122, %c0_123] : memref<45x128x128xf32, #tpu.memory_space<vmem>>, vector<1x128x128xf32>
    %160 = vector.shape_cast %159 : vector<1x128x128xf32> to vector<128x128xf32>
    %cst_124 = arith.constant dense<0.000000e+00> : vector<128x128xf32>
    %161 = tpu.matmul %160, %158, %cst_124 {dimension_numbers = #tpu.dot_dimension_numbers<[1], [0], [0], [1], [0, 0, 1, 1], [], []>} : vector<128x128xf32>, vector<128x128xf32>, vector<128x128xf32> -> vector<128x128xf32>
    %162 = arith.addf %157, %161 : vector<128x128xf32>
    %c27 = arith.constant 27 : index
    %c0_125 = arith.constant 0 : index
    %c0_126 = arith.constant 0 : index
    %163 = vector.load %arg4[%c27, %c0_125, %c0_126] : memref<45x128x128xf32, #tpu.memory_space<vmem>>, vector<1x128x128xf32>
    %164 = vector.shape_cast %163 : vector<1x128x128xf32> to vector<128x128xf32>
    %cst_127 = arith.constant dense<0.000000e+00> : vector<128x128xf32>
    %165 = tpu.matmul %164, %153, %cst_127 {dimension_numbers = #tpu.dot_dimension_numbers<[1], [0], [0], [1], [0, 0, 1, 1], [], []>} : vector<128x128xf32>, vector<128x128xf32>, vector<128x128xf32> -> vector<128x128xf32>
    %166 = arith.addf %162, %165 : vector<128x128xf32>
    %c120_i32_128 = arith.constant 120 : i32
    %167 = tpu.dynamic_rotate %153 by %c120_i32_128 dim 1 : vector<128x128xf32>, i32 -> vector<128x128xf32>
    %c28 = arith.constant 28 : index
    %c0_129 = arith.constant 0 : index
    %c0_130 = arith.constant 0 : index
    %168 = vector.load %arg4[%c28, %c0_129, %c0_130] : memref<45x128x128xf32, #tpu.memory_space<vmem>>, vector<1x128x128xf32>
    %169 = vector.shape_cast %168 : vector<1x128x128xf32> to vector<128x128xf32>
    %cst_131 = arith.constant dense<0.000000e+00> : vector<128x128xf32>
    %170 = tpu.matmul %169, %167, %cst_131 {dimension_numbers = #tpu.dot_dimension_numbers<[1], [0], [0], [1], [0, 0, 1, 1], [], []>} : vector<128x128xf32>, vector<128x128xf32>, vector<128x128xf32> -> vector<128x128xf32>
    %171 = arith.addf %166, %170 : vector<128x128xf32>
    %c112_i32_132 = arith.constant 112 : i32
    %172 = tpu.dynamic_rotate %153 by %c112_i32_132 dim 1 : vector<128x128xf32>, i32 -> vector<128x128xf32>
    %c29 = arith.constant 29 : index
    %c0_133 = arith.constant 0 : index
    %c0_134 = arith.constant 0 : index
    %173 = vector.load %arg4[%c29, %c0_133, %c0_134] : memref<45x128x128xf32, #tpu.memory_space<vmem>>, vector<1x128x128xf32>
    %174 = vector.shape_cast %173 : vector<1x128x128xf32> to vector<128x128xf32>
    %cst_135 = arith.constant dense<0.000000e+00> : vector<128x128xf32>
    %175 = tpu.matmul %174, %172, %cst_135 {dimension_numbers = #tpu.dot_dimension_numbers<[1], [0], [0], [1], [0, 0, 1, 1], [], []>} : vector<128x128xf32>, vector<128x128xf32>, vector<128x128xf32> -> vector<128x128xf32>
    %176 = arith.addf %171, %175 : vector<128x128xf32>
    %c5_136 = arith.constant 5 : index
    %c0_137 = arith.constant 0 : index
    %c0_138 = arith.constant 0 : index
    %177 = vector.load %arg5[%c5_136, %c0_137, %c0_138] : memref<9x128x1xf32, #tpu.memory_space<vmem>>, vector<1x128x1xf32>
    %178 = vector.shape_cast %177 : vector<1x128x1xf32> to vector<128x1xf32>
    %179 = vector.broadcast %178 : vector<128x1xf32> to vector<128x128xf32>
    %180 = arith.addf %176, %179 : vector<128x128xf32>
    %cst_139 = arith.constant 0.000000e+00 : f32
    %181 = vector.broadcast %cst_139 : f32 to vector<128x128xf32>
    %182 = arith.maximumf %180, %181 : vector<128x128xf32>
    %c16_i32_140 = arith.constant 16 : i32
    %183 = tpu.dynamic_rotate %182 by %c16_i32_140 dim 1 : vector<128x128xf32>, i32 -> vector<128x128xf32>
    %c30 = arith.constant 30 : index
    %c0_141 = arith.constant 0 : index
    %c0_142 = arith.constant 0 : index
    %184 = vector.load %arg4[%c30, %c0_141, %c0_142] : memref<45x128x128xf32, #tpu.memory_space<vmem>>, vector<1x128x128xf32>
    %185 = vector.shape_cast %184 : vector<1x128x128xf32> to vector<128x128xf32>
    %cst_143 = arith.constant dense<0.000000e+00> : vector<128x128xf32>
    %186 = tpu.matmul %185, %183, %cst_143 {dimension_numbers = #tpu.dot_dimension_numbers<[1], [0], [0], [1], [0, 0, 1, 1], [], []>} : vector<128x128xf32>, vector<128x128xf32>, vector<128x128xf32> -> vector<128x128xf32>
    %c8_i32_144 = arith.constant 8 : i32
    %187 = tpu.dynamic_rotate %182 by %c8_i32_144 dim 1 : vector<128x128xf32>, i32 -> vector<128x128xf32>
    %c31 = arith.constant 31 : index
    %c0_145 = arith.constant 0 : index
    %c0_146 = arith.constant 0 : index
    %188 = vector.load %arg4[%c31, %c0_145, %c0_146] : memref<45x128x128xf32, #tpu.memory_space<vmem>>, vector<1x128x128xf32>
    %189 = vector.shape_cast %188 : vector<1x128x128xf32> to vector<128x128xf32>
    %cst_147 = arith.constant dense<0.000000e+00> : vector<128x128xf32>
    %190 = tpu.matmul %189, %187, %cst_147 {dimension_numbers = #tpu.dot_dimension_numbers<[1], [0], [0], [1], [0, 0, 1, 1], [], []>} : vector<128x128xf32>, vector<128x128xf32>, vector<128x128xf32> -> vector<128x128xf32>
    %191 = arith.addf %186, %190 : vector<128x128xf32>
    %c32 = arith.constant 32 : index
    %c0_148 = arith.constant 0 : index
    %c0_149 = arith.constant 0 : index
    %192 = vector.load %arg4[%c32, %c0_148, %c0_149] : memref<45x128x128xf32, #tpu.memory_space<vmem>>, vector<1x128x128xf32>
    %193 = vector.shape_cast %192 : vector<1x128x128xf32> to vector<128x128xf32>
    %cst_150 = arith.constant dense<0.000000e+00> : vector<128x128xf32>
    %194 = tpu.matmul %193, %182, %cst_150 {dimension_numbers = #tpu.dot_dimension_numbers<[1], [0], [0], [1], [0, 0, 1, 1], [], []>} : vector<128x128xf32>, vector<128x128xf32>, vector<128x128xf32> -> vector<128x128xf32>
    %195 = arith.addf %191, %194 : vector<128x128xf32>
    %c120_i32_151 = arith.constant 120 : i32
    %196 = tpu.dynamic_rotate %182 by %c120_i32_151 dim 1 : vector<128x128xf32>, i32 -> vector<128x128xf32>
    %c33 = arith.constant 33 : index
    %c0_152 = arith.constant 0 : index
    %c0_153 = arith.constant 0 : index
    %197 = vector.load %arg4[%c33, %c0_152, %c0_153] : memref<45x128x128xf32, #tpu.memory_space<vmem>>, vector<1x128x128xf32>
    %198 = vector.shape_cast %197 : vector<1x128x128xf32> to vector<128x128xf32>
    %cst_154 = arith.constant dense<0.000000e+00> : vector<128x128xf32>
    %199 = tpu.matmul %198, %196, %cst_154 {dimension_numbers = #tpu.dot_dimension_numbers<[1], [0], [0], [1], [0, 0, 1, 1], [], []>} : vector<128x128xf32>, vector<128x128xf32>, vector<128x128xf32> -> vector<128x128xf32>
    %200 = arith.addf %195, %199 : vector<128x128xf32>
    %c112_i32_155 = arith.constant 112 : i32
    %201 = tpu.dynamic_rotate %182 by %c112_i32_155 dim 1 : vector<128x128xf32>, i32 -> vector<128x128xf32>
    %c34 = arith.constant 34 : index
    %c0_156 = arith.constant 0 : index
    %c0_157 = arith.constant 0 : index
    %202 = vector.load %arg4[%c34, %c0_156, %c0_157] : memref<45x128x128xf32, #tpu.memory_space<vmem>>, vector<1x128x128xf32>
    %203 = vector.shape_cast %202 : vector<1x128x128xf32> to vector<128x128xf32>
    %cst_158 = arith.constant dense<0.000000e+00> : vector<128x128xf32>
    %204 = tpu.matmul %203, %201, %cst_158 {dimension_numbers = #tpu.dot_dimension_numbers<[1], [0], [0], [1], [0, 0, 1, 1], [], []>} : vector<128x128xf32>, vector<128x128xf32>, vector<128x128xf32> -> vector<128x128xf32>
    %205 = arith.addf %200, %204 : vector<128x128xf32>
    %c6_159 = arith.constant 6 : index
    %c0_160 = arith.constant 0 : index
    %c0_161 = arith.constant 0 : index
    %206 = vector.load %arg5[%c6_159, %c0_160, %c0_161] : memref<9x128x1xf32, #tpu.memory_space<vmem>>, vector<1x128x1xf32>
    %207 = vector.shape_cast %206 : vector<1x128x1xf32> to vector<128x1xf32>
    %208 = vector.broadcast %207 : vector<128x1xf32> to vector<128x128xf32>
    %209 = arith.addf %205, %208 : vector<128x128xf32>
    %cst_162 = arith.constant 0.000000e+00 : f32
    %210 = vector.broadcast %cst_162 : f32 to vector<128x128xf32>
    %211 = arith.maximumf %209, %210 : vector<128x128xf32>
    %c16_i32_163 = arith.constant 16 : i32
    %212 = tpu.dynamic_rotate %211 by %c16_i32_163 dim 1 : vector<128x128xf32>, i32 -> vector<128x128xf32>
    %c35 = arith.constant 35 : index
    %c0_164 = arith.constant 0 : index
    %c0_165 = arith.constant 0 : index
    %213 = vector.load %arg4[%c35, %c0_164, %c0_165] : memref<45x128x128xf32, #tpu.memory_space<vmem>>, vector<1x128x128xf32>
    %214 = vector.shape_cast %213 : vector<1x128x128xf32> to vector<128x128xf32>
    %cst_166 = arith.constant dense<0.000000e+00> : vector<128x128xf32>
    %215 = tpu.matmul %214, %212, %cst_166 {dimension_numbers = #tpu.dot_dimension_numbers<[1], [0], [0], [1], [0, 0, 1, 1], [], []>} : vector<128x128xf32>, vector<128x128xf32>, vector<128x128xf32> -> vector<128x128xf32>
    %c8_i32_167 = arith.constant 8 : i32
    %216 = tpu.dynamic_rotate %211 by %c8_i32_167 dim 1 : vector<128x128xf32>, i32 -> vector<128x128xf32>
    %c36 = arith.constant 36 : index
    %c0_168 = arith.constant 0 : index
    %c0_169 = arith.constant 0 : index
    %217 = vector.load %arg4[%c36, %c0_168, %c0_169] : memref<45x128x128xf32, #tpu.memory_space<vmem>>, vector<1x128x128xf32>
    %218 = vector.shape_cast %217 : vector<1x128x128xf32> to vector<128x128xf32>
    %cst_170 = arith.constant dense<0.000000e+00> : vector<128x128xf32>
    %219 = tpu.matmul %218, %216, %cst_170 {dimension_numbers = #tpu.dot_dimension_numbers<[1], [0], [0], [1], [0, 0, 1, 1], [], []>} : vector<128x128xf32>, vector<128x128xf32>, vector<128x128xf32> -> vector<128x128xf32>
    %220 = arith.addf %215, %219 : vector<128x128xf32>
    %c37 = arith.constant 37 : index
    %c0_171 = arith.constant 0 : index
    %c0_172 = arith.constant 0 : index
    %221 = vector.load %arg4[%c37, %c0_171, %c0_172] : memref<45x128x128xf32, #tpu.memory_space<vmem>>, vector<1x128x128xf32>
    %222 = vector.shape_cast %221 : vector<1x128x128xf32> to vector<128x128xf32>
    %cst_173 = arith.constant dense<0.000000e+00> : vector<128x128xf32>
    %223 = tpu.matmul %222, %211, %cst_173 {dimension_numbers = #tpu.dot_dimension_numbers<[1], [0], [0], [1], [0, 0, 1, 1], [], []>} : vector<128x128xf32>, vector<128x128xf32>, vector<128x128xf32> -> vector<128x128xf32>
    %224 = arith.addf %220, %223 : vector<128x128xf32>
    %c120_i32_174 = arith.constant 120 : i32
    %225 = tpu.dynamic_rotate %211 by %c120_i32_174 dim 1 : vector<128x128xf32>, i32 -> vector<128x128xf32>
    %c38 = arith.constant 38 : index
    %c0_175 = arith.constant 0 : index
    %c0_176 = arith.constant 0 : index
    %226 = vector.load %arg4[%c38, %c0_175, %c0_176] : memref<45x128x128xf32, #tpu.memory_space<vmem>>, vector<1x128x128xf32>
    %227 = vector.shape_cast %226 : vector<1x128x128xf32> to vector<128x128xf32>
    %cst_177 = arith.constant dense<0.000000e+00> : vector<128x128xf32>
    %228 = tpu.matmul %227, %225, %cst_177 {dimension_numbers = #tpu.dot_dimension_numbers<[1], [0], [0], [1], [0, 0, 1, 1], [], []>} : vector<128x128xf32>, vector<128x128xf32>, vector<128x128xf32> -> vector<128x128xf32>
    %229 = arith.addf %224, %228 : vector<128x128xf32>
    %c112_i32_178 = arith.constant 112 : i32
    %230 = tpu.dynamic_rotate %211 by %c112_i32_178 dim 1 : vector<128x128xf32>, i32 -> vector<128x128xf32>
    %c39 = arith.constant 39 : index
    %c0_179 = arith.constant 0 : index
    %c0_180 = arith.constant 0 : index
    %231 = vector.load %arg4[%c39, %c0_179, %c0_180] : memref<45x128x128xf32, #tpu.memory_space<vmem>>, vector<1x128x128xf32>
    %232 = vector.shape_cast %231 : vector<1x128x128xf32> to vector<128x128xf32>
    %cst_181 = arith.constant dense<0.000000e+00> : vector<128x128xf32>
    %233 = tpu.matmul %232, %230, %cst_181 {dimension_numbers = #tpu.dot_dimension_numbers<[1], [0], [0], [1], [0, 0, 1, 1], [], []>} : vector<128x128xf32>, vector<128x128xf32>, vector<128x128xf32> -> vector<128x128xf32>
    %234 = arith.addf %229, %233 : vector<128x128xf32>
    %c7_182 = arith.constant 7 : index
    %c0_183 = arith.constant 0 : index
    %c0_184 = arith.constant 0 : index
    %235 = vector.load %arg5[%c7_182, %c0_183, %c0_184] : memref<9x128x1xf32, #tpu.memory_space<vmem>>, vector<1x128x1xf32>
    %236 = vector.shape_cast %235 : vector<1x128x1xf32> to vector<128x1xf32>
    %237 = vector.broadcast %236 : vector<128x1xf32> to vector<128x128xf32>
    %238 = arith.addf %234, %237 : vector<128x128xf32>
    %cst_185 = arith.constant 0.000000e+00 : f32
    %239 = vector.broadcast %cst_185 : f32 to vector<128x128xf32>
    %240 = arith.maximumf %238, %239 : vector<128x128xf32>
    %c16_i32_186 = arith.constant 16 : i32
    %241 = tpu.dynamic_rotate %240 by %c16_i32_186 dim 1 : vector<128x128xf32>, i32 -> vector<128x128xf32>
    %c40 = arith.constant 40 : index
    %c0_187 = arith.constant 0 : index
    %c0_188 = arith.constant 0 : index
    %242 = vector.load %arg4[%c40, %c0_187, %c0_188] : memref<45x128x128xf32, #tpu.memory_space<vmem>>, vector<1x128x128xf32>
    %243 = vector.shape_cast %242 : vector<1x128x128xf32> to vector<128x128xf32>
    %cst_189 = arith.constant dense<0.000000e+00> : vector<128x128xf32>
    %244 = tpu.matmul %243, %241, %cst_189 {dimension_numbers = #tpu.dot_dimension_numbers<[1], [0], [0], [1], [0, 0, 1, 1], [], []>} : vector<128x128xf32>, vector<128x128xf32>, vector<128x128xf32> -> vector<128x128xf32>
    %c8_i32_190 = arith.constant 8 : i32
    %245 = tpu.dynamic_rotate %240 by %c8_i32_190 dim 1 : vector<128x128xf32>, i32 -> vector<128x128xf32>
    %c41 = arith.constant 41 : index
    %c0_191 = arith.constant 0 : index
    %c0_192 = arith.constant 0 : index
    %246 = vector.load %arg4[%c41, %c0_191, %c0_192] : memref<45x128x128xf32, #tpu.memory_space<vmem>>, vector<1x128x128xf32>
    %247 = vector.shape_cast %246 : vector<1x128x128xf32> to vector<128x128xf32>
    %cst_193 = arith.constant dense<0.000000e+00> : vector<128x128xf32>
    %248 = tpu.matmul %247, %245, %cst_193 {dimension_numbers = #tpu.dot_dimension_numbers<[1], [0], [0], [1], [0, 0, 1, 1], [], []>} : vector<128x128xf32>, vector<128x128xf32>, vector<128x128xf32> -> vector<128x128xf32>
    %249 = arith.addf %244, %248 : vector<128x128xf32>
    %c42 = arith.constant 42 : index
    %c0_194 = arith.constant 0 : index
    %c0_195 = arith.constant 0 : index
    %250 = vector.load %arg4[%c42, %c0_194, %c0_195] : memref<45x128x128xf32, #tpu.memory_space<vmem>>, vector<1x128x128xf32>
    %251 = vector.shape_cast %250 : vector<1x128x128xf32> to vector<128x128xf32>
    %cst_196 = arith.constant dense<0.000000e+00> : vector<128x128xf32>
    %252 = tpu.matmul %251, %240, %cst_196 {dimension_numbers = #tpu.dot_dimension_numbers<[1], [0], [0], [1], [0, 0, 1, 1], [], []>} : vector<128x128xf32>, vector<128x128xf32>, vector<128x128xf32> -> vector<128x128xf32>
    %253 = arith.addf %249, %252 : vector<128x128xf32>
    %c120_i32_197 = arith.constant 120 : i32
    %254 = tpu.dynamic_rotate %240 by %c120_i32_197 dim 1 : vector<128x128xf32>, i32 -> vector<128x128xf32>
    %c43 = arith.constant 43 : index
    %c0_198 = arith.constant 0 : index
    %c0_199 = arith.constant 0 : index
    %255 = vector.load %arg4[%c43, %c0_198, %c0_199] : memref<45x128x128xf32, #tpu.memory_space<vmem>>, vector<1x128x128xf32>
    %256 = vector.shape_cast %255 : vector<1x128x128xf32> to vector<128x128xf32>
    %cst_200 = arith.constant dense<0.000000e+00> : vector<128x128xf32>
    %257 = tpu.matmul %256, %254, %cst_200 {dimension_numbers = #tpu.dot_dimension_numbers<[1], [0], [0], [1], [0, 0, 1, 1], [], []>} : vector<128x128xf32>, vector<128x128xf32>, vector<128x128xf32> -> vector<128x128xf32>
    %258 = arith.addf %253, %257 : vector<128x128xf32>
    %c112_i32_201 = arith.constant 112 : i32
    %259 = tpu.dynamic_rotate %240 by %c112_i32_201 dim 1 : vector<128x128xf32>, i32 -> vector<128x128xf32>
    %c44 = arith.constant 44 : index
    %c0_202 = arith.constant 0 : index
    %c0_203 = arith.constant 0 : index
    %260 = vector.load %arg4[%c44, %c0_202, %c0_203] : memref<45x128x128xf32, #tpu.memory_space<vmem>>, vector<1x128x128xf32>
    %261 = vector.shape_cast %260 : vector<1x128x128xf32> to vector<128x128xf32>
    %cst_204 = arith.constant dense<0.000000e+00> : vector<128x128xf32>
    %262 = tpu.matmul %261, %259, %cst_204 {dimension_numbers = #tpu.dot_dimension_numbers<[1], [0], [0], [1], [0, 0, 1, 1], [], []>} : vector<128x128xf32>, vector<128x128xf32>, vector<128x128xf32> -> vector<128x128xf32>
    %263 = arith.addf %258, %262 : vector<128x128xf32>
    %c8_205 = arith.constant 8 : index
    %c0_206 = arith.constant 0 : index
    %c0_207 = arith.constant 0 : index
    %264 = vector.load %arg5[%c8_205, %c0_206, %c0_207] : memref<9x128x1xf32, #tpu.memory_space<vmem>>, vector<1x128x1xf32>
    %265 = vector.shape_cast %264 : vector<1x128x1xf32> to vector<128x1xf32>
    %266 = vector.broadcast %265 : vector<128x1xf32> to vector<128x128xf32>
    %267 = arith.addf %263, %266 : vector<128x128xf32>
    %cst_208 = arith.constant 0.000000e+00 : f32
    %268 = vector.broadcast %cst_208 : f32 to vector<128x128xf32>
    %269 = arith.maximumf %267, %268 : vector<128x128xf32>
    %c0_209 = arith.constant 0 : index
    %c0_210 = arith.constant 0 : index
    %270 = vector.load %arg6[%c0_209, %c0_210] : memref<128x128xf32, #tpu.memory_space<vmem>>, vector<128x128xf32>
    %cst_211 = arith.constant dense<0.000000e+00> : vector<128x128xf32>
    %271 = tpu.matmul %270, %269, %cst_211 {dimension_numbers = #tpu.dot_dimension_numbers<[1], [0], [0], [1], [0, 0, 1, 1], [], []>} : vector<128x128xf32>, vector<128x128xf32>, vector<128x128xf32> -> vector<128x128xf32>
    %c0_212 = arith.constant 0 : index
    %c0_213 = arith.constant 0 : index
    %272 = vector.load %arg7[%c0_212, %c0_213] : memref<128x1xf32, #tpu.memory_space<vmem>>, vector<128x1xf32>
    %273 = vector.broadcast %272 : vector<128x1xf32> to vector<128x128xf32>
    %274 = arith.addf %271, %273 : vector<128x128xf32>
    %cst_214 = arith.constant 0.000000e+00 : f32
    %275 = vector.broadcast %cst_214 : f32 to vector<128x128xf32>
    %276 = arith.maximumf %274, %275 : vector<128x128xf32>
    %c0_215 = arith.constant 0 : index
    %c0_216 = arith.constant 0 : index
    %277 = vector.load %arg8[%c0_215, %c0_216] : memref<32x128xf32, #tpu.memory_space<vmem>>, vector<32x128xf32>
    %cst_217 = arith.constant dense<0.000000e+00> : vector<32x128xf32>
    %278 = tpu.matmul %277, %276, %cst_217 {dimension_numbers = #tpu.dot_dimension_numbers<[1], [0], [0], [1], [0, 0, 1, 1], [], []>} : vector<32x128xf32>, vector<128x128xf32>, vector<32x128xf32> -> vector<32x128xf32>
    %c0_218 = arith.constant 0 : index
    %c0_219 = arith.constant 0 : index
    %279 = vector.load %arg9[%c0_218, %c0_219] : memref<32x1xf32, #tpu.memory_space<vmem>>, vector<32x1xf32>
    %280 = vector.broadcast %279 : vector<32x1xf32> to vector<32x128xf32>
    %281 = arith.addf %278, %280 : vector<32x128xf32>
    %c0_220 = arith.constant 0 : index
    %c0_221 = arith.constant 0 : index
    %c0_222 = arith.constant 0 : index
    %282 = vector.load %arg10[%c0_220, %c0_221, %c0_222] : memref<1x32x128xf32, #tpu.memory_space<vmem>>, vector<1x32x128xf32>
    %283 = vector.shape_cast %282 : vector<1x32x128xf32> to vector<32x128xf32>
    %284 = vector.shape_cast %281 : vector<32x128xf32> to vector<1x32x128xf32>
    tpu.vector_store %arg10[%c0_220, %c0_221, %c0_222], %284 {strides = array<i32>} : memref<1x32x128xf32, #tpu.memory_space<vmem>>, vector<1x32x128xf32>,
    return
  }
  func.func @transform_0(%arg0: i32) -> (i32, i32, i32) {
    %c0_i32 = arith.constant 0 : i32
    %c0_i32_0 = arith.constant 0 : i32
    %c0_i32_1 = arith.constant 0 : i32
    return %arg0, %c0_i32, %c0_i32_0 : i32, i32, i32
  }
  func.func @transform_1(%arg0: i32) -> (i32, i32) {
    %c0_i32 = arith.constant 0 : i32
    %c0_i32_0 = arith.constant 0 : i32
    %c0_i32_1 = arith.constant 0 : i32
    return %c0_i32, %c0_i32_0 : i32, i32
  }
  func.func @transform_2(%arg0: i32) -> (i32, i32) {
    %c0_i32 = arith.constant 0 : i32
    %c0_i32_0 = arith.constant 0 : i32
    %c0_i32_1 = arith.constant 0 : i32
    return %c0_i32, %c0_i32_0 : i32, i32
  }
  func.func @transform_3(%arg0: i32) -> (i32, i32, i32) {
    %c0_i32 = arith.constant 0 : i32
    %c0_i32_0 = arith.constant 0 : i32
    %c0_i32_1 = arith.constant 0 : i32
    %c0_i32_2 = arith.constant 0 : i32
    return %c0_i32, %c0_i32_0, %c0_i32_1 : i32, i32, i32
  }
  func.func @transform_4(%arg0: i32) -> (i32, i32, i32) {
    %c0_i32 = arith.constant 0 : i32
    %c0_i32_0 = arith.constant 0 : i32
    %c0_i32_1 = arith.constant 0 : i32
    %c0_i32_2 = arith.constant 0 : i32
    return %c0_i32, %c0_i32_0, %c0_i32_1 : i32, i32, i32
  }
  func.func @transform_5(%arg0: i32) -> (i32, i32) {
    %c0_i32 = arith.constant 0 : i32
    %c0_i32_0 = arith.constant 0 : i32
    %c0_i32_1 = arith.constant 0 : i32
    return %c0_i32, %c0_i32_0 : i32, i32
  }
  func.func @transform_6(%arg0: i32) -> (i32, i32) {
    %c0_i32 = arith.constant 0 : i32
    %c0_i32_0 = arith.constant 0 : i32
    %c0_i32_1 = arith.constant 0 : i32
    return %c0_i32, %c0_i32_0 : i32, i32
  }
  func.func @transform_7(%arg0: i32) -> (i32, i32) {
    %c0_i32 = arith.constant 0 : i32
    %c0_i32_0 = arith.constant 0 : i32
    %c0_i32_1 = arith.constant 0 : i32
    return %c0_i32, %c0_i32_0 : i32, i32
  }
  func.func @transform_8(%arg0: i32) -> (i32, i32) {
    %c0_i32 = arith.constant 0 : i32
    %c0_i32_0 = arith.constant 0 : i32
    %c0_i32_1 = arith.constant 0 : i32
    return %c0_i32, %c0_i32_0 : i32, i32
  }
  func.func @transform_9(%arg0: i32) -> (i32, i32, i32) {
    %c0_i32 = arith.constant 0 : i32
    %c0_i32_0 = arith.constant 0 : i32
    %c0_i32_1 = arith.constant 0 : i32
    return %arg0, %c0_i32, %c0_i32_0 : i32, i32, i32
  }
}

</mosaic_0001>

<bundles_post_ra>
// kernel: resnet1d_forward.1
= control target key start
LH: loop header
LB: loop body
LE: loop exit
PB: predicated region body
PF: predicated region fallthrough
CT: control target
= control target key end

     0   :  { %v15668_v0 = vmov 0   ;;  %s15670_s12 = smov 16   ;;  %s15671_s15 = smov 120   ;;  %s22781_s2 = inlined_call_operand.vmem [shape: f32[128,1], index: 2, kind: input, shape index: {}]   ;;  %s22782_s1 = inlined_call_operand.vmem [shape: f32[128,1], index: 1, kind: input, shape index: {}]   ;;  %s22783_s0 = inlined_call_operand.vmem [shape: f32[1,1,128], index: 0, kind: input, shape index: {}]   ;;  %s22784_s3 = inlined_call_operand.vmem [shape: f32[45,128,128], index: 3, kind: input, shape index: {}]   ;;  %s22785_s4 = inlined_call_operand.vmem [shape: f32[9,128,1], index: 4, kind: input, shape index: {}]   ;;  %s22786_s6 = inlined_call_operand.vmem [shape: f32[128,1], index: 6, kind: input, shape index: {}]   ;;  %s22787_s8 = inlined_call_operand.vmem [shape: f32[32,1], index: 8, kind: input, shape index: {}]   ;;  %s22788_s5 = inlined_call_operand.vmem [shape: f32[128,128], index: 5, kind: input, shape index: {}]   ;;  %s22789_s7 = inlined_call_operand.vmem [shape: f32[32,128], index: 7, kind: input, shape index: {}]   ;;  %s22790_s9 = inlined_call_operand.vmem [shape: f32[1,32,128], index: 9, kind: output, shape index: {}]  }
   0x1   :  { %15667 = vset.pattern.permute.xlu1 %v15668_v0  ;;  %15666 = vset.pattern.permute.xlu0 %v15668_v0  ;;  %v166_v1 = vld [vmem:[%s22781_s2 + $0x78] sm:$0xff]  ;;  %v47_v3 = vld [vmem:[%s22782_s1 + $0x70] sm:$0xff]  ;;  %v46_v4 = vld [vmem:[%s22782_s1 + $0x68] sm:$0xff]  ;;  %s15672_s16 = smov 112  }
   0x2   :  { %v48_v2 = vld [vmem:[%s22782_s1 + $0x78] sm:$0xff]  ;;  %244 = vperm.xlu1 %15667, %v166_v1   ;;  %v165_v5 = vld [vmem:[%s22781_s2 + $0x70] sm:$0xff]  ;;  %v45_v6 = vld [vmem:[%s22782_s1 + $0x60] sm:$0xff] }
   0x3   :  { %126 = vperm.xlu0 %15666, %v48_v2   ;;  %v164_v7 = vld [vmem:[%s22781_s2 + $0x68] sm:$0xff]  ;;  %v44_v8 = vld [vmem:[%s22782_s1 + $0x58] sm:$0xff]  ;;  %v163_v9 = vld [vmem:[%s22781_s2 + $0x60] sm:$0xff] }
   0x4   :  { %v43_v10 = vld [vmem:[%s22782_s1 + $0x50] sm:$0xff]  ;;  %v162_v11 = vld [vmem:[%s22781_s2 + $0x58] sm:$0xff]  ;;  %v42_v12 = vld [vmem:[%s22782_s1 + $0x48] sm:$0xff] }
   0x5   :  { %v161_v13 = vld [vmem:[%s22781_s2 + $0x50] sm:$0xff]  ;;  %v41_v14 = vld [vmem:[%s22782_s1 + $0x40] sm:$0xff]  ;;  %v160_v15 = vld [vmem:[%s22781_s2 + $0x48] sm:$0xff] }
   0x6   :  { %116 = vperm.xlu1 %15667, %v46_v4   ;;  %v40_v16 = vld [vmem:[%s22782_s1 + $0x38] sm:$0xff]  ;;  %v159_v17 = vld [vmem:[%s22781_s2 + $0x40] sm:$0xff]  ;;  %v39_v18 = vld [vmem:[%s22782_s1 + $0x30] sm:$0xff] }
   0x7   :  { %121 = vperm.xlu0 %15666, %v47_v3   ;;  %v158_v19 = vld [vmem:[%s22781_s2 + $0x38] sm:$0xff]  ;;  %v38_v20 = vld [vmem:[%s22782_s1 + $0x28] sm:$0xff]  ;;  %v157_v21 = vld [vmem:[%s22781_s2 + $0x30] sm:$0xff] }
   0x8   :  { %v37_v22 = vld [vmem:[%s22782_s1 + $0x20] sm:$0xff]  ;;  %v156_v23 = vld [vmem:[%s22781_s2 + $0x28] sm:$0xff]  ;;  %v36_v24 = vld [vmem:[%s22782_s1 + $0x18] sm:$0xff] }
   0x9   :  { %v155_v25 = vld [vmem:[%s22781_s2 + $0x20] sm:$0xff]  ;;  %v35_v26 = vld [vmem:[%s22782_s1 + $0x10] sm:$0xff]  ;;  %v154_v27 = vld [vmem:[%s22781_s2 + $0x18] sm:$0xff] }
   0xa   :  { %111 = vperm.xlu1 %15667, %v45_v6   ;;  %v34_v28 = vld [vmem:[%s22782_s1 + $0x8] sm:$0xff]  ;;  %v153_v29 = vld [vmem:[%s22781_s2 + $0x10] sm:$0xff]  ;;  %v33_v30 = vld [vmem:[%s22782_s1] sm:$0xff]  ;;  %s15669_s1 = smov 8  }
   0xb   :  { %239 = vperm.xlu0 %15666, %v165_v5   ;;  %v152_v31 = vld [vmem:[%s22781_s2 + $0x8] sm:$0xff]  ;;  %v151_v32 = vld [vmem:[%s22781_s2] sm:$0xff] }
   0xc   :  { %v15822_v33 = vld [vmem:[%s22783_s0] ss:$0 sm:$0xff] }
   0xe   :  { %106 = vperm.xlu1 %15667, %v44_v8  }
   0xf   :  { %234 = vperm.xlu0 %15666, %v164_v7  }
  0x12   :  { %101 = vperm.xlu1 %15667, %v43_v10  }
  0x13   :  { %229 = vperm.xlu0 %15666, %v163_v9  }
  0x16   :  { %96 = vperm.xlu1 %15667, %v42_v12  }
  0x17   :  { %224 = vperm.xlu0 %15666, %v162_v11  }
  0x1a   :  { %91 = vperm.xlu1 %15667, %v41_v14  }
  0x1b   :  { %219 = vperm.xlu0 %15666, %v161_v13  }
  0x1e   :  { %86 = vperm.xlu1 %15667, %v40_v16  }
  0x1f   :  { %214 = vperm.xlu0 %15666, %v160_v15  }
  0x22   :  { %81 = vperm.xlu1 %15667, %v39_v18  }
  0x23   :  { %209 = vperm.xlu0 %15666, %v159_v17  }
  0x26   :  { %76 = vperm.xlu1 %15667, %v38_v20  }
  0x27   :  { %204 = vperm.xlu0 %15666, %v158_v19  }
  0x2a   :  { %71 = vperm.xlu1 %15667, %v37_v22  }
  0x2b   :  { %199 = vperm.xlu0 %15666, %v157_v21  }
  0x2e   :  { %66 = vperm.xlu1 %15667, %v36_v24  }
  0x2f   :  { %194 = vperm.xlu0 %15666, %v156_v23  }
  0x32   :  { %61 = vperm.xlu1 %15667, %v35_v26  }
  0x33   :  { %189 = vperm.xlu0 %15666, %v155_v25   ;;  %v10691_v25 = vld [vmem:[%s22784_s3 + $0x80] sm:$0xff] }
  0x34   :  { %13047 = vmatprep.mubr.f32.mxu0 %v10691_v25  ;;  %v10695_v25 = vld [vmem:[%s22784_s3 + $0xa0] sm:$0xff] }
  0x36   :  { %56 = vperm.xlu1 %15667, %v34_v28  }
  0x37   :  { %184 = vperm.xlu0 %15666, %v154_v27  }
  0x3a   :  { %51 = vperm.xlu1 %15667, %v33_v30  }
  0x3b   :  { %179 = vperm.xlu0 %15666, %v153_v29  }
  0x3e   :  { %169 = vperm.xlu1 %15667, %v151_v32  }
  0x3f   :  { %174 = vperm.xlu0 %15666, %v152_v31  }
  0x7d   :  { %v245_v34 = vpop.permute.xlu1 %244 }
  0x7e   :  { %v127_v35 = vpop.permute.xlu0 %126 }
  0x7f   :  { %v150_v36 = vmul.f32 %v15822_v33, %v127_v35 }
  0x81   :  { %v15825_v37 = vadd.f32 %v245_v34, %v150_v36  ;;  %v117_v39 = vpop.permute.xlu1 %116 }
  0x82   :  { %v122_v38 = vpop.permute.xlu0 %121  ;;  %v148_v44 = vmul.f32 %v15822_v33, %v117_v39 }
  0x83   :  { %341 = vrot.lane.b32.xlu0 %v15825_v37, %s15669_s1  ;;  %v149_v40 = vmul.f32 %v15822_v33, %v122_v38 }
  0x85   :  { %v112_v42 = vpop.permute.xlu1 %111 }
  0x86   :  { %v240_v41 = vpop.permute.xlu0 %239  ;;  %v147_v48 = vmul.f32 %v15822_v33, %v112_v42 }
  0x87   :  { %v15830_v43 = vadd.f32 %v240_v41, %v149_v40 }
  0x89   :  { %339 = vrot.lane.b32.xlu1 %v15830_v43, %s15669_s1  ;;  %v107_v46 = vpop.permute.xlu1 %106 }
  0x8a   :  { %v235_v45 = vpop.permute.xlu0 %234  ;;  %v146_v52 = vmul.f32 %v15822_v33, %v107_v46 }
  0x8b   :  { %v15835_v47 = vadd.f32 %v235_v45, %v148_v44 }
  0x8d   :  { %337 = vrot.lane.b32.xlu0 %v15835_v47, %s15669_s1  ;;  %v102_v50 = vpop.permute.xlu1 %101 }
  0x8e   :  { %v230_v49 = vpop.permute.xlu0 %229  ;;  %v145_v56 = vmul.f32 %v15822_v33, %v102_v50 }
  0x8f   :  { %v15840_v51 = vadd.f32 %v230_v49, %v147_v48  ;;  %v1262_v49 = vld [vmem:[%s22785_s4 + $0x70] sm:$0xff] }
  0x91   :  { %335 = vrot.lane.b32.xlu1 %v15840_v51, %s15669_s1  ;;  %v97_v54 = vpop.permute.xlu1 %96 }
  0x92   :  { %v225_v53 = vpop.permute.xlu0 %224  ;;  %v144_v60 = vmul.f32 %v15822_v33, %v97_v54 }
  0x93   :  { %v15845_v55 = vadd.f32 %v225_v53, %v146_v52  ;;  %v1263_v52 = vld [vmem:[%s22785_s4 + $0x78] sm:$0xff]  ;;  %v1260_v53 = vld [vmem:[%s22785_s4 + $0x60] sm:$0xff] }
  0x95   :  { %333 = vrot.lane.b32.xlu0 %v15845_v55, %s15669_s1  ;;  %v92_v58 = vpop.permute.xlu1 %91 }
  0x96   :  { %v220_v57 = vpop.permute.xlu0 %219  ;;  %v143_v0 = vmul.f32 %v15822_v33, %v92_v58 }
  0x97   :  { %v15850_v59 = vadd.f32 %v220_v57, %v145_v56  ;;  %v1261_v56 = vld [vmem:[%s22785_s4 + $0x68] sm:$0xff]  ;;  %v1258_v57 = vld [vmem:[%s22785_s4 + $0x50] sm:$0xff] }
  0x99   :  { %331 = vrot.lane.b32.xlu1 %v15850_v59, %s15669_s1  ;;  %v87_v62 = vpop.permute.xlu1 %86 }
  0x9a   :  { %v215_v61 = vpop.permute.xlu0 %214  ;;  %v142_v4 = vmul.f32 %v15822_v33, %v87_v62 }
  0x9b   :  { %v15855_v63 = vadd.f32 %v215_v61, %v144_v60  ;;  %v1259_v60 = vld [vmem:[%s22785_s4 + $0x58] sm:$0xff]  ;;  %v1256_v61 = vld [vmem:[%s22785_s4 + $0x40] sm:$0xff] }
  0x9d   :  { %329 = vrot.lane.b32.xlu0 %v15855_v63, %s15669_s1  ;;  %v82_v2 = vpop.permute.xlu1 %81 }
  0x9e   :  { %v210_v1 = vpop.permute.xlu0 %209  ;;  %v141_v8 = vmul.f32 %v15822_v33, %v82_v2 }
  0x9f   :  { %v15860_v3 = vadd.f32 %v210_v1, %v143_v0  ;;  %v1257_v0 = vld [vmem:[%s22785_s4 + $0x48] sm:$0xff] }
  0xa1   :  { %327 = vrot.lane.b32.xlu1 %v15860_v3, %s15669_s1  ;;  %v77_v6 = vpop.permute.xlu1 %76 }
  0xa2   :  { %v205_v5 = vpop.permute.xlu0 %204  ;;  %v140_v12 = vmul.f32 %v15822_v33, %v77_v6 }
  0xa3   :  { %v15865_v7 = vadd.f32 %v205_v5, %v142_v4  ;;  %v1254_v4 = vld [vmem:[%s22785_s4 + $0x30] sm:$0xff]  ;;  %v1255_v5 = vld [vmem:[%s22785_s4 + $0x38] sm:$0xff] }
  0xa5   :  { %325 = vrot.lane.b32.xlu0 %v15865_v7, %s15669_s1  ;;  %v72_v10 = vpop.permute.xlu1 %71 }
  0xa6   :  { %v200_v9 = vpop.permute.xlu0 %199  ;;  %v139_v16 = vmul.f32 %v15822_v33, %v72_v10  ;;  %v1253_v10 = vld [vmem:[%s22785_s4 + $0x28] sm:$0xff] }
  0xa7   :  { %v15870_v11 = vadd.f32 %v200_v9, %v141_v8  ;;  %v1252_v9 = vld [vmem:[%s22785_s4 + $0x20] sm:$0xff] }
  0xa9   :  { %323 = vrot.lane.b32.xlu1 %v15870_v11, %s15669_s1  ;;  %v67_v14 = vpop.permute.xlu1 %66 }
  0xaa   :  { %v195_v13 = vpop.permute.xlu0 %194  ;;  %v138_v20 = vmul.f32 %v15822_v33, %v67_v14 }
  0xab   :  { %v15875_v15 = vadd.f32 %v195_v13, %v140_v12  ;;  %v10692_v12 = vld [vmem:[%s22784_s3 + $0x88] sm:$0xff]  ;;  %v10693_v13 = vld [vmem:[%s22784_s3 + $0x90] sm:$0xff] }
  0xad   :  { %321 = vrot.lane.b32.xlu0 %v15875_v15, %s15669_s1  ;;  %v62_v18 = vpop.permute.xlu1 %61 }
  0xae   :  { %v190_v17 = vpop.permute.xlu0 %189  ;;  %v137_v24 = vmul.f32 %v15822_v33, %v62_v18  ;;  %v1251_v18 = vld [vmem:[%s22785_s4 + $0x18] sm:$0xff] }
  0xaf   :  { %v15880_v19 = vadd.f32 %v190_v17, %v139_v16  ;;  %v1250_v17 = vld [vmem:[%s22785_s4 + $0x10] sm:$0xff] }
  0xb1   :  { %319 = vrot.lane.b32.xlu1 %v15880_v19, %s15669_s1  ;;  %v57_v22 = vpop.permute.xlu1 %56 }
  0xb2   :  { %v185_v21 = vpop.permute.xlu0 %184  ;;  %v136_v29 = vmul.f32 %v15822_v33, %v57_v22 }
  0xb3   :  { %v15885_v23 = vadd.f32 %v185_v21, %v138_v20  ;;  %v10694_v20 = vld [vmem:[%s22784_s3 + $0x98] sm:$0xff] }
  0xb5   :  { %317 = vrot.lane.b32.xlu0 %v15885_v23, %s15669_s1  ;;  %v52_v27 = vpop.permute.xlu1 %51 }
  0xb6   :  { %v180_v26 = vpop.permute.xlu0 %179  ;;  %v135_v34 = vmul.f32 %v15822_v33, %v52_v27  ;;  %v295_v33 = vld [vmem:[%s22784_s3] sm:$0xff] }
  0xb7   :  { %v15893_v28 = vadd.f32 %v180_v26, %v137_v24  ;;  %13103 = vmatprep.mubr.f32.mxu1 %v295_v33  ;;  %v1249_v24 = vld [vmem:[%s22785_s4 + $0x8] sm:$0xff] }
  0xb9   :  { %315 = vrot.lane.b32.xlu1 %v15893_v28, %s15669_s1  ;;  %v170_v32 = vpop.permute.xlu1 %169 }
  0xba   :  { %v175_v30 = vpop.permute.xlu0 %174  ;;  %v15905_v35 = vadd.f32 %v170_v32, %v135_v34  ;;  %v10698_v32 = vld [vmem:[%s22784_s3 + $0xb8] sm:$0xff] }
  0xbb   :  { %v15898_v31 = vadd.f32 %v175_v30, %v136_v29 }
  0xbd   :  { %293 = vrot.lane.b32.xlu1 %v15825_v37, %s15670_s12  ;;  %313 = vrot.lane.b32.xlu0 %v15898_v31, %s15669_s1 }
  0xc1   :  { %291 = vrot.lane.b32.xlu1 %v15830_v43, %s15670_s12  ;;  %311 = vrot.lane.b32.xlu0 %v15905_v35, %s15669_s1 }
  0xc5   :  { %287 = vrot.lane.b32.xlu1 %v15840_v51, %s15670_s12  ;;  %289 = vrot.lane.b32.xlu0 %v15835_v47, %s15670_s12 }
  0xc9   :  { %283 = vrot.lane.b32.xlu1 %v15850_v59, %s15670_s12  ;;  %285 = vrot.lane.b32.xlu0 %v15845_v55, %s15670_s12 }
  0xcd   :  { %279 = vrot.lane.b32.xlu1 %v15860_v3, %s15670_s12  ;;  %281 = vrot.lane.b32.xlu0 %v15855_v63, %s15670_s12 }
  0xd1   :  { %275 = vrot.lane.b32.xlu1 %v15870_v11, %s15670_s12  ;;  %277 = vrot.lane.b32.xlu0 %v15865_v7, %s15670_s12 }
  0xd5   :  { %271 = vrot.lane.b32.xlu1 %v15880_v19, %s15670_s12  ;;  %273 = vrot.lane.b32.xlu0 %v15875_v15, %s15670_s12 }
  0xd9   :  { %267 = vrot.lane.b32.xlu1 %v15893_v28, %s15670_s12  ;;  %269 = vrot.lane.b32.xlu0 %v15885_v23, %s15670_s12 }
  0xdd   :  { %263 = vrot.lane.b32.xlu1 %v15905_v35, %s15670_s12  ;;  %265 = vrot.lane.b32.xlu0 %v15898_v31, %s15670_s12 }
  0xe1   :  { %856 = vrot.lane.b32.xlu1 %v15830_v43, %s15671_s15  ;;  %858 = vrot.lane.b32.xlu0 %v15825_v37, %s15671_s15 }
  0xe5   :  { %854 = vrot.lane.b32.xlu1 %v15835_v47, %s15671_s15  ;;  %1068 = vrot.lane.b32.xlu0 %v15825_v37, %s15672_s16 }
  0xe9   :  { %852 = vrot.lane.b32.xlu1 %v15840_v51, %s15671_s15  ;;  %1066 = vrot.lane.b32.xlu0 %v15830_v43, %s15672_s16 }
  0xed   :  { %850 = vrot.lane.b32.xlu1 %v15845_v55, %s15671_s15  ;;  %1064 = vrot.lane.b32.xlu0 %v15835_v47, %s15672_s16 }
  0xf1   :  { %848 = vrot.lane.b32.xlu1 %v15850_v59, %s15671_s15  ;;  %1062 = vrot.lane.b32.xlu0 %v15840_v51, %s15672_s16 }
  0xf5   :  { %v342_v36 = vpop.permute.xlu0 %341  ;;  %846 = vrot.lane.b32.xlu1 %v15855_v63, %s15671_s15  ;;  %1060 = vrot.lane.b32.xlu0 %v15845_v55, %s15672_s16 }
  0xf6   :  { %13015 = vmatprep.subr.mxu0 %v342_v36 }
  0xf7   :  { %13016 = vmatpush3.msra.mxu0 %v342_v36 }
  0xf9   :  { %844 = vrot.lane.b32.xlu1 %v15860_v3, %s15671_s15  ;;  %1058 = vrot.lane.b32.xlu0 %v15850_v59, %s15672_s16 }
  0xfb   :  { %v340_v38 = vpop.permute.xlu1 %339 }
  0xfc   :  { %13017 = vmatprep.subr.mxu0 %v340_v38 }
  0xfd   :  { %13018 = vmatpush3.msra.mxu0 %v340_v38  ;;  %842 = vrot.lane.b32.xlu1 %v15865_v7, %s15671_s15  ;;  %v10701_v38 = vld [vmem:[%s22784_s3 + $0xd0] sm:$0xff] }
  0xfe   :  { %1056 = vrot.lane.b32.xlu0 %v15855_v63, %s15672_s16 }
  0xff   :  { %v338_v39 = vpop.permute.xlu0 %337 }
 0x100   :  { %13019 = vmatprep.subr.mxu0 %v338_v39 }
 0x101   :  { %13020 = vmatpush3.msra.mxu0 %v338_v39  ;;  %840 = vrot.lane.b32.xlu1 %v15870_v11, %s15671_s15 }
 0x102   :  { %1054 = vrot.lane.b32.xlu0 %v15860_v3, %s15672_s16 }
 0x103   :  { %v336_v40 = vpop.permute.xlu1 %335 }
 0x104   :  { %13021 = vmatprep.subr.mxu0 %v336_v40 }
 0x105   :  { %13022 = vmatpush3.msra.mxu0 %v336_v40  ;;  %838 = vrot.lane.b32.xlu1 %v15875_v15, %s15671_s15  ;;  %v10703_v40 = vld [vmem:[%s22784_s3 + $0xe0] sm:$0xff] }
 0x106   :  { %1052 = vrot.lane.b32.xlu0 %v15865_v7, %s15672_s16 }
 0x107   :  { %v334_v41 = vpop.permute.xlu0 %333 }
 0x108   :  { %13023 = vmatprep.subr.mxu0 %v334_v41 }
 0x109   :  { %13024 = vmatpush3.msra.mxu0 %v334_v41  ;;  %836 = vrot.lane.b32.xlu1 %v15880_v19, %s15671_s15 }
 0x10a   :  { %1050 = vrot.lane.b32.xlu0 %v15870_v11, %s15672_s16 }
 0x10b   :  { %v332_v42 = vpop.permute.xlu1 %331 }
 0x10c   :  { %13025 = vmatprep.subr.mxu0 %v332_v42 }
 0x10d   :  { %13026 = vmatpush3.msra.mxu0 %v332_v42  ;;  %834 = vrot.lane.b32.xlu1 %v15885_v23, %s15671_s15 }
 0x10e   :  { %1048 = vrot.lane.b32.xlu0 %v15875_v15, %s15672_s16 }
 0x10f   :  { %v330_v44 = vpop.permute.xlu0 %329 }
 0x110   :  { %13027 = vmatprep.subr.mxu0 %v330_v44 }
 0x111   :  { %13028 = vmatpush3.msra.mxu0 %v330_v44  ;;  %832 = vrot.lane.b32.xlu1 %v15893_v28, %s15671_s15 }
 0x112   :  { %1046 = vrot.lane.b32.xlu0 %v15880_v19, %s15672_s16 }
 0x113   :  { %v328_v45 = vpop.permute.xlu1 %327 }
 0x114   :  { %13029 = vmatprep.subr.mxu0 %v328_v45 }
 0x115   :  { %13030 = vmatpush3.msra.mxu0 %v328_v45  ;;  %830 = vrot.lane.b32.xlu1 %v15898_v31, %s15671_s15  ;;  %v10706_v45 = vld [vmem:[%s22784_s3 + $0xf8] sm:$0xff] }
 0x116   :  { %1044 = vrot.lane.b32.xlu0 %v15885_v23, %s15672_s16 }
 0x117   :  { %v326_v46 = vpop.permute.xlu0 %325 }
 0x118   :  { %13031 = vmatprep.subr.mxu0 %v326_v46 }
 0x119   :  { %13032 = vmatpush3.msra.mxu0 %v326_v46  ;;  %828 = vrot.lane.b32.xlu1 %v15905_v35, %s15671_s15 }
 0x11a   :  { %1042 = vrot.lane.b32.xlu0 %v15893_v28, %s15672_s16 }
 0x11b   :  { %v324_v48 = vpop.permute.xlu1 %323 }
 0x11c   :  { %13033 = vmatprep.subr.mxu0 %v324_v48 }
 0x11d   :  { %13034 = vmatpush3.msra.mxu0 %v324_v48  ;;  %1038 = vrot.lane.b32.xlu1 %v15905_v35, %s15672_s16 }
 0x11e   :  { %1040 = vrot.lane.b32.xlu0 %v15898_v31, %s15672_s16 }
 0x11f   :  { %v322_v50 = vpop.permute.xlu0 %321 }
 0x120   :  { %13035 = vmatprep.subr.mxu0 %v322_v50 }
 0x121   :  { %13036 = vmatpush3.msra.mxu0 %v322_v50  ;;  %1336 = vperm.xlu1 %15667, %v1262_v49   ;;  %v297_v49 = vld [vmem:[%s22784_s3 + $0x10] sm:$0xff] }
 0x122   :  { %1341 = vperm.xlu0 %15666, %v1263_v52  }
 0x123   :  { %v320_v54 = vpop.permute.xlu1 %319 }
 0x124   :  { %13037 = vmatprep.subr.mxu0 %v320_v54 }
 0x125   :  { %13038 = vmatpush3.msra.mxu0 %v320_v54  ;;  %1326 = vperm.xlu1 %15667, %v1260_v53   ;;  %v10709_v53 = vld [vmem:[%s22784_s3 + $0x110] sm:$0xff]  ;;  %v10710_v54 = vld [vmem:[%s22784_s3 + $0x118] sm:$0xff] }
 0x126   :  { %1331 = vperm.xlu0 %15666, %v1261_v56  }
 0x127   :  { %v318_v58 = vpop.permute.xlu0 %317 }
 0x128   :  { %13039 = vmatprep.subr.mxu0 %v318_v58 }
 0x129   :  { %13040 = vmatpush3.msra.mxu0 %v318_v58  ;;  %1316 = vperm.xlu1 %15667, %v1258_v57   ;;  %v300_v58 = vld [vmem:[%s22784_s3 + $0x28] sm:$0xff] }
 0x12a   :  { %1321 = vperm.xlu0 %15666, %v1259_v60   ;;  %v10711_v60 = vld [vmem:[%s22784_s3 + $0x120] sm:$0xff] }
 0x12b   :  { %v316_v62 = vpop.permute.xlu1 %315 }
 0x12c   :  { %13041 = vmatprep.subr.mxu0 %v316_v62 }
 0x12d   :  { %13042 = vmatpush3.msra.mxu0 %v316_v62  ;;  %1306 = vperm.xlu1 %15667, %v1256_v61   ;;  %v301_v61 = vld [vmem:[%s22784_s3 + $0x30] sm:$0xff]  ;;  %v10712_v62 = vld [vmem:[%s22784_s3 + $0x128] sm:$0xff] }
 0x12e   :  { %1311 = vperm.xlu0 %15666, %v1257_v0  }
 0x12f   :  { %v294_v1 = vpop.permute.xlu1 %293  ;;  %v314_v2 = vpop.permute.xlu0 %313 }
 0x130   :  { %13043 = vmatprep.subr.mxu0 %v314_v2  ;;  %13071 = vmatprep.subr.mxu1 %v294_v1 }
 0x131   :  { %13044 = vmatpush3.msra.mxu0 %v314_v2  ;;  %13072 = vmatpush3.msra.mxu1 %v294_v1  ;;  %v302_v2 = vld [vmem:[%s22784_s3 + $0x38] sm:$0xff] }
 0x132   :  { %1296 = vperm.xlu1 %15667, %v1254_v4   ;;  %1301 = vperm.xlu0 %15666, %v1255_v5   ;;  %v10713_v4 = vld [vmem:[%s22784_s3 + $0x130] sm:$0xff]  ;;  %v303_v5 = vld [vmem:[%s22784_s3 + $0x40] sm:$0xff] }
 0x133   :  { %v292_v6 = vpop.permute.xlu1 %291  ;;  %v312_v8 = vpop.permute.xlu0 %311 }
 0x134   :  { %13045 = vmatprep.subr.mxu0 %v312_v8  ;;  %13073 = vmatprep.subr.mxu1 %v292_v6 }
 0x135   :  { %13074 = vmatpush3.msra.mxu1 %v292_v6  ;;  %13046 = vmatpush3.msra.mxu0 %v312_v8  ;;  %v10714_v6 = vld [vmem:[%s22784_s3 + $0x138] sm:$0xff] }
 0x136   :  { %1286 = vperm.xlu1 %15667, %v1252_v9   ;;  %1291 = vperm.xlu0 %15666, %v1253_v10   ;;  %v304_v10 = vld [vmem:[%s22784_s3 + $0x48] sm:$0xff] }
 0x137   :  { %13048 = vmatmul.mubr.f32.vlgmr.msra.gmra.mxu0 %v10692_v12  ;;  %13127 = vmatprep.subr.mxu0 %v15825_v37  ;;  %v288_v14 = vpop.permute.xlu1 %287  ;;  %v290_v16 = vpop.permute.xlu0 %289  ;;  %v10715_v12 = vld [vmem:[%s22784_s3 + $0x140] sm:$0xff] }
 0x138   :  { %13128 = vmatpush3.msra.mxu0 %v15825_v37  ;;  %13075 = vmatprep.subr.mxu1 %v290_v16  ;;  %v1248_v37 = vld [vmem:[%s22785_s4] sm:$0xff] }
 0x139   :  { %13129 = vmatprep.subr.mxu0 %v15830_v43  ;;  %13050 = vmatprep.mubr.f32.mxu0 %v10693_v13  ;;  %v305_v13 = vld [vmem:[%s22784_s3 + $0x50] sm:$0xff] }
 0x13a   :  { %1276 = vperm.xlu1 %15667, %v1250_v17   ;;  %1281 = vperm.xlu0 %15666, %v1251_v18   ;;  %v306_v17 = vld [vmem:[%s22784_s3 + $0x58] sm:$0xff] }
 0x13b   :  { %13076 = vmatpush3.msra.mxu1 %v290_v16  ;;  %13130 = vmatpush3.msra.mxu0 %v15830_v43  ;;  %v284_v21 = vpop.permute.xlu1 %283  ;;  %v286_v22 = vpop.permute.xlu0 %285  ;;  %v10696_v43 = vld [vmem:[%s22784_s3 + $0xa8] sm:$0xff] }
 0x13c   :  { %13051 = vmatmul.mubr.f32.gmra.mxu0 %v10694_v20  ;;  %13077 = vmatprep.subr.mxu1 %v288_v14  ;;  %v10717_v20 = vld [vmem:[%s22784_s3 + $0x150] sm:$0xff] }
 0x13d   :  { %13131 = vmatprep.subr.mxu0 %v15835_v47  ;;  %13078 = vmatpush3.msra.mxu1 %v288_v14  ;;  %v10716_v14 = vld [vmem:[%s22784_s3 + $0x148] sm:$0xff] }
 0x13e   :  { %13132 = vmatpush3.msra.mxu0 %v15835_v47  ;;  %13079 = vmatprep.subr.mxu1 %v286_v22  ;;  %v10697_v47 = vld [vmem:[%s22784_s3 + $0xb0] sm:$0xff] }
 0x13f   :  { %13133 = vmatprep.subr.mxu0 %v15840_v51  ;;  %1266 = vperm.xlu1 %15667, %v1248_v37   ;;  %v280_v26 = vpop.permute.xlu1 %279  ;;  %v282_v27 = vpop.permute.xlu0 %281 }
 0x140   :  { %1271 = vperm.xlu0 %15666, %v1249_v24   ;;  %13053 = vmatprep.mubr.f32.mxu0 %v10695_v25  ;;  %v308_v24 = vld [vmem:[%s22784_s3 + $0x68] sm:$0xff] }
 0x141   :  { %13080 = vmatpush3.msra.mxu1 %v286_v22  ;;  %13134 = vmatpush3.msra.mxu0 %v15840_v51  ;;  %v10699_v51 = vld [vmem:[%s22784_s3 + $0xc0] sm:$0xff]  ;;  %v10718_v22 = vld [vmem:[%s22784_s3 + $0x158] sm:$0xff] }
 0x142   :  { %13054 = vmatmul.mubr.f32.gmra.mxu0 %v10696_v43  ;;  %13081 = vmatprep.subr.mxu1 %v284_v21  ;;  %v10719_v43 = vld [vmem:[%s22784_s3 + $0x160] sm:$0xff] }
 0x143   :  { %13135 = vmatprep.subr.mxu0 %v15845_v55  ;;  %13082 = vmatpush3.msra.mxu1 %v284_v21  ;;  %v276_v29 = vpop.permute.xlu1 %275  ;;  %v278_v30 = vpop.permute.xlu0 %277  ;;  %v307_v21 = vld [vmem:[%s22784_s3 + $0x60] sm:$0xff] }
 0x144   :  { %13136 = vmatpush3.msra.mxu0 %v15845_v55  ;;  %13083 = vmatprep.subr.mxu1 %v282_v27  ;;  %v10700_v55 = vld [vmem:[%s22784_s3 + $0xc8] sm:$0xff] }
 0x145   :  { %13137 = vmatprep.subr.mxu0 %v15850_v59  ;;  %13056 = vmatprep.mubr.f32.mxu0 %v10697_v47 }
 0x146   :  { %13084 = vmatpush3.msra.mxu1 %v282_v27  ;;  %13138 = vmatpush3.msra.mxu0 %v15850_v59  ;;  %v10720_v27 = vld [vmem:[%s22784_s3 + $0x168] sm:$0xff] }
 0x147   :  { %13057 = vmatmul.mubr.f32.gmra.mxu0 %v10698_v32  ;;  %13085 = vmatprep.subr.mxu1 %v280_v26  ;;  %v272_v34 = vpop.permute.xlu1 %271  ;;  %v274_v33 = vpop.permute.xlu0 %273  ;;  %v10721_v32 = vld [vmem:[%s22784_s3 + $0x170] sm:$0xff] }
 0x148   :  { %13139 = vmatprep.subr.mxu0 %v15855_v63  ;;  %13086 = vmatpush3.msra.mxu1 %v280_v26  ;;  %v309_v26 = vld [vmem:[%s22784_s3 + $0x70] sm:$0xff] }
 0x149   :  { %13140 = vmatpush3.msra.mxu0 %v15855_v63  ;;  %13087 = vmatprep.subr.mxu1 %v278_v30  ;;  %v10702_v63 = vld [vmem:[%s22784_s3 + $0xd8] sm:$0xff] }
 0x14a   :  { %13141 = vmatprep.subr.mxu0 %v15860_v3  ;;  %13059 = vmatprep.mubr.f32.mxu0 %v10699_v51  ;;  %v10722_v51 = vld [vmem:[%s22784_s3 + $0x178] sm:$0xff] }
 0x14b   :  { %13088 = vmatpush3.msra.mxu1 %v278_v30  ;;  %13142 = vmatpush3.msra.mxu0 %v15860_v3  ;;  %v268_v59 = vpop.permute.xlu1 %267  ;;  %v270_v36 = vpop.permute.xlu0 %269 }
 0x14c   :  { %13060 = vmatmul.mubr.f32.gmra.mxu0 %v10700_v55  ;;  %13089 = vmatprep.subr.mxu1 %v276_v29 }
 0x14d   :  { %13143 = vmatprep.subr.mxu0 %v15865_v7  ;;  %13090 = vmatpush3.msra.mxu1 %v276_v29  ;;  %v310_v29 = vld [vmem:[%s22784_s3 + $0x78] sm:$0xff] }
 0x14e   :  { %13144 = vmatpush3.msra.mxu0 %v15865_v7  ;;  %13091 = vmatprep.subr.mxu1 %v274_v33  ;;  %v10704_v7 = vld [vmem:[%s22784_s3 + $0xe8] sm:$0xff] }
 0x14f   :  { %13145 = vmatprep.subr.mxu0 %v15870_v11  ;;  %13062 = vmatprep.mubr.f32.mxu0 %v10701_v38  ;;  %v264_v3 = vpop.permute.xlu1 %263  ;;  %v266_v39 = vpop.permute.xlu0 %265 }
 0x150   :  { %13092 = vmatpush3.msra.mxu1 %v274_v33  ;;  %13146 = vmatpush3.msra.mxu0 %v15870_v11  ;;  %v10705_v11 = vld [vmem:[%s22784_s3 + $0xf0] sm:$0xff] }
 0x151   :  { %13063 = vmatmul.mubr.f32.gmra.mxu0 %v10702_v63  ;;  %13093 = vmatprep.subr.mxu1 %v272_v34  ;;  %v10723_v63 = vld [vmem:[%s22784_s3 + $0x180] sm:$0xff] }
 0x152   :  { %13147 = vmatprep.subr.mxu0 %v15875_v15  ;;  %13094 = vmatpush3.msra.mxu1 %v272_v34 }
 0x153   :  { %13148 = vmatpush3.msra.mxu0 %v15875_v15  ;;  %13095 = vmatprep.subr.mxu1 %v270_v36  ;;  %v857_v41 = vpop.permute.xlu1 %856  ;;  %v859_v42 = vpop.permute.xlu0 %858 }
 0x154   :  { %13149 = vmatprep.subr.mxu0 %v15880_v19  ;;  %13065 = vmatprep.mubr.f32.mxu0 %v10703_v40 }
 0x155   :  { %13096 = vmatpush3.msra.mxu1 %v270_v36  ;;  %13150 = vmatpush3.msra.mxu0 %v15880_v19  ;;  %v296_v19 = vld [vmem:[%s22784_s3 + $0x8] sm:$0xff] }
 0x156   :  { %13066 = vmatmul.mubr.f32.gmra.mxu0 %v10704_v7  ;;  %13097 = vmatprep.subr.mxu1 %v268_v59 }
 0x157   :  { %13151 = vmatprep.subr.mxu0 %v15885_v23  ;;  %13098 = vmatpush3.msra.mxu1 %v268_v59  ;;  %v855_v15 = vpop.permute.xlu1 %854  ;;  %v1069_v44 = vpop.permute.xlu0 %1068 }
 0x158   :  { %13152 = vmatpush3.msra.mxu0 %v15885_v23  ;;  %13099 = vmatprep.subr.mxu1 %v266_v39  ;;  %v10707_v23 = vld [vmem:[%s22784_s3 + $0x100] sm:$0xff] }
 0x159   :  { %13153 = vmatprep.subr.mxu0 %v15893_v28  ;;  %13068 = vmatprep.mubr.f32.mxu0 %v10705_v11  ;;  %v10725_v11 = vld [vmem:[%s22784_s3 + $0x190] sm:$0xff] }
 0x15a   :  { %13100 = vmatpush3.msra.mxu1 %v266_v39  ;;  %13154 = vmatpush3.msra.mxu0 %v15893_v28  ;;  %v10708_v28 = vld [vmem:[%s22784_s3 + $0x108] sm:$0xff]  ;;  %v10739_v39 = vld [vmem:[%s22784_s3 + $0x200] sm:$0xff] }
 0x15b   :  { %13069 = vmatmul.mubr.f32.gmra.mxu0 %v10706_v45  ;;  %13101 = vmatprep.subr.mxu1 %v264_v3  ;;  %v853_v46 = vpop.permute.xlu1 %852  ;;  %v1067_v48 = vpop.permute.xlu0 %1066  ;;  %v10727_v45 = vld [vmem:[%s22784_s3 + $0x1a0] sm:$0xff] }
 0x15c   :  { %13155 = vmatprep.subr.mxu0 %v15898_v31  ;;  %13102 = vmatpush3.msra.mxu1 %v264_v3 }
 0x15d   :  { %13156 = vmatpush3.msra.mxu0 %v15898_v31  ;;  %13104 = vmatmul.mubr.f32.vlgmr.msra.gmra.mxu1 %v296_v19  ;;  %v298_v31 = vld [vmem:[%s22784_s3 + $0x18] sm:$0xff] }
 0x15e   :  { %13157 = vmatprep.subr.mxu0 %v15905_v35  ;;  %13183 = vmatprep.subr.mxu1 %v859_v42 }
 0x15f   :  { %13158 = vmatpush3.msra.mxu0 %v15905_v35  ;;  %13159 = vmatprep.mubr.f32.mxu0 %v10707_v23  ;;  %v851_v50 = vpop.permute.xlu1 %850  ;;  %v1065_v52 = vpop.permute.xlu0 %1064  ;;  %v299_v35 = vld [vmem:[%s22784_s3 + $0x20] sm:$0xff]  ;;  %v10741_v23 = vld [vmem:[%s22784_s3 + $0x210] sm:$0xff] }
 0x160   :  { %13184 = vmatpush3.msra.mxu1 %v859_v42  ;;  %13160 = vmatmul.mubr.f32.vlgmr.msra.gmra.mxu0 %v10708_v28  ;;  %v10729_v28 = vld [vmem:[%s22784_s3 + $0x1b0] sm:$0xff] }
 0x161   :  { %13185 = vmatprep.subr.mxu1 %v857_v41  ;;  %13106 = vmatprep.mubr.f32.mxu1 %v297_v49  ;;  %v10742_v49 = vld [vmem:[%s22784_s3 + $0x218] sm:$0xff] }
 0x162   :  { %13186 = vmatpush3.msra.mxu1 %v857_v41  ;;  %13239 = vmatprep.subr.mxu0 %v1069_v44  ;;  %v10724_v41 = vld [vmem:[%s22784_s3 + $0x188] sm:$0xff] }
 0x163   :  { %13107 = vmatmul.mubr.f32.gmra.mxu1 %v298_v31  ;;  %13187 = vmatprep.subr.mxu1 %v855_v15  ;;  %v849_v56 = vpop.permute.xlu1 %848  ;;  %v1063_v57 = vpop.permute.xlu0 %1062  ;;  %v10731_v31 = vld [vmem:[%s22784_s3 + $0x1c0] sm:$0xff] }
 0x164   :  { %13162 = vmatprep.mubr.f32.mxu0 %v10709_v53  ;;  %13188 = vmatpush3.msra.mxu1 %v855_v15  ;;  %v10726_v15 = vld [vmem:[%s22784_s3 + $0x198] sm:$0xff]  ;;  %v10744_v53 = vld [vmem:[%s22784_s3 + $0x228] sm:$0xff] }
 0x165   :  { %13240 = vmatpush3.msra.mxu0 %v1069_v44  ;;  %13109 = vmatprep.mubr.f32.mxu1 %v299_v35  ;;  %v10732_v35 = vld [vmem:[%s22784_s3 + $0x1c8] sm:$0xff] }
 0x166   :  { %13163 = vmatmul.mubr.f32.gmra.mxu0 %v10710_v54  ;;  %13189 = vmatprep.subr.mxu1 %v853_v46  ;;  %v10745_v54 = vld [vmem:[%s22784_s3 + $0x230] sm:$0xff] }
 0x167   :  { %13110 = vmatmul.mubr.f32.gmra.mxu1 %v300_v58  ;;  %13241 = vmatprep.subr.mxu0 %v1067_v48  ;;  %v847_v0 = vpop.permute.xlu1 %846  ;;  %v1061_v1 = vpop.permute.xlu0 %1060  ;;  %v10734_v58 = vld [vmem:[%s22784_s3 + $0x1d8] sm:$0xff] }
 0x168   :  { %13165 = vmatprep.mubr.f32.mxu0 %v10711_v60  ;;  %13190 = vmatpush3.msra.mxu1 %v853_v46  ;;  %v10740_v46 = vld [vmem:[%s22784_s3 + $0x208] sm:$0xff]  ;;  %v10747_v60 = vld [vmem:[%s22784_s3 + $0x240] sm:$0xff] }
 0x169   :  { %13242 = vmatpush3.msra.mxu0 %v1067_v48  ;;  %13112 = vmatprep.mubr.f32.mxu1 %v301_v61  ;;  %v10728_v48 = vld [vmem:[%s22784_s3 + $0x1a8] sm:$0xff]  ;;  %v10735_v61 = vld [vmem:[%s22784_s3 + $0x1e0] sm:$0xff] }
 0x16a   :  { %13166 = vmatmul.mubr.f32.gmra.mxu0 %v10712_v62  ;;  %13191 = vmatprep.subr.mxu1 %v851_v50  ;;  %v10748_v62 = vld [vmem:[%s22784_s3 + $0x248] sm:$0xff] }
 0x16b   :  { %13113 = vmatmul.mubr.f32.gmra.mxu1 %v302_v2  ;;  %13243 = vmatprep.subr.mxu0 %v1065_v52  ;;  %v845_v8 = vpop.permute.xlu1 %844  ;;  %v1059_v9 = vpop.permute.xlu0 %1058  ;;  %v10737_v2 = vld [vmem:[%s22784_s3 + $0x1f0] sm:$0xff] }
 0x16c   :  { %13168 = vmatprep.mubr.f32.mxu0 %v10713_v4  ;;  %13192 = vmatpush3.msra.mxu1 %v851_v50  ;;  %v10730_v50 = vld [vmem:[%s22784_s3 + $0x1b8] sm:$0xff] }
 0x16d   :  { %13244 = vmatpush3.msra.mxu0 %v1065_v52  ;;  %13115 = vmatprep.mubr.f32.mxu1 %v303_v5  ;;  %v10743_v52 = vld [vmem:[%s22784_s3 + $0x220] sm:$0xff]  ;;  %v10750_v4 = vld [vmem:[%s22784_s3 + $0x258] sm:$0xff] }
 0x16e   :  { %13169 = vmatmul.mubr.f32.gmra.mxu0 %v10714_v6  ;;  %13193 = vmatprep.subr.mxu1 %v849_v56  ;;  %v10738_v5 = vld [vmem:[%s22784_s3 + $0x1f8] sm:$0xff]  ;;  %v10751_v6 = vld [vmem:[%s22784_s3 + $0x260] sm:$0xff] }
 0x16f   :  { %13116 = vmatmul.mubr.f32.gmra.mxu1 %v304_v10  ;;  %13245 = vmatprep.subr.mxu0 %v1063_v57  ;;  %v843_v16 = vpop.permute.xlu1 %842  ;;  %v10754_v10 = vld [vmem:[%s22784_s3 + $0x278] sm:$0xff] }
 0x170   :  { %13171 = vmatprep.mubr.f32.mxu0 %v10715_v12  ;;  %13194 = vmatpush3.msra.mxu1 %v849_v56  ;;  %v1057_v18 = vpop.permute.xlu0 %1056  ;;  %v10733_v56 = vld [vmem:[%s22784_s3 + $0x1d0] sm:$0xff] }
 0x171   :  { %13246 = vmatpush3.msra.mxu0 %v1063_v57  ;;  %13118 = vmatprep.mubr.f32.mxu1 %v305_v13  ;;  %v10746_v57 = vld [vmem:[%s22784_s3 + $0x238] sm:$0xff] }
 0x172   :  { %13172 = vmatmul.mubr.f32.gmra.mxu0 %v10716_v14  ;;  %13195 = vmatprep.subr.mxu1 %v847_v0 }
 0x173   :  { %13119 = vmatmul.mubr.f32.gmra.mxu1 %v306_v17  ;;  %13247 = vmatprep.subr.mxu0 %v1061_v1  ;;  %v841_v37 = vpop.permute.xlu1 %840 }
 0x174   :  { %13174 = vmatprep.mubr.f32.mxu0 %v10717_v20  ;;  %13196 = vmatpush3.msra.mxu1 %v847_v0  ;;  %v1055_v25 = vpop.permute.xlu0 %1054  ;;  %v10736_v0 = vld [vmem:[%s22784_s3 + $0x1e8] sm:$0xff] }
 0x175   :  { %13248 = vmatpush3.msra.mxu0 %v1061_v1  ;;  %13121 = vmatprep.mubr.f32.mxu1 %v307_v21  ;;  %v10749_v1 = vld [vmem:[%s22784_s3 + $0x250] sm:$0xff] }
 0x176   :  { %13175 = vmatmul.mubr.f32.gmra.mxu0 %v10718_v22  ;;  %13197 = vmatprep.subr.mxu1 %v845_v8 }
 0x177   :  { %13122 = vmatmul.mubr.f32.gmra.mxu1 %v308_v24  ;;  %13249 = vmatprep.subr.mxu0 %v1059_v9  ;;  %v839_v47 = vpop.permute.xlu1 %838 }
 0x178   :  { %13177 = vmatprep.mubr.f32.mxu0 %v10719_v43  ;;  %13198 = vmatpush3.msra.mxu1 %v845_v8  ;;  %v1053_v30 = vpop.permute.xlu0 %1052  ;;  %v10752_v8 = vld [vmem:[%s22784_s3 + $0x268] sm:$0xff] }
 0x179   :  { %13250 = vmatpush3.msra.mxu0 %v1059_v9  ;;  %13124 = vmatprep.mubr.f32.mxu1 %v309_v26  ;;  %v10753_v9 = vld [vmem:[%s22784_s3 + $0x270] sm:$0xff] }
 0x17a   :  { %13178 = vmatmul.mubr.f32.gmra.mxu0 %v10720_v27  ;;  %13199 = vmatprep.subr.mxu1 %v843_v16 }
 0x17b   :  { %13125 = vmatmul.mubr.f32.gmra.mxu1 %v310_v29  ;;  %13251 = vmatprep.subr.mxu0 %v1057_v18  ;;  %v837_v34 = vpop.permute.xlu1 %836 }
 0x17c   :  { %13180 = vmatprep.mubr.f32.mxu0 %v10721_v32  ;;  %13200 = vmatpush3.msra.mxu1 %v843_v16  ;;  %v1051_v33 = vpop.permute.xlu0 %1050 }
 0x17d   :  { %13252 = vmatpush3.msra.mxu0 %v1057_v18  ;;  %13201 = vmatprep.subr.mxu1 %v841_v37 }
 0x17e   :  { %13181 = vmatmul.mubr.f32.gmra.mxu0 %v10722_v51  ;;  %13253 = vmatprep.subr.mxu0 %v1055_v25 }
 0x17f   :  { %13202 = vmatpush3.msra.mxu1 %v841_v37  ;;  %13254 = vmatpush3.msra.mxu0 %v1055_v25  ;;  %v835_v55 = vpop.permute.xlu1 %834 }
 0x180   :  { %13203 = vmatprep.subr.mxu1 %v839_v47  ;;  %13255 = vmatprep.subr.mxu0 %v1053_v30  ;;  %v1049_v59 = vpop.permute.xlu0 %1048 }
 0x181   :  { %13204 = vmatpush3.msra.mxu1 %v839_v47  ;;  %13256 = vmatpush3.msra.mxu0 %v1053_v30 }
 0x182   :  { %13205 = vmatprep.subr.mxu1 %v837_v34  ;;  %13257 = vmatprep.subr.mxu0 %v1051_v33 }
 0x183   :  { %13206 = vmatpush3.msra.mxu1 %v837_v34  ;;  %13258 = vmatpush3.msra.mxu0 %v1051_v33  ;;  %v833_v36 = vpop.permute.xlu1 %832 }
 0x184   :  { %13207 = vmatprep.subr.mxu1 %v835_v55  ;;  %13259 = vmatprep.subr.mxu0 %v1049_v59  ;;  %v1047_v38 = vpop.permute.xlu0 %1046 }
 0x185   :  { %13208 = vmatpush3.msra.mxu1 %v835_v55  ;;  %13260 = vmatpush3.msra.mxu0 %v1049_v59 }
 0x186   :  { %13209 = vmatprep.subr.mxu1 %v833_v36  ;;  %13261 = vmatprep.subr.mxu0 %v1047_v38 }
 0x187   :  { %13210 = vmatpush3.msra.mxu1 %v833_v36  ;;  %13262 = vmatpush3.msra.mxu0 %v1047_v38  ;;  %v831_v3 = vpop.permute.xlu1 %830 }
 0x188   :  { %v1045_v40 = vpop.permute.xlu0 %1044  ;;  %13211 = vmatprep.subr.mxu1 %v831_v3  ;;  %13215 = vmatprep.mubr.f32.mxu1 %v10723_v63 }
 0x189   :  { %13263 = vmatprep.subr.mxu0 %v1045_v40  ;;  %13212 = vmatpush3.msra.mxu1 %v831_v3 }
 0x18a   :  { %13264 = vmatpush3.msra.mxu0 %v1045_v40  ;;  %13271 = vmatprep.mubr.f32.mxu0 %v10739_v39 }
 0x18b   :  { %v829_v7 = vpop.permute.xlu1 %828 }
 0x18c   :  { %v1043_v42 = vpop.permute.xlu0 %1042  ;;  %13213 = vmatprep.subr.mxu1 %v829_v7 }
 0x18d   :  { %13265 = vmatprep.subr.mxu0 %v1043_v42  ;;  %13214 = vmatpush3.msra.mxu1 %v829_v7 }
 0x18e   :  { %13266 = vmatpush3.msra.mxu0 %v1043_v42  ;;  %13216 = vmatmul.mubr.f32.vlgmr.msra.gmra.mxu1 %v10724_v41 }
 0x18f   :  { %13218 = vmatprep.mubr.f32.mxu1 %v10725_v11  ;;  %v1039_v19 = vpop.permute.xlu1 %1038 }
 0x190   :  { %v1041_v44 = vpop.permute.xlu0 %1040 }
 0x191   :  { %13267 = vmatprep.subr.mxu0 %v1041_v44 }
 0x192   :  { %13268 = vmatpush3.msra.mxu0 %v1041_v44  ;;  %13219 = vmatmul.mubr.f32.gmra.mxu1 %v10726_v15 }
 0x193   :  { %13269 = vmatprep.subr.mxu0 %v1039_v19  ;;  %13221 = vmatprep.mubr.f32.mxu1 %v10727_v45 }
 0x194   :  { %13270 = vmatpush3.msra.mxu0 %v1039_v19 }
 0x195   :  { %13272 = vmatmul.mubr.f32.vlgmr.msra.gmra.mxu0 %v10740_v46 }
 0x196   :  { %13222 = vmatmul.mubr.f32.gmra.mxu1 %v10728_v48  ;;  %13274 = vmatprep.mubr.f32.mxu0 %v10741_v23 }
 0x197   :  { %13224 = vmatprep.mubr.f32.mxu1 %v10729_v28 }
 0x199   :  { %13275 = vmatmul.mubr.f32.gmra.mxu0 %v10742_v49 }
 0x19a   :  { %13225 = vmatmul.mubr.f32.gmra.mxu1 %v10730_v50  ;;  %13277 = vmatprep.mubr.f32.mxu0 %v10743_v52 }
 0x19b   :  { %13227 = vmatprep.mubr.f32.mxu1 %v10731_v31 }
 0x19c   :  { %v16354_v41 = vpop.permute.xlu1 %1336 }
 0x19d   :  { %13278 = vmatmul.mubr.f32.gmra.mxu0 %v10744_v53  ;;  %v16350_v40 = vpop.permute.xlu0 %1341  ;;  %22793 = vst [vmem:[#allocation4_spill] sm:$0xff] %v16354_v41 }
 0x19e   :  { %13228 = vmatmul.mubr.f32.gmra.mxu1 %v10732_v35  ;;  %13280 = vmatprep.mubr.f32.mxu0 %v10745_v54  ;;  %22792 = vst [vmem:[#allocation3_spill] sm:$0xff] %v16350_v40 }
 0x19f   :  { %13230 = vmatprep.mubr.f32.mxu1 %v10733_v56 }
 0x1a0   :  { %v16366_v19 = vpop.permute.xlu1 %1326 }
 0x1a1   :  { %13281 = vmatmul.mubr.f32.gmra.mxu0 %v10746_v57  ;;  %v16360_v15 = vpop.permute.xlu0 %1331  ;;  %22795 = vst [vmem:[#allocation6_spill] sm:$0xff] %v16366_v19 }
 0x1a2   :  { %13231 = vmatmul.mubr.f32.gmra.mxu1 %v10734_v58  ;;  %13283 = vmatprep.mubr.f32.mxu0 %v10747_v60  ;;  %22794 = vst [vmem:[#allocation5_spill] sm:$0xff] %v16360_v15 }
 0x1a3   :  { %13233 = vmatprep.mubr.f32.mxu1 %v10735_v61 }
 0x1a4   :  { %v16374_v28 = vpop.permute.xlu1 %1316 }
 0x1a5   :  { %13284 = vmatmul.mubr.f32.gmra.mxu0 %v10748_v62  ;;  %v16372_v23 = vpop.permute.xlu0 %1321  ;;  %22797 = vst [vmem:[#allocation8_spill] sm:$0xff] %v16374_v28 }
 0x1a6   :  { %13234 = vmatmul.mubr.f32.gmra.mxu1 %v10736_v0  ;;  %13286 = vmatprep.mubr.f32.mxu0 %v10749_v1  ;;  %22796 = vst [vmem:[#allocation7_spill] sm:$0xff] %v16372_v23 }
 0x1a7   :  { %13236 = vmatprep.mubr.f32.mxu1 %v10737_v2 }
 0x1a8   :  { %v16386_v35 = vpop.permute.xlu1 %1306 }
 0x1a9   :  { %13287 = vmatmul.mubr.f32.gmra.mxu0 %v10750_v4  ;;  %v16380_v52 = vpop.permute.xlu0 %1311  ;;  %22799 = vst [vmem:[#allocation10_spill] sm:$0xff] %v16386_v35 }
 0x1aa   :  { %13237 = vmatmul.mubr.f32.gmra.mxu1 %v10738_v5  ;;  %13289 = vmatprep.mubr.f32.mxu0 %v10751_v6  ;;  %22798 = vst [vmem:[#allocation9_spill] sm:$0xff] %v16380_v52 }
 0x1ad   :  { %13290 = vmatmul.mubr.f32.gmra.mxu0 %v10752_v8  ;;  %v16392_v57 = vpop.permute.xlu0 %1301  ;;  %v16394_v58 = vpop.permute.xlu1 %1296 }
 0x1ae   :  { %13292 = vmatprep.mubr.f32.mxu0 %v10753_v9 }
 0x1b1   :  { %13293 = vmatmul.mubr.f32.gmra.mxu0 %v10754_v10  ;;  %v16400_v62 = vpop.permute.xlu0 %1291  ;;  %v16406_v2 = vpop.permute.xlu1 %1286 }
 0x1b5   :  { %v1282_v10 = vpop.permute.xlu0 %1281  ;;  %v1277_v15 = vpop.permute.xlu1 %1276 }
 0x1bb   :  { %v1272_v52 = vpop.permute.xlu0 %1271 }
 0x1f7   :  { %v13049_v12 = vpop.f32.mrf.mxu0 }
 0x1f9   :  { %v426_v13 = vpop.f32.mrf.mxu0 }
 0x1fc   :  { %v16320_v14 = vpop.f32.mrf.mxu0 }
 0x1fe   :  { %v16322_v16 = vpop.f32.mrf.mxu0 }
 0x202   :  { %v16324_v17 = vpop.f32.mrf.mxu0 }
 0x204   :  { %v16326_v18 = vpop.f32.mrf.mxu0 }
 0x207   :  { %v16328_v20 = vpop.f32.mrf.mxu0 }
 0x209   :  { %v16330_v21 = vpop.f32.mrf.mxu0 }
 0x20c   :  { %v16332_v22 = vpop.f32.mrf.mxu0 }
 0x20e   :  { %v16334_v37 = vpop.f32.mrf.mxu0 }
 0x211   :  { %v16336_v24 = vpop.f32.mrf.mxu0 }
 0x213   :  { %v16338_v25 = vpop.f32.mrf.mxu0 }
 0x216   :  { %v16340_v43 = vpop.f32.mrf.mxu0 }
 0x218   :  { %v16342_v26 = vpop.f32.mrf.mxu0 }
 0x21b   :  { %v16344_v27 = vpop.f32.mrf.mxu0 }
 0x21d   :  { %v16346_v47 = vpop.f32.mrf.mxu0  ;;  %v13105_v29 = vpop.f32.mrf.mxu1 }
 0x21e   :  { %22791 = vst [vmem:[#allocation2_spill] sm:$0xff] %v16346_v47  ;;  %v577_v4 = vadd.f32 %v13105_v29, %v13049_v12 }
 0x21f   :  { %v571_v30 = vpop.f32.mrf.mxu1 }
 0x220   :  { %v13161_v32 = vpop.f32.mrf.mxu0  ;;  %v572_v8 = vadd.f32 %v571_v30, %v426_v13 }
 0x221   :  { %v813_v41 = vadd.f32 %v13161_v32, %v577_v4 }
 0x222   :  { %v733_v51 = vpop.f32.mrf.mxu0 }
 0x223   :  { %v13108_v34 = vpop.f32.mrf.mxu1  ;;  %v812_v28 = vadd.f32 %v733_v51, %v572_v8  ;;  %v1267_v8 = vpop.permute.xlu1 %1266 }
 0x224   :  { %v587_v40 = vadd.f32 %v13108_v34, %v16320_v14 }
 0x225   :  { %v581_v33 = vpop.f32.mrf.mxu1 }
 0x226   :  { %v13164_v55 = vpop.f32.mrf.mxu0  ;;  %v582_v23 = vadd.f32 %v581_v33, %v16322_v16 }
 0x227   :  { %v13111_v59 = vpop.f32.mrf.mxu1  ;;  %v815_v35 = vadd.f32 %v13164_v55, %v587_v40 }
 0x228   :  { %v743_v36 = vpop.f32.mrf.mxu0  ;;  %v597_v12 = vadd.f32 %v13111_v59, %v16324_v17 }
 0x229   :  { %v591_v38 = vpop.f32.mrf.mxu1  ;;  %v814_v34 = vadd.f32 %v743_v36, %v582_v23 }
 0x22a   :  { %v13167_v63 = vpop.f32.mrf.mxu0  ;;  %v592_v32 = vadd.f32 %v591_v38, %v16326_v18 }
 0x22b   :  { %v13114_v3 = vpop.f32.mrf.mxu1  ;;  %v817_v16 = vadd.f32 %v13167_v63, %v597_v12 }
 0x22c   :  { %v16348_v39 = vpop.f32.mrf.mxu0  ;;  %v607_v33 = vadd.f32 %v13114_v3, %v16328_v20 }
 0x22d   :  { %v16352_v7 = vpop.f32.mrf.mxu1 }
 0x22e   :  { %v16356_v42 = vpop.f32.mrf.mxu0  ;;  %v602_v18 = vadd.f32 %v16352_v7, %v16330_v21 }
 0x22f   :  { %v16358_v11 = vpop.f32.mrf.mxu1  ;;  %v819_v20 = vadd.f32 %v16356_v42, %v607_v33 }
 0x230   :  { %v16362_v44 = vpop.f32.mrf.mxu0  ;;  %v617_v3 = vadd.f32 %v16358_v11, %v16332_v22 }
 0x231   :  { %v16364_v45 = vpop.f32.mrf.mxu1  ;;  %v818_v7 = vadd.f32 %v16362_v44, %v602_v18  ;;  %v22806_v18 = vld [vmem:[#allocation9_spill] sm:$0xff] }
 0x232   :  { %v16368_v46 = vpop.f32.mrf.mxu0 }
 0x233   :  { %v16370_v48 = vpop.f32.mrf.mxu1  ;;  %v821_v11 = vadd.f32 %v16368_v46, %v617_v3 }
 0x234   :  { %v16376_v49 = vpop.f32.mrf.mxu0 }
 0x235   :  { %v16378_v50 = vpop.f32.mrf.mxu1 }
 0x236   :  { %v16382_v31 = vpop.f32.mrf.mxu0  ;;  %v622_v46 = vadd.f32 %v16378_v50, %v16338_v25 }
 0x237   :  { %v16384_v53 = vpop.f32.mrf.mxu1 }
 0x238   :  { %v16388_v54 = vpop.f32.mrf.mxu0 }
 0x239   :  { %v16390_v56 = vpop.f32.mrf.mxu1  ;;  %v822_v33 = vadd.f32 %v16388_v54, %v622_v46 }
 0x23a   :  { %v16396_v60 = vpop.f32.mrf.mxu0 }
 0x23b   :  { %v16398_v61 = vpop.f32.mrf.mxu1 }
 0x23c   :  { %22800 = vst [vmem:[#allocation11_spill] sm:$0xff] %v16398_v61  ;;  %v16402_v0 = vpop.f32.mrf.mxu0 }
 0x23d   :  { %22801 = vst [vmem:[#allocation12_spill] sm:$0xff] %v16402_v0  ;;  %v16404_v1 = vpop.f32.mrf.mxu1 }
 0x23e   :  { %22802 = vst [vmem:[#allocation13_spill] sm:$0xff] %v16404_v1  ;;  %v16408_v6 = vpop.f32.mrf.mxu0 }
 0x23f   :  { %22803 = vst [vmem:[#allocation14_spill] sm:$0xff] %v16408_v6 }
 0x240   :  { %v16411_v47 = vpop.f32.mrf.mxu0 }
 0x241   :  { %22804 = vst [vmem:[#allocation15_spill] sm:$0xff] %v16411_v47 }
 0x24e   :  { %v13217_v5 = vpop.f32.mrf.mxu1 }
 0x24f   :  { %v1023_v1 = vadd.f32 %v13217_v5, %v813_v41 }
 0x250   :  { %v943_v9 = vpop.f32.mrf.mxu1 }
 0x251   :  { %v1022_v6 = vadd.f32 %v943_v9, %v812_v28 }
 0x252   :  { %v13220_v19 = vpop.f32.mrf.mxu1 }
 0x253   :  { %v1025_v4 = vadd.f32 %v13220_v19, %v815_v35 }
 0x254   :  { %v953_v0 = vpop.f32.mrf.mxu1 }
 0x255   :  { %v13273_v29 = vpop.f32.mrf.mxu0  ;;  %v1024_v17 = vadd.f32 %v953_v0, %v814_v34  ;;  %v612_v0 = vadd.f32 %v16364_v45, %v16334_v37  ;;  %v637_v34 = vadd.f32 %v16384_v53, %v16340_v43 }
 0x256   :  { %v1233_v13 = vadd.f32 %v13273_v29, %v1023_v1  ;;  %v13223_v30 = vpop.f32.mrf.mxu1  ;;  %v816_v1 = vadd.f32 %v16348_v39, %v592_v32 }
 0x257   :  { %v1153_v14 = vpop.f32.mrf.mxu0  ;;  %v1027_v38 = vadd.f32 %v13223_v30, %v817_v16  ;;  %v820_v30 = vadd.f32 %v16376_v49, %v612_v0 }
 0x258   :  { %v1345_v61 = vadd.f32 %v1272_v52, %v1233_v13  ;;  %v1232_v47 = vadd.f32 %v1153_v14, %v1022_v6  ;;  %v963_v51 = vpop.f32.mrf.mxu1 }
 0x259   :  { %v13276_v41 = vpop.f32.mrf.mxu0 }
 0x25a   :  { %v16417_v59 = vmax.f32 %v1345_v61, 0.0  ;;  %v1344_v55 = vadd.f32 %v1267_v8, %v1232_v47  ;;  %v1235_v40 = vadd.f32 %v13276_v41, %v1025_v4  ;;  %v13226_v28 = vpop.f32.mrf.mxu1  ;;  %v1026_v47 = vadd.f32 %v963_v51, %v816_v1 }
 0x25b   :  { %v1163_v36 = vpop.f32.mrf.mxu0  ;;  %v1029_v6 = vadd.f32 %v13226_v28, %v819_v20 }
 0x25c   :  { %v1234_v19 = vadd.f32 %v1163_v36, %v1024_v17  ;;  %1427 = vrot.lane.b32.xlu0 %v16417_v59, %s15669_s1  ;;  %v973_v63 = vpop.f32.mrf.mxu1  ;;  %v16427_v52 = vmax.f32 %v1344_v55, 0.0  ;;  %v1347_v39 = vadd.f32 %v1282_v10, %v1235_v40 }
 0x25d   :  { %v13279_v23 = vpop.f32.mrf.mxu0  ;;  %v1028_v10 = vadd.f32 %v973_v63, %v818_v7  ;;  %v22810_v7 = vld [vmem:[#allocation7_spill] sm:$0xff] }
 0x25e   :  { %v1346_v35 = vadd.f32 %v1277_v15, %v1234_v19  ;;  %v1237_v61 = vadd.f32 %v13279_v23, %v1027_v38  ;;  %v13229_v21 = vpop.f32.mrf.mxu1  ;;  %v627_v15 = vadd.f32 %v16370_v48, %v16336_v24  ;;  %v16439_v44 = vmax.f32 %v1347_v39, 0.0  ;;  %v22808_v19 = vld [vmem:[#allocation12_spill] sm:$0xff] }
 0x25f   :  { %v1173_v5 = vpop.f32.mrf.mxu0  ;;  %v1031_v24 = vadd.f32 %v13229_v21, %v821_v11  ;;  %v22812_v11 = vld [vmem:[#allocation2_spill] sm:$0xff] }
 0x260   :  { %v16432_v9 = vmax.f32 %v1346_v35, 0.0  ;;  %v1236_v42 = vadd.f32 %v1173_v5, %v1026_v47  ;;  %1425 = vrot.lane.b32.xlu0 %v16427_v52, %s15669_s1  ;;  %v983_v22 = vpop.f32.mrf.mxu1  ;;  %v1349_v37 = vadd.f32 %v16400_v62, %v1237_v61  ;;  %v22809_v47 = vld [vmem:[#allocation14_spill] sm:$0xff]  ;;  %v22811_v5 = vld [vmem:[#allocation8_spill] sm:$0xff] }
 0x261   :  { %v13282_v12 = vpop.f32.mrf.mxu0  ;;  %v1030_v4 = vadd.f32 %v983_v22, %v820_v30  ;;  %v22814_v30 = vld [vmem:[#allocation5_spill] sm:$0xff] }
 0x262   :  { %v1348_v45 = vadd.f32 %v16406_v2, %v1236_v42  ;;  %v1239_v29 = vadd.f32 %v13282_v12, %v1029_v6  ;;  %1429 = vrot.lane.b32.xlu1 %v16432_v9, %s15669_s1  ;;  %v13232_v13 = vpop.f32.mrf.mxu1  ;;  %v823_v2 = vadd.f32 %v16382_v31, %v627_v15  ;;  %v16455_v49 = vmax.f32 %v1349_v37, 0.0  ;;  %v22813_v15 = vld [vmem:[#allocation13_spill] sm:$0xff] }
 0x263   :  { %v1183_v32 = vpop.f32.mrf.mxu0  ;;  %v632_v31 = vadd.f32 %v16390_v56, %v16342_v26  ;;  %v22807_v56 = vld [vmem:[#allocation10_spill] sm:$0xff] }
 0x264   :  { %v16448_v48 = vmax.f32 %v1348_v45, 0.0  ;;  %v1238_v14 = vadd.f32 %v1183_v32, %v1028_v10  ;;  %1431 = vrot.lane.b32.xlu0 %v16439_v44, %s15669_s1  ;;  %v993_v62 = vpop.f32.mrf.mxu1  ;;  %v1351_v25 = vadd.f32 %v16392_v57, %v1239_v29  ;;  %v1033_v43 = vadd.f32 %v13232_v13, %v823_v2  ;;  %v22815_v32 = vld [vmem:[#allocation6_spill] sm:$0xff]  ;;  %v22816_v2 = vld [vmem:[#allocation15_spill] sm:$0xff] }
 0x265   :  { %v13285_v51 = vpop.f32.mrf.mxu0  ;;  %v825_v57 = vadd.f32 %v16396_v60, %v637_v34  ;;  %v1032_v40 = vadd.f32 %v993_v62, %v822_v33  ;;  %v824_v63 = vadd.f32 %v22808_v19, %v632_v31  ;;  %v642_v10 = vadd.f32 %v22813_v15, %v22812_v11  ;;  %v10841_v15 = vld [vmem:[%s22785_s4 + $0xb0] sm:$0xff] }
 0x266   :  { %v1350_v50 = vadd.f32 %v16394_v58, %v1238_v14  ;;  %v1241_v8 = vadd.f32 %v13285_v51, %v1031_v24  ;;  %1433 = vrot.lane.b32.xlu1 %v16448_v48, %s15669_s1  ;;  %v13235_v16 = vpop.f32.mrf.mxu1  ;;  %v22805_v58 = vld [vmem:[#allocation11_spill] sm:$0xff]  ;;  %v16471_v54 = vmax.f32 %v1351_v25, 0.0 }
 0x267   :  { %v1193_v41 = vpop.f32.mrf.mxu0  ;;  %v647_v55 = vadd.f32 %v22805_v58, %v16344_v27  ;;  %v1035_v60 = vadd.f32 %v13235_v16, %v825_v57  ;;  %v826_v34 = vadd.f32 %v22816_v2, %v642_v10  ;;  %v10771_v57 = vld [vmem:[%s22784_s3 + $0x300] sm:$0xff] }
 0x268   :  { %v16464_v53 = vmax.f32 %v1350_v50, 0.0  ;;  %v1240_v17 = vadd.f32 %v1193_v41, %v1030_v4  ;;  %1435 = vrot.lane.b32.xlu0 %v16455_v49, %s15669_s1  ;;  %v1003_v28 = vpop.f32.mrf.mxu1  ;;  %v1353_v26 = vadd.f32 %v22806_v18, %v1241_v8  ;;  %v22817_v8 = vld [vmem:[#allocation3_spill] sm:$0xff]  ;;  %v22818_v41 = vld [vmem:[#allocation4_spill] sm:$0xff]  ;;  %13327 = vmatprep.mubr.f32.mxu1 %v10771_v57  ;;  %v10755_v58 = vld [vmem:[%s22784_s3 + $0x280] sm:$0xff] }
 0x269   :  { %v13288_v1 = vpop.f32.mrf.mxu0  ;;  %v827_v23 = vadd.f32 %v22809_v47, %v647_v55  ;;  %v1034_v39 = vadd.f32 %v1003_v28, %v824_v63  ;;  %13383 = vmatprep.mubr.f32.mxu0 %v10755_v58  ;;  %v10849_v63 = vld [vmem:[%s22785_s4 + $0xf0] sm:$0xff]  ;;  %v10847_v47 = vld [vmem:[%s22785_s4 + $0xe0] sm:$0xff] }
 0x26a   :  { %v1352_v36 = vadd.f32 %v22807_v56, %v1240_v17  ;;  %v1243_v38 = vadd.f32 %v13288_v1, %v1033_v43  ;;  %1437 = vrot.lane.b32.xlu1 %v16464_v53, %s15669_s1  ;;  %v13238_v35 = vpop.f32.mrf.mxu1  ;;  %v16483_v21 = vmax.f32 %v1353_v26, 0.0  ;;  %v10850_v26 = vld [vmem:[%s22785_s4 + $0xf8] sm:$0xff]  ;;  %v10835_v2 = vld [vmem:[%s22785_s4 + $0x80] sm:$0xff] }
 0x26b   :  { %v1203_v20 = vpop.f32.mrf.mxu0  ;;  %v1037_v12 = vadd.f32 %v13238_v35, %v827_v23 }
 0x26c   :  { %v16478_v3 = vmax.f32 %v1352_v36, 0.0  ;;  %v1242_v27 = vadd.f32 %v1203_v20, %v1032_v40  ;;  %1439 = vrot.lane.b32.xlu0 %v16471_v54, %s15669_s1  ;;  %v1355_v0 = vadd.f32 %v22810_v7, %v1243_v38  ;;  %v1013_v62 = vpop.f32.mrf.mxu1  ;;  %v10848_v38 = vld [vmem:[%s22785_s4 + $0xe8] sm:$0xff] }
 0x26d   :  { %v13291_v61 = vpop.f32.mrf.mxu0  ;;  %v1036_v25 = vadd.f32 %v1013_v62, %v826_v34 }
 0x26e   :  { %v1354_v6 = vadd.f32 %v22811_v5, %v1242_v27  ;;  %v1245_v42 = vadd.f32 %v13291_v61, %v1035_v60  ;;  %1441 = vrot.lane.b32.xlu1 %v16478_v3, %s15669_s1  ;;  %v16495_v13 = vmax.f32 %v1355_v0, 0.0  ;;  %v10846_v60 = vld [vmem:[%s22785_s4 + $0xd8] sm:$0xff]  ;;  %v10845_v61 = vld [vmem:[%s22785_s4 + $0xd0] sm:$0xff] }
 0x26f   :  { %v1213_v22 = vpop.f32.mrf.mxu0  ;;  %v10842_v0 = vld [vmem:[%s22785_s4 + $0xb8] sm:$0xff] }
 0x270   :  { %v16491_v37 = vmax.f32 %v1354_v6, 0.0  ;;  %v1244_v45 = vadd.f32 %v1213_v22, %v1034_v39  ;;  %1443 = vrot.lane.b32.xlu0 %v16483_v21, %s15669_s1  ;;  %v1357_v46 = vadd.f32 %v22814_v30, %v1245_v42  ;;  %v10844_v39 = vld [vmem:[%s22785_s4 + $0xc8] sm:$0xff]  ;;  %v10843_v6 = vld [vmem:[%s22785_s4 + $0xc0] sm:$0xff] }
 0x271   :  { %v13294_v29 = vpop.f32.mrf.mxu0  ;;  %v10840_v22 = vld [vmem:[%s22785_s4 + $0xa8] sm:$0xff] }
 0x272   :  { %v1356_v24 = vadd.f32 %v22815_v32, %v1244_v45  ;;  %v1247_v14 = vadd.f32 %v13294_v29, %v1037_v12  ;;  %1445 = vrot.lane.b32.xlu1 %v16491_v37, %s15669_s1  ;;  %v16506_v50 = vmax.f32 %v1357_v46, 0.0  ;;  %v10838_v12 = vld [vmem:[%s22785_s4 + $0x98] sm:$0xff]  ;;  %v10839_v29 = vld [vmem:[%s22785_s4 + $0xa0] sm:$0xff]  ;;  %v10836_v46 = vld [vmem:[%s22785_s4 + $0x88] sm:$0xff] }
 0x273   :  { %v1223_v51 = vpop.f32.mrf.mxu0 }
 0x274   :  { %v16502_v4 = vmax.f32 %v1356_v24, 0.0  ;;  %1447 = vrot.lane.b32.xlu0 %v16495_v13, %s15669_s1  ;;  %v1359_v16 = vadd.f32 %v22817_v8, %v1247_v14  ;;  %v1246_v33 = vadd.f32 %v1223_v51, %v1036_v25  ;;  %v10837_v24 = vld [vmem:[%s22785_s4 + $0x90] sm:$0xff] }
 0x276   :  { %1449 = vrot.lane.b32.xlu1 %v16502_v4, %s15669_s1  ;;  %v16513_v31 = vmax.f32 %v1359_v16, 0.0  ;;  %v1358_v43 = vadd.f32 %v22818_v41, %v1246_v33 }
 0x278   :  { %1451 = vrot.lane.b32.xlu0 %v16506_v50, %s15669_s1  ;;  %v16522_v17 = vmax.f32 %v1358_v43, 0.0 }
 0x27a   :  { %1400 = vrot.lane.b32.xlu1 %v16502_v4, %s15670_s12 }
 0x27c   :  { %1455 = vrot.lane.b32.xlu0 %v16513_v31, %s15669_s1 }
 0x27e   :  { %1406 = vrot.lane.b32.xlu1 %v16513_v31, %s15670_s12 }
 0x280   :  { %1402 = vrot.lane.b32.xlu0 %v16506_v50, %s15670_s12 }
 0x282   :  { %1453 = vrot.lane.b32.xlu1 %v16522_v17, %s15669_s1 }
 0x284   :  { %1398 = vrot.lane.b32.xlu0 %v16495_v13, %s15670_s12 }
 0x286   :  { %1396 = vrot.lane.b32.xlu1 %v16491_v37, %s15670_s12 }
 0x288   :  { %1394 = vrot.lane.b32.xlu0 %v16483_v21, %s15670_s12 }
 0x28a   :  { %1392 = vrot.lane.b32.xlu1 %v16478_v3, %s15670_s12 }
 0x28c   :  { %1390 = vrot.lane.b32.xlu0 %v16471_v54, %s15670_s12 }
 0x28e   :  { %1388 = vrot.lane.b32.xlu1 %v16464_v53, %s15670_s12 }
 0x290   :  { %1386 = vrot.lane.b32.xlu0 %v16455_v49, %s15670_s12 }
 0x292   :  { %1384 = vrot.lane.b32.xlu1 %v16448_v48, %s15670_s12 }
 0x294   :  { %1382 = vrot.lane.b32.xlu0 %v16439_v44, %s15670_s12 }
 0x296   :  { %1380 = vrot.lane.b32.xlu1 %v16432_v9, %s15670_s12 }
 0x298   :  { %1378 = vrot.lane.b32.xlu0 %v16417_v59, %s15670_s12 }
 0x29a   :  { %1376 = vrot.lane.b32.xlu1 %v16427_v52, %s15670_s12 }
 0x29c   :  { %1972 = vrot.lane.b32.xlu0 %v16513_v31, %s15671_s15 }
 0x29e   :  { %1404 = vrot.lane.b32.xlu1 %v16522_v17, %s15670_s12 }
 0x2a0   :  { %2182 = vrot.lane.b32.xlu0 %v16513_v31, %s15672_s16 }
 0x2a2   :  { %1968 = vrot.lane.b32.xlu1 %v16506_v50, %s15671_s15 }
 0x2a4   :  { %2178 = vrot.lane.b32.xlu0 %v16506_v50, %s15672_s16 }
 0x2a6   :  { %1966 = vrot.lane.b32.xlu1 %v16502_v4, %s15671_s15 }
 0x2a8   :  { %2176 = vrot.lane.b32.xlu0 %v16502_v4, %s15672_s16 }
 0x2aa   :  { %1964 = vrot.lane.b32.xlu1 %v16495_v13, %s15671_s15 }
 0x2ac   :  { %2174 = vrot.lane.b32.xlu0 %v16495_v13, %s15672_s16 }
 0x2ae   :  { %1962 = vrot.lane.b32.xlu1 %v16491_v37, %s15671_s15 }
 0x2b0   :  { %2172 = vrot.lane.b32.xlu0 %v16491_v37, %s15672_s16 }
 0x2b2   :  { %1960 = vrot.lane.b32.xlu1 %v16483_v21, %s15671_s15 }
 0x2b4   :  { %2170 = vrot.lane.b32.xlu0 %v16483_v21, %s15672_s16 }
 0x2b6   :  { %1958 = vrot.lane.b32.xlu1 %v16478_v3, %s15671_s15 }
 0x2b8   :  { %2168 = vrot.lane.b32.xlu0 %v16478_v3, %s15672_s16 }
 0x2ba   :  { %1956 = vrot.lane.b32.xlu1 %v16471_v54, %s15671_s15 }
 0x2bc   :  { %2180 = vrot.lane.b32.xlu0 %v16522_v17, %s15672_s16 }
 0x2be   :  { %1970 = vrot.lane.b32.xlu1 %v16522_v17, %s15671_s15 }
 0x2c0   :  { %2166 = vrot.lane.b32.xlu0 %v16471_v54, %s15672_s16 }
 0x2c2   :  { %1954 = vrot.lane.b32.xlu1 %v16464_v53, %s15671_s15 }
 0x2c4   :  { %2164 = vrot.lane.b32.xlu0 %v16464_v53, %s15672_s16 }
 0x2c6   :  { %1952 = vrot.lane.b32.xlu1 %v16455_v49, %s15671_s15 }
 0x2c8   :  { %2162 = vrot.lane.b32.xlu0 %v16455_v49, %s15672_s16 }
 0x2ca   :  { %1950 = vrot.lane.b32.xlu1 %v16448_v48, %s15671_s15 }
 0x2cc   :  { %2160 = vrot.lane.b32.xlu0 %v16448_v48, %s15672_s16 }
 0x2ce   :  { %1948 = vrot.lane.b32.xlu1 %v16439_v44, %s15671_s15  ;;  %v16610_v55 = vpop.permute.xlu0 %1427 }
 0x2d0   :  { %2158 = vrot.lane.b32.xlu0 %v16439_v44, %s15672_s16 }
 0x2d2   :  { %1946 = vrot.lane.b32.xlu1 %v16432_v9, %s15671_s15  ;;  %v16616_v40 = vpop.permute.xlu0 %1425 }
 0x2d4   :  { %v16618_v28 = vpop.permute.xlu1 %1429  ;;  %2156 = vrot.lane.b32.xlu0 %v16432_v9, %s15672_s16 }
 0x2d6   :  { %1944 = vrot.lane.b32.xlu1 %v16417_v59, %s15671_s15  ;;  %v16624_v1 = vpop.permute.xlu0 %1431 }
 0x2d8   :  { %v16626_v18 = vpop.permute.xlu1 %1433  ;;  %2154 = vrot.lane.b32.xlu0 %v16417_v59, %s15672_s16 }
 0x2da   :  { %1942 = vrot.lane.b32.xlu1 %v16427_v52, %s15671_s15  ;;  %v16635_v56 = vpop.permute.xlu0 %1435 }
 0x2dc   :  { %v16637_v36 = vpop.permute.xlu1 %1437  ;;  %2456 = vperm.xlu0 %15666, %v10850_v26  }
 0x2de   :  { %2152 = vrot.lane.b32.xlu1 %v16427_v52, %s15672_s16  ;;  %v16644_v19 = vpop.permute.xlu0 %1439 }
 0x2e0   :  { %v1442_v20 = vpop.permute.xlu1 %1441  ;;  %2446 = vperm.xlu0 %15666, %v10848_v38  }
 0x2e2   :  { %2451 = vperm.xlu1 %15667, %v10849_v63   ;;  %v1444_v27 = vpop.permute.xlu0 %1443 }
 0x2e4   :  { %v1446_v23 = vpop.permute.xlu1 %1445  ;;  %2436 = vperm.xlu0 %15666, %v10846_v60  }
 0x2e6   :  { %2441 = vperm.xlu1 %15667, %v10847_v47   ;;  %v1448_v35 = vpop.permute.xlu0 %1447 }
 0x2e8   :  { %v1450_v7 = vpop.permute.xlu1 %1449  ;;  %2426 = vperm.xlu0 %15666, %v10844_v39  }
 0x2ea   :  { %2431 = vperm.xlu1 %15667, %v10845_v61   ;;  %v1452_v5 = vpop.permute.xlu0 %1451 }
 0x2ec   :  { %v16667_v42 = vpop.permute.xlu1 %1400  ;;  %2416 = vperm.xlu0 %15666, %v10842_v0   ;;  %v10758_v0 = vld [vmem:[%s22784_s3 + $0x298] sm:$0xff] }
 0x2ee   :  { %2421 = vperm.xlu1 %15667, %v10843_v6   ;;  %v1456_v11 = vpop.permute.xlu0 %1455 }
 0x2ef   :  { %13295 = vmatprep.subr.mxu1 %v1456_v11 }
 0x2f0   :  { %v1407_v10 = vpop.permute.xlu1 %1406  ;;  %2406 = vperm.xlu0 %15666, %v10840_v22   ;;  %13296 = vmatpush3.msra.mxu1 %v1456_v11  ;;  %v10789_v22 = vld [vmem:[%s22784_s3 + $0x390] sm:$0xff]  ;;  %v10790_v11 = vld [vmem:[%s22784_s3 + $0x398] sm:$0xff] }
 0x2f1   :  { %13351 = vmatprep.subr.mxu0 %v1407_v10 }
 0x2f2   :  { %13352 = vmatpush3.msra.mxu0 %v1407_v10  ;;  %2411 = vperm.xlu1 %15667, %v10841_v15   ;;  %v16678_v45 = vpop.permute.xlu0 %1402 }
 0x2f4   :  { %v1454_v30 = vpop.permute.xlu1 %1453  ;;  %2396 = vperm.xlu0 %15666, %v10838_v12   ;;  %v10761_v12 = vld [vmem:[%s22784_s3 + $0x2b0] sm:$0xff] }
 0x2f5   :  { %13297 = vmatprep.subr.mxu1 %v1454_v30 }
 0x2f6   :  { %2401 = vperm.xlu1 %15667, %v10839_v29   ;;  %13298 = vmatpush3.msra.mxu1 %v1454_v30  ;;  %v16686_v32 = vpop.permute.xlu0 %1398  ;;  %v10762_v29 = vld [vmem:[%s22784_s3 + $0x2b8] sm:$0xff]  ;;  %v10792_v30 = vld [vmem:[%s22784_s3 + $0x3a8] sm:$0xff] }
 0x2f7   :  { %13299 = vmatprep.subr.mxu1 %v1452_v5 }
 0x2f8   :  { %v16691_v14 = vpop.permute.xlu1 %1396  ;;  %2386 = vperm.xlu0 %15666, %v10836_v46   ;;  %13300 = vmatpush3.msra.mxu1 %v1452_v5  ;;  %v10788_v5 = vld [vmem:[%s22784_s3 + $0x388] sm:$0xff] }
 0x2f9   :  { %13301 = vmatprep.subr.mxu1 %v1450_v7 }
 0x2fa   :  { %2391 = vperm.xlu1 %15667, %v10837_v24   ;;  %13302 = vmatpush3.msra.mxu1 %v1450_v7  ;;  %v16693_v62 = vpop.permute.xlu0 %1394  ;;  %v10757_v7 = vld [vmem:[%s22784_s3 + $0x290] sm:$0xff]  ;;  %v10763_v24 = vld [vmem:[%s22784_s3 + $0x2c0] sm:$0xff] }
 0x2fb   :  { %13303 = vmatprep.subr.mxu1 %v1448_v35 }
 0x2fc   :  { %v16698_v34 = vpop.permute.xlu1 %1392  ;;  %13304 = vmatpush3.msra.mxu1 %v1448_v35  ;;  %v10756_v35 = vld [vmem:[%s22784_s3 + $0x288] sm:$0xff] }
 0x2fd   :  { %13305 = vmatprep.subr.mxu1 %v1446_v23 }
 0x2fe   :  { %2381 = vperm.xlu1 %15667, %v10835_v2   ;;  %13306 = vmatpush3.msra.mxu1 %v1446_v23  ;;  %v16700_v51 = vpop.permute.xlu0 %1390  ;;  %v10784_v23 = vld [vmem:[%s22784_s3 + $0x368] sm:$0xff]  ;;  %v10794_v2 = vld [vmem:[%s22784_s3 + $0x3b8] sm:$0xff] }
 0x2ff   :  { %13307 = vmatprep.subr.mxu1 %v1444_v27 }
 0x300   :  { %v16702_v25 = vpop.permute.xlu1 %1388  ;;  %13308 = vmatpush3.msra.mxu1 %v1444_v27  ;;  %v10782_v27 = vld [vmem:[%s22784_s3 + $0x358] sm:$0xff] }
 0x301   :  { %13309 = vmatprep.subr.mxu1 %v1442_v20 }
 0x302   :  { %13310 = vmatpush3.msra.mxu1 %v1442_v20  ;;  %v16704_v8 = vpop.permute.xlu0 %1386 }
 0x303   :  { %13311 = vmatprep.subr.mxu1 %v16644_v19 }
 0x304   :  { %v16707_v16 = vpop.permute.xlu1 %1384  ;;  %13312 = vmatpush3.msra.mxu1 %v16644_v19 }
 0x305   :  { %13313 = vmatprep.subr.mxu1 %v16637_v36 }
 0x306   :  { %13314 = vmatpush3.msra.mxu1 %v16637_v36  ;;  %v16712_v33 = vpop.permute.xlu0 %1382 }
 0x307   :  { %13315 = vmatprep.subr.mxu1 %v16635_v56 }
 0x308   :  { %v16715_v41 = vpop.permute.xlu1 %1380  ;;  %13316 = vmatpush3.msra.mxu1 %v16635_v56 }
 0x309   :  { %13317 = vmatprep.subr.mxu1 %v16626_v18 }
 0x30a   :  { %13318 = vmatpush3.msra.mxu1 %v16626_v18  ;;  %v16720_v43 = vpop.permute.xlu0 %1378  ;;  %v10772_v18 = vld [vmem:[%s22784_s3 + $0x308] sm:$0xff] }
 0x30b   :  { %13319 = vmatprep.subr.mxu1 %v16624_v1 }
 0x30c   :  { %v16723_v57 = vpop.permute.xlu1 %1376  ;;  %13320 = vmatpush3.msra.mxu1 %v16624_v1 }
 0x30d   :  { %13321 = vmatprep.subr.mxu1 %v16618_v28 }
 0x30e   :  { %13322 = vmatpush3.msra.mxu1 %v16618_v28  ;;  %v16728_v58 = vpop.permute.xlu0 %1972  ;;  %v10773_v28 = vld [vmem:[%s22784_s3 + $0x310] sm:$0xff] }
 0x30f   :  { %13323 = vmatprep.subr.mxu1 %v16610_v55 }
 0x310   :  { %v1405_v26 = vpop.permute.xlu1 %1404  ;;  %13324 = vmatpush3.msra.mxu1 %v16610_v55 }
 0x311   :  { %13325 = vmatprep.subr.mxu1 %v16616_v40  ;;  %13353 = vmatprep.subr.mxu0 %v1405_v26 }
 0x312   :  { %13326 = vmatpush3.msra.mxu1 %v16616_v40  ;;  %13354 = vmatpush3.msra.mxu0 %v1405_v26  ;;  %v16737_v1 = vpop.permute.xlu0 %2182  ;;  %v10774_v40 = vld [vmem:[%s22784_s3 + $0x318] sm:$0xff]  ;;  %v10768_v26 = vld [vmem:[%s22784_s3 + $0x2e8] sm:$0xff] }
 0x313   :  { %13328 = vmatmul.mubr.f32.vlgmr.msra.gmra.mxu1 %v10772_v18  ;;  %13355 = vmatprep.subr.mxu0 %v16678_v45  ;;  %v10798_v18 = vld [vmem:[%s22784_s3 + $0x3d8] sm:$0xff] }
 0x314   :  { %13407 = vmatprep.subr.mxu1 %v16513_v31  ;;  %v16744_v55 = vpop.permute.xlu1 %1968  ;;  %13356 = vmatpush3.msra.mxu0 %v16678_v45  ;;  %v10791_v45 = vld [vmem:[%s22784_s3 + $0x3a0] sm:$0xff] }
 0x315   :  { %13408 = vmatpush3.msra.mxu1 %v16513_v31  ;;  %13357 = vmatprep.subr.mxu0 %v16667_v42  ;;  %v10775_v31 = vld [vmem:[%s22784_s3 + $0x320] sm:$0xff] }
 0x316   :  { %13409 = vmatprep.subr.mxu1 %v16522_v17  ;;  %13330 = vmatprep.mubr.f32.mxu1 %v10773_v28  ;;  %v16755_v56 = vpop.permute.xlu0 %2178 }
 0x317   :  { %13358 = vmatpush3.msra.mxu0 %v16667_v42  ;;  %13410 = vmatpush3.msra.mxu1 %v16522_v17  ;;  %v10776_v17 = vld [vmem:[%s22784_s3 + $0x328] sm:$0xff]  ;;  %v10759_v42 = vld [vmem:[%s22784_s3 + $0x2a0] sm:$0xff] }
 0x318   :  { %13331 = vmatmul.mubr.f32.gmra.mxu1 %v10774_v40  ;;  %13359 = vmatprep.subr.mxu0 %v16686_v32  ;;  %v16758_v36 = vpop.permute.xlu1 %1966  ;;  %v10799_v40 = vld [vmem:[%s22784_s3 + $0x3e0] sm:$0xff] }
 0x319   :  { %13411 = vmatprep.subr.mxu1 %v16506_v50  ;;  %13360 = vmatpush3.msra.mxu0 %v16686_v32 }
 0x31a   :  { %13412 = vmatpush3.msra.mxu1 %v16506_v50  ;;  %13361 = vmatprep.subr.mxu0 %v16691_v14  ;;  %v10777_v50 = vld [vmem:[%s22784_s3 + $0x330] sm:$0xff]  ;;  %v16779_v19 = vpop.permute.xlu0 %2176 }
 0x31b   :  { %13413 = vmatprep.subr.mxu1 %v16502_v4  ;;  %13333 = vmatprep.mubr.f32.mxu1 %v10775_v31 }
 0x31c   :  { %13362 = vmatpush3.msra.mxu0 %v16691_v14  ;;  %13414 = vmatpush3.msra.mxu1 %v16502_v4  ;;  %v16773_v38 = vpop.permute.xlu1 %1964  ;;  %v10778_v4 = vld [vmem:[%s22784_s3 + $0x338] sm:$0xff]  ;;  %v10793_v14 = vld [vmem:[%s22784_s3 + $0x3b0] sm:$0xff] }
 0x31d   :  { %13334 = vmatmul.mubr.f32.gmra.mxu1 %v10776_v17  ;;  %13363 = vmatprep.subr.mxu0 %v16693_v62 }
 0x31e   :  { %13415 = vmatprep.subr.mxu1 %v16495_v13  ;;  %13364 = vmatpush3.msra.mxu0 %v16693_v62  ;;  %v16799_v20 = vpop.permute.xlu0 %2174  ;;  %v10764_v62 = vld [vmem:[%s22784_s3 + $0x2c8] sm:$0xff] }
 0x31f   :  { %13416 = vmatpush3.msra.mxu1 %v16495_v13  ;;  %13365 = vmatprep.subr.mxu0 %v16698_v34  ;;  %v10779_v13 = vld [vmem:[%s22784_s3 + $0x340] sm:$0xff] }
 0x320   :  { %13417 = vmatprep.subr.mxu1 %v16491_v37  ;;  %13336 = vmatprep.mubr.f32.mxu1 %v10777_v50  ;;  %v16789_v63 = vpop.permute.xlu1 %1962  ;;  %v10803_v50 = vld [vmem:[%s22784_s3 + $0x400] sm:$0xff] }
 0x321   :  { %13366 = vmatpush3.msra.mxu0 %v16698_v34  ;;  %13418 = vmatpush3.msra.mxu1 %v16491_v37  ;;  %v10780_v37 = vld [vmem:[%s22784_s3 + $0x348] sm:$0xff] }
 0x322   :  { %13337 = vmatmul.mubr.f32.gmra.mxu1 %v10778_v4  ;;  %13367 = vmatprep.subr.mxu0 %v16700_v51  ;;  %v10804_v4 = vld [vmem:[%s22784_s3 + $0x408] sm:$0xff] }
 0x323   :  { %13419 = vmatprep.subr.mxu1 %v16483_v21  ;;  %13368 = vmatpush3.msra.mxu0 %v16700_v51 }
 0x324   :  { %13420 = vmatpush3.msra.mxu1 %v16483_v21  ;;  %13369 = vmatprep.subr.mxu0 %v16702_v25  ;;  %v16806_v60 = vpop.permute.xlu1 %1960  ;;  %v10781_v21 = vld [vmem:[%s22784_s3 + $0x350] sm:$0xff] }
 0x325   :  { %13421 = vmatprep.subr.mxu1 %v16478_v3  ;;  %13339 = vmatprep.mubr.f32.mxu1 %v10779_v13  ;;  %v10819_v13 = vld [vmem:[%s22784_s3 + $0x480] sm:$0xff] }
 0x326   :  { %13370 = vmatpush3.msra.mxu0 %v16702_v25  ;;  %13422 = vmatpush3.msra.mxu1 %v16478_v3  ;;  %v16822_v3 = vpop.permute.xlu0 %2172  ;;  %v10765_v25 = vld [vmem:[%s22784_s3 + $0x2d0] sm:$0xff] }
 0x327   :  { %13340 = vmatmul.mubr.f32.gmra.mxu1 %v10780_v37  ;;  %13371 = vmatprep.subr.mxu0 %v16704_v8 }
 0x328   :  { %13423 = vmatprep.subr.mxu1 %v16471_v54  ;;  %13372 = vmatpush3.msra.mxu0 %v16704_v8  ;;  %v16825_v47 = vpop.permute.xlu1 %1958  ;;  %v10795_v8 = vld [vmem:[%s22784_s3 + $0x3c0] sm:$0xff] }
 0x329   :  { %13424 = vmatpush3.msra.mxu1 %v16471_v54  ;;  %13373 = vmatprep.subr.mxu0 %v16707_v16  ;;  %v10783_v54 = vld [vmem:[%s22784_s3 + $0x360] sm:$0xff] }
 0x32a   :  { %13425 = vmatprep.subr.mxu1 %v16464_v53  ;;  %13342 = vmatprep.mubr.f32.mxu1 %v10781_v21  ;;  %v10820_v21 = vld [vmem:[%s22784_s3 + $0x488] sm:$0xff] }
 0x32b   :  { %13374 = vmatpush3.msra.mxu0 %v16707_v16  ;;  %13426 = vmatpush3.msra.mxu1 %v16464_v53  ;;  %v16841_v53 = vpop.permute.xlu0 %2170  ;;  %v10766_v16 = vld [vmem:[%s22784_s3 + $0x2d8] sm:$0xff] }
 0x32c   :  { %13343 = vmatmul.mubr.f32.gmra.mxu1 %v10782_v27  ;;  %13375 = vmatprep.subr.mxu0 %v16712_v33  ;;  %v16845_v39 = vpop.permute.xlu1 %1956  ;;  %v10807_v27 = vld [vmem:[%s22784_s3 + $0x420] sm:$0xff] }
 0x32d   :  { %13427 = vmatprep.subr.mxu1 %v16455_v49  ;;  %13376 = vmatpush3.msra.mxu0 %v16712_v33  ;;  %v10796_v33 = vld [vmem:[%s22784_s3 + $0x3c8] sm:$0xff] }
 0x32e   :  { %13428 = vmatpush3.msra.mxu1 %v16455_v49  ;;  %13377 = vmatprep.subr.mxu0 %v16715_v41  ;;  %v10785_v49 = vld [vmem:[%s22784_s3 + $0x370] sm:$0xff] }
 0x32f   :  { %13429 = vmatprep.subr.mxu1 %v16448_v48  ;;  %13345 = vmatprep.mubr.f32.mxu1 %v10783_v54  ;;  %v16864_v61 = vpop.permute.xlu0 %2168  ;;  %v10822_v54 = vld [vmem:[%s22784_s3 + $0x498] sm:$0xff] }
 0x330   :  { %13378 = vmatpush3.msra.mxu0 %v16715_v41  ;;  %13430 = vmatpush3.msra.mxu1 %v16448_v48  ;;  %v10786_v48 = vld [vmem:[%s22784_s3 + $0x378] sm:$0xff] }
 0x331   :  { %13346 = vmatmul.mubr.f32.gmra.mxu1 %v10784_v23  ;;  %13379 = vmatprep.subr.mxu0 %v16720_v43  ;;  %v10809_v23 = vld [vmem:[%s22784_s3 + $0x430] sm:$0xff] }
 0x332   :  { %13431 = vmatprep.subr.mxu1 %v16439_v44  ;;  %13380 = vmatpush3.msra.mxu0 %v16720_v43 }
 0x333   :  { %13432 = vmatpush3.msra.mxu1 %v16439_v44  ;;  %13381 = vmatprep.subr.mxu0 %v16723_v57  ;;  %v1971_v44 = vpop.permute.xlu1 %1970 }
 0x334   :  { %13433 = vmatprep.subr.mxu1 %v16432_v9  ;;  %13348 = vmatprep.mubr.f32.mxu1 %v10785_v49  ;;  %v10824_v49 = vld [vmem:[%s22784_s3 + $0x4a8] sm:$0xff] }
 0x335   :  { %13382 = vmatpush3.msra.mxu0 %v16723_v57  ;;  %13434 = vmatpush3.msra.mxu1 %v16432_v9  ;;  %v10787_v9 = vld [vmem:[%s22784_s3 + $0x380] sm:$0xff] }
 0x336   :  { %13349 = vmatmul.mubr.f32.gmra.mxu1 %v10786_v48  ;;  %13384 = vmatmul.mubr.f32.vlgmr.msra.gmra.mxu0 %v10756_v35  ;;  %v10767_v57 = vld [vmem:[%s22784_s3 + $0x2e0] sm:$0xff]  ;;  %v10825_v35 = vld [vmem:[%s22784_s3 + $0x4b0] sm:$0xff] }
 0x337   :  { %13435 = vmatprep.subr.mxu1 %v16417_v59  ;;  %13463 = vmatprep.subr.mxu0 %v16728_v58  ;;  %v16884_v6 = vpop.permute.xlu1 %1954  ;;  %v10811_v48 = vld [vmem:[%s22784_s3 + $0x440] sm:$0xff] }
 0x338   :  { %13436 = vmatpush3.msra.mxu1 %v16417_v59  ;;  %13464 = vmatpush3.msra.mxu0 %v16728_v58  ;;  %v2181_v59 = vpop.permute.xlu0 %2180  ;;  %v10797_v58 = vld [vmem:[%s22784_s3 + $0x3d0] sm:$0xff] }
 0x339   :  { %13437 = vmatprep.subr.mxu1 %v16427_v52  ;;  %13465 = vmatprep.subr.mxu0 %v1971_v44 }
 0x33a   :  { %13386 = vmatprep.mubr.f32.mxu0 %v10757_v7  ;;  %13438 = vmatpush3.msra.mxu1 %v16427_v52  ;;  %v10760_v52 = vld [vmem:[%s22784_s3 + $0x2a8] sm:$0xff]  ;;  %v10813_v7 = vld [vmem:[%s22784_s3 + $0x450] sm:$0xff] }
 0x33b   :  { %13439 = vmatprep.mubr.f32.mxu1 %v10787_v9  ;;  %13466 = vmatpush3.msra.mxu0 %v1971_v44  ;;  %v1953_v10 = vpop.permute.xlu1 %1952  ;;  %v10826_v44 = vld [vmem:[%s22784_s3 + $0x4b8] sm:$0xff]  ;;  %v10827_v9 = vld [vmem:[%s22784_s3 + $0x4c0] sm:$0xff] }
 0x33c   :  { %13387 = vmatmul.mubr.f32.gmra.mxu0 %v10758_v0  ;;  %13440 = vmatmul.mubr.f32.vlgmr.msra.gmra.mxu1 %v10788_v5  ;;  %v2167_v15 = vpop.permute.xlu0 %2166  ;;  %v10814_v0 = vld [vmem:[%s22784_s3 + $0x458] sm:$0xff]  ;;  %v10828_v5 = vld [vmem:[%s22784_s3 + $0x4c8] sm:$0xff] }
 0x33d   :  { %13467 = vmatprep.subr.mxu0 %v16744_v55  ;;  %13519 = vmatprep.subr.mxu1 %v16737_v1 }
 0x33e   :  { %13468 = vmatpush3.msra.mxu0 %v16744_v55  ;;  %13520 = vmatpush3.msra.mxu1 %v16737_v1  ;;  %v10769_v55 = vld [vmem:[%s22784_s3 + $0x2f0] sm:$0xff] }
 0x33f   :  { %13469 = vmatprep.subr.mxu0 %v16758_v36  ;;  %13521 = vmatprep.subr.mxu1 %v2181_v59  ;;  %v1951_v32 = vpop.permute.xlu1 %1950 }
 0x340   :  { %13389 = vmatprep.mubr.f32.mxu0 %v10759_v42  ;;  %13442 = vmatprep.mubr.f32.mxu1 %v10789_v22  ;;  %v2165_v46 = vpop.permute.xlu0 %2164  ;;  %v10816_v42 = vld [vmem:[%s22784_s3 + $0x468] sm:$0xff]  ;;  %v10830_v22 = vld [vmem:[%s22784_s3 + $0x4d8] sm:$0xff] }
 0x341   :  { %13470 = vmatpush3.msra.mxu0 %v16758_v36  ;;  %13522 = vmatpush3.msra.mxu1 %v2181_v59  ;;  %v10800_v36 = vld [vmem:[%s22784_s3 + $0x3e8] sm:$0xff]  ;;  %v10815_v59 = vld [vmem:[%s22784_s3 + $0x460] sm:$0xff] }
 0x342   :  { %13390 = vmatmul.mubr.f32.gmra.mxu0 %v10760_v52  ;;  %13443 = vmatmul.mubr.f32.gmra.mxu1 %v10790_v11  ;;  %v10817_v52 = vld [vmem:[%s22784_s3 + $0x470] sm:$0xff]  ;;  %v10831_v11 = vld [vmem:[%s22784_s3 + $0x4e0] sm:$0xff] }
 0x343   :  { %13471 = vmatprep.subr.mxu0 %v16773_v38  ;;  %13523 = vmatprep.subr.mxu1 %v16755_v56  ;;  %v1949_v51 = vpop.permute.xlu1 %1948 }
 0x344   :  { %13472 = vmatpush3.msra.mxu0 %v16773_v38  ;;  %13524 = vmatpush3.msra.mxu1 %v16755_v56  ;;  %v2163_v34 = vpop.permute.xlu0 %2162  ;;  %v10770_v56 = vld [vmem:[%s22784_s3 + $0x2f8] sm:$0xff]  ;;  %v10801_v38 = vld [vmem:[%s22784_s3 + $0x3f0] sm:$0xff] }
 0x345   :  { %13473 = vmatprep.subr.mxu0 %v16789_v63  ;;  %13525 = vmatprep.subr.mxu1 %v16779_v19 }
 0x346   :  { %13392 = vmatprep.mubr.f32.mxu0 %v10761_v12  ;;  %13445 = vmatprep.mubr.f32.mxu1 %v10791_v45  ;;  %v10833_v12 = vld [vmem:[%s22784_s3 + $0x4f0] sm:$0xff]  ;;  %v10834_v45 = vld [vmem:[%s22784_s3 + $0x4f8] sm:$0xff] }
 0x347   :  { %13474 = vmatpush3.msra.mxu0 %v16789_v63  ;;  %13526 = vmatpush3.msra.mxu1 %v16779_v19  ;;  %v1947_v43 = vpop.permute.xlu1 %1946  ;;  %v10802_v19 = vld [vmem:[%s22784_s3 + $0x3f8] sm:$0xff]  ;;  %v10805_v63 = vld [vmem:[%s22784_s3 + $0x410] sm:$0xff] }
 0x348   :  { %13393 = vmatmul.mubr.f32.gmra.mxu0 %v10762_v29  ;;  %13446 = vmatmul.mubr.f32.gmra.mxu1 %v10792_v30  ;;  %v2161_v41 = vpop.permute.xlu0 %2160 }
 0x349   :  { %13475 = vmatprep.subr.mxu0 %v16806_v60  ;;  %13527 = vmatprep.subr.mxu1 %v16799_v20 }
 0x34a   :  { %13476 = vmatpush3.msra.mxu0 %v16806_v60  ;;  %13528 = vmatpush3.msra.mxu1 %v16799_v20  ;;  %v10806_v60 = vld [vmem:[%s22784_s3 + $0x418] sm:$0xff] }
 0x34b   :  { %13477 = vmatprep.subr.mxu0 %v16825_v47  ;;  %13529 = vmatprep.subr.mxu1 %v16822_v3  ;;  %v1945_v28 = vpop.permute.xlu1 %1944 }
 0x34c   :  { %13395 = vmatprep.mubr.f32.mxu0 %v10763_v24  ;;  %13448 = vmatprep.mubr.f32.mxu1 %v10793_v14  ;;  %v2159_v1 = vpop.permute.xlu0 %2158 }
 0x34d   :  { %13478 = vmatpush3.msra.mxu0 %v16825_v47  ;;  %13530 = vmatpush3.msra.mxu1 %v16822_v3  ;;  %v10821_v3 = vld [vmem:[%s22784_s3 + $0x490] sm:$0xff]  ;;  %v10808_v47 = vld [vmem:[%s22784_s3 + $0x428] sm:$0xff] }
 0x34e   :  { %13396 = vmatmul.mubr.f32.gmra.mxu0 %v10764_v62  ;;  %13449 = vmatmul.mubr.f32.gmra.mxu1 %v10794_v2 }
 0x34f   :  { %13479 = vmatprep.subr.mxu0 %v16845_v39  ;;  %13531 = vmatprep.subr.mxu1 %v16841_v53  ;;  %v1943_v17 = vpop.permute.xlu1 %1942 }
 0x350   :  { %13480 = vmatpush3.msra.mxu0 %v16845_v39  ;;  %13532 = vmatpush3.msra.mxu1 %v16841_v53  ;;  %v2157_v31 = vpop.permute.xlu0 %2156  ;;  %v10823_v53 = vld [vmem:[%s22784_s3 + $0x4a0] sm:$0xff]  ;;  %v10810_v39 = vld [vmem:[%s22784_s3 + $0x438] sm:$0xff] }
 0x351   :  { %13481 = vmatprep.subr.mxu0 %v16884_v6  ;;  %13533 = vmatprep.subr.mxu1 %v16864_v61 }
 0x352   :  { %13398 = vmatprep.mubr.f32.mxu0 %v10765_v25  ;;  %13451 = vmatprep.mubr.f32.mxu1 %v10795_v8 }
 0x353   :  { %13482 = vmatpush3.msra.mxu0 %v16884_v6  ;;  %13534 = vmatpush3.msra.mxu1 %v16864_v61  ;;  %v2153_v37 = vpop.permute.xlu1 %2152  ;;  %v10812_v61 = vld [vmem:[%s22784_s3 + $0x448] sm:$0xff]  ;;  %v10829_v6 = vld [vmem:[%s22784_s3 + $0x4d0] sm:$0xff] }
 0x354   :  { %13399 = vmatmul.mubr.f32.gmra.mxu0 %v10766_v16  ;;  %13452 = vmatmul.mubr.f32.gmra.mxu1 %v10796_v33  ;;  %v2155_v20 = vpop.permute.xlu0 %2154 }
 0x355   :  { %13483 = vmatprep.subr.mxu0 %v1953_v10  ;;  %13535 = vmatprep.subr.mxu1 %v2167_v15 }
 0x356   :  { %13484 = vmatpush3.msra.mxu0 %v1953_v10  ;;  %13536 = vmatpush3.msra.mxu1 %v2167_v15  ;;  %v10818_v15 = vld [vmem:[%s22784_s3 + $0x478] sm:$0xff]  ;;  %v10832_v10 = vld [vmem:[%s22784_s3 + $0x4e8] sm:$0xff] }
 0x357   :  { %13485 = vmatprep.subr.mxu0 %v1951_v32  ;;  %13537 = vmatprep.subr.mxu1 %v2165_v46 }
 0x358   :  { %13401 = vmatprep.mubr.f32.mxu0 %v10767_v57  ;;  %13454 = vmatprep.mubr.f32.mxu1 %v10797_v58 }
 0x359   :  { %13486 = vmatpush3.msra.mxu0 %v1951_v32  ;;  %13538 = vmatpush3.msra.mxu1 %v2165_v46 }
 0x35a   :  { %13402 = vmatmul.mubr.f32.gmra.mxu0 %v10768_v26  ;;  %13455 = vmatmul.mubr.f32.gmra.mxu1 %v10798_v18 }
 0x35b   :  { %13487 = vmatprep.subr.mxu0 %v1949_v51  ;;  %13539 = vmatprep.subr.mxu1 %v2163_v34 }
 0x35c   :  { %13488 = vmatpush3.msra.mxu0 %v1949_v51  ;;  %13540 = vmatpush3.msra.mxu1 %v2163_v34 }
 0x35d   :  { %13489 = vmatprep.subr.mxu0 %v1947_v43  ;;  %13541 = vmatprep.subr.mxu1 %v2161_v41 }
 0x35e   :  { %13404 = vmatprep.mubr.f32.mxu0 %v10769_v55  ;;  %13457 = vmatprep.mubr.f32.mxu1 %v10799_v40 }
 0x35f   :  { %13490 = vmatpush3.msra.mxu0 %v1947_v43  ;;  %13542 = vmatpush3.msra.mxu1 %v2161_v41 }
 0x360   :  { %13405 = vmatmul.mubr.f32.gmra.mxu0 %v10770_v56  ;;  %13458 = vmatmul.mubr.f32.gmra.mxu1 %v10800_v36  ;;  %v17118_v56 = vpop.permute.xlu0 %2456 }
 0x361   :  { %13491 = vmatprep.subr.mxu0 %v1945_v28  ;;  %13543 = vmatprep.subr.mxu1 %v2159_v1  ;;  %22821 = vst [vmem:[#allocation10_spill] sm:$0xff] %v17118_v56 }
 0x362   :  { %13492 = vmatpush3.msra.mxu0 %v1945_v28  ;;  %13544 = vmatpush3.msra.mxu1 %v2159_v1 }
 0x363   :  { %13493 = vmatprep.subr.mxu0 %v1943_v17  ;;  %13545 = vmatprep.subr.mxu1 %v2157_v31 }
 0x364   :  { %13460 = vmatprep.mubr.f32.mxu1 %v10801_v38  ;;  %13494 = vmatpush3.msra.mxu0 %v1943_v17  ;;  %v17120_v17 = vpop.permute.xlu1 %2451 }
 0x365   :  { %13495 = vmatprep.mubr.f32.mxu0 %v10803_v50  ;;  %13546 = vmatpush3.msra.mxu1 %v2157_v31  ;;  %22822 = vst [vmem:[#allocation12_spill] sm:$0xff] %v17120_v17 }
 0x366   :  { %13461 = vmatmul.mubr.f32.gmra.mxu1 %v10802_v19  ;;  %13496 = vmatmul.mubr.f32.vlgmr.msra.gmra.mxu0 %v10804_v4  ;;  %v17124_v19 = vpop.permute.xlu0 %2446 }
 0x367   :  { %13547 = vmatprep.subr.mxu1 %v2155_v20  ;;  %13498 = vmatprep.mubr.f32.mxu0 %v10805_v63  ;;  %22823 = vst [vmem:[#allocation14_spill] sm:$0xff] %v17124_v19 }
 0x368   :  { %13548 = vmatpush3.msra.mxu1 %v2155_v20  ;;  %13551 = vmatprep.mubr.f32.mxu1 %v10819_v13  ;;  %v17130_v13 = vpop.permute.xlu1 %2441 }
 0x369   :  { %13549 = vmatprep.subr.mxu1 %v2153_v37  ;;  %22824 = vst [vmem:[#allocation7_spill] sm:$0xff] %v17130_v13 }
 0x36a   :  { %13550 = vmatpush3.msra.mxu1 %v2153_v37  ;;  %13499 = vmatmul.mubr.f32.gmra.mxu0 %v10806_v60  ;;  %v17136_v60 = vpop.permute.xlu0 %2436 }
 0x36b   :  { %13552 = vmatmul.mubr.f32.vlgmr.msra.gmra.mxu1 %v10820_v21  ;;  %13501 = vmatprep.mubr.f32.mxu0 %v10807_v27  ;;  %22825 = vst [vmem:[#allocation8_spill] sm:$0xff] %v17136_v60 }
 0x36c   :  { %13554 = vmatprep.mubr.f32.mxu1 %v10821_v3  ;;  %v17142_v3 = vpop.permute.xlu1 %2431 }
 0x36d   :  { %22826 = vst [vmem:[#allocation2_spill] sm:$0xff] %v17142_v3 }
 0x36e   :  { %13502 = vmatmul.mubr.f32.gmra.mxu0 %v10808_v47 }
 0x36f   :  { %13555 = vmatmul.mubr.f32.gmra.mxu1 %v10822_v54  ;;  %13504 = vmatprep.mubr.f32.mxu0 %v10809_v23  ;;  %v17148_v23 = vpop.permute.xlu0 %2426 }
 0x370   :  { %13557 = vmatprep.mubr.f32.mxu1 %v10823_v53  ;;  %22827 = vst [vmem:[#allocation13_spill] sm:$0xff] %v17148_v23 }
 0x372   :  { %13505 = vmatmul.mubr.f32.gmra.mxu0 %v10810_v39 }
 0x373   :  { %13558 = vmatmul.mubr.f32.gmra.mxu1 %v10824_v49  ;;  %13507 = vmatprep.mubr.f32.mxu0 %v10811_v48  ;;  %v17154_v49 = vpop.permute.xlu1 %2421 }
 0x374   :  { %13560 = vmatprep.mubr.f32.mxu1 %v10825_v35  ;;  %22828 = vst [vmem:[#allocation5_spill] sm:$0xff] %v17154_v49 }
 0x376   :  { %13508 = vmatmul.mubr.f32.gmra.mxu0 %v10812_v61  ;;  %v17160_v61 = vpop.permute.xlu0 %2416 }
 0x377   :  { %13561 = vmatmul.mubr.f32.gmra.mxu1 %v10826_v44  ;;  %13510 = vmatprep.mubr.f32.mxu0 %v10813_v7 }
 0x378   :  { %13563 = vmatprep.mubr.f32.mxu1 %v10827_v9  ;;  %v17166_v9 = vpop.permute.xlu1 %2411 }
 0x37a   :  { %13511 = vmatmul.mubr.f32.gmra.mxu0 %v10814_v0 }
 0x37b   :  { %13564 = vmatmul.mubr.f32.gmra.mxu1 %v10828_v5  ;;  %13513 = vmatprep.mubr.f32.mxu0 %v10815_v59  ;;  %v17172_v59 = vpop.permute.xlu0 %2406 }
 0x37c   :  { %13566 = vmatprep.mubr.f32.mxu1 %v10829_v6 }
 0x37e   :  { %13514 = vmatmul.mubr.f32.gmra.mxu0 %v10816_v42 }
 0x37f   :  { %13567 = vmatmul.mubr.f32.gmra.mxu1 %v10830_v22  ;;  %13516 = vmatprep.mubr.f32.mxu0 %v10817_v52  ;;  %v17178_v22 = vpop.permute.xlu1 %2401 }
 0x380   :  { %13569 = vmatprep.mubr.f32.mxu1 %v10831_v11 }
 0x382   :  { %13517 = vmatmul.mubr.f32.gmra.mxu0 %v10818_v15 }
 0x383   :  { %13570 = vmatmul.mubr.f32.gmra.mxu1 %v10832_v10  ;;  %v2397_v10 = vpop.permute.xlu0 %2396  ;;  %v2392_v13 = vpop.permute.xlu1 %2391 }
 0x384   :  { %13572 = vmatprep.mubr.f32.mxu1 %v10833_v12 }
 0x387   :  { %13573 = vmatmul.mubr.f32.gmra.mxu1 %v10834_v45 }
 0x3d3   :  { %v13329_v29 = vpop.f32.mrf.mxu1 }
 0x3d5   :  { %v1540_v30 = vpop.f32.mrf.mxu1 }
 0x3d8   :  { %v17090_v46 = vpop.f32.mrf.mxu1 }
 0x3da   :  { %v17092_v32 = vpop.f32.mrf.mxu1 }
 0x3dd   :  { %v17094_v24 = vpop.f32.mrf.mxu1 }
 0x3df   :  { %v17096_v14 = vpop.f32.mrf.mxu1 }
 0x3e2   :  { %v17098_v62 = vpop.f32.mrf.mxu1 }
 0x3e4   :  { %v17100_v2 = vpop.f32.mrf.mxu1 }
 0x3e7   :  { %v17102_v34 = vpop.f32.mrf.mxu1 }
 0x3e9   :  { %v17104_v51 = vpop.f32.mrf.mxu1 }
 0x3ec   :  { %v17106_v25 = vpop.f32.mrf.mxu1 }
 0x3ee   :  { %v17108_v8 = vpop.f32.mrf.mxu1 }
 0x3f1   :  { %v17110_v16 = vpop.f32.mrf.mxu1 }
 0x3f3   :  { %v17112_v33 = vpop.f32.mrf.mxu1 }
 0x3f6   :  { %v17114_v41 = vpop.f32.mrf.mxu1  ;;  %v13385_v43 = vpop.f32.mrf.mxu0 }
 0x3f7   :  { %22819 = vst [vmem:[#allocation11_spill] sm:$0xff] %v17114_v41  ;;  %v1691_v52 = vadd.f32 %v13385_v43, %v13329_v29  ;;  %v2387_v41 = vpop.permute.xlu0 %2386 }
 0x3f8   :  { %v17116_v57 = vpop.f32.mrf.mxu1  ;;  %v1685_v58 = vpop.f32.mrf.mxu0 }
 0x3f9   :  { %22820 = vst [vmem:[#allocation9_spill] sm:$0xff] %v17116_v57  ;;  %v1686_v12 = vadd.f32 %v1685_v58, %v1540_v30 }
 0x3fc   :  { %v13388_v26 = vpop.f32.mrf.mxu0  ;;  %v13441_v18 = vpop.f32.mrf.mxu1 }
 0x3fd   :  { %v1927_v45 = vadd.f32 %v13441_v18, %v1691_v52  ;;  %v1701_v19 = vadd.f32 %v13388_v26, %v17090_v46  ;;  %v2382_v46 = vpop.permute.xlu1 %2381 }
 0x3fe   :  { %v1695_v1 = vpop.f32.mrf.mxu0  ;;  %v1847_v28 = vpop.f32.mrf.mxu1 }
 0x3ff   :  { %v1926_v57 = vadd.f32 %v1847_v28, %v1686_v12 }
 0x402   :  { %v13391_v55 = vpop.f32.mrf.mxu0  ;;  %v13444_v40 = vpop.f32.mrf.mxu1 }
 0x403   :  { %v1711_v30 = vadd.f32 %v13391_v55, %v17094_v24 }
 0x404   :  { %v1705_v36 = vpop.f32.mrf.mxu0  ;;  %v1857_v31 = vpop.f32.mrf.mxu1 }
 0x405   :  { %v1706_v26 = vadd.f32 %v1705_v36, %v17096_v14 }
 0x408   :  { %v17122_v38 = vpop.f32.mrf.mxu0  ;;  %v13447_v50 = vpop.f32.mrf.mxu1 }
 0x409   :  { %v1931_v28 = vadd.f32 %v13447_v50, %v1711_v30  ;;  %v1721_v24 = vadd.f32 %v17122_v38, %v17098_v62 }
 0x40a   :  { %v17126_v4 = vpop.f32.mrf.mxu0  ;;  %v17128_v63 = vpop.f32.mrf.mxu1 }
 0x40b   :  { %v1930_v55 = vadd.f32 %v17128_v63, %v1706_v26  ;;  %v1716_v36 = vadd.f32 %v17126_v4, %v17100_v2 }
 0x40e   :  { %v17132_v20 = vpop.f32.mrf.mxu0  ;;  %v17134_v37 = vpop.f32.mrf.mxu1 }
 0x410   :  { %v17138_v21 = vpop.f32.mrf.mxu0  ;;  %v17140_v27 = vpop.f32.mrf.mxu1 }
 0x414   :  { %v17144_v47 = vpop.f32.mrf.mxu0  ;;  %v17146_v54 = vpop.f32.mrf.mxu1 }
 0x416   :  { %v17150_v53 = vpop.f32.mrf.mxu0  ;;  %v17152_v39 = vpop.f32.mrf.mxu1 }
 0x41a   :  { %v17156_v48 = vpop.f32.mrf.mxu0  ;;  %v17158_v35 = vpop.f32.mrf.mxu1 }
 0x41c   :  { %v17162_v44 = vpop.f32.mrf.mxu0  ;;  %v17164_v7 = vpop.f32.mrf.mxu1 }
 0x420   :  { %v17168_v0 = vpop.f32.mrf.mxu0  ;;  %v17170_v5 = vpop.f32.mrf.mxu1 }
 0x421   :  { %22829 = vst [vmem:[#allocation6_spill] sm:$0xff] %v17168_v0  ;;  %v1929_v0 = vadd.f32 %v13444_v40, %v1701_v19 }
 0x422   :  { %v17174_v6 = vpop.f32.mrf.mxu0  ;;  %v17176_v42 = vpop.f32.mrf.mxu1 }
 0x423   :  { %22830 = vst [vmem:[#allocation15_spill] sm:$0xff] %v17174_v6  ;;  %22831 = vst [vmem:[#allocation3_spill] sm:$0xff] %v17176_v42  ;;  %v1696_v42 = vadd.f32 %v1695_v1, %v17092_v32 }
 0x425   :  { %v1928_v18 = vadd.f32 %v1857_v31, %v1696_v42 }
 0x426   :  { %v17180_v11 = vpop.f32.mrf.mxu1  ;;  %v13497_v15 = vpop.f32.mrf.mxu0 }
 0x427   :  { %22832 = vst [vmem:[#allocation4_spill] sm:$0xff] %v17180_v11  ;;  %v2137_v3 = vadd.f32 %v13497_v15, %v1927_v45 }
 0x428   :  { %v17182_v17 = vpop.f32.mrf.mxu1  ;;  %v2057_v56 = vpop.f32.mrf.mxu0 }
 0x429   :  { %22833 = vst [vmem:[#allocation16_spill] sm:$0xff] %v17182_v17  ;;  %v2136_v29 = vadd.f32 %v2057_v56, %v1926_v57 }
 0x42a   :  { %v13500_v6 = vpop.f32.mrf.mxu0 }
 0x42b   :  { %v13553_v60 = vpop.f32.mrf.mxu1  ;;  %v2139_v52 = vadd.f32 %v13500_v6, %v1929_v0  ;;  %v1932_v0 = vadd.f32 %v17140_v27, %v1716_v36  ;;  %v22837_v36 = vld [vmem:[#allocation6_spill] sm:$0xff] }
 0x42c   :  { %v2347_v43 = vadd.f32 %v13553_v60, %v2137_v3  ;;  %v2067_v11 = vpop.f32.mrf.mxu0 }
 0x42d   :  { %v2267_v58 = vpop.f32.mrf.mxu1  ;;  %v2138_v32 = vadd.f32 %v2067_v11, %v1928_v18 }
 0x42e   :  { %v2460_v17 = vadd.f32 %v2387_v41, %v2347_v43  ;;  %v2346_v49 = vadd.f32 %v2267_v58, %v2136_v29  ;;  %v13503_v23 = vpop.f32.mrf.mxu0  ;;  %v1741_v43 = vadd.f32 %v17144_v47, %v17106_v25 }
 0x42f   :  { %v13556_v15 = vpop.f32.mrf.mxu1  ;;  %v2141_v41 = vadd.f32 %v13503_v23, %v1931_v28  ;;  %v1731_v23 = vadd.f32 %v17132_v20, %v17102_v34 }
 0x430   :  { %v17188_v12 = vmax.f32 %v2460_v17, 0.0  ;;  %v2459_v57 = vadd.f32 %v2382_v46, %v2346_v49  ;;  %v2349_v1 = vadd.f32 %v13556_v15, %v2139_v52  ;;  %v2077_v40 = vpop.f32.mrf.mxu0  ;;  %v1933_v17 = vadd.f32 %v17134_v37, %v1721_v24 }
 0x431   :  { %v2277_v56 = vpop.f32.mrf.mxu1  ;;  %v2140_v50 = vadd.f32 %v2077_v40, %v1930_v55  ;;  %v1726_v37 = vadd.f32 %v17138_v21, %v17104_v51  ;;  %v1937_v18 = vadd.f32 %v17158_v35, %v1741_v43  ;;  %v1751_v15 = vadd.f32 %v17156_v48, %v17110_v16  ;;  %v22834_v40 = vld [vmem:[#allocation13_spill] sm:$0xff] }
 0x432   :  { %v2348_v31 = vadd.f32 %v2277_v56, %v2138_v32  ;;  %2542 = vrot.lane.b32.xlu0 %v17188_v12, %s15669_s1  ;;  %v13506_v14 = vpop.f32.mrf.mxu0  ;;  %v17198_v60 = vmax.f32 %v2459_v57, 0.0  ;;  %v2462_v3 = vadd.f32 %v2397_v10, %v2349_v1 }
 0x433   :  { %v13559_v19 = vpop.f32.mrf.mxu1  ;;  %v2143_v42 = vadd.f32 %v13506_v14, %v1933_v17  ;;  %v1934_v51 = vadd.f32 %v17152_v39, %v1726_v37  ;;  %v1939_v1 = vadd.f32 %v17170_v5, %v1751_v15  ;;  %v22836_v14 = vld [vmem:[#allocation11_spill] sm:$0xff] }
 0x434   :  { %v2461_v62 = vadd.f32 %v2392_v13, %v2348_v31  ;;  %v2351_v38 = vadd.f32 %v13559_v19, %v2141_v41  ;;  %v2087_v63 = vpop.f32.mrf.mxu0  ;;  %v1935_v13 = vadd.f32 %v17146_v54, %v1731_v23  ;;  %v17211_v34 = vmax.f32 %v2462_v3, 0.0 }
 0x435   :  { %v2287_v49 = vpop.f32.mrf.mxu1  ;;  %v2142_v20 = vadd.f32 %v2087_v63, %v1932_v0  ;;  %v1761_v17 = vadd.f32 %v22837_v36, %v22836_v14  ;;  %v22840_v0 = vld [vmem:[#allocation8_spill] sm:$0xff] }
 0x436   :  { %v17203_v6 = vmax.f32 %v2461_v62, 0.0  ;;  %v2350_v2 = vadd.f32 %v2287_v49, %v2140_v50  ;;  %2540 = vrot.lane.b32.xlu0 %v17198_v60, %s15669_s1  ;;  %v13509_v4 = vpop.f32.mrf.mxu0  ;;  %v2464_v11 = vadd.f32 %v17172_v59, %v2351_v38  ;;  %v22839_v62 = vld [vmem:[#allocation4_spill] sm:$0xff] }
 0x437   :  { %v13562_v10 = vpop.f32.mrf.mxu1  ;;  %v2145_v54 = vadd.f32 %v13509_v4, %v1935_v13  ;;  %v1941_v38 = vadd.f32 %v22839_v62, %v1761_v17  ;;  %v22841_v4 = vld [vmem:[#allocation2_spill] sm:$0xff]  ;;  %v10944_v17 = vld [vmem:[%s22785_s4 + $0x168] sm:$0xff] }
 0x438   :  { %v2463_v27 = vadd.f32 %v17178_v22, %v2350_v2  ;;  %v2353_v45 = vadd.f32 %v13562_v10, %v2143_v42  ;;  %2544 = vrot.lane.b32.xlu1 %v17203_v6, %s15669_s1  ;;  %v2097_v29 = vpop.f32.mrf.mxu0  ;;  %v1736_v22 = vadd.f32 %v17150_v53, %v17108_v8  ;;  %v17226_v52 = vmax.f32 %v2464_v11, 0.0  ;;  %v10943_v62 = vld [vmem:[%s22785_s4 + $0x160] sm:$0xff] }
 0x439   :  { %v2297_v30 = vpop.f32.mrf.mxu1  ;;  %v2144_v47 = vadd.f32 %v2097_v29, %v1934_v51  ;;  %v22843_v29 = vld [vmem:[#allocation15_spill] sm:$0xff] }
 0x43a   :  { %v17219_v21 = vmax.f32 %v2463_v27, 0.0  ;;  %v2352_v59 = vadd.f32 %v2297_v30, %v2142_v20  ;;  %2546 = vrot.lane.b32.xlu0 %v17211_v34, %s15669_s1  ;;  %v13512_v58 = vpop.f32.mrf.mxu0  ;;  %v2466_v25 = vadd.f32 %v17160_v61, %v2353_v45  ;;  %v1936_v8 = vadd.f32 %v17164_v7, %v1736_v22  ;;  %v22835_v7 = vld [vmem:[#allocation5_spill] sm:$0xff] }
 0x43b   :  { %v13565_v46 = vpop.f32.mrf.mxu1  ;;  %v2147_v35 = vadd.f32 %v13512_v58, %v1937_v18  ;;  %v22842_v45 = vld [vmem:[#allocation9_spill] sm:$0xff]  ;;  %v22845_v58 = vld [vmem:[#allocation7_spill] sm:$0xff] }
 0x43c   :  { %v2465_v39 = vadd.f32 %v17166_v9, %v2352_v59  ;;  %v2355_v26 = vadd.f32 %v13565_v46, %v2145_v54  ;;  %2548 = vrot.lane.b32.xlu1 %v17219_v21, %s15669_s1  ;;  %v2107_v28 = vpop.f32.mrf.mxu0  ;;  %v1746_v9 = vadd.f32 %v17162_v44, %v17112_v33  ;;  %v17243_v16 = vmax.f32 %v2466_v25, 0.0  ;;  %v22838_v33 = vld [vmem:[#allocation3_spill] sm:$0xff]  ;;  %v22844_v54 = vld [vmem:[#allocation14_spill] sm:$0xff]  ;;  %v22846_v25 = vld [vmem:[#allocation16_spill] sm:$0xff] }
 0x43d   :  { %v2307_v32 = vpop.f32.mrf.mxu1  ;;  %v2146_v48 = vadd.f32 %v2107_v28, %v1936_v8  ;;  %v1756_v43 = vadd.f32 %v22843_v29, %v22842_v45  ;;  %v10934_v29 = vld [vmem:[%s22785_s4 + $0x118] sm:$0xff] }
 0x43e   :  { %v17235_v53 = vmax.f32 %v2465_v39, 0.0  ;;  %v2354_v57 = vadd.f32 %v2307_v32, %v2144_v47  ;;  %2550 = vrot.lane.b32.xlu0 %v17226_v52, %s15669_s1  ;;  %v13515_v61 = vpop.f32.mrf.mxu0  ;;  %v2468_v24 = vadd.f32 %v22834_v40, %v2355_v26  ;;  %v1938_v44 = vadd.f32 %v22838_v33, %v1746_v9  ;;  %v22847_v32 = vld [vmem:[#allocation10_spill] sm:$0xff]  ;;  %v10945_v33 = vld [vmem:[%s22785_s4 + $0x170] sm:$0xff] }
 0x43f   :  { %v13568_v55 = vpop.f32.mrf.mxu1  ;;  %v2149_v19 = vadd.f32 %v13515_v61, %v1939_v1  ;;  %v1940_v47 = vadd.f32 %v22846_v25, %v1756_v43  ;;  %v22848_v61 = vld [vmem:[#allocation12_spill] sm:$0xff]  ;;  %v10867_v40 = vld [vmem:[%s22784_s3 + $0x580] sm:$0xff] }
 0x440   :  { %v2467_v56 = vadd.f32 %v22835_v7, %v2354_v57  ;;  %v2357_v41 = vadd.f32 %v13568_v55, %v2147_v35  ;;  %2552 = vrot.lane.b32.xlu1 %v17235_v53, %s15669_s1  ;;  %v2117_v31 = vpop.f32.mrf.mxu0  ;;  %v17256_v63 = vmax.f32 %v2468_v24, 0.0  ;;  %13607 = vmatprep.mubr.f32.mxu0 %v10867_v40  ;;  %v10851_v24 = vld [vmem:[%s22784_s3 + $0x500] sm:$0xff] }
 0x441   :  { %v2317_v50 = vpop.f32.mrf.mxu1  ;;  %v2148_v2 = vadd.f32 %v2117_v31, %v1938_v44  ;;  %13663 = vmatprep.mubr.f32.mxu1 %v10851_v24  ;;  %v10946_v31 = vld [vmem:[%s22785_s4 + $0x178] sm:$0xff]  ;;  %v10931_v25 = vld [vmem:[%s22785_s4 + $0x100] sm:$0xff] }
 0x442   :  { %v17251_v5 = vmax.f32 %v2467_v56, 0.0  ;;  %v2356_v3 = vadd.f32 %v2317_v50, %v2146_v48  ;;  %2554 = vrot.lane.b32.xlu0 %v17243_v16, %s15669_s1  ;;  %v13518_v23 = vpop.f32.mrf.mxu0  ;;  %v2470_v42 = vadd.f32 %v22840_v0, %v2357_v41  ;;  %v10941_v0 = vld [vmem:[%s22785_s4 + $0x150] sm:$0xff] }
 0x443   :  { %v13571_v49 = vpop.f32.mrf.mxu1  ;;  %v2151_v20 = vadd.f32 %v13518_v23, %v1941_v38  ;;  %v10940_v23 = vld [vmem:[%s22785_s4 + $0x148] sm:$0xff] }
 0x444   :  { %v2469_v37 = vadd.f32 %v22841_v4, %v2356_v3  ;;  %v2359_v13 = vadd.f32 %v13571_v49, %v2149_v19  ;;  %2556 = vrot.lane.b32.xlu1 %v17251_v5, %s15669_s1  ;;  %v17268_v51 = vmax.f32 %v2470_v42, 0.0  ;;  %v2127_v46 = vpop.f32.mrf.mxu0  ;;  %v10942_v19 = vld [vmem:[%s22785_s4 + $0x158] sm:$0xff] }
 0x445   :  { %v2327_v11 = vpop.f32.mrf.mxu1  ;;  %v2150_v15 = vadd.f32 %v2127_v46, %v1940_v47 }
 0x446   :  { %v17262_v10 = vmax.f32 %v2469_v37, 0.0  ;;  %v2358_v27 = vadd.f32 %v2327_v11, %v2148_v2  ;;  %2558 = vrot.lane.b32.xlu0 %v17256_v63, %s15669_s1  ;;  %v2472_v59 = vadd.f32 %v22844_v54, %v2359_v13  ;;  %v10938_v2 = vld [vmem:[%s22785_s4 + $0x138] sm:$0xff]  ;;  %v10939_v37 = vld [vmem:[%s22785_s4 + $0x140] sm:$0xff]  ;;  %v10936_v11 = vld [vmem:[%s22785_s4 + $0x128] sm:$0xff] }
 0x447   :  { %v13574_v30 = vpop.f32.mrf.mxu1 }
 0x448   :  { %v2471_v22 = vadd.f32 %v22845_v58, %v2358_v27  ;;  %v2361_v18 = vadd.f32 %v13574_v30, %v2151_v20  ;;  %2560 = vrot.lane.b32.xlu1 %v17262_v10, %s15669_s1  ;;  %v17279_v28 = vmax.f32 %v2472_v59, 0.0  ;;  %v10937_v27 = vld [vmem:[%s22785_s4 + $0x130] sm:$0xff]  ;;  %v10935_v30 = vld [vmem:[%s22785_s4 + $0x120] sm:$0xff]  ;;  %v10932_v59 = vld [vmem:[%s22785_s4 + $0x108] sm:$0xff] }
 0x449   :  { %v2337_v26 = vpop.f32.mrf.mxu1 }
 0x44a   :  { %v17275_v39 = vmax.f32 %v2471_v22, 0.0  ;;  %2562 = vrot.lane.b32.xlu0 %v17268_v51, %s15669_s1  ;;  %v2474_v8 = vadd.f32 %v22847_v32, %v2361_v18  ;;  %v2360_v35 = vadd.f32 %v2337_v26, %v2150_v15  ;;  %v10933_v22 = vld [vmem:[%s22785_s4 + $0x110] sm:$0xff] }
 0x44c   :  { %2564 = vrot.lane.b32.xlu1 %v17275_v39, %s15669_s1  ;;  %v17286_v57 = vmax.f32 %v2474_v8, 0.0  ;;  %v2473_v9 = vadd.f32 %v22848_v61, %v2360_v35 }
 0x44e   :  { %2566 = vrot.lane.b32.xlu0 %v17279_v28, %s15669_s1  ;;  %v17295_v1 = vmax.f32 %v2473_v9, 0.0 }
 0x450   :  { %2515 = vrot.lane.b32.xlu1 %v17275_v39, %s15670_s12 }
 0x452   :  { %2570 = vrot.lane.b32.xlu0 %v17286_v57, %s15669_s1 }
 0x454   :  { %2521 = vrot.lane.b32.xlu1 %v17286_v57, %s15670_s12 }
 0x456   :  { %2517 = vrot.lane.b32.xlu0 %v17279_v28, %s15670_s12 }
 0x458   :  { %2568 = vrot.lane.b32.xlu1 %v17295_v1, %s15669_s1 }
 0x45a   :  { %2513 = vrot.lane.b32.xlu0 %v17268_v51, %s15670_s12 }
 0x45c   :  { %2511 = vrot.lane.b32.xlu1 %v17262_v10, %s15670_s12 }
 0x45e   :  { %2509 = vrot.lane.b32.xlu0 %v17256_v63, %s15670_s12 }
 0x460   :  { %2507 = vrot.lane.b32.xlu1 %v17251_v5, %s15670_s12 }
 0x462   :  { %2505 = vrot.lane.b32.xlu0 %v17243_v16, %s15670_s12 }
 0x464   :  { %2503 = vrot.lane.b32.xlu1 %v17235_v53, %s15670_s12 }
 0x466   :  { %2501 = vrot.lane.b32.xlu0 %v17226_v52, %s15670_s12 }
 0x468   :  { %2499 = vrot.lane.b32.xlu1 %v17219_v21, %s15670_s12 }
 0x46a   :  { %2497 = vrot.lane.b32.xlu0 %v17211_v34, %s15670_s12 }
 0x46c   :  { %2495 = vrot.lane.b32.xlu1 %v17203_v6, %s15670_s12 }
 0x46e   :  { %2493 = vrot.lane.b32.xlu0 %v17188_v12, %s15670_s12 }
 0x470   :  { %2491 = vrot.lane.b32.xlu1 %v17198_v60, %s15670_s12 }
 0x472   :  { %3087 = vrot.lane.b32.xlu0 %v17286_v57, %s15671_s15 }
 0x474   :  { %2519 = vrot.lane.b32.xlu1 %v17295_v1, %s15670_s12 }
 0x476   :  { %3297 = vrot.lane.b32.xlu0 %v17286_v57, %s15672_s16 }
 0x478   :  { %3083 = vrot.lane.b32.xlu1 %v17279_v28, %s15671_s15 }
 0x47a   :  { %3293 = vrot.lane.b32.xlu0 %v17279_v28, %s15672_s16 }
 0x47c   :  { %3081 = vrot.lane.b32.xlu1 %v17275_v39, %s15671_s15 }
 0x47e   :  { %3291 = vrot.lane.b32.xlu0 %v17275_v39, %s15672_s16 }
 0x480   :  { %3079 = vrot.lane.b32.xlu1 %v17268_v51, %s15671_s15 }
 0x482   :  { %3289 = vrot.lane.b32.xlu0 %v17268_v51, %s15672_s16 }
 0x484   :  { %3077 = vrot.lane.b32.xlu1 %v17262_v10, %s15671_s15 }
 0x486   :  { %3287 = vrot.lane.b32.xlu0 %v17262_v10, %s15672_s16 }
 0x488   :  { %3075 = vrot.lane.b32.xlu1 %v17256_v63, %s15671_s15 }
 0x48a   :  { %3285 = vrot.lane.b32.xlu0 %v17256_v63, %s15672_s16 }
 0x48c   :  { %3073 = vrot.lane.b32.xlu1 %v17251_v5, %s15671_s15 }
 0x48e   :  { %3283 = vrot.lane.b32.xlu0 %v17251_v5, %s15672_s16 }
 0x490   :  { %3071 = vrot.lane.b32.xlu1 %v17243_v16, %s15671_s15 }
 0x492   :  { %3295 = vrot.lane.b32.xlu0 %v17295_v1, %s15672_s16 }
 0x494   :  { %3085 = vrot.lane.b32.xlu1 %v17295_v1, %s15671_s15 }
 0x496   :  { %3281 = vrot.lane.b32.xlu0 %v17243_v16, %s15672_s16 }
 0x498   :  { %3069 = vrot.lane.b32.xlu1 %v17235_v53, %s15671_s15 }
 0x49a   :  { %3279 = vrot.lane.b32.xlu0 %v17235_v53, %s15672_s16 }
 0x49c   :  { %3067 = vrot.lane.b32.xlu1 %v17226_v52, %s15671_s15 }
 0x49e   :  { %3277 = vrot.lane.b32.xlu0 %v17226_v52, %s15672_s16 }
 0x4a0   :  { %3065 = vrot.lane.b32.xlu1 %v17219_v21, %s15671_s15 }
 0x4a2   :  { %3275 = vrot.lane.b32.xlu0 %v17219_v21, %s15672_s16 }
 0x4a4   :  { %3063 = vrot.lane.b32.xlu1 %v17211_v34, %s15671_s15  ;;  %v17383_v55 = vpop.permute.xlu0 %2542 }
 0x4a6   :  { %3273 = vrot.lane.b32.xlu0 %v17211_v34, %s15672_s16 }
 0x4a8   :  { %3061 = vrot.lane.b32.xlu1 %v17203_v6, %s15671_s15  ;;  %v17389_v48 = vpop.permute.xlu0 %2540 }
 0x4aa   :  { %v17391_v7 = vpop.permute.xlu1 %2544  ;;  %3271 = vrot.lane.b32.xlu0 %v17203_v6, %s15672_s16 }
 0x4ac   :  { %3059 = vrot.lane.b32.xlu1 %v17188_v12, %s15671_s15  ;;  %v17397_v56 = vpop.permute.xlu0 %2546 }
 0x4ae   :  { %v17399_v41 = vpop.permute.xlu1 %2548  ;;  %3269 = vrot.lane.b32.xlu0 %v17188_v12, %s15672_s16 }
 0x4b0   :  { %3057 = vrot.lane.b32.xlu1 %v17198_v60, %s15671_s15  ;;  %v17408_v14 = vpop.permute.xlu0 %2550 }
 0x4b2   :  { %v17410_v36 = vpop.permute.xlu1 %2552  ;;  %3571 = vperm.xlu0 %15666, %v10946_v31  }
 0x4b4   :  { %3267 = vrot.lane.b32.xlu1 %v17198_v60, %s15672_s16  ;;  %v17417_v50 = vpop.permute.xlu0 %2554 }
 0x4b6   :  { %v2557_v44 = vpop.permute.xlu1 %2556  ;;  %3561 = vperm.xlu0 %15666, %v10944_v17  }
 0x4b8   :  { %3566 = vperm.xlu1 %15667, %v10945_v33   ;;  %v2559_v3 = vpop.permute.xlu0 %2558 }
 0x4ba   :  { %v2561_v38 = vpop.permute.xlu1 %2560  ;;  %3551 = vperm.xlu0 %15666, %v10942_v19  }
 0x4bc   :  { %3556 = vperm.xlu1 %15667, %v10943_v62   ;;  %v2563_v49 = vpop.permute.xlu0 %2562 }
 0x4be   :  { %v2565_v42 = vpop.permute.xlu1 %2564  ;;  %3541 = vperm.xlu0 %15666, %v10940_v23  }
 0x4c0   :  { %3546 = vperm.xlu1 %15667, %v10941_v0   ;;  %v2567_v4 = vpop.permute.xlu0 %2566 }
 0x4c2   :  { %v17440_v13 = vpop.permute.xlu1 %2515  ;;  %3531 = vperm.xlu0 %15666, %v10938_v2   ;;  %v10854_v2 = vld [vmem:[%s22784_s3 + $0x518] sm:$0xff] }
 0x4c4   :  { %3536 = vperm.xlu1 %15667, %v10939_v37   ;;  %v2571_v20 = vpop.permute.xlu0 %2570 }
 0x4c5   :  { %13575 = vmatprep.subr.mxu0 %v2571_v20 }
 0x4c6   :  { %v2522_v45 = vpop.permute.xlu1 %2521  ;;  %3521 = vperm.xlu0 %15666, %v10936_v11   ;;  %13576 = vmatpush3.msra.mxu0 %v2571_v20  ;;  %v10885_v11 = vld [vmem:[%s22784_s3 + $0x610] sm:$0xff]  ;;  %v10886_v20 = vld [vmem:[%s22784_s3 + $0x618] sm:$0xff] }
 0x4c7   :  { %13631 = vmatprep.subr.mxu1 %v2522_v45 }
 0x4c8   :  { %13632 = vmatpush3.msra.mxu1 %v2522_v45  ;;  %3526 = vperm.xlu1 %15667, %v10937_v27   ;;  %v17451_v43 = vpop.permute.xlu0 %2517 }
 0x4ca   :  { %v2569_v54 = vpop.permute.xlu1 %2568  ;;  %3511 = vperm.xlu0 %15666, %v10934_v29   ;;  %v10857_v29 = vld [vmem:[%s22784_s3 + $0x530] sm:$0xff] }
 0x4cb   :  { %13577 = vmatprep.subr.mxu0 %v2569_v54 }
 0x4cc   :  { %3516 = vperm.xlu1 %15667, %v10935_v30   ;;  %13578 = vmatpush3.msra.mxu0 %v2569_v54  ;;  %v17459_v58 = vpop.permute.xlu0 %2513  ;;  %v10858_v30 = vld [vmem:[%s22784_s3 + $0x538] sm:$0xff]  ;;  %v10888_v54 = vld [vmem:[%s22784_s3 + $0x628] sm:$0xff] }
 0x4cd   :  { %13579 = vmatprep.subr.mxu0 %v2567_v4 }
 0x4ce   :  { %v17464_v18 = vpop.permute.xlu1 %2511  ;;  %3501 = vperm.xlu0 %15666, %v10932_v59   ;;  %13580 = vmatpush3.msra.mxu0 %v2567_v4  ;;  %v10884_v4 = vld [vmem:[%s22784_s3 + $0x608] sm:$0xff] }
 0x4cf   :  { %13581 = vmatprep.subr.mxu0 %v2565_v42 }
 0x4d0   :  { %3506 = vperm.xlu1 %15667, %v10933_v22   ;;  %13582 = vmatpush3.msra.mxu0 %v2565_v42  ;;  %v17466_v46 = vpop.permute.xlu0 %2509  ;;  %v10853_v42 = vld [vmem:[%s22784_s3 + $0x510] sm:$0xff]  ;;  %v10859_v22 = vld [vmem:[%s22784_s3 + $0x540] sm:$0xff] }
 0x4d1   :  { %13583 = vmatprep.subr.mxu0 %v2563_v49 }
 0x4d2   :  { %v17471_v47 = vpop.permute.xlu1 %2507  ;;  %13584 = vmatpush3.msra.mxu0 %v2563_v49  ;;  %v10852_v49 = vld [vmem:[%s22784_s3 + $0x508] sm:$0xff] }
 0x4d3   :  { %13585 = vmatprep.subr.mxu0 %v2561_v38 }
 0x4d4   :  { %3496 = vperm.xlu1 %15667, %v10931_v25   ;;  %13586 = vmatpush3.msra.mxu0 %v2561_v38  ;;  %v17473_v26 = vpop.permute.xlu0 %2505  ;;  %v10880_v38 = vld [vmem:[%s22784_s3 + $0x5e8] sm:$0xff]  ;;  %v10890_v25 = vld [vmem:[%s22784_s3 + $0x638] sm:$0xff] }
 0x4d5   :  { %13587 = vmatprep.subr.mxu0 %v2559_v3 }
 0x4d6   :  { %v17475_v15 = vpop.permute.xlu1 %2503  ;;  %13588 = vmatpush3.msra.mxu0 %v2559_v3  ;;  %v10878_v3 = vld [vmem:[%s22784_s3 + $0x5d8] sm:$0xff] }
 0x4d7   :  { %13589 = vmatprep.subr.mxu0 %v2557_v44 }
 0x4d8   :  { %13590 = vmatpush3.msra.mxu0 %v2557_v44  ;;  %v17477_v32 = vpop.permute.xlu0 %2501 }
 0x4d9   :  { %13591 = vmatprep.subr.mxu0 %v17417_v50 }
 0x4da   :  { %v17480_v8 = vpop.permute.xlu1 %2499  ;;  %13592 = vmatpush3.msra.mxu0 %v17417_v50 }
 0x4db   :  { %13593 = vmatprep.subr.mxu0 %v17410_v36 }
 0x4dc   :  { %13594 = vmatpush3.msra.mxu0 %v17410_v36  ;;  %v17485_v35 = vpop.permute.xlu0 %2497 }
 0x4dd   :  { %13595 = vmatprep.subr.mxu0 %v17408_v14 }
 0x4de   :  { %v17488_v61 = vpop.permute.xlu1 %2495  ;;  %13596 = vmatpush3.msra.mxu0 %v17408_v14 }
 0x4df   :  { %13597 = vmatprep.subr.mxu0 %v17399_v41 }
 0x4e0   :  { %13598 = vmatpush3.msra.mxu0 %v17399_v41  ;;  %v17493_v9 = vpop.permute.xlu0 %2493  ;;  %v10868_v41 = vld [vmem:[%s22784_s3 + $0x588] sm:$0xff] }
 0x4e1   :  { %13599 = vmatprep.subr.mxu0 %v17397_v56 }
 0x4e2   :  { %v17496_v40 = vpop.permute.xlu1 %2491  ;;  %13600 = vmatpush3.msra.mxu0 %v17397_v56 }
 0x4e3   :  { %13601 = vmatprep.subr.mxu0 %v17391_v7 }
 0x4e4   :  { %13602 = vmatpush3.msra.mxu0 %v17391_v7  ;;  %v17501_v24 = vpop.permute.xlu0 %3087  ;;  %v10869_v7 = vld [vmem:[%s22784_s3 + $0x590] sm:$0xff] }
 0x4e5   :  { %13603 = vmatprep.subr.mxu0 %v17383_v55 }
 0x4e6   :  { %v2520_v31 = vpop.permute.xlu1 %2519  ;;  %13604 = vmatpush3.msra.mxu0 %v17383_v55 }
 0x4e7   :  { %13605 = vmatprep.subr.mxu0 %v17389_v48  ;;  %13633 = vmatprep.subr.mxu1 %v2520_v31 }
 0x4e8   :  { %13606 = vmatpush3.msra.mxu0 %v17389_v48  ;;  %13634 = vmatpush3.msra.mxu1 %v2520_v31  ;;  %v17510_v56 = vpop.permute.xlu0 %3297  ;;  %v10870_v48 = vld [vmem:[%s22784_s3 + $0x598] sm:$0xff]  ;;  %v10864_v31 = vld [vmem:[%s22784_s3 + $0x568] sm:$0xff] }
 0x4e9   :  { %13608 = vmatmul.mubr.f32.vlgmr.msra.gmra.mxu0 %v10868_v41  ;;  %13635 = vmatprep.subr.mxu1 %v17451_v43  ;;  %v10894_v41 = vld [vmem:[%s22784_s3 + $0x658] sm:$0xff] }
 0x4ea   :  { %13687 = vmatprep.subr.mxu0 %v17286_v57  ;;  %v17517_v55 = vpop.permute.xlu1 %3083  ;;  %13636 = vmatpush3.msra.mxu1 %v17451_v43  ;;  %v10887_v43 = vld [vmem:[%s22784_s3 + $0x620] sm:$0xff] }
 0x4eb   :  { %13688 = vmatpush3.msra.mxu0 %v17286_v57  ;;  %13637 = vmatprep.subr.mxu1 %v17440_v13  ;;  %v10871_v57 = vld [vmem:[%s22784_s3 + $0x5a0] sm:$0xff] }
 0x4ec   :  { %13689 = vmatprep.subr.mxu0 %v17295_v1  ;;  %13610 = vmatprep.mubr.f32.mxu0 %v10869_v7  ;;  %v17528_v14 = vpop.permute.xlu0 %3293 }
 0x4ed   :  { %13638 = vmatpush3.msra.mxu1 %v17440_v13  ;;  %13690 = vmatpush3.msra.mxu0 %v17295_v1  ;;  %v10872_v1 = vld [vmem:[%s22784_s3 + $0x5a8] sm:$0xff]  ;;  %v10855_v13 = vld [vmem:[%s22784_s3 + $0x520] sm:$0xff] }
 0x4ee   :  { %13611 = vmatmul.mubr.f32.gmra.mxu0 %v10870_v48  ;;  %13639 = vmatprep.subr.mxu1 %v17459_v58  ;;  %v17531_v36 = vpop.permute.xlu1 %3081  ;;  %v10895_v48 = vld [vmem:[%s22784_s3 + $0x660] sm:$0xff] }
 0x4ef   :  { %13691 = vmatprep.subr.mxu0 %v17279_v28  ;;  %13640 = vmatpush3.msra.mxu1 %v17459_v58 }
 0x4f0   :  { %13692 = vmatpush3.msra.mxu0 %v17279_v28  ;;  %13641 = vmatprep.subr.mxu1 %v17464_v18  ;;  %v10873_v28 = vld [vmem:[%s22784_s3 + $0x5b0] sm:$0xff]  ;;  %v17552_v50 = vpop.permute.xlu0 %3291 }
 0x4f1   :  { %13693 = vmatprep.subr.mxu0 %v17275_v39  ;;  %13613 = vmatprep.mubr.f32.mxu0 %v10871_v57 }
 0x4f2   :  { %13642 = vmatpush3.msra.mxu1 %v17464_v18  ;;  %13694 = vmatpush3.msra.mxu0 %v17275_v39  ;;  %v17546_v17 = vpop.permute.xlu1 %3079  ;;  %v10874_v39 = vld [vmem:[%s22784_s3 + $0x5b8] sm:$0xff]  ;;  %v10889_v18 = vld [vmem:[%s22784_s3 + $0x630] sm:$0xff] }
 0x4f3   :  { %13614 = vmatmul.mubr.f32.gmra.mxu0 %v10872_v1  ;;  %13643 = vmatprep.subr.mxu1 %v17466_v46 }
 0x4f4   :  { %13695 = vmatprep.subr.mxu0 %v17268_v51  ;;  %13644 = vmatpush3.msra.mxu1 %v17466_v46  ;;  %v17572_v44 = vpop.permute.xlu0 %3289  ;;  %v10860_v46 = vld [vmem:[%s22784_s3 + $0x548] sm:$0xff] }
 0x4f5   :  { %13696 = vmatpush3.msra.mxu0 %v17268_v51  ;;  %13645 = vmatprep.subr.mxu1 %v17471_v47  ;;  %v10875_v51 = vld [vmem:[%s22784_s3 + $0x5c0] sm:$0xff] }
 0x4f6   :  { %13697 = vmatprep.subr.mxu0 %v17262_v10  ;;  %13616 = vmatprep.mubr.f32.mxu0 %v10873_v28  ;;  %v17562_v33 = vpop.permute.xlu1 %3077  ;;  %v10899_v28 = vld [vmem:[%s22784_s3 + $0x680] sm:$0xff] }
 0x4f7   :  { %13646 = vmatpush3.msra.mxu1 %v17471_v47  ;;  %13698 = vmatpush3.msra.mxu0 %v17262_v10  ;;  %v10876_v10 = vld [vmem:[%s22784_s3 + $0x5c8] sm:$0xff] }
 0x4f8   :  { %13617 = vmatmul.mubr.f32.gmra.mxu0 %v10874_v39  ;;  %13647 = vmatprep.subr.mxu1 %v17473_v26  ;;  %v10900_v39 = vld [vmem:[%s22784_s3 + $0x688] sm:$0xff] }
 0x4f9   :  { %13699 = vmatprep.subr.mxu0 %v17256_v63  ;;  %13648 = vmatpush3.msra.mxu1 %v17473_v26 }
 0x4fa   :  { %13700 = vmatpush3.msra.mxu0 %v17256_v63  ;;  %13649 = vmatprep.subr.mxu1 %v17475_v15  ;;  %v17579_v19 = vpop.permute.xlu1 %3075  ;;  %v10877_v63 = vld [vmem:[%s22784_s3 + $0x5d0] sm:$0xff] }
 0x4fb   :  { %13701 = vmatprep.subr.mxu0 %v17251_v5  ;;  %13619 = vmatprep.mubr.f32.mxu0 %v10875_v51  ;;  %v10915_v51 = vld [vmem:[%s22784_s3 + $0x700] sm:$0xff] }
 0x4fc   :  { %13650 = vmatpush3.msra.mxu1 %v17475_v15  ;;  %13702 = vmatpush3.msra.mxu0 %v17251_v5  ;;  %v17595_v5 = vpop.permute.xlu0 %3287  ;;  %v10861_v15 = vld [vmem:[%s22784_s3 + $0x550] sm:$0xff] }
 0x4fd   :  { %13620 = vmatmul.mubr.f32.gmra.mxu0 %v10876_v10  ;;  %13651 = vmatprep.subr.mxu1 %v17477_v32 }
 0x4fe   :  { %13703 = vmatprep.subr.mxu0 %v17243_v16  ;;  %13652 = vmatpush3.msra.mxu1 %v17477_v32  ;;  %v17598_v62 = vpop.permute.xlu1 %3073  ;;  %v10891_v32 = vld [vmem:[%s22784_s3 + $0x640] sm:$0xff] }
 0x4ff   :  { %13704 = vmatpush3.msra.mxu0 %v17243_v16  ;;  %13653 = vmatprep.subr.mxu1 %v17480_v8  ;;  %v10879_v16 = vld [vmem:[%s22784_s3 + $0x5e0] sm:$0xff] }
 0x500   :  { %13705 = vmatprep.subr.mxu0 %v17235_v53  ;;  %13622 = vmatprep.mubr.f32.mxu0 %v10877_v63  ;;  %v10916_v63 = vld [vmem:[%s22784_s3 + $0x708] sm:$0xff] }
 0x501   :  { %13654 = vmatpush3.msra.mxu1 %v17480_v8  ;;  %13706 = vmatpush3.msra.mxu0 %v17235_v53  ;;  %v17614_v53 = vpop.permute.xlu0 %3285  ;;  %v10862_v8 = vld [vmem:[%s22784_s3 + $0x558] sm:$0xff] }
 0x502   :  { %13623 = vmatmul.mubr.f32.gmra.mxu0 %v10878_v3  ;;  %13655 = vmatprep.subr.mxu1 %v17485_v35  ;;  %v17618_v23 = vpop.permute.xlu1 %3071  ;;  %v10903_v3 = vld [vmem:[%s22784_s3 + $0x6a0] sm:$0xff] }
 0x503   :  { %13707 = vmatprep.subr.mxu0 %v17226_v52  ;;  %13656 = vmatpush3.msra.mxu1 %v17485_v35  ;;  %v10892_v35 = vld [vmem:[%s22784_s3 + $0x648] sm:$0xff] }
 0x504   :  { %13708 = vmatpush3.msra.mxu0 %v17226_v52  ;;  %13657 = vmatprep.subr.mxu1 %v17488_v61  ;;  %v10881_v52 = vld [vmem:[%s22784_s3 + $0x5f0] sm:$0xff] }
 0x505   :  { %13709 = vmatprep.subr.mxu0 %v17219_v21  ;;  %13625 = vmatprep.mubr.f32.mxu0 %v10879_v16  ;;  %v17637_v0 = vpop.permute.xlu0 %3283  ;;  %v10918_v16 = vld [vmem:[%s22784_s3 + $0x718] sm:$0xff] }
 0x506   :  { %13658 = vmatpush3.msra.mxu1 %v17488_v61  ;;  %13710 = vmatpush3.msra.mxu0 %v17219_v21  ;;  %v10882_v21 = vld [vmem:[%s22784_s3 + $0x5f8] sm:$0xff] }
 0x507   :  { %13626 = vmatmul.mubr.f32.gmra.mxu0 %v10880_v38  ;;  %13659 = vmatprep.subr.mxu1 %v17493_v9  ;;  %v10905_v38 = vld [vmem:[%s22784_s3 + $0x6b0] sm:$0xff] }
 0x508   :  { %13711 = vmatprep.subr.mxu0 %v17211_v34  ;;  %13660 = vmatpush3.msra.mxu1 %v17493_v9 }
 0x509   :  { %13712 = vmatpush3.msra.mxu0 %v17211_v34  ;;  %13661 = vmatprep.subr.mxu1 %v17496_v40  ;;  %v3086_v34 = vpop.permute.xlu1 %3085 }
 0x50a   :  { %13713 = vmatprep.subr.mxu0 %v17203_v6  ;;  %13628 = vmatprep.mubr.f32.mxu0 %v10881_v52  ;;  %v10920_v52 = vld [vmem:[%s22784_s3 + $0x728] sm:$0xff] }
 0x50b   :  { %13662 = vmatpush3.msra.mxu1 %v17496_v40  ;;  %13714 = vmatpush3.msra.mxu0 %v17203_v6  ;;  %v10883_v6 = vld [vmem:[%s22784_s3 + $0x600] sm:$0xff] }
 0x50c   :  { %13629 = vmatmul.mubr.f32.gmra.mxu0 %v10882_v21  ;;  %13664 = vmatmul.mubr.f32.vlgmr.msra.gmra.mxu1 %v10852_v49  ;;  %v10863_v40 = vld [vmem:[%s22784_s3 + $0x560] sm:$0xff]  ;;  %v10921_v49 = vld [vmem:[%s22784_s3 + $0x730] sm:$0xff] }
 0x50d   :  { %13715 = vmatprep.subr.mxu0 %v17188_v12  ;;  %13743 = vmatprep.subr.mxu1 %v17501_v24  ;;  %v17657_v37 = vpop.permute.xlu1 %3069  ;;  %v10907_v21 = vld [vmem:[%s22784_s3 + $0x6c0] sm:$0xff] }
 0x50e   :  { %13716 = vmatpush3.msra.mxu0 %v17188_v12  ;;  %13744 = vmatpush3.msra.mxu1 %v17501_v24  ;;  %v3296_v12 = vpop.permute.xlu0 %3295  ;;  %v10893_v24 = vld [vmem:[%s22784_s3 + $0x650] sm:$0xff] }
 0x50f   :  { %13717 = vmatprep.subr.mxu0 %v17198_v60  ;;  %13745 = vmatprep.subr.mxu1 %v3086_v34 }
 0x510   :  { %13666 = vmatprep.mubr.f32.mxu1 %v10853_v42  ;;  %13718 = vmatpush3.msra.mxu0 %v17198_v60  ;;  %v10856_v60 = vld [vmem:[%s22784_s3 + $0x528] sm:$0xff]  ;;  %v10909_v42 = vld [vmem:[%s22784_s3 + $0x6d0] sm:$0xff] }
 0x511   :  { %13719 = vmatprep.mubr.f32.mxu0 %v10883_v6  ;;  %13746 = vmatpush3.msra.mxu1 %v3086_v34  ;;  %v3068_v45 = vpop.permute.xlu1 %3067  ;;  %v10922_v34 = vld [vmem:[%s22784_s3 + $0x738] sm:$0xff]  ;;  %v10923_v6 = vld [vmem:[%s22784_s3 + $0x740] sm:$0xff] }
 0x512   :  { %13667 = vmatmul.mubr.f32.gmra.mxu1 %v10854_v2  ;;  %13720 = vmatmul.mubr.f32.vlgmr.msra.gmra.mxu0 %v10884_v4  ;;  %v3282_v27 = vpop.permute.xlu0 %3281  ;;  %v10910_v2 = vld [vmem:[%s22784_s3 + $0x6d8] sm:$0xff]  ;;  %v10924_v4 = vld [vmem:[%s22784_s3 + $0x748] sm:$0xff] }
 0x513   :  { %13747 = vmatprep.subr.mxu1 %v17517_v55  ;;  %13799 = vmatprep.subr.mxu0 %v17510_v56 }
 0x514   :  { %13748 = vmatpush3.msra.mxu1 %v17517_v55  ;;  %13800 = vmatpush3.msra.mxu0 %v17510_v56  ;;  %v10865_v55 = vld [vmem:[%s22784_s3 + $0x570] sm:$0xff] }
 0x515   :  { %13749 = vmatprep.subr.mxu1 %v17531_v36  ;;  %13801 = vmatprep.subr.mxu0 %v3296_v12  ;;  %v3066_v58 = vpop.permute.xlu1 %3065 }
 0x516   :  { %13669 = vmatprep.mubr.f32.mxu1 %v10855_v13  ;;  %13722 = vmatprep.mubr.f32.mxu0 %v10885_v11  ;;  %v3280_v59 = vpop.permute.xlu0 %3279  ;;  %v10912_v13 = vld [vmem:[%s22784_s3 + $0x6e8] sm:$0xff]  ;;  %v10926_v11 = vld [vmem:[%s22784_s3 + $0x758] sm:$0xff] }
 0x517   :  { %13750 = vmatpush3.msra.mxu1 %v17531_v36  ;;  %13802 = vmatpush3.msra.mxu0 %v3296_v12  ;;  %v10896_v36 = vld [vmem:[%s22784_s3 + $0x668] sm:$0xff]  ;;  %v10911_v12 = vld [vmem:[%s22784_s3 + $0x6e0] sm:$0xff] }
 0x518   :  { %13670 = vmatmul.mubr.f32.gmra.mxu1 %v10856_v60  ;;  %13723 = vmatmul.mubr.f32.gmra.mxu0 %v10886_v20  ;;  %v10913_v60 = vld [vmem:[%s22784_s3 + $0x6f0] sm:$0xff]  ;;  %v10927_v20 = vld [vmem:[%s22784_s3 + $0x760] sm:$0xff] }
 0x519   :  { %13751 = vmatprep.subr.mxu1 %v17546_v17  ;;  %13803 = vmatprep.subr.mxu0 %v17528_v14  ;;  %v3064_v26 = vpop.permute.xlu1 %3063 }
 0x51a   :  { %13752 = vmatpush3.msra.mxu1 %v17546_v17  ;;  %13804 = vmatpush3.msra.mxu0 %v17528_v14  ;;  %v3278_v47 = vpop.permute.xlu0 %3277  ;;  %v10866_v14 = vld [vmem:[%s22784_s3 + $0x578] sm:$0xff]  ;;  %v10897_v17 = vld [vmem:[%s22784_s3 + $0x670] sm:$0xff] }
 0x51b   :  { %13753 = vmatprep.subr.mxu1 %v17562_v33  ;;  %13805 = vmatprep.subr.mxu0 %v17552_v50 }
 0x51c   :  { %13672 = vmatprep.mubr.f32.mxu1 %v10857_v29  ;;  %13725 = vmatprep.mubr.f32.mxu0 %v10887_v43  ;;  %v10929_v29 = vld [vmem:[%s22784_s3 + $0x770] sm:$0xff]  ;;  %v10930_v43 = vld [vmem:[%s22784_s3 + $0x778] sm:$0xff] }
 0x51d   :  { %13754 = vmatpush3.msra.mxu1 %v17562_v33  ;;  %13806 = vmatpush3.msra.mxu0 %v17552_v50  ;;  %v3062_v9 = vpop.permute.xlu1 %3061  ;;  %v10898_v50 = vld [vmem:[%s22784_s3 + $0x678] sm:$0xff]  ;;  %v10901_v33 = vld [vmem:[%s22784_s3 + $0x690] sm:$0xff] }
 0x51e   :  { %13673 = vmatmul.mubr.f32.gmra.mxu1 %v10858_v30  ;;  %13726 = vmatmul.mubr.f32.gmra.mxu0 %v10888_v54  ;;  %v3276_v61 = vpop.permute.xlu0 %3275 }
 0x51f   :  { %13755 = vmatprep.subr.mxu1 %v17579_v19  ;;  %13807 = vmatprep.subr.mxu0 %v17572_v44 }
 0x520   :  { %13756 = vmatpush3.msra.mxu1 %v17579_v19  ;;  %13808 = vmatpush3.msra.mxu0 %v17572_v44  ;;  %v10902_v19 = vld [vmem:[%s22784_s3 + $0x698] sm:$0xff] }
 0x521   :  { %13757 = vmatprep.subr.mxu1 %v17598_v62  ;;  %13809 = vmatprep.subr.mxu0 %v17595_v5  ;;  %v3060_v7 = vpop.permute.xlu1 %3059 }
 0x522   :  { %13675 = vmatprep.mubr.f32.mxu1 %v10859_v22  ;;  %13728 = vmatprep.mubr.f32.mxu0 %v10889_v18  ;;  %v3274_v56 = vpop.permute.xlu0 %3273 }
 0x523   :  { %13758 = vmatpush3.msra.mxu1 %v17598_v62  ;;  %13810 = vmatpush3.msra.mxu0 %v17595_v5  ;;  %v10917_v5 = vld [vmem:[%s22784_s3 + $0x710] sm:$0xff]  ;;  %v10904_v62 = vld [vmem:[%s22784_s3 + $0x6a8] sm:$0xff] }
 0x524   :  { %13676 = vmatmul.mubr.f32.gmra.mxu1 %v10860_v46  ;;  %13729 = vmatmul.mubr.f32.gmra.mxu0 %v10890_v25 }
 0x525   :  { %13759 = vmatprep.subr.mxu1 %v17618_v23  ;;  %13811 = vmatprep.subr.mxu0 %v17614_v53  ;;  %v3058_v1 = vpop.permute.xlu1 %3057 }
 0x526   :  { %13760 = vmatpush3.msra.mxu1 %v17618_v23  ;;  %13812 = vmatpush3.msra.mxu0 %v17614_v53  ;;  %v3272_v57 = vpop.permute.xlu0 %3271  ;;  %v10919_v53 = vld [vmem:[%s22784_s3 + $0x720] sm:$0xff]  ;;  %v10906_v23 = vld [vmem:[%s22784_s3 + $0x6b8] sm:$0xff] }
 0x527   :  { %13761 = vmatprep.subr.mxu1 %v17657_v37  ;;  %13813 = vmatprep.subr.mxu0 %v17637_v0 }
 0x528   :  { %13678 = vmatprep.mubr.f32.mxu1 %v10861_v15  ;;  %13731 = vmatprep.mubr.f32.mxu0 %v10891_v32 }
 0x529   :  { %13762 = vmatpush3.msra.mxu1 %v17657_v37  ;;  %13814 = vmatpush3.msra.mxu0 %v17637_v0  ;;  %v3268_v10 = vpop.permute.xlu1 %3267  ;;  %v10908_v0 = vld [vmem:[%s22784_s3 + $0x6c8] sm:$0xff]  ;;  %v10925_v37 = vld [vmem:[%s22784_s3 + $0x750] sm:$0xff] }
 0x52a   :  { %13679 = vmatmul.mubr.f32.gmra.mxu1 %v10862_v8  ;;  %13732 = vmatmul.mubr.f32.gmra.mxu0 %v10892_v35  ;;  %v3270_v44 = vpop.permute.xlu0 %3269 }
 0x52b   :  { %13763 = vmatprep.subr.mxu1 %v3068_v45  ;;  %13815 = vmatprep.subr.mxu0 %v3282_v27 }
 0x52c   :  { %13764 = vmatpush3.msra.mxu1 %v3068_v45  ;;  %13816 = vmatpush3.msra.mxu0 %v3282_v27  ;;  %v10914_v27 = vld [vmem:[%s22784_s3 + $0x6f8] sm:$0xff]  ;;  %v10928_v45 = vld [vmem:[%s22784_s3 + $0x768] sm:$0xff] }
 0x52d   :  { %13765 = vmatprep.subr.mxu1 %v3066_v58  ;;  %13817 = vmatprep.subr.mxu0 %v3280_v59 }
 0x52e   :  { %13681 = vmatprep.mubr.f32.mxu1 %v10863_v40  ;;  %13734 = vmatprep.mubr.f32.mxu0 %v10893_v24 }
 0x52f   :  { %13766 = vmatpush3.msra.mxu1 %v3066_v58  ;;  %13818 = vmatpush3.msra.mxu0 %v3280_v59 }
 0x530   :  { %13682 = vmatmul.mubr.f32.gmra.mxu1 %v10864_v31  ;;  %13735 = vmatmul.mubr.f32.gmra.mxu0 %v10894_v41 }
 0x531   :  { %13767 = vmatprep.subr.mxu1 %v3064_v26  ;;  %13819 = vmatprep.subr.mxu0 %v3278_v47 }
 0x532   :  { %13768 = vmatpush3.msra.mxu1 %v3064_v26  ;;  %13820 = vmatpush3.msra.mxu0 %v3278_v47 }
 0x533   :  { %13769 = vmatprep.subr.mxu1 %v3062_v9  ;;  %13821 = vmatprep.subr.mxu0 %v3276_v61 }
 0x534   :  { %13684 = vmatprep.mubr.f32.mxu1 %v10865_v55  ;;  %13737 = vmatprep.mubr.f32.mxu0 %v10895_v48 }
 0x535   :  { %13770 = vmatpush3.msra.mxu1 %v3062_v9  ;;  %13822 = vmatpush3.msra.mxu0 %v3276_v61 }
 0x536   :  { %13685 = vmatmul.mubr.f32.gmra.mxu1 %v10866_v14  ;;  %13738 = vmatmul.mubr.f32.gmra.mxu0 %v10896_v36  ;;  %v17891_v14 = vpop.permute.xlu0 %3571 }
 0x537   :  { %13771 = vmatprep.subr.mxu1 %v3060_v7  ;;  %13823 = vmatprep.subr.mxu0 %v3274_v56  ;;  %22851 = vst [vmem:[#allocation11_spill] sm:$0xff] %v17891_v14 }
 0x538   :  { %13772 = vmatpush3.msra.mxu1 %v3060_v7  ;;  %13824 = vmatpush3.msra.mxu0 %v3274_v56 }
 0x539   :  { %13773 = vmatprep.subr.mxu1 %v3058_v1  ;;  %13825 = vmatprep.subr.mxu0 %v3272_v57 }
 0x53a   :  { %13740 = vmatprep.mubr.f32.mxu0 %v10897_v17  ;;  %13774 = vmatpush3.msra.mxu1 %v3058_v1  ;;  %v17893_v1 = vpop.permute.xlu1 %3566 }
 0x53b   :  { %13775 = vmatprep.mubr.f32.mxu1 %v10899_v28  ;;  %13826 = vmatpush3.msra.mxu0 %v3272_v57  ;;  %22852 = vst [vmem:[#allocation6_spill] sm:$0xff] %v17893_v1 }
 0x53c   :  { %13741 = vmatmul.mubr.f32.gmra.mxu0 %v10898_v50  ;;  %13776 = vmatmul.mubr.f32.vlgmr.msra.gmra.mxu1 %v10900_v39  ;;  %v17897_v50 = vpop.permute.xlu0 %3561 }
 0x53d   :  { %13827 = vmatprep.subr.mxu0 %v3270_v44  ;;  %13778 = vmatprep.mubr.f32.mxu1 %v10901_v33  ;;  %22853 = vst [vmem:[#allocation3_spill] sm:$0xff] %v17897_v50 }
 0x53e   :  { %13828 = vmatpush3.msra.mxu0 %v3270_v44  ;;  %13831 = vmatprep.mubr.f32.mxu0 %v10915_v51  ;;  %v17903_v51 = vpop.permute.xlu1 %3556 }
 0x53f   :  { %13829 = vmatprep.subr.mxu0 %v3268_v10  ;;  %22854 = vst [vmem:[#allocation4_spill] sm:$0xff] %v17903_v51 }
 0x540   :  { %13830 = vmatpush3.msra.mxu0 %v3268_v10  ;;  %13779 = vmatmul.mubr.f32.gmra.mxu1 %v10902_v19  ;;  %v17909_v19 = vpop.permute.xlu0 %3551 }
 0x541   :  { %13832 = vmatmul.mubr.f32.vlgmr.msra.gmra.mxu0 %v10916_v63  ;;  %13781 = vmatprep.mubr.f32.mxu1 %v10903_v3  ;;  %22855 = vst [vmem:[#allocation8_spill] sm:$0xff] %v17909_v19 }
 0x542   :  { %13834 = vmatprep.mubr.f32.mxu0 %v10917_v5  ;;  %v17915_v5 = vpop.permute.xlu1 %3546 }
 0x543   :  { %22856 = vst [vmem:[#allocation2_spill] sm:$0xff] %v17915_v5 }
 0x544   :  { %13782 = vmatmul.mubr.f32.gmra.mxu1 %v10904_v62 }
 0x545   :  { %13835 = vmatmul.mubr.f32.gmra.mxu0 %v10918_v16  ;;  %13784 = vmatprep.mubr.f32.mxu1 %v10905_v38  ;;  %v17921_v38 = vpop.permute.xlu0 %3541 }
 0x546   :  { %13837 = vmatprep.mubr.f32.mxu0 %v10919_v53  ;;  %22857 = vst [vmem:[#allocation9_spill] sm:$0xff] %v17921_v38 }
 0x548   :  { %13785 = vmatmul.mubr.f32.gmra.mxu1 %v10906_v23 }
 0x549   :  { %13838 = vmatmul.mubr.f32.gmra.mxu0 %v10920_v52  ;;  %13787 = vmatprep.mubr.f32.mxu1 %v10907_v21  ;;  %v17927_v52 = vpop.permute.xlu1 %3536 }
 0x54a   :  { %13840 = vmatprep.mubr.f32.mxu0 %v10921_v49  ;;  %22858 = vst [vmem:[#allocation15_spill] sm:$0xff] %v17927_v52 }
 0x54c   :  { %13788 = vmatmul.mubr.f32.gmra.mxu1 %v10908_v0  ;;  %v17933_v0 = vpop.permute.xlu0 %3531 }
 0x54d   :  { %13841 = vmatmul.mubr.f32.gmra.mxu0 %v10922_v34  ;;  %13790 = vmatprep.mubr.f32.mxu1 %v10909_v42 }
 0x54e   :  { %13843 = vmatprep.mubr.f32.mxu0 %v10923_v6  ;;  %v17939_v6 = vpop.permute.xlu1 %3526 }
 0x550   :  { %13791 = vmatmul.mubr.f32.gmra.mxu1 %v10910_v2 }
 0x551   :  { %13844 = vmatmul.mubr.f32.gmra.mxu0 %v10924_v4  ;;  %13793 = vmatprep.mubr.f32.mxu1 %v10911_v12  ;;  %v17945_v12 = vpop.permute.xlu0 %3521 }
 0x552   :  { %13846 = vmatprep.mubr.f32.mxu0 %v10925_v37 }
 0x554   :  { %13794 = vmatmul.mubr.f32.gmra.mxu1 %v10912_v13 }
 0x555   :  { %13847 = vmatmul.mubr.f32.gmra.mxu0 %v10926_v11  ;;  %13796 = vmatprep.mubr.f32.mxu1 %v10913_v60  ;;  %v17951_v11 = vpop.permute.xlu1 %3516 }
 0x556   :  { %13849 = vmatprep.mubr.f32.mxu0 %v10927_v20 }
 0x558   :  { %13797 = vmatmul.mubr.f32.gmra.mxu1 %v10914_v27 }
 0x559   :  { %13850 = vmatmul.mubr.f32.gmra.mxu0 %v10928_v45  ;;  %v3512_v45 = vpop.permute.xlu0 %3511  ;;  %v3507_v51 = vpop.permute.xlu1 %3506 }
 0x55a   :  { %13852 = vmatprep.mubr.f32.mxu0 %v10929_v29 }
 0x55d   :  { %13853 = vmatmul.mubr.f32.gmra.mxu0 %v10930_v43 }
 0x5a9   :  { %v13609_v30 = vpop.f32.mrf.mxu0 }
 0x5ab   :  { %v2655_v54 = vpop.f32.mrf.mxu0 }
 0x5ae   :  { %v17863_v59 = vpop.f32.mrf.mxu0 }
 0x5b0   :  { %v17865_v58 = vpop.f32.mrf.mxu0 }
 0x5b3   :  { %v17867_v22 = vpop.f32.mrf.mxu0 }
 0x5b5   :  { %v17869_v18 = vpop.f32.mrf.mxu0 }
 0x5b8   :  { %v17871_v46 = vpop.f32.mrf.mxu0 }
 0x5ba   :  { %v17873_v25 = vpop.f32.mrf.mxu0 }
 0x5bd   :  { %v17875_v47 = vpop.f32.mrf.mxu0 }
 0x5bf   :  { %v17877_v26 = vpop.f32.mrf.mxu0 }
 0x5c2   :  { %v17879_v15 = vpop.f32.mrf.mxu0 }
 0x5c4   :  { %v17881_v32 = vpop.f32.mrf.mxu0 }
 0x5c7   :  { %v17883_v8 = vpop.f32.mrf.mxu0 }
 0x5c9   :  { %v17885_v35 = vpop.f32.mrf.mxu0 }
 0x5cc   :  { %v17887_v61 = vpop.f32.mrf.mxu0  ;;  %v13665_v9 = vpop.f32.mrf.mxu1 }
 0x5cd   :  { %22849 = vst [vmem:[#allocation13_spill] sm:$0xff] %v17887_v61  ;;  %v2806_v60 = vadd.f32 %v13665_v9, %v13609_v30  ;;  %v3502_v61 = vpop.permute.xlu0 %3501 }
 0x5ce   :  { %v17889_v40 = vpop.f32.mrf.mxu0  ;;  %v2800_v24 = vpop.f32.mrf.mxu1 }
 0x5cf   :  { %22850 = vst [vmem:[#allocation5_spill] sm:$0xff] %v17889_v40  ;;  %v2801_v29 = vadd.f32 %v2800_v24, %v2655_v54 }
 0x5d2   :  { %v13668_v31 = vpop.f32.mrf.mxu1  ;;  %v13721_v41 = vpop.f32.mrf.mxu0 }
 0x5d3   :  { %v3042_v43 = vadd.f32 %v13721_v41, %v2806_v60  ;;  %v2816_v50 = vadd.f32 %v13668_v31, %v17863_v59  ;;  %v3497_v59 = vpop.permute.xlu1 %3496 }
 0x5d4   :  { %v2810_v56 = vpop.f32.mrf.mxu1  ;;  %v2962_v7 = vpop.f32.mrf.mxu0 }
 0x5d5   :  { %v3041_v40 = vadd.f32 %v2962_v7, %v2801_v29 }
 0x5d8   :  { %v13671_v55 = vpop.f32.mrf.mxu1  ;;  %v13724_v48 = vpop.f32.mrf.mxu0 }
 0x5d9   :  { %v2826_v54 = vadd.f32 %v13671_v55, %v17867_v22 }
 0x5da   :  { %v2820_v36 = vpop.f32.mrf.mxu1  ;;  %v2972_v57 = vpop.f32.mrf.mxu0 }
 0x5db   :  { %v2821_v31 = vadd.f32 %v2820_v36, %v17869_v18 }
 0x5de   :  { %v17895_v17 = vpop.f32.mrf.mxu1  ;;  %v13727_v28 = vpop.f32.mrf.mxu0 }
 0x5df   :  { %v3046_v7 = vadd.f32 %v13727_v28, %v2826_v54  ;;  %v2836_v22 = vadd.f32 %v17895_v17, %v17871_v46 }
 0x5e0   :  { %v17899_v39 = vpop.f32.mrf.mxu1  ;;  %v17901_v33 = vpop.f32.mrf.mxu0 }
 0x5e1   :  { %v3045_v55 = vadd.f32 %v17901_v33, %v2821_v31  ;;  %v2831_v36 = vadd.f32 %v17899_v39, %v17873_v25 }
 0x5e4   :  { %v17905_v44 = vpop.f32.mrf.mxu1  ;;  %v17907_v10 = vpop.f32.mrf.mxu0 }
 0x5e6   :  { %v17911_v63 = vpop.f32.mrf.mxu1  ;;  %v17913_v3 = vpop.f32.mrf.mxu0 }
 0x5ea   :  { %v17917_v62 = vpop.f32.mrf.mxu1  ;;  %v17919_v16 = vpop.f32.mrf.mxu0 }
 0x5ec   :  { %v17923_v53 = vpop.f32.mrf.mxu1  ;;  %v17925_v23 = vpop.f32.mrf.mxu0 }
 0x5f0   :  { %v17929_v21 = vpop.f32.mrf.mxu1  ;;  %v17931_v49 = vpop.f32.mrf.mxu0 }
 0x5f2   :  { %v17935_v34 = vpop.f32.mrf.mxu1  ;;  %v17937_v42 = vpop.f32.mrf.mxu0 }
 0x5f6   :  { %v17941_v2 = vpop.f32.mrf.mxu1  ;;  %v17943_v4 = vpop.f32.mrf.mxu0 }
 0x5f7   :  { %22859 = vst [vmem:[#allocation14_spill] sm:$0xff] %v17941_v2  ;;  %v3044_v2 = vadd.f32 %v13724_v48, %v2816_v50 }
 0x5f8   :  { %v17947_v37 = vpop.f32.mrf.mxu1  ;;  %v17949_v13 = vpop.f32.mrf.mxu0 }
 0x5f9   :  { %22860 = vst [vmem:[#allocation7_spill] sm:$0xff] %v17947_v37  ;;  %22861 = vst [vmem:[#allocation16_spill] sm:$0xff] %v17949_v13  ;;  %v2811_v13 = vadd.f32 %v2810_v56, %v17865_v58 }
 0x5fb   :  { %v3043_v41 = vadd.f32 %v2972_v57, %v2811_v13 }
 0x5fc   :  { %v17953_v20 = vpop.f32.mrf.mxu0  ;;  %v13777_v27 = vpop.f32.mrf.mxu1 }
 0x5fd   :  { %22862 = vst [vmem:[#allocation10_spill] sm:$0xff] %v17953_v20  ;;  %v3252_v5 = vadd.f32 %v13777_v27, %v3042_v43 }
 0x5fe   :  { %v17955_v1 = vpop.f32.mrf.mxu0  ;;  %v3172_v14 = vpop.f32.mrf.mxu1 }
 0x5ff   :  { %22863 = vst [vmem:[#allocation12_spill] sm:$0xff] %v17955_v1  ;;  %v3251_v30 = vadd.f32 %v3172_v14, %v3041_v40 }
 0x600   :  { %v13780_v37 = vpop.f32.mrf.mxu1 }
 0x601   :  { %v13833_v19 = vpop.f32.mrf.mxu0  ;;  %v3254_v60 = vadd.f32 %v13780_v37, %v3044_v2  ;;  %v3047_v2 = vadd.f32 %v17913_v3, %v2831_v36  ;;  %v22867_v36 = vld [vmem:[#allocation14_spill] sm:$0xff] }
 0x602   :  { %v3462_v9 = vadd.f32 %v13833_v19, %v3252_v5  ;;  %v3182_v20 = vpop.f32.mrf.mxu1 }
 0x603   :  { %v3382_v24 = vpop.f32.mrf.mxu0  ;;  %v3253_v58 = vadd.f32 %v3182_v20, %v3043_v41 }
 0x604   :  { %v3575_v1 = vadd.f32 %v3502_v61, %v3462_v9  ;;  %v3461_v52 = vadd.f32 %v3382_v24, %v3251_v30  ;;  %v13783_v38 = vpop.f32.mrf.mxu1  ;;  %v2856_v9 = vadd.f32 %v17917_v62, %v17879_v15 }
 0x605   :  { %v13836_v27 = vpop.f32.mrf.mxu0  ;;  %v3256_v61 = vadd.f32 %v13783_v38, %v3046_v7  ;;  %v2846_v38 = vadd.f32 %v17905_v44, %v17875_v47 }
 0x606   :  { %v17961_v29 = vmax.f32 %v3575_v1, 0.0  ;;  %v3574_v40 = vadd.f32 %v3497_v59, %v3461_v52  ;;  %v3464_v56 = vadd.f32 %v13836_v27, %v3254_v60  ;;  %v3192_v48 = vpop.f32.mrf.mxu1  ;;  %v3048_v1 = vadd.f32 %v17907_v10, %v2836_v22 }
 0x607   :  { %v3392_v14 = vpop.f32.mrf.mxu0  ;;  %v3255_v28 = vadd.f32 %v3192_v48, %v3045_v55  ;;  %v2841_v10 = vadd.f32 %v17911_v63, %v17877_v26  ;;  %v3052_v41 = vadd.f32 %v17931_v49, %v2856_v9  ;;  %v2866_v27 = vadd.f32 %v17929_v21, %v17883_v8  ;;  %v22864_v48 = vld [vmem:[#allocation9_spill] sm:$0xff] }
 0x608   :  { %v3463_v57 = vadd.f32 %v3392_v14, %v3253_v58  ;;  %3657 = vrot.lane.b32.xlu0 %v17961_v29, %s15669_s1  ;;  %v13786_v18 = vpop.f32.mrf.mxu1  ;;  %v17971_v19 = vmax.f32 %v3574_v40, 0.0  ;;  %v3577_v5 = vadd.f32 %v3512_v45, %v3464_v56 }
 0x609   :  { %v13839_v50 = vpop.f32.mrf.mxu0  ;;  %v3258_v13 = vadd.f32 %v13786_v18, %v3048_v1  ;;  %v3049_v26 = vadd.f32 %v17925_v23, %v2841_v10  ;;  %v3054_v56 = vadd.f32 %v17943_v4, %v2866_v27  ;;  %v22866_v18 = vld [vmem:[#allocation13_spill] sm:$0xff] }
 0x60a   :  { %v3576_v46 = vadd.f32 %v3507_v51, %v3463_v57  ;;  %v3466_v17 = vadd.f32 %v13839_v50, %v3256_v61  ;;  %v3202_v33 = vpop.f32.mrf.mxu1  ;;  %v3050_v51 = vadd.f32 %v17919_v16, %v2846_v38  ;;  %v17984_v47 = vmax.f32 %v3577_v5, 0.0 }
 0x60b   :  { %v3402_v52 = vpop.f32.mrf.mxu0  ;;  %v3257_v44 = vadd.f32 %v3202_v33, %v3047_v2  ;;  %v2876_v1 = vadd.f32 %v22867_v36, %v22866_v18  ;;  %v22870_v2 = vld [vmem:[#allocation8_spill] sm:$0xff] }
 0x60c   :  { %v17976_v37 = vmax.f32 %v3576_v46, 0.0  ;;  %v3465_v25 = vadd.f32 %v3402_v52, %v3255_v28  ;;  %3655 = vrot.lane.b32.xlu0 %v17971_v19, %s15669_s1  ;;  %v13789_v39 = vpop.f32.mrf.mxu1  ;;  %v3579_v20 = vadd.f32 %v17945_v12, %v3466_v17  ;;  %v22869_v46 = vld [vmem:[#allocation10_spill] sm:$0xff] }
 0x60d   :  { %v13842_v45 = vpop.f32.mrf.mxu0  ;;  %v3260_v16 = vadd.f32 %v13789_v39, %v3050_v51  ;;  %v3056_v17 = vadd.f32 %v22869_v46, %v2876_v1  ;;  %v22871_v39 = vld [vmem:[#allocation2_spill] sm:$0xff]  ;;  %v11040_v1 = vld [vmem:[%s22785_s4 + $0x1e8] sm:$0xff] }
 0x60e   :  { %v3578_v3 = vadd.f32 %v17951_v11, %v3465_v25  ;;  %v3468_v43 = vadd.f32 %v13842_v45, %v3258_v13  ;;  %3659 = vrot.lane.b32.xlu1 %v17976_v37, %s15669_s1  ;;  %v3212_v30 = vpop.f32.mrf.mxu1  ;;  %v2851_v11 = vadd.f32 %v17923_v53, %v17881_v32  ;;  %v17999_v60 = vmax.f32 %v3579_v20, 0.0  ;;  %v11039_v46 = vld [vmem:[%s22785_s4 + $0x1e0] sm:$0xff] }
 0x60f   :  { %v3412_v54 = vpop.f32.mrf.mxu0  ;;  %v3259_v62 = vadd.f32 %v3212_v30, %v3049_v26  ;;  %v22873_v30 = vld [vmem:[#allocation7_spill] sm:$0xff] }
 0x610   :  { %v17992_v63 = vmax.f32 %v3578_v3, 0.0  ;;  %v3467_v12 = vadd.f32 %v3412_v54, %v3257_v44  ;;  %3661 = vrot.lane.b32.xlu0 %v17984_v47, %s15669_s1  ;;  %v13792_v24 = vpop.f32.mrf.mxu1  ;;  %v3581_v15 = vadd.f32 %v17933_v0, %v3468_v43  ;;  %v3051_v32 = vadd.f32 %v17937_v42, %v2851_v11  ;;  %v22865_v42 = vld [vmem:[#allocation15_spill] sm:$0xff]  ;;  %v22872_v43 = vld [vmem:[#allocation5_spill] sm:$0xff] }
 0x611   :  { %v13845_v59 = vpop.f32.mrf.mxu0  ;;  %v3262_v49 = vadd.f32 %v13792_v24, %v3052_v41  ;;  %v2871_v9 = vadd.f32 %v22873_v30, %v22872_v43  ;;  %v22875_v24 = vld [vmem:[#allocation4_spill] sm:$0xff]  ;;  %v11030_v30 = vld [vmem:[%s22785_s4 + $0x198] sm:$0xff] }
 0x612   :  { %v3580_v23 = vadd.f32 %v17939_v6, %v3467_v12  ;;  %v3470_v31 = vadd.f32 %v13845_v59, %v3260_v16  ;;  %3663 = vrot.lane.b32.xlu1 %v17992_v63, %s15669_s1  ;;  %v3222_v7 = vpop.f32.mrf.mxu1  ;;  %v2861_v6 = vadd.f32 %v17935_v34, %v17885_v35  ;;  %v18016_v8 = vmax.f32 %v3581_v15, 0.0  ;;  %v22868_v35 = vld [vmem:[#allocation16_spill] sm:$0xff]  ;;  %v22874_v16 = vld [vmem:[#allocation3_spill] sm:$0xff] }
 0x613   :  { %v3422_v58 = vpop.f32.mrf.mxu0  ;;  %v3261_v21 = vadd.f32 %v3222_v7, %v3051_v32  ;;  %v22876_v15 = vld [vmem:[#allocation12_spill] sm:$0xff] }
 0x614   :  { %v18008_v53 = vmax.f32 %v3580_v23, 0.0  ;;  %v3469_v40 = vadd.f32 %v3422_v58, %v3259_v62  ;;  %3665 = vrot.lane.b32.xlu0 %v17999_v60, %s15669_s1  ;;  %v13795_v0 = vpop.f32.mrf.mxu1  ;;  %v3583_v22 = vadd.f32 %v22864_v48, %v3470_v31  ;;  %v3053_v34 = vadd.f32 %v22868_v35, %v2861_v6  ;;  %v22877_v58 = vld [vmem:[#allocation11_spill] sm:$0xff]  ;;  %v10963_v48 = vld [vmem:[%s22784_s3 + $0x800] sm:$0xff]  ;;  %v11041_v35 = vld [vmem:[%s22785_s4 + $0x1f0] sm:$0xff] }
 0x615   :  { %v13848_v55 = vpop.f32.mrf.mxu0  ;;  %v3264_v50 = vadd.f32 %v13795_v0, %v3054_v56  ;;  %v3055_v62 = vadd.f32 %v22876_v15, %v2871_v9  ;;  %v22878_v0 = vld [vmem:[#allocation6_spill] sm:$0xff]  ;;  %13887 = vmatprep.mubr.f32.mxu1 %v10963_v48 }
 0x616   :  { %v3582_v14 = vadd.f32 %v22865_v42, %v3469_v40  ;;  %v3472_v61 = vadd.f32 %v13848_v55, %v3262_v49  ;;  %3667 = vrot.lane.b32.xlu1 %v18008_v53, %s15669_s1  ;;  %v3232_v57 = vpop.f32.mrf.mxu1  ;;  %v18029_v33 = vmax.f32 %v3583_v22, 0.0  ;;  %v10947_v22 = vld [vmem:[%s22784_s3 + $0x780] sm:$0xff] }
 0x617   :  { %v3432_v28 = vpop.f32.mrf.mxu0  ;;  %v3263_v25 = vadd.f32 %v3232_v57, %v3053_v34  ;;  %13943 = vmatprep.mubr.f32.mxu0 %v10947_v22  ;;  %v11042_v57 = vld [vmem:[%s22785_s4 + $0x1f8] sm:$0xff]  ;;  %v11027_v15 = vld [vmem:[%s22785_s4 + $0x180] sm:$0xff] }
 0x618   :  { %v18024_v4 = vmax.f32 %v3582_v14, 0.0  ;;  %v3471_v5 = vadd.f32 %v3432_v28, %v3261_v21  ;;  %3669 = vrot.lane.b32.xlu0 %v18016_v8, %s15669_s1  ;;  %v13798_v38 = vpop.f32.mrf.mxu1  ;;  %v3585_v13 = vadd.f32 %v22870_v2, %v3472_v61  ;;  %v11037_v2 = vld [vmem:[%s22785_s4 + $0x1d0] sm:$0xff] }
 0x619   :  { %v13851_v52 = vpop.f32.mrf.mxu0  ;;  %v3266_v44 = vadd.f32 %v13798_v38, %v3056_v17  ;;  %v11036_v38 = vld [vmem:[%s22785_s4 + $0x1c8] sm:$0xff] }
 0x61a   :  { %v3584_v10 = vadd.f32 %v22871_v39, %v3471_v5  ;;  %v3474_v51 = vadd.f32 %v13851_v52, %v3264_v50  ;;  %3671 = vrot.lane.b32.xlu1 %v18024_v4, %s15669_s1  ;;  %v18041_v26 = vmax.f32 %v3585_v13, 0.0  ;;  %v3242_v59 = vpop.f32.mrf.mxu1  ;;  %v11038_v50 = vld [vmem:[%s22785_s4 + $0x1d8] sm:$0xff] }
 0x61b   :  { %v3442_v20 = vpop.f32.mrf.mxu0  ;;  %v3265_v27 = vadd.f32 %v3242_v59, %v3055_v62 }
 0x61c   :  { %v18035_v45 = vmax.f32 %v3584_v10, 0.0  ;;  %v3473_v3 = vadd.f32 %v3442_v20, %v3263_v25  ;;  %3673 = vrot.lane.b32.xlu0 %v18029_v33, %s15669_s1  ;;  %v3587_v12 = vadd.f32 %v22874_v16, %v3474_v51  ;;  %v11034_v25 = vld [vmem:[%s22785_s4 + $0x1b8] sm:$0xff]  ;;  %v11035_v10 = vld [vmem:[%s22785_s4 + $0x1c0] sm:$0xff]  ;;  %v11032_v20 = vld [vmem:[%s22785_s4 + $0x1a8] sm:$0xff] }
 0x61d   :  { %v13854_v54 = vpop.f32.mrf.mxu0 }
 0x61e   :  { %v3586_v11 = vadd.f32 %v22875_v24, %v3473_v3  ;;  %v3476_v41 = vadd.f32 %v13854_v54, %v3266_v44  ;;  %3675 = vrot.lane.b32.xlu1 %v18035_v45, %s15669_s1  ;;  %v18052_v7 = vmax.f32 %v3587_v12, 0.0  ;;  %v11033_v3 = vld [vmem:[%s22785_s4 + $0x1b0] sm:$0xff]  ;;  %v11031_v54 = vld [vmem:[%s22785_s4 + $0x1a0] sm:$0xff]  ;;  %v11028_v12 = vld [vmem:[%s22785_s4 + $0x188] sm:$0xff] }
 0x61f   :  { %v3452_v31 = vpop.f32.mrf.mxu0 }
 0x620   :  { %v18048_v23 = vmax.f32 %v3586_v11, 0.0  ;;  %3677 = vrot.lane.b32.xlu0 %v18041_v26, %s15669_s1  ;;  %v3589_v32 = vadd.f32 %v22877_v58, %v3476_v41  ;;  %v3475_v49 = vadd.f32 %v3452_v31, %v3265_v27  ;;  %v11029_v11 = vld [vmem:[%s22785_s4 + $0x190] sm:$0xff] }
 0x622   :  { %3679 = vrot.lane.b32.xlu1 %v18048_v23, %s15669_s1  ;;  %v18059_v40 = vmax.f32 %v3589_v32, 0.0  ;;  %v3588_v6 = vadd.f32 %v22878_v0, %v3475_v49 }
 0x624   :  { %3681 = vrot.lane.b32.xlu0 %v18052_v7, %s15669_s1  ;;  %v18068_v56 = vmax.f32 %v3588_v6, 0.0 }
 0x626   :  { %3630 = vrot.lane.b32.xlu1 %v18048_v23, %s15670_s12 }
 0x628   :  { %3685 = vrot.lane.b32.xlu0 %v18059_v40, %s15669_s1 }
 0x62a   :  { %3636 = vrot.lane.b32.xlu1 %v18059_v40, %s15670_s12 }
 0x62c   :  { %3632 = vrot.lane.b32.xlu0 %v18052_v7, %s15670_s12 }
 0x62e   :  { %3683 = vrot.lane.b32.xlu1 %v18068_v56, %s15669_s1 }
 0x630   :  { %3628 = vrot.lane.b32.xlu0 %v18041_v26, %s15670_s12 }
 0x632   :  { %3626 = vrot.lane.b32.xlu1 %v18035_v45, %s15670_s12 }
 0x634   :  { %3624 = vrot.lane.b32.xlu0 %v18029_v33, %s15670_s12 }
 0x636   :  { %3622 = vrot.lane.b32.xlu1 %v18024_v4, %s15670_s12 }
 0x638   :  { %3620 = vrot.lane.b32.xlu0 %v18016_v8, %s15670_s12 }
 0x63a   :  { %3618 = vrot.lane.b32.xlu1 %v18008_v53, %s15670_s12 }
 0x63c   :  { %3616 = vrot.lane.b32.xlu0 %v17999_v60, %s15670_s12 }
 0x63e   :  { %3614 = vrot.lane.b32.xlu1 %v17992_v63, %s15670_s12 }
 0x640   :  { %3612 = vrot.lane.b32.xlu0 %v17984_v47, %s15670_s12 }
 0x642   :  { %3610 = vrot.lane.b32.xlu1 %v17976_v37, %s15670_s12 }
 0x644   :  { %3608 = vrot.lane.b32.xlu0 %v17961_v29, %s15670_s12 }
 0x646   :  { %3606 = vrot.lane.b32.xlu1 %v17971_v19, %s15670_s12 }
 0x648   :  { %4202 = vrot.lane.b32.xlu0 %v18059_v40, %s15671_s15 }
 0x64a   :  { %3634 = vrot.lane.b32.xlu1 %v18068_v56, %s15670_s12 }
 0x64c   :  { %4412 = vrot.lane.b32.xlu0 %v18059_v40, %s15672_s16 }
 0x64e   :  { %4198 = vrot.lane.b32.xlu1 %v18052_v7, %s15671_s15 }
 0x650   :  { %4408 = vrot.lane.b32.xlu0 %v18052_v7, %s15672_s16 }
 0x652   :  { %4196 = vrot.lane.b32.xlu1 %v18048_v23, %s15671_s15 }
 0x654   :  { %4406 = vrot.lane.b32.xlu0 %v18048_v23, %s15672_s16 }
 0x656   :  { %4194 = vrot.lane.b32.xlu1 %v18041_v26, %s15671_s15 }
 0x658   :  { %4404 = vrot.lane.b32.xlu0 %v18041_v26, %s15672_s16 }
 0x65a   :  { %4192 = vrot.lane.b32.xlu1 %v18035_v45, %s15671_s15 }
 0x65c   :  { %4402 = vrot.lane.b32.xlu0 %v18035_v45, %s15672_s16 }
 0x65e   :  { %4190 = vrot.lane.b32.xlu1 %v18029_v33, %s15671_s15 }
 0x660   :  { %4400 = vrot.lane.b32.xlu0 %v18029_v33, %s15672_s16 }
 0x662   :  { %4188 = vrot.lane.b32.xlu1 %v18024_v4, %s15671_s15 }
 0x664   :  { %4398 = vrot.lane.b32.xlu0 %v18024_v4, %s15672_s16 }
 0x666   :  { %4186 = vrot.lane.b32.xlu1 %v18016_v8, %s15671_s15 }
 0x668   :  { %4410 = vrot.lane.b32.xlu0 %v18068_v56, %s15672_s16 }
 0x66a   :  { %4200 = vrot.lane.b32.xlu1 %v18068_v56, %s15671_s15 }
 0x66c   :  { %4396 = vrot.lane.b32.xlu0 %v18016_v8, %s15672_s16 }
 0x66e   :  { %4184 = vrot.lane.b32.xlu1 %v18008_v53, %s15671_s15 }
 0x670   :  { %4394 = vrot.lane.b32.xlu0 %v18008_v53, %s15672_s16 }
 0x672   :  { %4182 = vrot.lane.b32.xlu1 %v17999_v60, %s15671_s15 }
 0x674   :  { %4392 = vrot.lane.b32.xlu0 %v17999_v60, %s15672_s16 }
 0x676   :  { %4180 = vrot.lane.b32.xlu1 %v17992_v63, %s15671_s15 }
 0x678   :  { %4390 = vrot.lane.b32.xlu0 %v17992_v63, %s15672_s16 }
 0x67a   :  { %4178 = vrot.lane.b32.xlu1 %v17984_v47, %s15671_s15  ;;  %v18156_v55 = vpop.permute.xlu0 %3657 }
 0x67c   :  { %4388 = vrot.lane.b32.xlu0 %v17984_v47, %s15672_s16 }
 0x67e   :  { %4176 = vrot.lane.b32.xlu1 %v17976_v37, %s15671_s15  ;;  %v18162_v21 = vpop.permute.xlu0 %3655 }
 0x680   :  { %v18164_v42 = vpop.permute.xlu1 %3659  ;;  %4386 = vrot.lane.b32.xlu0 %v17976_v37, %s15672_s16 }
 0x682   :  { %4174 = vrot.lane.b32.xlu1 %v17961_v29, %s15671_s15  ;;  %v18170_v14 = vpop.permute.xlu0 %3661 }
 0x684   :  { %v18172_v61 = vpop.permute.xlu1 %3663  ;;  %4384 = vrot.lane.b32.xlu0 %v17961_v29, %s15672_s16 }
 0x686   :  { %4172 = vrot.lane.b32.xlu1 %v17971_v19, %s15671_s15  ;;  %v18181_v18 = vpop.permute.xlu0 %3665 }
 0x688   :  { %v18183_v36 = vpop.permute.xlu1 %3667  ;;  %4686 = vperm.xlu0 %15666, %v11042_v57  }
 0x68a   :  { %4382 = vrot.lane.b32.xlu1 %v17971_v19, %s15672_s16  ;;  %v18190_v28 = vpop.permute.xlu0 %3669 }
 0x68c   :  { %v3672_v34 = vpop.permute.xlu1 %3671  ;;  %4676 = vperm.xlu0 %15666, %v11040_v1  }
 0x68e   :  { %4681 = vperm.xlu1 %15667, %v11041_v35   ;;  %v3674_v5 = vpop.permute.xlu0 %3673 }
 0x690   :  { %v3676_v17 = vpop.permute.xlu1 %3675  ;;  %4666 = vperm.xlu0 %15666, %v11038_v50  }
 0x692   :  { %4671 = vperm.xlu1 %15667, %v11039_v46   ;;  %v3678_v52 = vpop.permute.xlu0 %3677 }
 0x694   :  { %v3680_v13 = vpop.permute.xlu1 %3679  ;;  %4656 = vperm.xlu0 %15666, %v11036_v38  }
 0x696   :  { %4661 = vperm.xlu1 %15667, %v11037_v2   ;;  %v3682_v39 = vpop.permute.xlu0 %3681 }
 0x698   :  { %v18213_v51 = vpop.permute.xlu1 %3630  ;;  %4646 = vperm.xlu0 %15666, %v11034_v25   ;;  %v10950_v25 = vld [vmem:[%s22784_s3 + $0x798] sm:$0xff] }
 0x69a   :  { %4651 = vperm.xlu1 %15667, %v11035_v10   ;;  %v3686_v44 = vpop.permute.xlu0 %3685 }
 0x69b   :  { %13855 = vmatprep.subr.mxu1 %v3686_v44 }
 0x69c   :  { %v3637_v43 = vpop.permute.xlu1 %3636  ;;  %4636 = vperm.xlu0 %15666, %v11032_v20   ;;  %13856 = vmatpush3.msra.mxu1 %v3686_v44  ;;  %v10981_v20 = vld [vmem:[%s22784_s3 + $0x890] sm:$0xff]  ;;  %v10982_v44 = vld [vmem:[%s22784_s3 + $0x898] sm:$0xff] }
 0x69d   :  { %13911 = vmatprep.subr.mxu0 %v3637_v43 }
 0x69e   :  { %13912 = vmatpush3.msra.mxu0 %v3637_v43  ;;  %4641 = vperm.xlu1 %15667, %v11033_v3   ;;  %v18224_v9 = vpop.permute.xlu0 %3632 }
 0x6a0   :  { %v3684_v16 = vpop.permute.xlu1 %3683  ;;  %4626 = vperm.xlu0 %15666, %v11030_v30   ;;  %v10953_v30 = vld [vmem:[%s22784_s3 + $0x7b0] sm:$0xff] }
 0x6a1   :  { %13857 = vmatprep.subr.mxu1 %v3684_v16 }
 0x6a2   :  { %4631 = vperm.xlu1 %15667, %v11031_v54   ;;  %13858 = vmatpush3.msra.mxu1 %v3684_v16  ;;  %v18232_v24 = vpop.permute.xlu0 %3628  ;;  %v10954_v54 = vld [vmem:[%s22784_s3 + $0x7b8] sm:$0xff]  ;;  %v10984_v16 = vld [vmem:[%s22784_s3 + $0x8a8] sm:$0xff] }
 0x6a3   :  { %13859 = vmatprep.subr.mxu1 %v3682_v39 }
 0x6a4   :  { %v18237_v41 = vpop.permute.xlu1 %3626  ;;  %4616 = vperm.xlu0 %15666, %v11028_v12   ;;  %13860 = vmatpush3.msra.mxu1 %v3682_v39  ;;  %v10980_v39 = vld [vmem:[%s22784_s3 + $0x888] sm:$0xff] }
 0x6a5   :  { %13861 = vmatprep.subr.mxu1 %v3680_v13 }
 0x6a6   :  { %4621 = vperm.xlu1 %15667, %v11029_v11   ;;  %13862 = vmatpush3.msra.mxu1 %v3680_v13  ;;  %v18239_v59 = vpop.permute.xlu0 %3624  ;;  %v10949_v13 = vld [vmem:[%s22784_s3 + $0x790] sm:$0xff]  ;;  %v10955_v11 = vld [vmem:[%s22784_s3 + $0x7c0] sm:$0xff] }
 0x6a7   :  { %13863 = vmatprep.subr.mxu1 %v3678_v52 }
 0x6a8   :  { %v18244_v62 = vpop.permute.xlu1 %3622  ;;  %13864 = vmatpush3.msra.mxu1 %v3678_v52  ;;  %v10948_v52 = vld [vmem:[%s22784_s3 + $0x788] sm:$0xff] }
 0x6a9   :  { %13865 = vmatprep.subr.mxu1 %v3676_v17 }
 0x6aa   :  { %4611 = vperm.xlu1 %15667, %v11027_v15   ;;  %13866 = vmatpush3.msra.mxu1 %v3676_v17  ;;  %v18246_v31 = vpop.permute.xlu0 %3620  ;;  %v10976_v17 = vld [vmem:[%s22784_s3 + $0x868] sm:$0xff]  ;;  %v10986_v15 = vld [vmem:[%s22784_s3 + $0x8b8] sm:$0xff] }
 0x6ab   :  { %13867 = vmatprep.subr.mxu1 %v3674_v5 }
 0x6ac   :  { %v18248_v27 = vpop.permute.xlu1 %3618  ;;  %13868 = vmatpush3.msra.mxu1 %v3674_v5  ;;  %v10974_v5 = vld [vmem:[%s22784_s3 + $0x858] sm:$0xff] }
 0x6ad   :  { %13869 = vmatprep.subr.mxu1 %v3672_v34 }
 0x6ae   :  { %13870 = vmatpush3.msra.mxu1 %v3672_v34  ;;  %v18250_v58 = vpop.permute.xlu0 %3616 }
 0x6af   :  { %13871 = vmatprep.subr.mxu1 %v18190_v28 }
 0x6b0   :  { %v18253_v32 = vpop.permute.xlu1 %3614  ;;  %13872 = vmatpush3.msra.mxu1 %v18190_v28 }
 0x6b1   :  { %13873 = vmatprep.subr.mxu1 %v18183_v36 }
 0x6b2   :  { %13874 = vmatpush3.msra.mxu1 %v18183_v36  ;;  %v18258_v49 = vpop.permute.xlu0 %3612 }
 0x6b3   :  { %13875 = vmatprep.subr.mxu1 %v18181_v18 }
 0x6b4   :  { %v18261_v0 = vpop.permute.xlu1 %3610  ;;  %13876 = vmatpush3.msra.mxu1 %v18181_v18 }
 0x6b5   :  { %13877 = vmatprep.subr.mxu1 %v18172_v61 }
 0x6b6   :  { %13878 = vmatpush3.msra.mxu1 %v18172_v61  ;;  %v18266_v6 = vpop.permute.xlu0 %3608  ;;  %v10964_v61 = vld [vmem:[%s22784_s3 + $0x808] sm:$0xff] }
 0x6b7   :  { %13879 = vmatprep.subr.mxu1 %v18170_v14 }
 0x6b8   :  { %v18269_v48 = vpop.permute.xlu1 %3606  ;;  %13880 = vmatpush3.msra.mxu1 %v18170_v14 }
 0x6b9   :  { %13881 = vmatprep.subr.mxu1 %v18164_v42 }
 0x6ba   :  { %13882 = vmatpush3.msra.mxu1 %v18164_v42  ;;  %v18274_v22 = vpop.permute.xlu0 %4202  ;;  %v10965_v42 = vld [vmem:[%s22784_s3 + $0x810] sm:$0xff] }
 0x6bb   :  { %13883 = vmatprep.subr.mxu1 %v18156_v55 }
 0x6bc   :  { %v3635_v57 = vpop.permute.xlu1 %3634  ;;  %13884 = vmatpush3.msra.mxu1 %v18156_v55 }
 0x6bd   :  { %13885 = vmatprep.subr.mxu1 %v18162_v21  ;;  %13913 = vmatprep.subr.mxu0 %v3635_v57 }
 0x6be   :  { %13886 = vmatpush3.msra.mxu1 %v18162_v21  ;;  %13914 = vmatpush3.msra.mxu0 %v3635_v57  ;;  %v18283_v14 = vpop.permute.xlu0 %4412  ;;  %v10966_v21 = vld [vmem:[%s22784_s3 + $0x818] sm:$0xff]  ;;  %v10960_v57 = vld [vmem:[%s22784_s3 + $0x7e8] sm:$0xff] }
 0x6bf   :  { %13888 = vmatmul.mubr.f32.vlgmr.msra.gmra.mxu1 %v10964_v61  ;;  %13915 = vmatprep.subr.mxu0 %v18224_v9  ;;  %v10990_v61 = vld [vmem:[%s22784_s3 + $0x8d8] sm:$0xff] }
 0x6c0   :  { %13967 = vmatprep.subr.mxu1 %v18059_v40  ;;  %v18290_v55 = vpop.permute.xlu1 %4198  ;;  %13916 = vmatpush3.msra.mxu0 %v18224_v9  ;;  %v10983_v9 = vld [vmem:[%s22784_s3 + $0x8a0] sm:$0xff] }
 0x6c1   :  { %13968 = vmatpush3.msra.mxu1 %v18059_v40  ;;  %13917 = vmatprep.subr.mxu0 %v18213_v51  ;;  %v10967_v40 = vld [vmem:[%s22784_s3 + $0x820] sm:$0xff] }
 0x6c2   :  { %13969 = vmatprep.subr.mxu1 %v18068_v56  ;;  %13890 = vmatprep.mubr.f32.mxu1 %v10965_v42  ;;  %v18301_v18 = vpop.permute.xlu0 %4408 }
 0x6c3   :  { %13918 = vmatpush3.msra.mxu0 %v18213_v51  ;;  %13970 = vmatpush3.msra.mxu1 %v18068_v56  ;;  %v10968_v56 = vld [vmem:[%s22784_s3 + $0x828] sm:$0xff]  ;;  %v10951_v51 = vld [vmem:[%s22784_s3 + $0x7a0] sm:$0xff] }
 0x6c4   :  { %13891 = vmatmul.mubr.f32.gmra.mxu1 %v10966_v21  ;;  %13919 = vmatprep.subr.mxu0 %v18232_v24  ;;  %v18304_v36 = vpop.permute.xlu1 %4196  ;;  %v10991_v21 = vld [vmem:[%s22784_s3 + $0x8e0] sm:$0xff] }
 0x6c5   :  { %13971 = vmatprep.subr.mxu1 %v18052_v7  ;;  %13920 = vmatpush3.msra.mxu0 %v18232_v24 }
 0x6c6   :  { %13972 = vmatpush3.msra.mxu1 %v18052_v7  ;;  %13921 = vmatprep.subr.mxu0 %v18237_v41  ;;  %v10969_v7 = vld [vmem:[%s22784_s3 + $0x830] sm:$0xff]  ;;  %v18325_v28 = vpop.permute.xlu0 %4406 }
 0x6c7   :  { %13973 = vmatprep.subr.mxu1 %v18048_v23  ;;  %13893 = vmatprep.mubr.f32.mxu1 %v10967_v40 }
 0x6c8   :  { %13922 = vmatpush3.msra.mxu0 %v18237_v41  ;;  %13974 = vmatpush3.msra.mxu1 %v18048_v23  ;;  %v18319_v1 = vpop.permute.xlu1 %4194  ;;  %v10970_v23 = vld [vmem:[%s22784_s3 + $0x838] sm:$0xff]  ;;  %v10985_v41 = vld [vmem:[%s22784_s3 + $0x8b0] sm:$0xff] }
 0x6c9   :  { %13894 = vmatmul.mubr.f32.gmra.mxu1 %v10968_v56  ;;  %13923 = vmatprep.subr.mxu0 %v18239_v59 }
 0x6ca   :  { %13975 = vmatprep.subr.mxu1 %v18041_v26  ;;  %13924 = vmatpush3.msra.mxu0 %v18239_v59  ;;  %v18345_v34 = vpop.permute.xlu0 %4404  ;;  %v10956_v59 = vld [vmem:[%s22784_s3 + $0x7c8] sm:$0xff] }
 0x6cb   :  { %13976 = vmatpush3.msra.mxu1 %v18041_v26  ;;  %13925 = vmatprep.subr.mxu0 %v18244_v62  ;;  %v10971_v26 = vld [vmem:[%s22784_s3 + $0x840] sm:$0xff] }
 0x6cc   :  { %13977 = vmatprep.subr.mxu1 %v18035_v45  ;;  %13896 = vmatprep.mubr.f32.mxu1 %v10969_v7  ;;  %v18335_v35 = vpop.permute.xlu1 %4192  ;;  %v10995_v7 = vld [vmem:[%s22784_s3 + $0x900] sm:$0xff] }
 0x6cd   :  { %13926 = vmatpush3.msra.mxu0 %v18244_v62  ;;  %13978 = vmatpush3.msra.mxu1 %v18035_v45  ;;  %v10972_v45 = vld [vmem:[%s22784_s3 + $0x848] sm:$0xff] }
 0x6ce   :  { %13897 = vmatmul.mubr.f32.gmra.mxu1 %v10970_v23  ;;  %13927 = vmatprep.subr.mxu0 %v18246_v31  ;;  %v10996_v23 = vld [vmem:[%s22784_s3 + $0x908] sm:$0xff] }
 0x6cf   :  { %13979 = vmatprep.subr.mxu1 %v18029_v33  ;;  %13928 = vmatpush3.msra.mxu0 %v18246_v31 }
 0x6d0   :  { %13980 = vmatpush3.msra.mxu1 %v18029_v33  ;;  %13929 = vmatprep.subr.mxu0 %v18248_v27  ;;  %v18352_v50 = vpop.permute.xlu1 %4190  ;;  %v10973_v33 = vld [vmem:[%s22784_s3 + $0x850] sm:$0xff] }
 0x6d1   :  { %13981 = vmatprep.subr.mxu1 %v18024_v4  ;;  %13899 = vmatprep.mubr.f32.mxu1 %v10971_v26  ;;  %v11011_v26 = vld [vmem:[%s22784_s3 + $0x980] sm:$0xff] }
 0x6d2   :  { %13930 = vmatpush3.msra.mxu0 %v18248_v27  ;;  %13982 = vmatpush3.msra.mxu1 %v18024_v4  ;;  %v18368_v4 = vpop.permute.xlu0 %4402  ;;  %v10957_v27 = vld [vmem:[%s22784_s3 + $0x7d0] sm:$0xff] }
 0x6d3   :  { %13900 = vmatmul.mubr.f32.gmra.mxu1 %v10972_v45  ;;  %13931 = vmatprep.subr.mxu0 %v18250_v58 }
 0x6d4   :  { %13983 = vmatprep.subr.mxu1 %v18016_v8  ;;  %13932 = vmatpush3.msra.mxu0 %v18250_v58  ;;  %v18371_v46 = vpop.permute.xlu1 %4188  ;;  %v10987_v58 = vld [vmem:[%s22784_s3 + $0x8c0] sm:$0xff] }
 0x6d5   :  { %13984 = vmatpush3.msra.mxu1 %v18016_v8  ;;  %13933 = vmatprep.subr.mxu0 %v18253_v32  ;;  %v10975_v8 = vld [vmem:[%s22784_s3 + $0x860] sm:$0xff] }
 0x6d6   :  { %13985 = vmatprep.subr.mxu1 %v18008_v53  ;;  %13902 = vmatprep.mubr.f32.mxu1 %v10973_v33  ;;  %v11012_v33 = vld [vmem:[%s22784_s3 + $0x988] sm:$0xff] }
 0x6d7   :  { %13934 = vmatpush3.msra.mxu0 %v18253_v32  ;;  %13986 = vmatpush3.msra.mxu1 %v18008_v53  ;;  %v18387_v53 = vpop.permute.xlu0 %4400  ;;  %v10958_v32 = vld [vmem:[%s22784_s3 + $0x7d8] sm:$0xff] }
 0x6d8   :  { %13903 = vmatmul.mubr.f32.gmra.mxu1 %v10974_v5  ;;  %13935 = vmatprep.subr.mxu0 %v18258_v49  ;;  %v18391_v38 = vpop.permute.xlu1 %4186  ;;  %v10999_v5 = vld [vmem:[%s22784_s3 + $0x920] sm:$0xff] }
 0x6d9   :  { %13987 = vmatprep.subr.mxu1 %v17999_v60  ;;  %13936 = vmatpush3.msra.mxu0 %v18258_v49  ;;  %v10988_v49 = vld [vmem:[%s22784_s3 + $0x8c8] sm:$0xff] }
 0x6da   :  { %13988 = vmatpush3.msra.mxu1 %v17999_v60  ;;  %13937 = vmatprep.subr.mxu0 %v18261_v0  ;;  %v10977_v60 = vld [vmem:[%s22784_s3 + $0x870] sm:$0xff] }
 0x6db   :  { %13989 = vmatprep.subr.mxu1 %v17992_v63  ;;  %13905 = vmatprep.mubr.f32.mxu1 %v10975_v8  ;;  %v18410_v2 = vpop.permute.xlu0 %4398  ;;  %v11014_v8 = vld [vmem:[%s22784_s3 + $0x998] sm:$0xff] }
 0x6dc   :  { %13938 = vmatpush3.msra.mxu0 %v18261_v0  ;;  %13990 = vmatpush3.msra.mxu1 %v17992_v63  ;;  %v10978_v63 = vld [vmem:[%s22784_s3 + $0x878] sm:$0xff] }
 0x6dd   :  { %13906 = vmatmul.mubr.f32.gmra.mxu1 %v10976_v17  ;;  %13939 = vmatprep.subr.mxu0 %v18266_v6  ;;  %v11001_v17 = vld [vmem:[%s22784_s3 + $0x930] sm:$0xff] }
 0x6de   :  { %13991 = vmatprep.subr.mxu1 %v17984_v47  ;;  %13940 = vmatpush3.msra.mxu0 %v18266_v6 }
 0x6df   :  { %13992 = vmatpush3.msra.mxu1 %v17984_v47  ;;  %13941 = vmatprep.subr.mxu0 %v18269_v48  ;;  %v4201_v47 = vpop.permute.xlu1 %4200 }
 0x6e0   :  { %13993 = vmatprep.subr.mxu1 %v17976_v37  ;;  %13908 = vmatprep.mubr.f32.mxu1 %v10977_v60  ;;  %v11016_v60 = vld [vmem:[%s22784_s3 + $0x9a8] sm:$0xff] }
 0x6e1   :  { %13942 = vmatpush3.msra.mxu0 %v18269_v48  ;;  %13994 = vmatpush3.msra.mxu1 %v17976_v37  ;;  %v10979_v37 = vld [vmem:[%s22784_s3 + $0x880] sm:$0xff] }
 0x6e2   :  { %13909 = vmatmul.mubr.f32.gmra.mxu1 %v10978_v63  ;;  %13944 = vmatmul.mubr.f32.vlgmr.msra.gmra.mxu0 %v10948_v52  ;;  %v10959_v48 = vld [vmem:[%s22784_s3 + $0x7e0] sm:$0xff]  ;;  %v11017_v52 = vld [vmem:[%s22784_s3 + $0x9b0] sm:$0xff] }
 0x6e3   :  { %13995 = vmatprep.subr.mxu1 %v17961_v29  ;;  %14023 = vmatprep.subr.mxu0 %v18274_v22  ;;  %v18430_v10 = vpop.permute.xlu1 %4184  ;;  %v11003_v63 = vld [vmem:[%s22784_s3 + $0x940] sm:$0xff] }
 0x6e4   :  { %13996 = vmatpush3.msra.mxu1 %v17961_v29  ;;  %14024 = vmatpush3.msra.mxu0 %v18274_v22  ;;  %v4411_v29 = vpop.permute.xlu0 %4410  ;;  %v10989_v22 = vld [vmem:[%s22784_s3 + $0x8d0] sm:$0xff] }
 0x6e5   :  { %13997 = vmatprep.subr.mxu1 %v17971_v19  ;;  %14025 = vmatprep.subr.mxu0 %v4201_v47 }
 0x6e6   :  { %13946 = vmatprep.mubr.f32.mxu0 %v10949_v13  ;;  %13998 = vmatpush3.msra.mxu1 %v17971_v19  ;;  %v10952_v19 = vld [vmem:[%s22784_s3 + $0x7a8] sm:$0xff]  ;;  %v11005_v13 = vld [vmem:[%s22784_s3 + $0x950] sm:$0xff] }
 0x6e7   :  { %13999 = vmatprep.mubr.f32.mxu1 %v10979_v37  ;;  %14026 = vmatpush3.msra.mxu0 %v4201_v47  ;;  %v4183_v43 = vpop.permute.xlu1 %4182  ;;  %v11018_v47 = vld [vmem:[%s22784_s3 + $0x9b8] sm:$0xff]  ;;  %v11019_v37 = vld [vmem:[%s22784_s3 + $0x9c0] sm:$0xff] }
 0x6e8   :  { %13947 = vmatmul.mubr.f32.gmra.mxu0 %v10950_v25  ;;  %14000 = vmatmul.mubr.f32.vlgmr.msra.gmra.mxu1 %v10980_v39  ;;  %v4397_v3 = vpop.permute.xlu0 %4396  ;;  %v11006_v25 = vld [vmem:[%s22784_s3 + $0x958] sm:$0xff]  ;;  %v11020_v39 = vld [vmem:[%s22784_s3 + $0x9c8] sm:$0xff] }
 0x6e9   :  { %14027 = vmatprep.subr.mxu0 %v18290_v55  ;;  %14079 = vmatprep.subr.mxu1 %v18283_v14 }
 0x6ea   :  { %14028 = vmatpush3.msra.mxu0 %v18290_v55  ;;  %14080 = vmatpush3.msra.mxu1 %v18283_v14  ;;  %v10961_v55 = vld [vmem:[%s22784_s3 + $0x7f0] sm:$0xff] }
 0x6eb   :  { %14029 = vmatprep.subr.mxu0 %v18304_v36  ;;  %14081 = vmatprep.subr.mxu1 %v4411_v29  ;;  %v4181_v24 = vpop.permute.xlu1 %4180 }
 0x6ec   :  { %13949 = vmatprep.mubr.f32.mxu0 %v10951_v51  ;;  %14002 = vmatprep.mubr.f32.mxu1 %v10981_v20  ;;  %v4395_v12 = vpop.permute.xlu0 %4394  ;;  %v11008_v51 = vld [vmem:[%s22784_s3 + $0x968] sm:$0xff]  ;;  %v11022_v20 = vld [vmem:[%s22784_s3 + $0x9d8] sm:$0xff] }
 0x6ed   :  { %14030 = vmatpush3.msra.mxu0 %v18304_v36  ;;  %14082 = vmatpush3.msra.mxu1 %v4411_v29  ;;  %v10992_v36 = vld [vmem:[%s22784_s3 + $0x8e8] sm:$0xff]  ;;  %v11007_v29 = vld [vmem:[%s22784_s3 + $0x960] sm:$0xff] }
 0x6ee   :  { %13950 = vmatmul.mubr.f32.gmra.mxu0 %v10952_v19  ;;  %14003 = vmatmul.mubr.f32.gmra.mxu1 %v10982_v44  ;;  %v11009_v19 = vld [vmem:[%s22784_s3 + $0x970] sm:$0xff]  ;;  %v11023_v44 = vld [vmem:[%s22784_s3 + $0x9e0] sm:$0xff] }
 0x6ef   :  { %14031 = vmatprep.subr.mxu0 %v18319_v1  ;;  %14083 = vmatprep.subr.mxu1 %v18301_v18  ;;  %v4179_v31 = vpop.permute.xlu1 %4178 }
 0x6f0   :  { %14032 = vmatpush3.msra.mxu0 %v18319_v1  ;;  %14084 = vmatpush3.msra.mxu1 %v18301_v18  ;;  %v4393_v62 = vpop.permute.xlu0 %4392  ;;  %v10962_v18 = vld [vmem:[%s22784_s3 + $0x7f8] sm:$0xff]  ;;  %v10993_v1 = vld [vmem:[%s22784_s3 + $0x8f0] sm:$0xff] }
 0x6f1   :  { %14033 = vmatprep.subr.mxu0 %v18335_v35  ;;  %14085 = vmatprep.subr.mxu1 %v18325_v28 }
 0x6f2   :  { %13952 = vmatprep.mubr.f32.mxu0 %v10953_v30  ;;  %14005 = vmatprep.mubr.f32.mxu1 %v10983_v9  ;;  %v11025_v30 = vld [vmem:[%s22784_s3 + $0x9f0] sm:$0xff]  ;;  %v11026_v9 = vld [vmem:[%s22784_s3 + $0x9f8] sm:$0xff] }
 0x6f3   :  { %14034 = vmatpush3.msra.mxu0 %v18335_v35  ;;  %14086 = vmatpush3.msra.mxu1 %v18325_v28  ;;  %v4177_v6 = vpop.permute.xlu1 %4176  ;;  %v10994_v28 = vld [vmem:[%s22784_s3 + $0x8f8] sm:$0xff]  ;;  %v10997_v35 = vld [vmem:[%s22784_s3 + $0x910] sm:$0xff] }
 0x6f4   :  { %13953 = vmatmul.mubr.f32.gmra.mxu0 %v10954_v54  ;;  %14006 = vmatmul.mubr.f32.gmra.mxu1 %v10984_v16  ;;  %v4391_v0 = vpop.permute.xlu0 %4390 }
 0x6f5   :  { %14035 = vmatprep.subr.mxu0 %v18352_v50  ;;  %14087 = vmatprep.subr.mxu1 %v18345_v34 }
 0x6f6   :  { %14036 = vmatpush3.msra.mxu0 %v18352_v50  ;;  %14088 = vmatpush3.msra.mxu1 %v18345_v34  ;;  %v10998_v50 = vld [vmem:[%s22784_s3 + $0x918] sm:$0xff] }
 0x6f7   :  { %14037 = vmatprep.subr.mxu0 %v18371_v46  ;;  %14089 = vmatprep.subr.mxu1 %v18368_v4  ;;  %v4175_v42 = vpop.permute.xlu1 %4174 }
 0x6f8   :  { %13955 = vmatprep.mubr.f32.mxu0 %v10955_v11  ;;  %14008 = vmatprep.mubr.f32.mxu1 %v10985_v41  ;;  %v4389_v14 = vpop.permute.xlu0 %4388 }
 0x6f9   :  { %14038 = vmatpush3.msra.mxu0 %v18371_v46  ;;  %14090 = vmatpush3.msra.mxu1 %v18368_v4  ;;  %v11013_v4 = vld [vmem:[%s22784_s3 + $0x990] sm:$0xff]  ;;  %v11000_v46 = vld [vmem:[%s22784_s3 + $0x928] sm:$0xff] }
 0x6fa   :  { %13956 = vmatmul.mubr.f32.gmra.mxu0 %v10956_v59  ;;  %14009 = vmatmul.mubr.f32.gmra.mxu1 %v10986_v15 }
 0x6fb   :  { %14039 = vmatprep.subr.mxu0 %v18391_v38  ;;  %14091 = vmatprep.subr.mxu1 %v18387_v53  ;;  %v4173_v56 = vpop.permute.xlu1 %4172 }
 0x6fc   :  { %14040 = vmatpush3.msra.mxu0 %v18391_v38  ;;  %14092 = vmatpush3.msra.mxu1 %v18387_v53  ;;  %v4387_v40 = vpop.permute.xlu0 %4386  ;;  %v11015_v53 = vld [vmem:[%s22784_s3 + $0x9a0] sm:$0xff]  ;;  %v11002_v38 = vld [vmem:[%s22784_s3 + $0x938] sm:$0xff] }
 0x6fd   :  { %14041 = vmatprep.subr.mxu0 %v18430_v10  ;;  %14093 = vmatprep.subr.mxu1 %v18410_v2 }
 0x6fe   :  { %13958 = vmatprep.mubr.f32.mxu0 %v10957_v27  ;;  %14011 = vmatprep.mubr.f32.mxu1 %v10987_v58 }
 0x6ff   :  { %14042 = vmatpush3.msra.mxu0 %v18430_v10  ;;  %14094 = vmatpush3.msra.mxu1 %v18410_v2  ;;  %v4383_v45 = vpop.permute.xlu1 %4382  ;;  %v11004_v2 = vld [vmem:[%s22784_s3 + $0x948] sm:$0xff]  ;;  %v11021_v10 = vld [vmem:[%s22784_s3 + $0x9d0] sm:$0xff] }
 0x700   :  { %13959 = vmatmul.mubr.f32.gmra.mxu0 %v10958_v32  ;;  %14012 = vmatmul.mubr.f32.gmra.mxu1 %v10988_v49  ;;  %v4385_v34 = vpop.permute.xlu0 %4384 }
 0x701   :  { %14043 = vmatprep.subr.mxu0 %v4183_v43  ;;  %14095 = vmatprep.subr.mxu1 %v4397_v3 }
 0x702   :  { %14044 = vmatpush3.msra.mxu0 %v4183_v43  ;;  %14096 = vmatpush3.msra.mxu1 %v4397_v3  ;;  %v11010_v3 = vld [vmem:[%s22784_s3 + $0x978] sm:$0xff]  ;;  %v11024_v43 = vld [vmem:[%s22784_s3 + $0x9e8] sm:$0xff] }
 0x703   :  { %14045 = vmatprep.subr.mxu0 %v4181_v24  ;;  %14097 = vmatprep.subr.mxu1 %v4395_v12 }
 0x704   :  { %13961 = vmatprep.mubr.f32.mxu0 %v10959_v48  ;;  %14014 = vmatprep.mubr.f32.mxu1 %v10989_v22 }
 0x705   :  { %14046 = vmatpush3.msra.mxu0 %v4181_v24  ;;  %14098 = vmatpush3.msra.mxu1 %v4395_v12 }
 0x706   :  { %13962 = vmatmul.mubr.f32.gmra.mxu0 %v10960_v57  ;;  %14015 = vmatmul.mubr.f32.gmra.mxu1 %v10990_v61 }
 0x707   :  { %14047 = vmatprep.subr.mxu0 %v4179_v31  ;;  %14099 = vmatprep.subr.mxu1 %v4393_v62 }
 0x708   :  { %14048 = vmatpush3.msra.mxu0 %v4179_v31  ;;  %14100 = vmatpush3.msra.mxu1 %v4393_v62 }
 0x709   :  { %14049 = vmatprep.subr.mxu0 %v4177_v6  ;;  %14101 = vmatprep.subr.mxu1 %v4391_v0 }
 0x70a   :  { %13964 = vmatprep.mubr.f32.mxu0 %v10961_v55  ;;  %14017 = vmatprep.mubr.f32.mxu1 %v10991_v21 }
 0x70b   :  { %14050 = vmatpush3.msra.mxu0 %v4177_v6  ;;  %14102 = vmatpush3.msra.mxu1 %v4391_v0 }
 0x70c   :  { %13965 = vmatmul.mubr.f32.gmra.mxu0 %v10962_v18  ;;  %14018 = vmatmul.mubr.f32.gmra.mxu1 %v10992_v36  ;;  %v18664_v18 = vpop.permute.xlu0 %4686 }
 0x70d   :  { %14051 = vmatprep.subr.mxu0 %v4175_v42  ;;  %14103 = vmatprep.subr.mxu1 %v4389_v14  ;;  %22881 = vst [vmem:[#allocation13_spill] sm:$0xff] %v18664_v18 }
 0x70e   :  { %14052 = vmatpush3.msra.mxu0 %v4175_v42  ;;  %14104 = vmatpush3.msra.mxu1 %v4389_v14 }
 0x70f   :  { %14053 = vmatprep.subr.mxu0 %v4173_v56  ;;  %14105 = vmatprep.subr.mxu1 %v4387_v40 }
 0x710   :  { %14020 = vmatprep.mubr.f32.mxu1 %v10993_v1  ;;  %14054 = vmatpush3.msra.mxu0 %v4173_v56  ;;  %v18666_v56 = vpop.permute.xlu1 %4681 }
 0x711   :  { %14055 = vmatprep.mubr.f32.mxu0 %v10995_v7  ;;  %14106 = vmatpush3.msra.mxu1 %v4387_v40  ;;  %22882 = vst [vmem:[#allocation14_spill] sm:$0xff] %v18666_v56 }
 0x712   :  { %14021 = vmatmul.mubr.f32.gmra.mxu1 %v10994_v28  ;;  %14056 = vmatmul.mubr.f32.vlgmr.msra.gmra.mxu0 %v10996_v23  ;;  %v18670_v28 = vpop.permute.xlu0 %4676 }
 0x713   :  { %14107 = vmatprep.subr.mxu1 %v4385_v34  ;;  %14058 = vmatprep.mubr.f32.mxu0 %v10997_v35  ;;  %22883 = vst [vmem:[#allocation16_spill] sm:$0xff] %v18670_v28 }
 0x714   :  { %14108 = vmatpush3.msra.mxu1 %v4385_v34  ;;  %14111 = vmatprep.mubr.f32.mxu1 %v11011_v26  ;;  %v18676_v26 = vpop.permute.xlu1 %4671 }
 0x715   :  { %14109 = vmatprep.subr.mxu1 %v4383_v45  ;;  %22884 = vst [vmem:[#allocation10_spill] sm:$0xff] %v18676_v26 }
 0x716   :  { %14110 = vmatpush3.msra.mxu1 %v4383_v45  ;;  %14059 = vmatmul.mubr.f32.gmra.mxu0 %v10998_v50  ;;  %v18682_v50 = vpop.permute.xlu0 %4666 }
 0x717   :  { %14112 = vmatmul.mubr.f32.vlgmr.msra.gmra.mxu1 %v11012_v33  ;;  %14061 = vmatprep.mubr.f32.mxu0 %v10999_v5  ;;  %22885 = vst [vmem:[#allocation8_spill] sm:$0xff] %v18682_v50 }
 0x718   :  { %14114 = vmatprep.mubr.f32.mxu1 %v11013_v4  ;;  %v18688_v4 = vpop.permute.xlu1 %4661 }
 0x719   :  { %22886 = vst [vmem:[#allocation2_spill] sm:$0xff] %v18688_v4 }
 0x71a   :  { %14062 = vmatmul.mubr.f32.gmra.mxu0 %v11000_v46 }
 0x71b   :  { %14115 = vmatmul.mubr.f32.gmra.mxu1 %v11014_v8  ;;  %14064 = vmatprep.mubr.f32.mxu0 %v11001_v17  ;;  %v18694_v17 = vpop.permute.xlu0 %4656 }
 0x71c   :  { %14117 = vmatprep.mubr.f32.mxu1 %v11015_v53  ;;  %22887 = vst [vmem:[#allocation5_spill] sm:$0xff] %v18694_v17 }
 0x71e   :  { %14065 = vmatmul.mubr.f32.gmra.mxu0 %v11002_v38 }
 0x71f   :  { %14118 = vmatmul.mubr.f32.gmra.mxu1 %v11016_v60  ;;  %14067 = vmatprep.mubr.f32.mxu0 %v11003_v63  ;;  %v18700_v60 = vpop.permute.xlu1 %4651 }
 0x720   :  { %14120 = vmatprep.mubr.f32.mxu1 %v11017_v52  ;;  %22888 = vst [vmem:[#allocation7_spill] sm:$0xff] %v18700_v60 }
 0x722   :  { %14068 = vmatmul.mubr.f32.gmra.mxu0 %v11004_v2  ;;  %v18706_v2 = vpop.permute.xlu0 %4646 }
 0x723   :  { %14121 = vmatmul.mubr.f32.gmra.mxu1 %v11018_v47  ;;  %14070 = vmatprep.mubr.f32.mxu0 %v11005_v13 }
 0x724   :  { %14123 = vmatprep.mubr.f32.mxu1 %v11019_v37  ;;  %v18712_v37 = vpop.permute.xlu1 %4641 }
 0x726   :  { %14071 = vmatmul.mubr.f32.gmra.mxu0 %v11006_v25 }
 0x727   :  { %14124 = vmatmul.mubr.f32.gmra.mxu1 %v11020_v39  ;;  %14073 = vmatprep.mubr.f32.mxu0 %v11007_v29  ;;  %v18718_v29 = vpop.permute.xlu0 %4636 }
 0x728   :  { %14126 = vmatprep.mubr.f32.mxu1 %v11021_v10 }
 0x72a   :  { %14074 = vmatmul.mubr.f32.gmra.mxu0 %v11008_v51 }
 0x72b   :  { %14127 = vmatmul.mubr.f32.gmra.mxu1 %v11022_v20  ;;  %14076 = vmatprep.mubr.f32.mxu0 %v11009_v19  ;;  %v18724_v20 = vpop.permute.xlu1 %4631 }
 0x72c   :  { %14129 = vmatprep.mubr.f32.mxu1 %v11023_v44 }
 0x72e   :  { %14077 = vmatmul.mubr.f32.gmra.mxu0 %v11010_v3 }
 0x72f   :  { %14130 = vmatmul.mubr.f32.gmra.mxu1 %v11024_v43  ;;  %v4627_v43 = vpop.permute.xlu0 %4626  ;;  %v4622_v26 = vpop.permute.xlu1 %4621 }
 0x730   :  { %14132 = vmatprep.mubr.f32.mxu1 %v11025_v30 }
 0x733   :  { %14133 = vmatmul.mubr.f32.gmra.mxu1 %v11026_v9 }
 0x77f   :  { %v13889_v54 = vpop.f32.mrf.mxu1 }
 0x781   :  { %v3770_v16 = vpop.f32.mrf.mxu1 }
 0x784   :  { %v18636_v12 = vpop.f32.mrf.mxu1 }
 0x786   :  { %v18638_v24 = vpop.f32.mrf.mxu1 }
 0x789   :  { %v18640_v11 = vpop.f32.mrf.mxu1 }
 0x78b   :  { %v18642_v41 = vpop.f32.mrf.mxu1 }
 0x78e   :  { %v18644_v59 = vpop.f32.mrf.mxu1 }
 0x790   :  { %v18646_v15 = vpop.f32.mrf.mxu1 }
 0x793   :  { %v18648_v62 = vpop.f32.mrf.mxu1 }
 0x795   :  { %v18650_v31 = vpop.f32.mrf.mxu1 }
 0x798   :  { %v18652_v27 = vpop.f32.mrf.mxu1 }
 0x79a   :  { %v18654_v58 = vpop.f32.mrf.mxu1 }
 0x79d   :  { %v18656_v32 = vpop.f32.mrf.mxu1 }
 0x79f   :  { %v18658_v49 = vpop.f32.mrf.mxu1 }
 0x7a2   :  { %v18660_v0 = vpop.f32.mrf.mxu1  ;;  %v13945_v6 = vpop.f32.mrf.mxu0 }
 0x7a3   :  { %22879 = vst [vmem:[#allocation9_spill] sm:$0xff] %v18660_v0  ;;  %v3921_v19 = vadd.f32 %v13945_v6, %v13889_v54  ;;  %v4617_v0 = vpop.permute.xlu0 %4616 }
 0x7a4   :  { %v18662_v48 = vpop.f32.mrf.mxu1  ;;  %v3915_v22 = vpop.f32.mrf.mxu0 }
 0x7a5   :  { %22880 = vst [vmem:[#allocation15_spill] sm:$0xff] %v18662_v48  ;;  %v3916_v30 = vadd.f32 %v3915_v22, %v3770_v16 }
 0x7a8   :  { %v13948_v57 = vpop.f32.mrf.mxu0  ;;  %v14001_v61 = vpop.f32.mrf.mxu1 }
 0x7a9   :  { %v4157_v9 = vadd.f32 %v14001_v61, %v3921_v19  ;;  %v3931_v28 = vadd.f32 %v13948_v57, %v18636_v12  ;;  %v4612_v12 = vpop.permute.xlu1 %4611 }
 0x7aa   :  { %v3925_v14 = vpop.f32.mrf.mxu0  ;;  %v4077_v42 = vpop.f32.mrf.mxu1 }
 0x7ab   :  { %v4156_v48 = vadd.f32 %v4077_v42, %v3916_v30 }
 0x7ae   :  { %v13951_v55 = vpop.f32.mrf.mxu0  ;;  %v14004_v21 = vpop.f32.mrf.mxu1 }
 0x7af   :  { %v3941_v16 = vadd.f32 %v13951_v55, %v18640_v11 }
 0x7b0   :  { %v3935_v36 = vpop.f32.mrf.mxu0  ;;  %v4087_v40 = vpop.f32.mrf.mxu1 }
 0x7b1   :  { %v3936_v57 = vadd.f32 %v3935_v36, %v18642_v41 }
 0x7b4   :  { %v18668_v1 = vpop.f32.mrf.mxu0  ;;  %v14007_v7 = vpop.f32.mrf.mxu1 }
 0x7b5   :  { %v4161_v42 = vadd.f32 %v14007_v7, %v3941_v16  ;;  %v3951_v11 = vadd.f32 %v18668_v1, %v18644_v59 }
 0x7b6   :  { %v18672_v23 = vpop.f32.mrf.mxu0  ;;  %v18674_v35 = vpop.f32.mrf.mxu1 }
 0x7b7   :  { %v4160_v55 = vadd.f32 %v18674_v35, %v3936_v57  ;;  %v3946_v36 = vadd.f32 %v18672_v23, %v18646_v15 }
 0x7ba   :  { %v18678_v34 = vpop.f32.mrf.mxu0  ;;  %v18680_v45 = vpop.f32.mrf.mxu1 }
 0x7bc   :  { %v18684_v33 = vpop.f32.mrf.mxu0  ;;  %v18686_v5 = vpop.f32.mrf.mxu1 }
 0x7c0   :  { %v18690_v46 = vpop.f32.mrf.mxu0  ;;  %v18692_v8 = vpop.f32.mrf.mxu1 }
 0x7c2   :  { %v18696_v53 = vpop.f32.mrf.mxu0  ;;  %v18698_v38 = vpop.f32.mrf.mxu1 }
 0x7c6   :  { %v18702_v63 = vpop.f32.mrf.mxu0  ;;  %v18704_v52 = vpop.f32.mrf.mxu1 }
 0x7c8   :  { %v18708_v47 = vpop.f32.mrf.mxu0  ;;  %v18710_v13 = vpop.f32.mrf.mxu1 }
 0x7cc   :  { %v18714_v25 = vpop.f32.mrf.mxu0  ;;  %v18716_v39 = vpop.f32.mrf.mxu1 }
 0x7cd   :  { %22889 = vst [vmem:[#allocation3_spill] sm:$0xff] %v18714_v25  ;;  %v4159_v25 = vadd.f32 %v14004_v21, %v3931_v28 }
 0x7ce   :  { %v18720_v10 = vpop.f32.mrf.mxu0  ;;  %v18722_v51 = vpop.f32.mrf.mxu1 }
 0x7cf   :  { %22890 = vst [vmem:[#allocation4_spill] sm:$0xff] %v18720_v10  ;;  %22891 = vst [vmem:[#allocation12_spill] sm:$0xff] %v18722_v51  ;;  %v3926_v51 = vadd.f32 %v3925_v14, %v18638_v24 }
 0x7d1   :  { %v4158_v61 = vadd.f32 %v4087_v40, %v3926_v51 }
 0x7d2   :  { %v18726_v44 = vpop.f32.mrf.mxu1  ;;  %v14057_v3 = vpop.f32.mrf.mxu0 }
 0x7d3   :  { %22892 = vst [vmem:[#allocation11_spill] sm:$0xff] %v18726_v44  ;;  %v4367_v4 = vadd.f32 %v14057_v3, %v4157_v9 }
 0x7d4   :  { %v18728_v56 = vpop.f32.mrf.mxu1  ;;  %v4287_v18 = vpop.f32.mrf.mxu0 }
 0x7d5   :  { %22893 = vst [vmem:[#allocation6_spill] sm:$0xff] %v18728_v56  ;;  %v4366_v54 = vadd.f32 %v4287_v18, %v4156_v48 }
 0x7d6   :  { %v14060_v10 = vpop.f32.mrf.mxu0 }
 0x7d7   :  { %v14113_v50 = vpop.f32.mrf.mxu1  ;;  %v4369_v19 = vadd.f32 %v14060_v10, %v4159_v25  ;;  %v4162_v25 = vadd.f32 %v18686_v5, %v3946_v36  ;;  %v22897_v36 = vld [vmem:[#allocation3_spill] sm:$0xff] }
 0x7d8   :  { %v4577_v6 = vadd.f32 %v14113_v50, %v4367_v4  ;;  %v4297_v44 = vpop.f32.mrf.mxu0 }
 0x7d9   :  { %v4497_v22 = vpop.f32.mrf.mxu1  ;;  %v4368_v24 = vadd.f32 %v4297_v44, %v4158_v61 }
 0x7da   :  { %v4690_v56 = vadd.f32 %v4617_v0, %v4577_v6  ;;  %v4576_v60 = vadd.f32 %v4497_v22, %v4366_v54  ;;  %v14063_v17 = vpop.f32.mrf.mxu0  ;;  %v3971_v6 = vadd.f32 %v18690_v46, %v18652_v27 }
 0x7db   :  { %v14116_v3 = vpop.f32.mrf.mxu1  ;;  %v4371_v0 = vadd.f32 %v14063_v17, %v4161_v42  ;;  %v3961_v17 = vadd.f32 %v18678_v34, %v18648_v62 }
 0x7dc   :  { %v18734_v30 = vmax.f32 %v4690_v56, 0.0  ;;  %v4689_v48 = vadd.f32 %v4612_v12, %v4576_v60  ;;  %v4579_v14 = vadd.f32 %v14116_v3, %v4369_v19  ;;  %v4307_v21 = vpop.f32.mrf.mxu0  ;;  %v4163_v56 = vadd.f32 %v18680_v45, %v3951_v11 }
 0x7dd   :  { %v4507_v18 = vpop.f32.mrf.mxu1  ;;  %v4370_v7 = vadd.f32 %v4307_v21, %v4160_v55  ;;  %v3956_v45 = vadd.f32 %v18684_v33, %v18650_v31  ;;  %v4167_v61 = vadd.f32 %v18704_v52, %v3971_v6  ;;  %v3981_v3 = vadd.f32 %v18702_v63, %v18656_v32  ;;  %v22894_v21 = vld [vmem:[#allocation5_spill] sm:$0xff] }
 0x7de   :  { %v4578_v40 = vadd.f32 %v4507_v18, %v4368_v24  ;;  %4772 = vrot.lane.b32.xlu0 %v18734_v30, %s15669_s1  ;;  %v14066_v41 = vpop.f32.mrf.mxu0  ;;  %v18744_v50 = vmax.f32 %v4689_v48, 0.0  ;;  %v4692_v4 = vadd.f32 %v4627_v43, %v4579_v14 }
 0x7df   :  { %v14119_v28 = vpop.f32.mrf.mxu1  ;;  %v4373_v51 = vadd.f32 %v14066_v41, %v4163_v56  ;;  %v4164_v31 = vadd.f32 %v18698_v38, %v3956_v45  ;;  %v4169_v14 = vadd.f32 %v18716_v39, %v3981_v3  ;;  %v22896_v41 = vld [vmem:[#allocation9_spill] sm:$0xff] }
 0x7e0   :  { %v4691_v59 = vadd.f32 %v4622_v26, %v4578_v40  ;;  %v4581_v1 = vadd.f32 %v14119_v28, %v4371_v0  ;;  %v4317_v35 = vpop.f32.mrf.mxu0  ;;  %v4165_v26 = vadd.f32 %v18692_v8, %v3961_v17  ;;  %v18757_v62 = vmax.f32 %v4692_v4, 0.0 }
 0x7e1   :  { %v4517_v60 = vpop.f32.mrf.mxu1  ;;  %v4372_v34 = vadd.f32 %v4317_v35, %v4162_v25  ;;  %v3991_v56 = vadd.f32 %v22897_v36, %v22896_v41  ;;  %v22900_v25 = vld [vmem:[#allocation8_spill] sm:$0xff] }
 0x7e2   :  { %v18749_v10 = vmax.f32 %v4691_v59, 0.0  ;;  %v4580_v15 = vadd.f32 %v4517_v60, %v4370_v7  ;;  %4770 = vrot.lane.b32.xlu0 %v18744_v50, %s15669_s1  ;;  %v14069_v23 = vpop.f32.mrf.mxu0  ;;  %v4694_v44 = vadd.f32 %v18718_v29, %v4581_v1  ;;  %v22899_v59 = vld [vmem:[#allocation11_spill] sm:$0xff] }
 0x7e3   :  { %v14122_v43 = vpop.f32.mrf.mxu1  ;;  %v4375_v8 = vadd.f32 %v14069_v23, %v4165_v26  ;;  %v4171_v1 = vadd.f32 %v22899_v59, %v3991_v56  ;;  %v22901_v23 = vld [vmem:[#allocation2_spill] sm:$0xff]  ;;  %v11136_v56 = vld [vmem:[%s22785_s4 + $0x268] sm:$0xff] }
 0x7e4   :  { %v4693_v5 = vadd.f32 %v18724_v20, %v4580_v15  ;;  %v4583_v9 = vadd.f32 %v14122_v43, %v4373_v51  ;;  %4774 = vrot.lane.b32.xlu1 %v18749_v10, %s15669_s1  ;;  %v4327_v54 = vpop.f32.mrf.mxu0  ;;  %v3966_v20 = vadd.f32 %v18696_v53, %v18654_v58  ;;  %v18772_v19 = vmax.f32 %v4694_v44, 0.0  ;;  %v11135_v59 = vld [vmem:[%s22785_s4 + $0x260] sm:$0xff] }
 0x7e5   :  { %v4527_v16 = vpop.f32.mrf.mxu1  ;;  %v4374_v46 = vadd.f32 %v4327_v54, %v4164_v31  ;;  %v22903_v54 = vld [vmem:[#allocation4_spill] sm:$0xff] }
 0x7e6   :  { %v18765_v33 = vmax.f32 %v4693_v5, 0.0  ;;  %v4582_v29 = vadd.f32 %v4527_v16, %v4372_v34  ;;  %4776 = vrot.lane.b32.xlu0 %v18757_v62, %s15669_s1  ;;  %v14072_v22 = vpop.f32.mrf.mxu0  ;;  %v4696_v27 = vadd.f32 %v18706_v2, %v4583_v9  ;;  %v4166_v58 = vadd.f32 %v18710_v13, %v3966_v20  ;;  %v22895_v13 = vld [vmem:[#allocation7_spill] sm:$0xff] }
 0x7e7   :  { %v14125_v12 = vpop.f32.mrf.mxu1  ;;  %v4377_v52 = vadd.f32 %v14072_v22, %v4167_v61  ;;  %v22902_v9 = vld [vmem:[#allocation15_spill] sm:$0xff]  ;;  %v22905_v22 = vld [vmem:[#allocation10_spill] sm:$0xff] }
 0x7e8   :  { %v4695_v38 = vadd.f32 %v18712_v37, %v4582_v29  ;;  %v4585_v57 = vadd.f32 %v14125_v12, %v4375_v8  ;;  %4778 = vrot.lane.b32.xlu1 %v18765_v33, %s15669_s1  ;;  %v4337_v42 = vpop.f32.mrf.mxu0  ;;  %v3976_v37 = vadd.f32 %v18708_v47, %v18658_v49  ;;  %v18789_v32 = vmax.f32 %v4696_v27, 0.0  ;;  %v22898_v49 = vld [vmem:[#allocation12_spill] sm:$0xff]  ;;  %v22906_v27 = vld [vmem:[#allocation6_spill] sm:$0xff] }
 0x7e9   :  { %v4537_v24 = vpop.f32.mrf.mxu1  ;;  %v4376_v63 = vadd.f32 %v4337_v42, %v4166_v58  ;;  %v3986_v6 = vadd.f32 %v22903_v54, %v22902_v9  ;;  %v22904_v8 = vld [vmem:[#allocation16_spill] sm:$0xff]  ;;  %v11126_v54 = vld [vmem:[%s22785_s4 + $0x218] sm:$0xff] }
 0x7ea   :  { %v18781_v53 = vmax.f32 %v4695_v38, 0.0  ;;  %v4584_v48 = vadd.f32 %v4537_v24, %v4374_v46  ;;  %4780 = vrot.lane.b32.xlu0 %v18772_v19, %s15669_s1  ;;  %v14075_v2 = vpop.f32.mrf.mxu0  ;;  %v4698_v11 = vadd.f32 %v22894_v21, %v4585_v57  ;;  %v4168_v47 = vadd.f32 %v22898_v49, %v3976_v37  ;;  %v22907_v24 = vld [vmem:[#allocation13_spill] sm:$0xff]  ;;  %v11059_v21 = vld [vmem:[%s22784_s3 + $0xa80] sm:$0xff]  ;;  %v11137_v49 = vld [vmem:[%s22785_s4 + $0x270] sm:$0xff] }
 0x7eb   :  { %v14128_v55 = vpop.f32.mrf.mxu1  ;;  %v4379_v28 = vadd.f32 %v14075_v2, %v4169_v14  ;;  %v4170_v46 = vadd.f32 %v22906_v27, %v3986_v6  ;;  %v22908_v2 = vld [vmem:[#allocation14_spill] sm:$0xff]  ;;  %14167 = vmatprep.mubr.f32.mxu0 %v11059_v21 }
 0x7ec   :  { %v4697_v18 = vadd.f32 %v22895_v13, %v4584_v48  ;;  %v4587_v0 = vadd.f32 %v14128_v55, %v4377_v52  ;;  %4782 = vrot.lane.b32.xlu1 %v18781_v53, %s15669_s1  ;;  %v4347_v40 = vpop.f32.mrf.mxu0  ;;  %v18802_v35 = vmax.f32 %v4698_v11, 0.0  ;;  %v11043_v11 = vld [vmem:[%s22784_s3 + $0xa00] sm:$0xff] }
 0x7ed   :  { %v4547_v7 = vpop.f32.mrf.mxu1  ;;  %v4378_v15 = vadd.f32 %v4347_v40, %v4168_v47  ;;  %14223 = vmatprep.mubr.f32.mxu1 %v11043_v11  ;;  %v11138_v40 = vld [vmem:[%s22785_s4 + $0x278] sm:$0xff]  ;;  %v11123_v27 = vld [vmem:[%s22785_s4 + $0x200] sm:$0xff] }
 0x7ee   :  { %v18797_v39 = vmax.f32 %v4697_v18, 0.0  ;;  %v4586_v4 = vadd.f32 %v4547_v7, %v4376_v63  ;;  %4784 = vrot.lane.b32.xlu0 %v18789_v32, %s15669_s1  ;;  %v14078_v17 = vpop.f32.mrf.mxu0  ;;  %v4700_v51 = vadd.f32 %v22900_v25, %v4587_v0  ;;  %v11133_v25 = vld [vmem:[%s22785_s4 + $0x250] sm:$0xff] }
 0x7ef   :  { %v14131_v60 = vpop.f32.mrf.mxu1  ;;  %v4381_v34 = vadd.f32 %v14078_v17, %v4171_v1  ;;  %v11132_v17 = vld [vmem:[%s22785_s4 + $0x248] sm:$0xff] }
 0x7f0   :  { %v4699_v45 = vadd.f32 %v22901_v23, %v4586_v4  ;;  %v4589_v26 = vadd.f32 %v14131_v60, %v4379_v28  ;;  %4786 = vrot.lane.b32.xlu1 %v18797_v39, %s15669_s1  ;;  %v18814_v31 = vmax.f32 %v4700_v51, 0.0  ;;  %v4357_v12 = vpop.f32.mrf.mxu0  ;;  %v11134_v28 = vld [vmem:[%s22785_s4 + $0x258] sm:$0xff] }
 0x7f1   :  { %v4557_v44 = vpop.f32.mrf.mxu1  ;;  %v4380_v3 = vadd.f32 %v4357_v12, %v4170_v46 }
 0x7f2   :  { %v18808_v43 = vmax.f32 %v4699_v45, 0.0  ;;  %v4588_v5 = vadd.f32 %v4557_v44, %v4378_v15  ;;  %4788 = vrot.lane.b32.xlu0 %v18802_v35, %s15669_s1  ;;  %v4702_v29 = vadd.f32 %v22904_v8, %v4589_v26  ;;  %v11130_v15 = vld [vmem:[%s22785_s4 + $0x238] sm:$0xff]  ;;  %v11131_v45 = vld [vmem:[%s22785_s4 + $0x240] sm:$0xff]  ;;  %v11128_v44 = vld [vmem:[%s22785_s4 + $0x228] sm:$0xff] }
 0x7f3   :  { %v14134_v16 = vpop.f32.mrf.mxu1 }
 0x7f4   :  { %v4701_v20 = vadd.f32 %v22905_v22, %v4588_v5  ;;  %v4591_v61 = vadd.f32 %v14134_v16, %v4381_v34  ;;  %4790 = vrot.lane.b32.xlu1 %v18808_v43, %s15669_s1  ;;  %v18825_v42 = vmax.f32 %v4702_v29, 0.0  ;;  %v11129_v5 = vld [vmem:[%s22785_s4 + $0x230] sm:$0xff]  ;;  %v11127_v16 = vld [vmem:[%s22785_s4 + $0x220] sm:$0xff]  ;;  %v11124_v29 = vld [vmem:[%s22785_s4 + $0x208] sm:$0xff] }
 0x7f5   :  { %v4567_v57 = vpop.f32.mrf.mxu1 }
 0x7f6   :  { %v18821_v38 = vmax.f32 %v4701_v20, 0.0  ;;  %4792 = vrot.lane.b32.xlu0 %v18814_v31, %s15669_s1  ;;  %v4704_v58 = vadd.f32 %v22907_v24, %v4591_v61  ;;  %v4590_v52 = vadd.f32 %v4567_v57, %v4380_v3  ;;  %v11125_v20 = vld [vmem:[%s22785_s4 + $0x210] sm:$0xff] }
 0x7f8   :  { %4794 = vrot.lane.b32.xlu1 %v18821_v38, %s15669_s1  ;;  %v18832_v48 = vmax.f32 %v4704_v58, 0.0  ;;  %v4703_v37 = vadd.f32 %v22908_v2, %v4590_v52 }
 0x7fa   :  { %4796 = vrot.lane.b32.xlu0 %v18825_v42, %s15669_s1  ;;  %v18841_v14 = vmax.f32 %v4703_v37, 0.0 }
 0x7fc   :  { %4745 = vrot.lane.b32.xlu1 %v18821_v38, %s15670_s12 }
 0x7fe   :  { %4800 = vrot.lane.b32.xlu0 %v18832_v48, %s15669_s1 }
 0x800   :  { %4751 = vrot.lane.b32.xlu1 %v18832_v48, %s15670_s12 }
 0x802   :  { %4747 = vrot.lane.b32.xlu0 %v18825_v42, %s15670_s12 }
 0x804   :  { %4798 = vrot.lane.b32.xlu1 %v18841_v14, %s15669_s1 }
 0x806   :  { %4743 = vrot.lane.b32.xlu0 %v18814_v31, %s15670_s12 }
 0x808   :  { %4741 = vrot.lane.b32.xlu1 %v18808_v43, %s15670_s12 }
 0x80a   :  { %4739 = vrot.lane.b32.xlu0 %v18802_v35, %s15670_s12 }
 0x80c   :  { %4737 = vrot.lane.b32.xlu1 %v18797_v39, %s15670_s12 }
 0x80e   :  { %4735 = vrot.lane.b32.xlu0 %v18789_v32, %s15670_s12 }
 0x810   :  { %4733 = vrot.lane.b32.xlu1 %v18781_v53, %s15670_s12 }
 0x812   :  { %4731 = vrot.lane.b32.xlu0 %v18772_v19, %s15670_s12 }
 0x814   :  { %4729 = vrot.lane.b32.xlu1 %v18765_v33, %s15670_s12 }
 0x816   :  { %4727 = vrot.lane.b32.xlu0 %v18757_v62, %s15670_s12 }
 0x818   :  { %4725 = vrot.lane.b32.xlu1 %v18749_v10, %s15670_s12 }
 0x81a   :  { %4723 = vrot.lane.b32.xlu0 %v18734_v30, %s15670_s12 }
 0x81c   :  { %4721 = vrot.lane.b32.xlu1 %v18744_v50, %s15670_s12 }
 0x81e   :  { %5317 = vrot.lane.b32.xlu0 %v18832_v48, %s15671_s15 }
 0x820   :  { %4749 = vrot.lane.b32.xlu1 %v18841_v14, %s15670_s12 }
 0x822   :  { %5527 = vrot.lane.b32.xlu0 %v18832_v48, %s15672_s16 }
 0x824   :  { %5313 = vrot.lane.b32.xlu1 %v18825_v42, %s15671_s15 }
 0x826   :  { %5523 = vrot.lane.b32.xlu0 %v18825_v42, %s15672_s16 }
 0x828   :  { %5311 = vrot.lane.b32.xlu1 %v18821_v38, %s15671_s15 }
 0x82a   :  { %5521 = vrot.lane.b32.xlu0 %v18821_v38, %s15672_s16 }
 0x82c   :  { %5309 = vrot.lane.b32.xlu1 %v18814_v31, %s15671_s15 }
 0x82e   :  { %5519 = vrot.lane.b32.xlu0 %v18814_v31, %s15672_s16 }
 0x830   :  { %5307 = vrot.lane.b32.xlu1 %v18808_v43, %s15671_s15 }
 0x832   :  { %5517 = vrot.lane.b32.xlu0 %v18808_v43, %s15672_s16 }
 0x834   :  { %5305 = vrot.lane.b32.xlu1 %v18802_v35, %s15671_s15 }
 0x836   :  { %5515 = vrot.lane.b32.xlu0 %v18802_v35, %s15672_s16 }
 0x838   :  { %5303 = vrot.lane.b32.xlu1 %v18797_v39, %s15671_s15 }
 0x83a   :  { %5513 = vrot.lane.b32.xlu0 %v18797_v39, %s15672_s16 }
 0x83c   :  { %5301 = vrot.lane.b32.xlu1 %v18789_v32, %s15671_s15 }
 0x83e   :  { %5525 = vrot.lane.b32.xlu0 %v18841_v14, %s15672_s16 }
 0x840   :  { %5315 = vrot.lane.b32.xlu1 %v18841_v14, %s15671_s15 }
 0x842   :  { %5511 = vrot.lane.b32.xlu0 %v18789_v32, %s15672_s16 }
 0x844   :  { %5299 = vrot.lane.b32.xlu1 %v18781_v53, %s15671_s15 }
 0x846   :  { %5509 = vrot.lane.b32.xlu0 %v18781_v53, %s15672_s16 }
 0x848   :  { %5297 = vrot.lane.b32.xlu1 %v18772_v19, %s15671_s15 }
 0x84a   :  { %5507 = vrot.lane.b32.xlu0 %v18772_v19, %s15672_s16 }
 0x84c   :  { %5295 = vrot.lane.b32.xlu1 %v18765_v33, %s15671_s15 }
 0x84e   :  { %5505 = vrot.lane.b32.xlu0 %v18765_v33, %s15672_s16 }
 0x850   :  { %5293 = vrot.lane.b32.xlu1 %v18757_v62, %s15671_s15  ;;  %v18929_v55 = vpop.permute.xlu0 %4772 }
 0x852   :  { %5503 = vrot.lane.b32.xlu0 %v18757_v62, %s15672_s16 }
 0x854   :  { %5291 = vrot.lane.b32.xlu1 %v18749_v10, %s15671_s15  ;;  %v18935_v63 = vpop.permute.xlu0 %4770 }
 0x856   :  { %v18937_v13 = vpop.permute.xlu1 %4774  ;;  %5501 = vrot.lane.b32.xlu0 %v18749_v10, %s15672_s16 }
 0x858   :  { %5289 = vrot.lane.b32.xlu1 %v18734_v30, %s15671_s15  ;;  %v18943_v18 = vpop.permute.xlu0 %4776 }
 0x85a   :  { %v18945_v0 = vpop.permute.xlu1 %4778  ;;  %5499 = vrot.lane.b32.xlu0 %v18734_v30, %s15672_s16 }
 0x85c   :  { %5287 = vrot.lane.b32.xlu1 %v18744_v50, %s15671_s15  ;;  %v18954_v41 = vpop.permute.xlu0 %4780 }
 0x85e   :  { %v18956_v36 = vpop.permute.xlu1 %4782  ;;  %5801 = vperm.xlu0 %15666, %v11138_v40  }
 0x860   :  { %5497 = vrot.lane.b32.xlu1 %v18744_v50, %s15672_s16  ;;  %v18963_v7 = vpop.permute.xlu0 %4784 }
 0x862   :  { %v4787_v47 = vpop.permute.xlu1 %4786  ;;  %5791 = vperm.xlu0 %15666, %v11136_v56  }
 0x864   :  { %5796 = vperm.xlu1 %15667, %v11137_v49   ;;  %v4789_v4 = vpop.permute.xlu0 %4788 }
 0x866   :  { %v4791_v1 = vpop.permute.xlu1 %4790  ;;  %5781 = vperm.xlu0 %15666, %v11134_v28  }
 0x868   :  { %5786 = vperm.xlu1 %15667, %v11135_v59   ;;  %v4793_v60 = vpop.permute.xlu0 %4792 }
 0x86a   :  { %v4795_v51 = vpop.permute.xlu1 %4794  ;;  %5771 = vperm.xlu0 %15666, %v11132_v17  }
 0x86c   :  { %5776 = vperm.xlu1 %15667, %v11133_v25   ;;  %v4797_v23 = vpop.permute.xlu0 %4796 }
 0x86e   :  { %v18986_v26 = vpop.permute.xlu1 %4745  ;;  %5761 = vperm.xlu0 %15666, %v11130_v15   ;;  %v11046_v15 = vld [vmem:[%s22784_s3 + $0xa18] sm:$0xff] }
 0x870   :  { %5766 = vperm.xlu1 %15667, %v11131_v45   ;;  %v4801_v34 = vpop.permute.xlu0 %4800 }
 0x871   :  { %14135 = vmatprep.subr.mxu0 %v4801_v34 }
 0x872   :  { %v4752_v9 = vpop.permute.xlu1 %4751  ;;  %5751 = vperm.xlu0 %15666, %v11128_v44   ;;  %14136 = vmatpush3.msra.mxu0 %v4801_v34  ;;  %v11077_v44 = vld [vmem:[%s22784_s3 + $0xb10] sm:$0xff]  ;;  %v11078_v34 = vld [vmem:[%s22784_s3 + $0xb18] sm:$0xff] }
 0x873   :  { %14191 = vmatprep.subr.mxu1 %v4752_v9 }
 0x874   :  { %14192 = vmatpush3.msra.mxu1 %v4752_v9  ;;  %5756 = vperm.xlu1 %15667, %v11129_v5   ;;  %v18997_v6 = vpop.permute.xlu0 %4747 }
 0x876   :  { %v4799_v8 = vpop.permute.xlu1 %4798  ;;  %5741 = vperm.xlu0 %15666, %v11126_v54   ;;  %v11049_v54 = vld [vmem:[%s22784_s3 + $0xa30] sm:$0xff] }
 0x877   :  { %14137 = vmatprep.subr.mxu0 %v4799_v8 }
 0x878   :  { %5746 = vperm.xlu1 %15667, %v11127_v16   ;;  %14138 = vmatpush3.msra.mxu0 %v4799_v8  ;;  %v19005_v22 = vpop.permute.xlu0 %4743  ;;  %v11050_v16 = vld [vmem:[%s22784_s3 + $0xa38] sm:$0xff]  ;;  %v11080_v8 = vld [vmem:[%s22784_s3 + $0xb28] sm:$0xff] }
 0x879   :  { %14139 = vmatprep.subr.mxu0 %v4797_v23 }
 0x87a   :  { %v19010_v61 = vpop.permute.xlu1 %4741  ;;  %5731 = vperm.xlu0 %15666, %v11124_v29   ;;  %14140 = vmatpush3.msra.mxu0 %v4797_v23  ;;  %v11076_v23 = vld [vmem:[%s22784_s3 + $0xb08] sm:$0xff] }
 0x87b   :  { %14141 = vmatprep.subr.mxu0 %v4795_v51 }
 0x87c   :  { %5736 = vperm.xlu1 %15667, %v11125_v20   ;;  %14142 = vmatpush3.msra.mxu0 %v4795_v51  ;;  %v19012_v12 = vpop.permute.xlu0 %4739  ;;  %v11045_v51 = vld [vmem:[%s22784_s3 + $0xa10] sm:$0xff]  ;;  %v11051_v20 = vld [vmem:[%s22784_s3 + $0xa40] sm:$0xff] }
 0x87d   :  { %14143 = vmatprep.subr.mxu0 %v4793_v60 }
 0x87e   :  { %v19017_v46 = vpop.permute.xlu1 %4737  ;;  %14144 = vmatpush3.msra.mxu0 %v4793_v60  ;;  %v11044_v60 = vld [vmem:[%s22784_s3 + $0xa08] sm:$0xff] }
 0x87f   :  { %14145 = vmatprep.subr.mxu0 %v4791_v1 }
 0x880   :  { %5726 = vperm.xlu1 %15667, %v11123_v27   ;;  %14146 = vmatpush3.msra.mxu0 %v4791_v1  ;;  %v19019_v57 = vpop.permute.xlu0 %4735  ;;  %v11072_v1 = vld [vmem:[%s22784_s3 + $0xae8] sm:$0xff]  ;;  %v11082_v27 = vld [vmem:[%s22784_s3 + $0xb38] sm:$0xff] }
 0x881   :  { %14147 = vmatprep.subr.mxu0 %v4789_v4 }
 0x882   :  { %v19021_v3 = vpop.permute.xlu1 %4733  ;;  %14148 = vmatpush3.msra.mxu0 %v4789_v4  ;;  %v11070_v4 = vld [vmem:[%s22784_s3 + $0xad8] sm:$0xff] }
 0x883   :  { %14149 = vmatprep.subr.mxu0 %v4787_v47 }
 0x884   :  { %14150 = vmatpush3.msra.mxu0 %v4787_v47  ;;  %v19023_v24 = vpop.permute.xlu0 %4731 }
 0x885   :  { %14151 = vmatprep.subr.mxu0 %v18963_v7 }
 0x886   :  { %v19026_v58 = vpop.permute.xlu1 %4729  ;;  %14152 = vmatpush3.msra.mxu0 %v18963_v7 }
 0x887   :  { %14153 = vmatprep.subr.mxu0 %v18956_v36 }
 0x888   :  { %14154 = vmatpush3.msra.mxu0 %v18956_v36  ;;  %v19031_v52 = vpop.permute.xlu0 %4727 }
 0x889   :  { %14155 = vmatprep.subr.mxu0 %v18954_v41 }
 0x88a   :  { %v19034_v2 = vpop.permute.xlu1 %4725  ;;  %14156 = vmatpush3.msra.mxu0 %v18954_v41 }
 0x88b   :  { %14157 = vmatprep.subr.mxu0 %v18945_v0 }
 0x88c   :  { %14158 = vmatpush3.msra.mxu0 %v18945_v0  ;;  %v19039_v37 = vpop.permute.xlu0 %4723  ;;  %v11060_v0 = vld [vmem:[%s22784_s3 + $0xa88] sm:$0xff] }
 0x88d   :  { %14159 = vmatprep.subr.mxu0 %v18943_v18 }
 0x88e   :  { %v19042_v21 = vpop.permute.xlu1 %4721  ;;  %14160 = vmatpush3.msra.mxu0 %v18943_v18 }
 0x88f   :  { %14161 = vmatprep.subr.mxu0 %v18937_v13 }
 0x890   :  { %14162 = vmatpush3.msra.mxu0 %v18937_v13  ;;  %v19047_v11 = vpop.permute.xlu0 %5317  ;;  %v11061_v13 = vld [vmem:[%s22784_s3 + $0xa90] sm:$0xff] }
 0x891   :  { %14163 = vmatprep.subr.mxu0 %v18929_v55 }
 0x892   :  { %v4750_v40 = vpop.permute.xlu1 %4749  ;;  %14164 = vmatpush3.msra.mxu0 %v18929_v55 }
 0x893   :  { %14165 = vmatprep.subr.mxu0 %v18935_v63  ;;  %14193 = vmatprep.subr.mxu1 %v4750_v40 }
 0x894   :  { %14166 = vmatpush3.msra.mxu0 %v18935_v63  ;;  %14194 = vmatpush3.msra.mxu1 %v4750_v40  ;;  %v19056_v18 = vpop.permute.xlu0 %5527  ;;  %v11062_v63 = vld [vmem:[%s22784_s3 + $0xa98] sm:$0xff]  ;;  %v11056_v40 = vld [vmem:[%s22784_s3 + $0xa68] sm:$0xff] }
 0x895   :  { %14168 = vmatmul.mubr.f32.vlgmr.msra.gmra.mxu0 %v11060_v0  ;;  %14195 = vmatprep.subr.mxu1 %v18997_v6  ;;  %v11086_v0 = vld [vmem:[%s22784_s3 + $0xb58] sm:$0xff] }
 0x896   :  { %14247 = vmatprep.subr.mxu0 %v18832_v48  ;;  %v19063_v55 = vpop.permute.xlu1 %5313  ;;  %14196 = vmatpush3.msra.mxu1 %v18997_v6  ;;  %v11079_v6 = vld [vmem:[%s22784_s3 + $0xb20] sm:$0xff] }
 0x897   :  { %14248 = vmatpush3.msra.mxu0 %v18832_v48  ;;  %14197 = vmatprep.subr.mxu1 %v18986_v26  ;;  %v11063_v48 = vld [vmem:[%s22784_s3 + $0xaa0] sm:$0xff] }
 0x898   :  { %14249 = vmatprep.subr.mxu0 %v18841_v14  ;;  %14170 = vmatprep.mubr.f32.mxu0 %v11061_v13  ;;  %v19074_v41 = vpop.permute.xlu0 %5523 }
 0x899   :  { %14198 = vmatpush3.msra.mxu1 %v18986_v26  ;;  %14250 = vmatpush3.msra.mxu0 %v18841_v14  ;;  %v11064_v14 = vld [vmem:[%s22784_s3 + $0xaa8] sm:$0xff]  ;;  %v11047_v26 = vld [vmem:[%s22784_s3 + $0xa20] sm:$0xff] }
 0x89a   :  { %14171 = vmatmul.mubr.f32.gmra.mxu0 %v11062_v63  ;;  %14199 = vmatprep.subr.mxu1 %v19005_v22  ;;  %v19077_v36 = vpop.permute.xlu1 %5311  ;;  %v11087_v63 = vld [vmem:[%s22784_s3 + $0xb60] sm:$0xff] }
 0x89b   :  { %14251 = vmatprep.subr.mxu0 %v18825_v42  ;;  %14200 = vmatpush3.msra.mxu1 %v19005_v22 }
 0x89c   :  { %14252 = vmatpush3.msra.mxu0 %v18825_v42  ;;  %14201 = vmatprep.subr.mxu1 %v19010_v61  ;;  %v11065_v42 = vld [vmem:[%s22784_s3 + $0xab0] sm:$0xff]  ;;  %v19098_v7 = vpop.permute.xlu0 %5521 }
 0x89d   :  { %14253 = vmatprep.subr.mxu0 %v18821_v38  ;;  %14173 = vmatprep.mubr.f32.mxu0 %v11063_v48 }
 0x89e   :  { %14202 = vmatpush3.msra.mxu1 %v19010_v61  ;;  %14254 = vmatpush3.msra.mxu0 %v18821_v38  ;;  %v19092_v56 = vpop.permute.xlu1 %5309  ;;  %v11066_v38 = vld [vmem:[%s22784_s3 + $0xab8] sm:$0xff]  ;;  %v11081_v61 = vld [vmem:[%s22784_s3 + $0xb30] sm:$0xff] }
 0x89f   :  { %14174 = vmatmul.mubr.f32.gmra.mxu0 %v11064_v14  ;;  %14203 = vmatprep.subr.mxu1 %v19012_v12 }
 0x8a0   :  { %14255 = vmatprep.subr.mxu0 %v18814_v31  ;;  %14204 = vmatpush3.msra.mxu1 %v19012_v12  ;;  %v19118_v47 = vpop.permute.xlu0 %5519  ;;  %v11052_v12 = vld [vmem:[%s22784_s3 + $0xa48] sm:$0xff] }
 0x8a1   :  { %14256 = vmatpush3.msra.mxu0 %v18814_v31  ;;  %14205 = vmatprep.subr.mxu1 %v19017_v46  ;;  %v11067_v31 = vld [vmem:[%s22784_s3 + $0xac0] sm:$0xff] }
 0x8a2   :  { %14257 = vmatprep.subr.mxu0 %v18808_v43  ;;  %14176 = vmatprep.mubr.f32.mxu0 %v11065_v42  ;;  %v19108_v49 = vpop.permute.xlu1 %5307  ;;  %v11091_v42 = vld [vmem:[%s22784_s3 + $0xb80] sm:$0xff] }
 0x8a3   :  { %14206 = vmatpush3.msra.mxu1 %v19017_v46  ;;  %14258 = vmatpush3.msra.mxu0 %v18808_v43  ;;  %v11068_v43 = vld [vmem:[%s22784_s3 + $0xac8] sm:$0xff] }
 0x8a4   :  { %14177 = vmatmul.mubr.f32.gmra.mxu0 %v11066_v38  ;;  %14207 = vmatprep.subr.mxu1 %v19019_v57  ;;  %v11092_v38 = vld [vmem:[%s22784_s3 + $0xb88] sm:$0xff] }
 0x8a5   :  { %14259 = vmatprep.subr.mxu0 %v18802_v35  ;;  %14208 = vmatpush3.msra.mxu1 %v19019_v57 }
 0x8a6   :  { %14260 = vmatpush3.msra.mxu0 %v18802_v35  ;;  %14209 = vmatprep.subr.mxu1 %v19021_v3  ;;  %v19125_v28 = vpop.permute.xlu1 %5305  ;;  %v11069_v35 = vld [vmem:[%s22784_s3 + $0xad0] sm:$0xff] }
 0x8a7   :  { %14261 = vmatprep.subr.mxu0 %v18797_v39  ;;  %14179 = vmatprep.mubr.f32.mxu0 %v11067_v31  ;;  %v11107_v31 = vld [vmem:[%s22784_s3 + $0xc00] sm:$0xff] }
 0x8a8   :  { %14210 = vmatpush3.msra.mxu1 %v19021_v3  ;;  %14262 = vmatpush3.msra.mxu0 %v18797_v39  ;;  %v19141_v39 = vpop.permute.xlu0 %5517  ;;  %v11053_v3 = vld [vmem:[%s22784_s3 + $0xa50] sm:$0xff] }
 0x8a9   :  { %14180 = vmatmul.mubr.f32.gmra.mxu0 %v11068_v43  ;;  %14211 = vmatprep.subr.mxu1 %v19023_v24 }
 0x8aa   :  { %14263 = vmatprep.subr.mxu0 %v18789_v32  ;;  %14212 = vmatpush3.msra.mxu1 %v19023_v24  ;;  %v19144_v59 = vpop.permute.xlu1 %5303  ;;  %v11083_v24 = vld [vmem:[%s22784_s3 + $0xb40] sm:$0xff] }
 0x8ab   :  { %14264 = vmatpush3.msra.mxu0 %v18789_v32  ;;  %14213 = vmatprep.subr.mxu1 %v19026_v58  ;;  %v11071_v32 = vld [vmem:[%s22784_s3 + $0xae0] sm:$0xff] }
 0x8ac   :  { %14265 = vmatprep.subr.mxu0 %v18781_v53  ;;  %14182 = vmatprep.mubr.f32.mxu0 %v11069_v35  ;;  %v11108_v35 = vld [vmem:[%s22784_s3 + $0xc08] sm:$0xff] }
 0x8ad   :  { %14214 = vmatpush3.msra.mxu1 %v19026_v58  ;;  %14266 = vmatpush3.msra.mxu0 %v18781_v53  ;;  %v19160_v53 = vpop.permute.xlu0 %5515  ;;  %v11054_v58 = vld [vmem:[%s22784_s3 + $0xa58] sm:$0xff] }
 0x8ae   :  { %14183 = vmatmul.mubr.f32.gmra.mxu0 %v11070_v4  ;;  %14215 = vmatprep.subr.mxu1 %v19031_v52  ;;  %v19164_v17 = vpop.permute.xlu1 %5301  ;;  %v11095_v4 = vld [vmem:[%s22784_s3 + $0xba0] sm:$0xff] }
 0x8af   :  { %14267 = vmatprep.subr.mxu0 %v18772_v19  ;;  %14216 = vmatpush3.msra.mxu1 %v19031_v52  ;;  %v11084_v52 = vld [vmem:[%s22784_s3 + $0xb48] sm:$0xff] }
 0x8b0   :  { %14268 = vmatpush3.msra.mxu0 %v18772_v19  ;;  %14217 = vmatprep.subr.mxu1 %v19034_v2  ;;  %v11073_v19 = vld [vmem:[%s22784_s3 + $0xaf0] sm:$0xff] }
 0x8b1   :  { %14269 = vmatprep.subr.mxu0 %v18765_v33  ;;  %14185 = vmatprep.mubr.f32.mxu0 %v11071_v32  ;;  %v19183_v25 = vpop.permute.xlu0 %5513  ;;  %v11110_v32 = vld [vmem:[%s22784_s3 + $0xc18] sm:$0xff] }
 0x8b2   :  { %14218 = vmatpush3.msra.mxu1 %v19034_v2  ;;  %14270 = vmatpush3.msra.mxu0 %v18765_v33  ;;  %v11074_v33 = vld [vmem:[%s22784_s3 + $0xaf8] sm:$0xff] }
 0x8b3   :  { %14186 = vmatmul.mubr.f32.gmra.mxu0 %v11072_v1  ;;  %14219 = vmatprep.subr.mxu1 %v19039_v37  ;;  %v11097_v1 = vld [vmem:[%s22784_s3 + $0xbb0] sm:$0xff] }
 0x8b4   :  { %14271 = vmatprep.subr.mxu0 %v18757_v62  ;;  %14220 = vmatpush3.msra.mxu1 %v19039_v37 }
 0x8b5   :  { %14272 = vmatpush3.msra.mxu0 %v18757_v62  ;;  %14221 = vmatprep.subr.mxu1 %v19042_v21  ;;  %v5316_v62 = vpop.permute.xlu1 %5315 }
 0x8b6   :  { %14273 = vmatprep.subr.mxu0 %v18749_v10  ;;  %14188 = vmatprep.mubr.f32.mxu0 %v11073_v19  ;;  %v11112_v19 = vld [vmem:[%s22784_s3 + $0xc28] sm:$0xff] }
 0x8b7   :  { %14222 = vmatpush3.msra.mxu1 %v19042_v21  ;;  %14274 = vmatpush3.msra.mxu0 %v18749_v10  ;;  %v11075_v10 = vld [vmem:[%s22784_s3 + $0xb00] sm:$0xff] }
 0x8b8   :  { %14189 = vmatmul.mubr.f32.gmra.mxu0 %v11074_v33  ;;  %14224 = vmatmul.mubr.f32.vlgmr.msra.gmra.mxu1 %v11044_v60  ;;  %v11055_v21 = vld [vmem:[%s22784_s3 + $0xa60] sm:$0xff]  ;;  %v11113_v60 = vld [vmem:[%s22784_s3 + $0xc30] sm:$0xff] }
 0x8b9   :  { %14275 = vmatprep.subr.mxu0 %v18734_v30  ;;  %14303 = vmatprep.subr.mxu1 %v19047_v11  ;;  %v19203_v45 = vpop.permute.xlu1 %5299  ;;  %v11099_v33 = vld [vmem:[%s22784_s3 + $0xbc0] sm:$0xff] }
 0x8ba   :  { %14276 = vmatpush3.msra.mxu0 %v18734_v30  ;;  %14304 = vmatpush3.msra.mxu1 %v19047_v11  ;;  %v5526_v30 = vpop.permute.xlu0 %5525  ;;  %v11085_v11 = vld [vmem:[%s22784_s3 + $0xb50] sm:$0xff] }
 0x8bb   :  { %14277 = vmatprep.subr.mxu0 %v18744_v50  ;;  %14305 = vmatprep.subr.mxu1 %v5316_v62 }
 0x8bc   :  { %14226 = vmatprep.mubr.f32.mxu1 %v11045_v51  ;;  %14278 = vmatpush3.msra.mxu0 %v18744_v50  ;;  %v11048_v50 = vld [vmem:[%s22784_s3 + $0xa28] sm:$0xff]  ;;  %v11101_v51 = vld [vmem:[%s22784_s3 + $0xbd0] sm:$0xff] }
 0x8bd   :  { %14279 = vmatprep.mubr.f32.mxu0 %v11075_v10  ;;  %14306 = vmatpush3.msra.mxu1 %v5316_v62  ;;  %v5298_v9 = vpop.permute.xlu1 %5297  ;;  %v11114_v62 = vld [vmem:[%s22784_s3 + $0xc38] sm:$0xff]  ;;  %v11115_v10 = vld [vmem:[%s22784_s3 + $0xc40] sm:$0xff] }
 0x8be   :  { %14227 = vmatmul.mubr.f32.gmra.mxu1 %v11046_v15  ;;  %14280 = vmatmul.mubr.f32.vlgmr.msra.gmra.mxu0 %v11076_v23  ;;  %v5512_v5 = vpop.permute.xlu0 %5511  ;;  %v11102_v15 = vld [vmem:[%s22784_s3 + $0xbd8] sm:$0xff]  ;;  %v11116_v23 = vld [vmem:[%s22784_s3 + $0xc48] sm:$0xff] }
 0x8bf   :  { %14307 = vmatprep.subr.mxu1 %v19063_v55  ;;  %14359 = vmatprep.subr.mxu0 %v19056_v18 }
 0x8c0   :  { %14308 = vmatpush3.msra.mxu1 %v19063_v55  ;;  %14360 = vmatpush3.msra.mxu0 %v19056_v18  ;;  %v11057_v55 = vld [vmem:[%s22784_s3 + $0xa70] sm:$0xff] }
 0x8c1   :  { %14309 = vmatprep.subr.mxu1 %v19077_v36  ;;  %14361 = vmatprep.subr.mxu0 %v5526_v30  ;;  %v5296_v22 = vpop.permute.xlu1 %5295 }
 0x8c2   :  { %14229 = vmatprep.mubr.f32.mxu1 %v11047_v26  ;;  %14282 = vmatprep.mubr.f32.mxu0 %v11077_v44  ;;  %v5510_v29 = vpop.permute.xlu0 %5509  ;;  %v11104_v26 = vld [vmem:[%s22784_s3 + $0xbe8] sm:$0xff]  ;;  %v11118_v44 = vld [vmem:[%s22784_s3 + $0xc58] sm:$0xff] }
 0x8c3   :  { %14310 = vmatpush3.msra.mxu1 %v19077_v36  ;;  %14362 = vmatpush3.msra.mxu0 %v5526_v30  ;;  %v11088_v36 = vld [vmem:[%s22784_s3 + $0xb68] sm:$0xff]  ;;  %v11103_v30 = vld [vmem:[%s22784_s3 + $0xbe0] sm:$0xff] }
 0x8c4   :  { %14230 = vmatmul.mubr.f32.gmra.mxu1 %v11048_v50  ;;  %14283 = vmatmul.mubr.f32.gmra.mxu0 %v11078_v34  ;;  %v11105_v50 = vld [vmem:[%s22784_s3 + $0xbf0] sm:$0xff]  ;;  %v11119_v34 = vld [vmem:[%s22784_s3 + $0xc60] sm:$0xff] }
 0x8c5   :  { %14311 = vmatprep.subr.mxu1 %v19092_v56  ;;  %14363 = vmatprep.subr.mxu0 %v19074_v41  ;;  %v5294_v57 = vpop.permute.xlu1 %5293 }
 0x8c6   :  { %14312 = vmatpush3.msra.mxu1 %v19092_v56  ;;  %14364 = vmatpush3.msra.mxu0 %v19074_v41  ;;  %v5508_v46 = vpop.permute.xlu0 %5507  ;;  %v11058_v41 = vld [vmem:[%s22784_s3 + $0xa78] sm:$0xff]  ;;  %v11089_v56 = vld [vmem:[%s22784_s3 + $0xb70] sm:$0xff] }
 0x8c7   :  { %14313 = vmatprep.subr.mxu1 %v19108_v49  ;;  %14365 = vmatprep.subr.mxu0 %v19098_v7 }
 0x8c8   :  { %14232 = vmatprep.mubr.f32.mxu1 %v11049_v54  ;;  %14285 = vmatprep.mubr.f32.mxu0 %v11079_v6  ;;  %v11121_v54 = vld [vmem:[%s22784_s3 + $0xc70] sm:$0xff]  ;;  %v11122_v6 = vld [vmem:[%s22784_s3 + $0xc78] sm:$0xff] }
 0x8c9   :  { %14314 = vmatpush3.msra.mxu1 %v19108_v49  ;;  %14366 = vmatpush3.msra.mxu0 %v19098_v7  ;;  %v5292_v37 = vpop.permute.xlu1 %5291  ;;  %v11090_v7 = vld [vmem:[%s22784_s3 + $0xb78] sm:$0xff]  ;;  %v11093_v49 = vld [vmem:[%s22784_s3 + $0xb90] sm:$0xff] }
 0x8ca   :  { %14233 = vmatmul.mubr.f32.gmra.mxu1 %v11050_v16  ;;  %14286 = vmatmul.mubr.f32.gmra.mxu0 %v11080_v8  ;;  %v5506_v2 = vpop.permute.xlu0 %5505 }
 0x8cb   :  { %14315 = vmatprep.subr.mxu1 %v19125_v28  ;;  %14367 = vmatprep.subr.mxu0 %v19118_v47 }
 0x8cc   :  { %14316 = vmatpush3.msra.mxu1 %v19125_v28  ;;  %14368 = vmatpush3.msra.mxu0 %v19118_v47  ;;  %v11094_v28 = vld [vmem:[%s22784_s3 + $0xb98] sm:$0xff] }
 0x8cd   :  { %14317 = vmatprep.subr.mxu1 %v19144_v59  ;;  %14369 = vmatprep.subr.mxu0 %v19141_v39  ;;  %v5290_v13 = vpop.permute.xlu1 %5289 }
 0x8ce   :  { %14235 = vmatprep.mubr.f32.mxu1 %v11051_v20  ;;  %14288 = vmatprep.mubr.f32.mxu0 %v11081_v61  ;;  %v5504_v18 = vpop.permute.xlu0 %5503 }
 0x8cf   :  { %14318 = vmatpush3.msra.mxu1 %v19144_v59  ;;  %14370 = vmatpush3.msra.mxu0 %v19141_v39  ;;  %v11109_v39 = vld [vmem:[%s22784_s3 + $0xc10] sm:$0xff]  ;;  %v11096_v59 = vld [vmem:[%s22784_s3 + $0xba8] sm:$0xff] }
 0x8d0   :  { %14236 = vmatmul.mubr.f32.gmra.mxu1 %v11052_v12  ;;  %14289 = vmatmul.mubr.f32.gmra.mxu0 %v11082_v27 }
 0x8d1   :  { %14319 = vmatprep.subr.mxu1 %v19164_v17  ;;  %14371 = vmatprep.subr.mxu0 %v19160_v53  ;;  %v5288_v14 = vpop.permute.xlu1 %5287 }
 0x8d2   :  { %14320 = vmatpush3.msra.mxu1 %v19164_v17  ;;  %14372 = vmatpush3.msra.mxu0 %v19160_v53  ;;  %v5502_v48 = vpop.permute.xlu0 %5501  ;;  %v11111_v53 = vld [vmem:[%s22784_s3 + $0xc20] sm:$0xff]  ;;  %v11098_v17 = vld [vmem:[%s22784_s3 + $0xbb8] sm:$0xff] }
 0x8d3   :  { %14321 = vmatprep.subr.mxu1 %v19203_v45  ;;  %14373 = vmatprep.subr.mxu0 %v19183_v25 }
 0x8d4   :  { %14238 = vmatprep.mubr.f32.mxu1 %v11053_v3  ;;  %14291 = vmatprep.mubr.f32.mxu0 %v11083_v24 }
 0x8d5   :  { %14322 = vmatpush3.msra.mxu1 %v19203_v45  ;;  %14374 = vmatpush3.msra.mxu0 %v19183_v25  ;;  %v5498_v43 = vpop.permute.xlu1 %5497  ;;  %v11100_v25 = vld [vmem:[%s22784_s3 + $0xbc8] sm:$0xff]  ;;  %v11117_v45 = vld [vmem:[%s22784_s3 + $0xc50] sm:$0xff] }
 0x8d6   :  { %14239 = vmatmul.mubr.f32.gmra.mxu1 %v11054_v58  ;;  %14292 = vmatmul.mubr.f32.gmra.mxu0 %v11084_v52  ;;  %v5500_v47 = vpop.permute.xlu0 %5499 }
 0x8d7   :  { %14323 = vmatprep.subr.mxu1 %v5298_v9  ;;  %14375 = vmatprep.subr.mxu0 %v5512_v5 }
 0x8d8   :  { %14324 = vmatpush3.msra.mxu1 %v5298_v9  ;;  %14376 = vmatpush3.msra.mxu0 %v5512_v5  ;;  %v11106_v5 = vld [vmem:[%s22784_s3 + $0xbf8] sm:$0xff]  ;;  %v11120_v9 = vld [vmem:[%s22784_s3 + $0xc68] sm:$0xff] }
 0x8d9   :  { %14325 = vmatprep.subr.mxu1 %v5296_v22  ;;  %14377 = vmatprep.subr.mxu0 %v5510_v29 }
 0x8da   :  { %14241 = vmatprep.mubr.f32.mxu1 %v11055_v21  ;;  %14294 = vmatprep.mubr.f32.mxu0 %v11085_v11 }
 0x8db   :  { %14326 = vmatpush3.msra.mxu1 %v5296_v22  ;;  %14378 = vmatpush3.msra.mxu0 %v5510_v29 }
 0x8dc   :  { %14242 = vmatmul.mubr.f32.gmra.mxu1 %v11056_v40  ;;  %14295 = vmatmul.mubr.f32.gmra.mxu0 %v11086_v0 }
 0x8dd   :  { %14327 = vmatprep.subr.mxu1 %v5294_v57  ;;  %14379 = vmatprep.subr.mxu0 %v5508_v46 }
 0x8de   :  { %14328 = vmatpush3.msra.mxu1 %v5294_v57  ;;  %14380 = vmatpush3.msra.mxu0 %v5508_v46 }
 0x8df   :  { %14329 = vmatprep.subr.mxu1 %v5292_v37  ;;  %14381 = vmatprep.subr.mxu0 %v5506_v2 }
 0x8e0   :  { %14244 = vmatprep.mubr.f32.mxu1 %v11057_v55  ;;  %14297 = vmatprep.mubr.f32.mxu0 %v11087_v63 }
 0x8e1   :  { %14330 = vmatpush3.msra.mxu1 %v5292_v37  ;;  %14382 = vmatpush3.msra.mxu0 %v5506_v2 }
 0x8e2   :  { %14245 = vmatmul.mubr.f32.gmra.mxu1 %v11058_v41  ;;  %14298 = vmatmul.mubr.f32.gmra.mxu0 %v11088_v36  ;;  %v19437_v41 = vpop.permute.xlu0 %5801 }
 0x8e3   :  { %14331 = vmatprep.subr.mxu1 %v5290_v13  ;;  %14383 = vmatprep.subr.mxu0 %v5504_v18  ;;  %22911 = vst [vmem:[#allocation9_spill] sm:$0xff] %v19437_v41 }
 0x8e4   :  { %14332 = vmatpush3.msra.mxu1 %v5290_v13  ;;  %14384 = vmatpush3.msra.mxu0 %v5504_v18 }
 0x8e5   :  { %14333 = vmatprep.subr.mxu1 %v5288_v14  ;;  %14385 = vmatprep.subr.mxu0 %v5502_v48 }
 0x8e6   :  { %14300 = vmatprep.mubr.f32.mxu0 %v11089_v56  ;;  %14334 = vmatpush3.msra.mxu1 %v5288_v14  ;;  %v19439_v14 = vpop.permute.xlu1 %5796 }
 0x8e7   :  { %14335 = vmatprep.mubr.f32.mxu1 %v11091_v42  ;;  %14386 = vmatpush3.msra.mxu0 %v5502_v48  ;;  %22912 = vst [vmem:[#allocation3_spill] sm:$0xff] %v19439_v14 }
 0x8e8   :  { %14301 = vmatmul.mubr.f32.gmra.mxu0 %v11090_v7  ;;  %14336 = vmatmul.mubr.f32.vlgmr.msra.gmra.mxu1 %v11092_v38  ;;  %v19443_v7 = vpop.permute.xlu0 %5791 }
 0x8e9   :  { %14387 = vmatprep.subr.mxu0 %v5500_v47  ;;  %14338 = vmatprep.mubr.f32.mxu1 %v11093_v49  ;;  %22913 = vst [vmem:[#allocation12_spill] sm:$0xff] %v19443_v7 }
 0x8ea   :  { %14388 = vmatpush3.msra.mxu0 %v5500_v47  ;;  %14391 = vmatprep.mubr.f32.mxu0 %v11107_v31  ;;  %v19449_v31 = vpop.permute.xlu1 %5786 }
 0x8eb   :  { %14389 = vmatprep.subr.mxu0 %v5498_v43  ;;  %22914 = vst [vmem:[#allocation11_spill] sm:$0xff] %v19449_v31 }
 0x8ec   :  { %14390 = vmatpush3.msra.mxu0 %v5498_v43  ;;  %14339 = vmatmul.mubr.f32.gmra.mxu1 %v11094_v28  ;;  %v19455_v28 = vpop.permute.xlu0 %5781 }
 0x8ed   :  { %14392 = vmatmul.mubr.f32.vlgmr.msra.gmra.mxu0 %v11108_v35  ;;  %14341 = vmatprep.mubr.f32.mxu1 %v11095_v4  ;;  %22915 = vst [vmem:[#allocation8_spill] sm:$0xff] %v19455_v28 }
 0x8ee   :  { %14394 = vmatprep.mubr.f32.mxu0 %v11109_v39  ;;  %v19461_v39 = vpop.permute.xlu1 %5776 }
 0x8ef   :  { %22916 = vst [vmem:[#allocation2_spill] sm:$0xff] %v19461_v39 }
 0x8f0   :  { %14342 = vmatmul.mubr.f32.gmra.mxu1 %v11096_v59 }
 0x8f1   :  { %14395 = vmatmul.mubr.f32.gmra.mxu0 %v11110_v32  ;;  %14344 = vmatprep.mubr.f32.mxu1 %v11097_v1  ;;  %v19467_v1 = vpop.permute.xlu0 %5771 }
 0x8f2   :  { %14397 = vmatprep.mubr.f32.mxu0 %v11111_v53  ;;  %22917 = vst [vmem:[#allocation15_spill] sm:$0xff] %v19467_v1 }
 0x8f4   :  { %14345 = vmatmul.mubr.f32.gmra.mxu1 %v11098_v17 }
 0x8f5   :  { %14398 = vmatmul.mubr.f32.gmra.mxu0 %v11112_v19  ;;  %14347 = vmatprep.mubr.f32.mxu1 %v11099_v33  ;;  %v19473_v19 = vpop.permute.xlu1 %5766 }
 0x8f6   :  { %14400 = vmatprep.mubr.f32.mxu0 %v11113_v60  ;;  %22918 = vst [vmem:[#allocation4_spill] sm:$0xff] %v19473_v19 }
 0x8f8   :  { %14348 = vmatmul.mubr.f32.gmra.mxu1 %v11100_v25  ;;  %v19479_v25 = vpop.permute.xlu0 %5761 }
 0x8f9   :  { %14401 = vmatmul.mubr.f32.gmra.mxu0 %v11114_v62  ;;  %14350 = vmatprep.mubr.f32.mxu1 %v11101_v51 }
 0x8fa   :  { %14403 = vmatprep.mubr.f32.mxu0 %v11115_v10  ;;  %v19485_v10 = vpop.permute.xlu1 %5756 }
 0x8fc   :  { %14351 = vmatmul.mubr.f32.gmra.mxu1 %v11102_v15 }
 0x8fd   :  { %14404 = vmatmul.mubr.f32.gmra.mxu0 %v11116_v23  ;;  %14353 = vmatprep.mubr.f32.mxu1 %v11103_v30  ;;  %v19491_v30 = vpop.permute.xlu0 %5751 }
 0x8fe   :  { %14406 = vmatprep.mubr.f32.mxu0 %v11117_v45 }
 0x900   :  { %14354 = vmatmul.mubr.f32.gmra.mxu1 %v11104_v26 }
 0x901   :  { %14407 = vmatmul.mubr.f32.gmra.mxu0 %v11118_v44  ;;  %14356 = vmatprep.mubr.f32.mxu1 %v11105_v50  ;;  %v19497_v44 = vpop.permute.xlu1 %5746 }
 0x902   :  { %14409 = vmatprep.mubr.f32.mxu0 %v11119_v34 }
 0x904   :  { %14357 = vmatmul.mubr.f32.gmra.mxu1 %v11106_v5 }
 0x905   :  { %14410 = vmatmul.mubr.f32.gmra.mxu0 %v11120_v9  ;;  %v5742_v9 = vpop.permute.xlu0 %5741  ;;  %v5737_v31 = vpop.permute.xlu1 %5736 }
 0x906   :  { %14412 = vmatprep.mubr.f32.mxu0 %v11121_v54 }
 0x909   :  { %14413 = vmatmul.mubr.f32.gmra.mxu0 %v11122_v6 }
 0x955   :  { %v14169_v16 = vpop.f32.mrf.mxu0 }
 0x957   :  { %v4885_v8 = vpop.f32.mrf.mxu0 }
 0x95a   :  { %v19409_v29 = vpop.f32.mrf.mxu0 }
 0x95c   :  { %v19411_v22 = vpop.f32.mrf.mxu0 }
 0x95f   :  { %v19413_v20 = vpop.f32.mrf.mxu0 }
 0x961   :  { %v19415_v61 = vpop.f32.mrf.mxu0 }
 0x964   :  { %v19417_v12 = vpop.f32.mrf.mxu0 }
 0x966   :  { %v19419_v27 = vpop.f32.mrf.mxu0 }
 0x969   :  { %v19421_v46 = vpop.f32.mrf.mxu0 }
 0x96b   :  { %v19423_v57 = vpop.f32.mrf.mxu0 }
 0x96e   :  { %v19425_v3 = vpop.f32.mrf.mxu0 }
 0x970   :  { %v19427_v24 = vpop.f32.mrf.mxu0 }
 0x973   :  { %v19429_v58 = vpop.f32.mrf.mxu0 }
 0x975   :  { %v19431_v52 = vpop.f32.mrf.mxu0 }
 0x978   :  { %v19433_v2 = vpop.f32.mrf.mxu0  ;;  %v14225_v37 = vpop.f32.mrf.mxu1 }
 0x979   :  { %22909 = vst [vmem:[#allocation5_spill] sm:$0xff] %v19433_v2  ;;  %v5036_v50 = vadd.f32 %v14225_v37, %v14169_v16  ;;  %v5732_v2 = vpop.permute.xlu0 %5731 }
 0x97a   :  { %v19435_v21 = vpop.f32.mrf.mxu0  ;;  %v5030_v11 = vpop.f32.mrf.mxu1 }
 0x97b   :  { %22910 = vst [vmem:[#allocation7_spill] sm:$0xff] %v19435_v21  ;;  %v5031_v54 = vadd.f32 %v5030_v11, %v4885_v8 }
 0x97e   :  { %v14228_v40 = vpop.f32.mrf.mxu1  ;;  %v14281_v0 = vpop.f32.mrf.mxu0 }
 0x97f   :  { %v5272_v6 = vadd.f32 %v14281_v0, %v5036_v50  ;;  %v5046_v7 = vadd.f32 %v14228_v40, %v19409_v29  ;;  %v5727_v29 = vpop.permute.xlu1 %5726 }
 0x980   :  { %v5040_v18 = vpop.f32.mrf.mxu1  ;;  %v5192_v13 = vpop.f32.mrf.mxu0 }
 0x981   :  { %v5271_v21 = vadd.f32 %v5192_v13, %v5031_v54 }
 0x984   :  { %v14231_v55 = vpop.f32.mrf.mxu1  ;;  %v14284_v63 = vpop.f32.mrf.mxu0 }
 0x985   :  { %v5056_v8 = vadd.f32 %v14231_v55, %v19413_v20 }
 0x986   :  { %v5050_v36 = vpop.f32.mrf.mxu1  ;;  %v5202_v48 = vpop.f32.mrf.mxu0 }
 0x987   :  { %v5051_v40 = vadd.f32 %v5050_v36, %v19415_v61 }
 0x98a   :  { %v19441_v56 = vpop.f32.mrf.mxu1  ;;  %v14287_v42 = vpop.f32.mrf.mxu0 }
 0x98b   :  { %v5276_v13 = vadd.f32 %v14287_v42, %v5056_v8  ;;  %v5066_v20 = vadd.f32 %v19441_v56, %v19417_v12 }
 0x98c   :  { %v19445_v38 = vpop.f32.mrf.mxu1  ;;  %v19447_v49 = vpop.f32.mrf.mxu0 }
 0x98d   :  { %v5275_v55 = vadd.f32 %v19447_v49, %v5051_v40  ;;  %v5061_v36 = vadd.f32 %v19445_v38, %v19419_v27 }
 0x990   :  { %v19451_v47 = vpop.f32.mrf.mxu1  ;;  %v19453_v43 = vpop.f32.mrf.mxu0 }
 0x992   :  { %v19457_v35 = vpop.f32.mrf.mxu1  ;;  %v19459_v4 = vpop.f32.mrf.mxu0 }
 0x996   :  { %v19463_v59 = vpop.f32.mrf.mxu1  ;;  %v19465_v32 = vpop.f32.mrf.mxu0 }
 0x998   :  { %v19469_v53 = vpop.f32.mrf.mxu1  ;;  %v19471_v17 = vpop.f32.mrf.mxu0 }
 0x99c   :  { %v19475_v33 = vpop.f32.mrf.mxu1  ;;  %v19477_v60 = vpop.f32.mrf.mxu0 }
 0x99e   :  { %v19481_v62 = vpop.f32.mrf.mxu1  ;;  %v19483_v51 = vpop.f32.mrf.mxu0 }
 0x9a2   :  { %v19487_v15 = vpop.f32.mrf.mxu1  ;;  %v19489_v23 = vpop.f32.mrf.mxu0 }
 0x9a3   :  { %22919 = vst [vmem:[#allocation16_spill] sm:$0xff] %v19487_v15  ;;  %v5274_v15 = vadd.f32 %v14284_v63, %v5046_v7 }
 0x9a4   :  { %v19493_v45 = vpop.f32.mrf.mxu1  ;;  %v19495_v26 = vpop.f32.mrf.mxu0 }
 0x9a5   :  { %22920 = vst [vmem:[#allocation10_spill] sm:$0xff] %v19493_v45  ;;  %22921 = vst [vmem:[#allocation6_spill] sm:$0xff] %v19495_v26  ;;  %v5041_v26 = vadd.f32 %v5040_v18, %v19411_v22 }
 0x9a7   :  { %v5273_v0 = vadd.f32 %v5202_v48, %v5041_v26 }
 0x9a8   :  { %v19499_v34 = vpop.f32.mrf.mxu0  ;;  %v14337_v5 = vpop.f32.mrf.mxu1 }
 0x9a9   :  { %22922 = vst [vmem:[#allocation13_spill] sm:$0xff] %v19499_v34  ;;  %v5482_v39 = vadd.f32 %v14337_v5, %v5272_v6 }
 0x9aa   :  { %v19501_v14 = vpop.f32.mrf.mxu0  ;;  %v5402_v41 = vpop.f32.mrf.mxu1 }
 0x9ab   :  { %22923 = vst [vmem:[#allocation14_spill] sm:$0xff] %v19501_v14  ;;  %v5481_v16 = vadd.f32 %v5402_v41, %v5271_v21 }
 0x9ac   :  { %v14340_v45 = vpop.f32.mrf.mxu1 }
 0x9ad   :  { %v14393_v28 = vpop.f32.mrf.mxu0  ;;  %v5484_v50 = vadd.f32 %v14340_v45, %v5274_v15  ;;  %v5277_v15 = vadd.f32 %v19459_v4, %v5061_v36  ;;  %v22927_v36 = vld [vmem:[#allocation16_spill] sm:$0xff] }
 0x9ae   :  { %v5692_v37 = vadd.f32 %v14393_v28, %v5482_v39  ;;  %v5412_v34 = vpop.f32.mrf.mxu1 }
 0x9af   :  { %v5612_v11 = vpop.f32.mrf.mxu0  ;;  %v5483_v22 = vadd.f32 %v5412_v34, %v5273_v0 }
 0x9b0   :  { %v5805_v14 = vadd.f32 %v5732_v2, %v5692_v37  ;;  %v5691_v19 = vadd.f32 %v5612_v11, %v5481_v16  ;;  %v14343_v1 = vpop.f32.mrf.mxu1  ;;  %v5086_v37 = vadd.f32 %v19463_v59, %v19425_v3 }
 0x9b1   :  { %v14396_v5 = vpop.f32.mrf.mxu0  ;;  %v5486_v2 = vadd.f32 %v14343_v1, %v5276_v13  ;;  %v5076_v1 = vadd.f32 %v19451_v47, %v19421_v46 }
 0x9b2   :  { %v19507_v54 = vmax.f32 %v5805_v14, 0.0  ;;  %v5804_v21 = vadd.f32 %v5727_v29, %v5691_v19  ;;  %v5694_v18 = vadd.f32 %v14396_v5, %v5484_v50  ;;  %v5422_v63 = vpop.f32.mrf.mxu1  ;;  %v5278_v14 = vadd.f32 %v19453_v43, %v5066_v20 }
 0x9b3   :  { %v5622_v41 = vpop.f32.mrf.mxu0  ;;  %v5485_v42 = vadd.f32 %v5422_v63, %v5275_v55  ;;  %v5071_v43 = vadd.f32 %v19457_v35, %v19423_v57  ;;  %v5282_v0 = vadd.f32 %v19477_v60, %v5086_v37  ;;  %v5096_v5 = vadd.f32 %v19475_v33, %v19429_v58  ;;  %v22924_v63 = vld [vmem:[#allocation15_spill] sm:$0xff] }
 0x9b4   :  { %v5693_v48 = vadd.f32 %v5622_v41, %v5483_v22  ;;  %5887 = vrot.lane.b32.xlu0 %v19507_v54, %s15669_s1  ;;  %v14346_v61 = vpop.f32.mrf.mxu1  ;;  %v19517_v28 = vmax.f32 %v5804_v21, 0.0  ;;  %v5807_v39 = vadd.f32 %v5742_v9, %v5694_v18 }
 0x9b5   :  { %v14399_v7 = vpop.f32.mrf.mxu0  ;;  %v5488_v26 = vadd.f32 %v14346_v61, %v5278_v14  ;;  %v5279_v57 = vadd.f32 %v19471_v17, %v5071_v43  ;;  %v5284_v18 = vadd.f32 %v19489_v23, %v5096_v5  ;;  %v22926_v61 = vld [vmem:[#allocation5_spill] sm:$0xff] }
 0x9b6   :  { %v5806_v12 = vadd.f32 %v5737_v31, %v5693_v48  ;;  %v5696_v56 = vadd.f32 %v14399_v7, %v5486_v2  ;;  %v5432_v49 = vpop.f32.mrf.mxu1  ;;  %v5280_v31 = vadd.f32 %v19465_v32, %v5076_v1  ;;  %v19530_v46 = vmax.f32 %v5807_v39, 0.0 }
 0x9b7   :  { %v5632_v19 = vpop.f32.mrf.mxu0  ;;  %v5487_v47 = vadd.f32 %v5432_v49, %v5277_v15  ;;  %v5106_v14 = vadd.f32 %v22927_v36, %v22926_v61  ;;  %v22930_v15 = vld [vmem:[#allocation8_spill] sm:$0xff] }
 0x9b8   :  { %v19522_v45 = vmax.f32 %v5806_v12, 0.0  ;;  %v5695_v27 = vadd.f32 %v5632_v19, %v5485_v42  ;;  %5885 = vrot.lane.b32.xlu0 %v19517_v28, %s15669_s1  ;;  %v14349_v38 = vpop.f32.mrf.mxu1  ;;  %v5809_v34 = vadd.f32 %v19491_v30, %v5696_v56  ;;  %v22929_v12 = vld [vmem:[#allocation13_spill] sm:$0xff] }
 0x9b9   :  { %v14402_v9 = vpop.f32.mrf.mxu0  ;;  %v5490_v32 = vadd.f32 %v14349_v38, %v5280_v31  ;;  %v5286_v56 = vadd.f32 %v22929_v12, %v5106_v14  ;;  %v22931_v38 = vld [vmem:[#allocation2_spill] sm:$0xff]  ;;  %v11232_v14 = vld [vmem:[%s22785_s4 + $0x2e8] sm:$0xff] }
 0x9ba   :  { %v5808_v4 = vadd.f32 %v19497_v44, %v5695_v27  ;;  %v5698_v6 = vadd.f32 %v14402_v9, %v5488_v26  ;;  %5889 = vrot.lane.b32.xlu1 %v19522_v45, %s15669_s1  ;;  %v5442_v16 = vpop.f32.mrf.mxu1  ;;  %v5081_v44 = vadd.f32 %v19469_v53, %v19427_v24  ;;  %v19545_v50 = vmax.f32 %v5809_v34, 0.0  ;;  %v11231_v12 = vld [vmem:[%s22785_s4 + $0x2e0] sm:$0xff] }
 0x9bb   :  { %v5642_v8 = vpop.f32.mrf.mxu0  ;;  %v5489_v59 = vadd.f32 %v5442_v16, %v5279_v57  ;;  %v22933_v16 = vld [vmem:[#allocation10_spill] sm:$0xff] }
 0x9bc   :  { %v19538_v35 = vmax.f32 %v5808_v4, 0.0  ;;  %v5697_v30 = vadd.f32 %v5642_v8, %v5487_v47  ;;  %5891 = vrot.lane.b32.xlu0 %v19530_v46, %s15669_s1  ;;  %v14352_v11 = vpop.f32.mrf.mxu1  ;;  %v5811_v3 = vadd.f32 %v19479_v25, %v5698_v6  ;;  %v5281_v24 = vadd.f32 %v19483_v51, %v5081_v44  ;;  %v22925_v51 = vld [vmem:[#allocation4_spill] sm:$0xff]  ;;  %v22932_v6 = vld [vmem:[#allocation7_spill] sm:$0xff] }
 0x9bd   :  { %v14405_v29 = vpop.f32.mrf.mxu0  ;;  %v5492_v60 = vadd.f32 %v14352_v11, %v5282_v0  ;;  %v5101_v37 = vadd.f32 %v22933_v16, %v22932_v6  ;;  %v22935_v11 = vld [vmem:[#allocation11_spill] sm:$0xff]  ;;  %v11222_v16 = vld [vmem:[%s22785_s4 + $0x298] sm:$0xff] }
 0x9be   :  { %v5810_v17 = vadd.f32 %v19485_v10, %v5697_v30  ;;  %v5700_v40 = vadd.f32 %v14405_v29, %v5490_v32  ;;  %5893 = vrot.lane.b32.xlu1 %v19538_v35, %s15669_s1  ;;  %v5452_v13 = vpop.f32.mrf.mxu1  ;;  %v5091_v10 = vadd.f32 %v19481_v62, %v19431_v52  ;;  %v19562_v58 = vmax.f32 %v5811_v3, 0.0  ;;  %v22928_v52 = vld [vmem:[#allocation6_spill] sm:$0xff]  ;;  %v22934_v32 = vld [vmem:[#allocation12_spill] sm:$0xff] }
 0x9bf   :  { %v5652_v22 = vpop.f32.mrf.mxu0  ;;  %v5491_v33 = vadd.f32 %v5452_v13, %v5281_v24  ;;  %v22936_v3 = vld [vmem:[#allocation14_spill] sm:$0xff] }
 0x9c0   :  { %v19554_v53 = vmax.f32 %v5810_v17, 0.0  ;;  %v5699_v21 = vadd.f32 %v5652_v22, %v5489_v59  ;;  %5895 = vrot.lane.b32.xlu0 %v19545_v50, %s15669_s1  ;;  %v14355_v25 = vpop.f32.mrf.mxu1  ;;  %v5813_v20 = vadd.f32 %v22924_v63, %v5700_v40  ;;  %v5283_v62 = vadd.f32 %v22928_v52, %v5091_v10  ;;  %v22937_v22 = vld [vmem:[#allocation9_spill] sm:$0xff]  ;;  %v11155_v63 = vld [vmem:[%s22784_s3 + $0xd00] sm:$0xff]  ;;  %v11233_v52 = vld [vmem:[%s22785_s4 + $0x2f0] sm:$0xff] }
 0x9c1   :  { %v14408_v55 = vpop.f32.mrf.mxu0  ;;  %v5494_v7 = vadd.f32 %v14355_v25, %v5284_v18  ;;  %v5285_v59 = vadd.f32 %v22936_v3, %v5101_v37  ;;  %v22938_v25 = vld [vmem:[#allocation3_spill] sm:$0xff]  ;;  %14447 = vmatprep.mubr.f32.mxu1 %v11155_v63  ;;  %v11219_v3 = vld [vmem:[%s22785_s4 + $0x280] sm:$0xff] }
 0x9c2   :  { %v5812_v41 = vadd.f32 %v22925_v51, %v5699_v21  ;;  %v5702_v2 = vadd.f32 %v14408_v55, %v5492_v60  ;;  %5897 = vrot.lane.b32.xlu1 %v19554_v53, %s15669_s1  ;;  %v5462_v48 = vpop.f32.mrf.mxu1  ;;  %v19575_v49 = vmax.f32 %v5813_v20, 0.0  ;;  %v11139_v20 = vld [vmem:[%s22784_s3 + $0xc80] sm:$0xff] }
 0x9c3   :  { %v5662_v42 = vpop.f32.mrf.mxu0  ;;  %v5493_v27 = vadd.f32 %v5462_v48, %v5283_v62  ;;  %14503 = vmatprep.mubr.f32.mxu0 %v11139_v20  ;;  %v11234_v48 = vld [vmem:[%s22785_s4 + $0x2f8] sm:$0xff] }
 0x9c4   :  { %v19570_v23 = vmax.f32 %v5812_v41, 0.0  ;;  %v5701_v39 = vadd.f32 %v5662_v42, %v5491_v33  ;;  %5899 = vrot.lane.b32.xlu0 %v19562_v58, %s15669_s1  ;;  %v14358_v1 = vpop.f32.mrf.mxu1  ;;  %v5815_v26 = vadd.f32 %v22930_v15, %v5702_v2  ;;  %v11229_v15 = vld [vmem:[%s22785_s4 + $0x2d0] sm:$0xff] }
 0x9c5   :  { %v14411_v19 = vpop.f32.mrf.mxu0  ;;  %v5496_v47 = vadd.f32 %v14358_v1, %v5286_v56  ;;  %v11228_v1 = vld [vmem:[%s22785_s4 + $0x2c8] sm:$0xff] }
 0x9c6   :  { %v5814_v43 = vadd.f32 %v22931_v38, %v5701_v39  ;;  %v5704_v31 = vadd.f32 %v14411_v19, %v5494_v7  ;;  %5901 = vrot.lane.b32.xlu1 %v19570_v23, %s15669_s1  ;;  %v19587_v57 = vmax.f32 %v5815_v26, 0.0  ;;  %v5472_v29 = vpop.f32.mrf.mxu1  ;;  %v11230_v7 = vld [vmem:[%s22785_s4 + $0x2d8] sm:$0xff] }
 0x9c7   :  { %v5672_v34 = vpop.f32.mrf.mxu0  ;;  %v5495_v5 = vadd.f32 %v5472_v29, %v5285_v59 }
 0x9c8   :  { %v19581_v9 = vmax.f32 %v5814_v43, 0.0  ;;  %v5703_v4 = vadd.f32 %v5672_v34, %v5493_v27  ;;  %5903 = vrot.lane.b32.xlu0 %v19575_v49, %s15669_s1  ;;  %v5817_v30 = vadd.f32 %v22934_v32, %v5704_v31  ;;  %v11226_v27 = vld [vmem:[%s22785_s4 + $0x2b8] sm:$0xff]  ;;  %v11227_v43 = vld [vmem:[%s22785_s4 + $0x2c0] sm:$0xff]  ;;  %v11224_v34 = vld [vmem:[%s22785_s4 + $0x2a8] sm:$0xff] }
 0x9c9   :  { %v14414_v8 = vpop.f32.mrf.mxu0 }
 0x9ca   :  { %v5816_v44 = vadd.f32 %v22935_v11, %v5703_v4  ;;  %v5706_v0 = vadd.f32 %v14414_v8, %v5496_v47  ;;  %5905 = vrot.lane.b32.xlu1 %v19581_v9, %s15669_s1  ;;  %v19598_v13 = vmax.f32 %v5817_v30, 0.0  ;;  %v11225_v4 = vld [vmem:[%s22785_s4 + $0x2b0] sm:$0xff]  ;;  %v11223_v8 = vld [vmem:[%s22785_s4 + $0x2a0] sm:$0xff]  ;;  %v11220_v30 = vld [vmem:[%s22785_s4 + $0x288] sm:$0xff] }
 0x9cb   :  { %v5682_v40 = vpop.f32.mrf.mxu0 }
 0x9cc   :  { %v19594_v17 = vmax.f32 %v5816_v44, 0.0  ;;  %5907 = vrot.lane.b32.xlu0 %v19587_v57, %s15669_s1  ;;  %v5819_v24 = vadd.f32 %v22937_v22, %v5706_v0  ;;  %v5705_v60 = vadd.f32 %v5682_v40, %v5495_v5  ;;  %v11221_v44 = vld [vmem:[%s22785_s4 + $0x290] sm:$0xff] }
 0x9ce   :  { %5909 = vrot.lane.b32.xlu1 %v19594_v17, %s15669_s1  ;;  %v19605_v21 = vmax.f32 %v5819_v24, 0.0  ;;  %v5818_v10 = vadd.f32 %v22938_v25, %v5705_v60 }
 0x9d0   :  { %5911 = vrot.lane.b32.xlu0 %v19598_v13, %s15669_s1  ;;  %v19614_v18 = vmax.f32 %v5818_v10, 0.0 }
 0x9d2   :  { %5860 = vrot.lane.b32.xlu1 %v19594_v17, %s15670_s12 }
 0x9d4   :  { %5915 = vrot.lane.b32.xlu0 %v19605_v21, %s15669_s1 }
 0x9d6   :  { %5866 = vrot.lane.b32.xlu1 %v19605_v21, %s15670_s12 }
 0x9d8   :  { %5862 = vrot.lane.b32.xlu0 %v19598_v13, %s15670_s12 }
 0x9da   :  { %5913 = vrot.lane.b32.xlu1 %v19614_v18, %s15669_s1 }
 0x9dc   :  { %5858 = vrot.lane.b32.xlu0 %v19587_v57, %s15670_s12 }
 0x9de   :  { %5856 = vrot.lane.b32.xlu1 %v19581_v9, %s15670_s12 }
 0x9e0   :  { %5854 = vrot.lane.b32.xlu0 %v19575_v49, %s15670_s12 }
 0x9e2   :  { %5852 = vrot.lane.b32.xlu1 %v19570_v23, %s15670_s12 }
 0x9e4   :  { %5850 = vrot.lane.b32.xlu0 %v19562_v58, %s15670_s12 }
 0x9e6   :  { %5848 = vrot.lane.b32.xlu1 %v19554_v53, %s15670_s12 }
 0x9e8   :  { %5846 = vrot.lane.b32.xlu0 %v19545_v50, %s15670_s12 }
 0x9ea   :  { %5844 = vrot.lane.b32.xlu1 %v19538_v35, %s15670_s12 }
 0x9ec   :  { %5842 = vrot.lane.b32.xlu0 %v19530_v46, %s15670_s12 }
 0x9ee   :  { %5840 = vrot.lane.b32.xlu1 %v19522_v45, %s15670_s12 }
 0x9f0   :  { %5838 = vrot.lane.b32.xlu0 %v19507_v54, %s15670_s12 }
 0x9f2   :  { %5836 = vrot.lane.b32.xlu1 %v19517_v28, %s15670_s12 }
 0x9f4   :  { %6432 = vrot.lane.b32.xlu0 %v19605_v21, %s15671_s15 }
 0x9f6   :  { %5864 = vrot.lane.b32.xlu1 %v19614_v18, %s15670_s12 }
 0x9f8   :  { %6642 = vrot.lane.b32.xlu0 %v19605_v21, %s15672_s16 }
 0x9fa   :  { %6428 = vrot.lane.b32.xlu1 %v19598_v13, %s15671_s15 }
 0x9fc   :  { %6638 = vrot.lane.b32.xlu0 %v19598_v13, %s15672_s16 }
 0x9fe   :  { %6426 = vrot.lane.b32.xlu1 %v19594_v17, %s15671_s15 }
 0xa00   :  { %6636 = vrot.lane.b32.xlu0 %v19594_v17, %s15672_s16 }
 0xa02   :  { %6424 = vrot.lane.b32.xlu1 %v19587_v57, %s15671_s15 }
 0xa04   :  { %6634 = vrot.lane.b32.xlu0 %v19587_v57, %s15672_s16 }
 0xa06   :  { %6422 = vrot.lane.b32.xlu1 %v19581_v9, %s15671_s15 }
 0xa08   :  { %6632 = vrot.lane.b32.xlu0 %v19581_v9, %s15672_s16 }
 0xa0a   :  { %6420 = vrot.lane.b32.xlu1 %v19575_v49, %s15671_s15 }
 0xa0c   :  { %6630 = vrot.lane.b32.xlu0 %v19575_v49, %s15672_s16 }
 0xa0e   :  { %6418 = vrot.lane.b32.xlu1 %v19570_v23, %s15671_s15 }
 0xa10   :  { %6628 = vrot.lane.b32.xlu0 %v19570_v23, %s15672_s16 }
 0xa12   :  { %6416 = vrot.lane.b32.xlu1 %v19562_v58, %s15671_s15 }
 0xa14   :  { %6640 = vrot.lane.b32.xlu0 %v19614_v18, %s15672_s16 }
 0xa16   :  { %6430 = vrot.lane.b32.xlu1 %v19614_v18, %s15671_s15 }
 0xa18   :  { %6626 = vrot.lane.b32.xlu0 %v19562_v58, %s15672_s16 }
 0xa1a   :  { %6414 = vrot.lane.b32.xlu1 %v19554_v53, %s15671_s15 }
 0xa1c   :  { %6624 = vrot.lane.b32.xlu0 %v19554_v53, %s15672_s16 }
 0xa1e   :  { %6412 = vrot.lane.b32.xlu1 %v19545_v50, %s15671_s15 }
 0xa20   :  { %6622 = vrot.lane.b32.xlu0 %v19545_v50, %s15672_s16 }
 0xa22   :  { %6410 = vrot.lane.b32.xlu1 %v19538_v35, %s15671_s15 }
 0xa24   :  { %6620 = vrot.lane.b32.xlu0 %v19538_v35, %s15672_s16 }
 0xa26   :  { %6408 = vrot.lane.b32.xlu1 %v19530_v46, %s15671_s15  ;;  %v19702_v55 = vpop.permute.xlu0 %5887 }
 0xa28   :  { %6618 = vrot.lane.b32.xlu0 %v19530_v46, %s15672_s16 }
 0xa2a   :  { %6406 = vrot.lane.b32.xlu1 %v19522_v45, %s15671_s15  ;;  %v19708_v33 = vpop.permute.xlu0 %5885 }
 0xa2c   :  { %v19710_v51 = vpop.permute.xlu1 %5889  ;;  %6616 = vrot.lane.b32.xlu0 %v19522_v45, %s15672_s16 }
 0xa2e   :  { %6404 = vrot.lane.b32.xlu1 %v19507_v54, %s15671_s15  ;;  %v19716_v41 = vpop.permute.xlu0 %5891 }
 0xa30   :  { %v19718_v2 = vpop.permute.xlu1 %5893  ;;  %6614 = vrot.lane.b32.xlu0 %v19507_v54, %s15672_s16 }
 0xa32   :  { %6402 = vrot.lane.b32.xlu1 %v19517_v28, %s15671_s15  ;;  %v19727_v61 = vpop.permute.xlu0 %5895 }
 0xa34   :  { %v19729_v36 = vpop.permute.xlu1 %5897  ;;  %6916 = vperm.xlu0 %15666, %v11234_v48  }
 0xa36   :  { %6612 = vrot.lane.b32.xlu1 %v19517_v28, %s15672_s16  ;;  %v19736_v42 = vpop.permute.xlu0 %5899 }
 0xa38   :  { %v5902_v62 = vpop.permute.xlu1 %5901  ;;  %6906 = vperm.xlu0 %15666, %v11232_v14  }
 0xa3a   :  { %6911 = vperm.xlu1 %15667, %v11233_v52   ;;  %v5904_v39 = vpop.permute.xlu0 %5903 }
 0xa3c   :  { %v5906_v56 = vpop.permute.xlu1 %5905  ;;  %6896 = vperm.xlu0 %15666, %v11230_v7  }
 0xa3e   :  { %6901 = vperm.xlu1 %15667, %v11231_v12   ;;  %v5908_v19 = vpop.permute.xlu0 %5907 }
 0xa40   :  { %v5910_v26 = vpop.permute.xlu1 %5909  ;;  %6886 = vperm.xlu0 %15666, %v11228_v1  }
 0xa42   :  { %6891 = vperm.xlu1 %15667, %v11229_v15   ;;  %v5912_v38 = vpop.permute.xlu0 %5911 }
 0xa44   :  { %v19759_v31 = vpop.permute.xlu1 %5860  ;;  %6876 = vperm.xlu0 %15666, %v11226_v27   ;;  %v11142_v27 = vld [vmem:[%s22784_s3 + $0xc98] sm:$0xff] }
 0xa46   :  { %6881 = vperm.xlu1 %15667, %v11227_v43   ;;  %v5916_v47 = vpop.permute.xlu0 %5915 }
 0xa47   :  { %14415 = vmatprep.subr.mxu1 %v5916_v47 }
 0xa48   :  { %v5867_v6 = vpop.permute.xlu1 %5866  ;;  %6866 = vperm.xlu0 %15666, %v11224_v34   ;;  %14416 = vmatpush3.msra.mxu1 %v5916_v47  ;;  %v11173_v34 = vld [vmem:[%s22784_s3 + $0xd90] sm:$0xff]  ;;  %v11174_v47 = vld [vmem:[%s22784_s3 + $0xd98] sm:$0xff] }
 0xa49   :  { %14471 = vmatprep.subr.mxu0 %v5867_v6 }
 0xa4a   :  { %14472 = vmatpush3.msra.mxu0 %v5867_v6  ;;  %6871 = vperm.xlu1 %15667, %v11225_v4   ;;  %v19770_v37 = vpop.permute.xlu0 %5862 }
 0xa4c   :  { %v5914_v32 = vpop.permute.xlu1 %5913  ;;  %6856 = vperm.xlu0 %15666, %v11222_v16   ;;  %v11145_v16 = vld [vmem:[%s22784_s3 + $0xcb0] sm:$0xff] }
 0xa4d   :  { %14417 = vmatprep.subr.mxu1 %v5914_v32 }
 0xa4e   :  { %6861 = vperm.xlu1 %15667, %v11223_v8   ;;  %14418 = vmatpush3.msra.mxu1 %v5914_v32  ;;  %v19778_v11 = vpop.permute.xlu0 %5858  ;;  %v11146_v8 = vld [vmem:[%s22784_s3 + $0xcb8] sm:$0xff]  ;;  %v11176_v32 = vld [vmem:[%s22784_s3 + $0xda8] sm:$0xff] }
 0xa4f   :  { %14419 = vmatprep.subr.mxu1 %v5912_v38 }
 0xa50   :  { %v19783_v0 = vpop.permute.xlu1 %5856  ;;  %6846 = vperm.xlu0 %15666, %v11220_v30   ;;  %14420 = vmatpush3.msra.mxu1 %v5912_v38  ;;  %v11172_v38 = vld [vmem:[%s22784_s3 + $0xd88] sm:$0xff] }
 0xa51   :  { %14421 = vmatprep.subr.mxu1 %v5910_v26 }
 0xa52   :  { %6851 = vperm.xlu1 %15667, %v11221_v44   ;;  %14422 = vmatpush3.msra.mxu1 %v5910_v26  ;;  %v19785_v29 = vpop.permute.xlu0 %5854  ;;  %v11141_v26 = vld [vmem:[%s22784_s3 + $0xc90] sm:$0xff]  ;;  %v11147_v44 = vld [vmem:[%s22784_s3 + $0xcc0] sm:$0xff] }
 0xa53   :  { %14423 = vmatprep.subr.mxu1 %v5908_v19 }
 0xa54   :  { %v19790_v59 = vpop.permute.xlu1 %5852  ;;  %14424 = vmatpush3.msra.mxu1 %v5908_v19  ;;  %v11140_v19 = vld [vmem:[%s22784_s3 + $0xc88] sm:$0xff] }
 0xa55   :  { %14425 = vmatprep.subr.mxu1 %v5906_v56 }
 0xa56   :  { %6841 = vperm.xlu1 %15667, %v11219_v3   ;;  %14426 = vmatpush3.msra.mxu1 %v5906_v56  ;;  %v19792_v40 = vpop.permute.xlu0 %5850  ;;  %v11168_v56 = vld [vmem:[%s22784_s3 + $0xd68] sm:$0xff]  ;;  %v11178_v3 = vld [vmem:[%s22784_s3 + $0xdb8] sm:$0xff] }
 0xa57   :  { %14427 = vmatprep.subr.mxu1 %v5904_v39 }
 0xa58   :  { %v19794_v5 = vpop.permute.xlu1 %5848  ;;  %14428 = vmatpush3.msra.mxu1 %v5904_v39  ;;  %v11166_v39 = vld [vmem:[%s22784_s3 + $0xd58] sm:$0xff] }
 0xa59   :  { %14429 = vmatprep.subr.mxu1 %v5902_v62 }
 0xa5a   :  { %14430 = vmatpush3.msra.mxu1 %v5902_v62  ;;  %v19796_v22 = vpop.permute.xlu0 %5846 }
 0xa5b   :  { %14431 = vmatprep.subr.mxu1 %v19736_v42 }
 0xa5c   :  { %v19799_v24 = vpop.permute.xlu1 %5844  ;;  %14432 = vmatpush3.msra.mxu1 %v19736_v42 }
 0xa5d   :  { %14433 = vmatprep.subr.mxu1 %v19729_v36 }
 0xa5e   :  { %14434 = vmatpush3.msra.mxu1 %v19729_v36  ;;  %v19804_v60 = vpop.permute.xlu0 %5842 }
 0xa5f   :  { %14435 = vmatprep.subr.mxu1 %v19727_v61 }
 0xa60   :  { %v19807_v25 = vpop.permute.xlu1 %5840  ;;  %14436 = vmatpush3.msra.mxu1 %v19727_v61 }
 0xa61   :  { %14437 = vmatprep.subr.mxu1 %v19718_v2 }
 0xa62   :  { %14438 = vmatpush3.msra.mxu1 %v19718_v2  ;;  %v19812_v10 = vpop.permute.xlu0 %5838  ;;  %v11156_v2 = vld [vmem:[%s22784_s3 + $0xd08] sm:$0xff] }
 0xa63   :  { %14439 = vmatprep.subr.mxu1 %v19716_v41 }
 0xa64   :  { %v19815_v63 = vpop.permute.xlu1 %5836  ;;  %14440 = vmatpush3.msra.mxu1 %v19716_v41 }
 0xa65   :  { %14441 = vmatprep.subr.mxu1 %v19710_v51 }
 0xa66   :  { %14442 = vmatpush3.msra.mxu1 %v19710_v51  ;;  %v19820_v20 = vpop.permute.xlu0 %6432  ;;  %v11157_v51 = vld [vmem:[%s22784_s3 + $0xd10] sm:$0xff] }
 0xa67   :  { %14443 = vmatprep.subr.mxu1 %v19702_v55 }
 0xa68   :  { %v5865_v48 = vpop.permute.xlu1 %5864  ;;  %14444 = vmatpush3.msra.mxu1 %v19702_v55 }
 0xa69   :  { %14445 = vmatprep.subr.mxu1 %v19708_v33  ;;  %14473 = vmatprep.subr.mxu0 %v5865_v48 }
 0xa6a   :  { %14446 = vmatpush3.msra.mxu1 %v19708_v33  ;;  %14474 = vmatpush3.msra.mxu0 %v5865_v48  ;;  %v19829_v41 = vpop.permute.xlu0 %6642  ;;  %v11158_v33 = vld [vmem:[%s22784_s3 + $0xd18] sm:$0xff]  ;;  %v11152_v48 = vld [vmem:[%s22784_s3 + $0xce8] sm:$0xff] }
 0xa6b   :  { %14448 = vmatmul.mubr.f32.vlgmr.msra.gmra.mxu1 %v11156_v2  ;;  %14475 = vmatprep.subr.mxu0 %v19770_v37  ;;  %v11182_v2 = vld [vmem:[%s22784_s3 + $0xdd8] sm:$0xff] }
 0xa6c   :  { %14527 = vmatprep.subr.mxu1 %v19605_v21  ;;  %v19836_v55 = vpop.permute.xlu1 %6428  ;;  %14476 = vmatpush3.msra.mxu0 %v19770_v37  ;;  %v11175_v37 = vld [vmem:[%s22784_s3 + $0xda0] sm:$0xff] }
 0xa6d   :  { %14528 = vmatpush3.msra.mxu1 %v19605_v21  ;;  %14477 = vmatprep.subr.mxu0 %v19759_v31  ;;  %v11159_v21 = vld [vmem:[%s22784_s3 + $0xd20] sm:$0xff] }
 0xa6e   :  { %14529 = vmatprep.subr.mxu1 %v19614_v18  ;;  %14450 = vmatprep.mubr.f32.mxu1 %v11157_v51  ;;  %v19847_v61 = vpop.permute.xlu0 %6638 }
 0xa6f   :  { %14478 = vmatpush3.msra.mxu0 %v19759_v31  ;;  %14530 = vmatpush3.msra.mxu1 %v19614_v18  ;;  %v11160_v18 = vld [vmem:[%s22784_s3 + $0xd28] sm:$0xff]  ;;  %v11143_v31 = vld [vmem:[%s22784_s3 + $0xca0] sm:$0xff] }
 0xa70   :  { %14451 = vmatmul.mubr.f32.gmra.mxu1 %v11158_v33  ;;  %14479 = vmatprep.subr.mxu0 %v19778_v11  ;;  %v19850_v36 = vpop.permute.xlu1 %6426  ;;  %v11183_v33 = vld [vmem:[%s22784_s3 + $0xde0] sm:$0xff] }
 0xa71   :  { %14531 = vmatprep.subr.mxu1 %v19598_v13  ;;  %14480 = vmatpush3.msra.mxu0 %v19778_v11 }
 0xa72   :  { %14532 = vmatpush3.msra.mxu1 %v19598_v13  ;;  %14481 = vmatprep.subr.mxu0 %v19783_v0  ;;  %v11161_v13 = vld [vmem:[%s22784_s3 + $0xd30] sm:$0xff]  ;;  %v19871_v42 = vpop.permute.xlu0 %6636 }
 0xa73   :  { %14533 = vmatprep.subr.mxu1 %v19594_v17  ;;  %14453 = vmatprep.mubr.f32.mxu1 %v11159_v21 }
 0xa74   :  { %14482 = vmatpush3.msra.mxu0 %v19783_v0  ;;  %14534 = vmatpush3.msra.mxu1 %v19594_v17  ;;  %v19865_v14 = vpop.permute.xlu1 %6424  ;;  %v11162_v17 = vld [vmem:[%s22784_s3 + $0xd38] sm:$0xff]  ;;  %v11177_v0 = vld [vmem:[%s22784_s3 + $0xdb0] sm:$0xff] }
 0xa75   :  { %14454 = vmatmul.mubr.f32.gmra.mxu1 %v11160_v18  ;;  %14483 = vmatprep.subr.mxu0 %v19785_v29 }
 0xa76   :  { %14535 = vmatprep.subr.mxu1 %v19587_v57  ;;  %14484 = vmatpush3.msra.mxu0 %v19785_v29  ;;  %v19891_v62 = vpop.permute.xlu0 %6634  ;;  %v11148_v29 = vld [vmem:[%s22784_s3 + $0xcc8] sm:$0xff] }
 0xa77   :  { %14536 = vmatpush3.msra.mxu1 %v19587_v57  ;;  %14485 = vmatprep.subr.mxu0 %v19790_v59  ;;  %v11163_v57 = vld [vmem:[%s22784_s3 + $0xd40] sm:$0xff] }
 0xa78   :  { %14537 = vmatprep.subr.mxu1 %v19581_v9  ;;  %14456 = vmatprep.mubr.f32.mxu1 %v11161_v13  ;;  %v19881_v52 = vpop.permute.xlu1 %6422  ;;  %v11187_v13 = vld [vmem:[%s22784_s3 + $0xe00] sm:$0xff] }
 0xa79   :  { %14486 = vmatpush3.msra.mxu0 %v19790_v59  ;;  %14538 = vmatpush3.msra.mxu1 %v19581_v9  ;;  %v11164_v9 = vld [vmem:[%s22784_s3 + $0xd48] sm:$0xff] }
 0xa7a   :  { %14457 = vmatmul.mubr.f32.gmra.mxu1 %v11162_v17  ;;  %14487 = vmatprep.subr.mxu0 %v19792_v40  ;;  %v11188_v17 = vld [vmem:[%s22784_s3 + $0xe08] sm:$0xff] }
 0xa7b   :  { %14539 = vmatprep.subr.mxu1 %v19575_v49  ;;  %14488 = vmatpush3.msra.mxu0 %v19792_v40 }
 0xa7c   :  { %14540 = vmatpush3.msra.mxu1 %v19575_v49  ;;  %14489 = vmatprep.subr.mxu0 %v19794_v5  ;;  %v19898_v7 = vpop.permute.xlu1 %6420  ;;  %v11165_v49 = vld [vmem:[%s22784_s3 + $0xd50] sm:$0xff] }
 0xa7d   :  { %14541 = vmatprep.subr.mxu1 %v19570_v23  ;;  %14459 = vmatprep.mubr.f32.mxu1 %v11163_v57  ;;  %v11203_v57 = vld [vmem:[%s22784_s3 + $0xe80] sm:$0xff] }
 0xa7e   :  { %14490 = vmatpush3.msra.mxu0 %v19794_v5  ;;  %14542 = vmatpush3.msra.mxu1 %v19570_v23  ;;  %v19914_v23 = vpop.permute.xlu0 %6632  ;;  %v11149_v5 = vld [vmem:[%s22784_s3 + $0xcd0] sm:$0xff] }
 0xa7f   :  { %14460 = vmatmul.mubr.f32.gmra.mxu1 %v11164_v9  ;;  %14491 = vmatprep.subr.mxu0 %v19796_v22 }
 0xa80   :  { %14543 = vmatprep.subr.mxu1 %v19562_v58  ;;  %14492 = vmatpush3.msra.mxu0 %v19796_v22  ;;  %v19917_v12 = vpop.permute.xlu1 %6418  ;;  %v11179_v22 = vld [vmem:[%s22784_s3 + $0xdc0] sm:$0xff] }
 0xa81   :  { %14544 = vmatpush3.msra.mxu1 %v19562_v58  ;;  %14493 = vmatprep.subr.mxu0 %v19799_v24  ;;  %v11167_v58 = vld [vmem:[%s22784_s3 + $0xd60] sm:$0xff] }
 0xa82   :  { %14545 = vmatprep.subr.mxu1 %v19554_v53  ;;  %14462 = vmatprep.mubr.f32.mxu1 %v11165_v49  ;;  %v11204_v49 = vld [vmem:[%s22784_s3 + $0xe88] sm:$0xff] }
 0xa83   :  { %14494 = vmatpush3.msra.mxu0 %v19799_v24  ;;  %14546 = vmatpush3.msra.mxu1 %v19554_v53  ;;  %v19933_v53 = vpop.permute.xlu0 %6630  ;;  %v11150_v24 = vld [vmem:[%s22784_s3 + $0xcd8] sm:$0xff] }
 0xa84   :  { %14463 = vmatmul.mubr.f32.gmra.mxu1 %v11166_v39  ;;  %14495 = vmatprep.subr.mxu0 %v19804_v60  ;;  %v19937_v1 = vpop.permute.xlu1 %6416  ;;  %v11191_v39 = vld [vmem:[%s22784_s3 + $0xe20] sm:$0xff] }
 0xa85   :  { %14547 = vmatprep.subr.mxu1 %v19545_v50  ;;  %14496 = vmatpush3.msra.mxu0 %v19804_v60  ;;  %v11180_v60 = vld [vmem:[%s22784_s3 + $0xdc8] sm:$0xff] }
 0xa86   :  { %14548 = vmatpush3.msra.mxu1 %v19545_v50  ;;  %14497 = vmatprep.subr.mxu0 %v19807_v25  ;;  %v11169_v50 = vld [vmem:[%s22784_s3 + $0xd70] sm:$0xff] }
 0xa87   :  { %14549 = vmatprep.subr.mxu1 %v19538_v35  ;;  %14465 = vmatprep.mubr.f32.mxu1 %v11167_v58  ;;  %v19956_v15 = vpop.permute.xlu0 %6628  ;;  %v11206_v58 = vld [vmem:[%s22784_s3 + $0xe98] sm:$0xff] }
 0xa88   :  { %14498 = vmatpush3.msra.mxu0 %v19807_v25  ;;  %14550 = vmatpush3.msra.mxu1 %v19538_v35  ;;  %v11170_v35 = vld [vmem:[%s22784_s3 + $0xd78] sm:$0xff] }
 0xa89   :  { %14466 = vmatmul.mubr.f32.gmra.mxu1 %v11168_v56  ;;  %14499 = vmatprep.subr.mxu0 %v19812_v10  ;;  %v11193_v56 = vld [vmem:[%s22784_s3 + $0xe30] sm:$0xff] }
 0xa8a   :  { %14551 = vmatprep.subr.mxu1 %v19530_v46  ;;  %14500 = vmatpush3.msra.mxu0 %v19812_v10 }
 0xa8b   :  { %14552 = vmatpush3.msra.mxu1 %v19530_v46  ;;  %14501 = vmatprep.subr.mxu0 %v19815_v63  ;;  %v6431_v46 = vpop.permute.xlu1 %6430 }
 0xa8c   :  { %14553 = vmatprep.subr.mxu1 %v19522_v45  ;;  %14468 = vmatprep.mubr.f32.mxu1 %v11169_v50  ;;  %v11208_v50 = vld [vmem:[%s22784_s3 + $0xea8] sm:$0xff] }
 0xa8d   :  { %14502 = vmatpush3.msra.mxu0 %v19815_v63  ;;  %14554 = vmatpush3.msra.mxu1 %v19522_v45  ;;  %v11171_v45 = vld [vmem:[%s22784_s3 + $0xd80] sm:$0xff] }
 0xa8e   :  { %14469 = vmatmul.mubr.f32.gmra.mxu1 %v11170_v35  ;;  %14504 = vmatmul.mubr.f32.vlgmr.msra.gmra.mxu0 %v11140_v19  ;;  %v11151_v63 = vld [vmem:[%s22784_s3 + $0xce0] sm:$0xff]  ;;  %v11209_v19 = vld [vmem:[%s22784_s3 + $0xeb0] sm:$0xff] }
 0xa8f   :  { %14555 = vmatprep.subr.mxu1 %v19507_v54  ;;  %14583 = vmatprep.subr.mxu0 %v19820_v20  ;;  %v19976_v43 = vpop.permute.xlu1 %6414  ;;  %v11195_v35 = vld [vmem:[%s22784_s3 + $0xe40] sm:$0xff] }
 0xa90   :  { %14556 = vmatpush3.msra.mxu1 %v19507_v54  ;;  %14584 = vmatpush3.msra.mxu0 %v19820_v20  ;;  %v6641_v54 = vpop.permute.xlu0 %6640  ;;  %v11181_v20 = vld [vmem:[%s22784_s3 + $0xdd0] sm:$0xff] }
 0xa91   :  { %14557 = vmatprep.subr.mxu1 %v19517_v28  ;;  %14585 = vmatprep.subr.mxu0 %v6431_v46 }
 0xa92   :  { %14506 = vmatprep.mubr.f32.mxu0 %v11141_v26  ;;  %14558 = vmatpush3.msra.mxu1 %v19517_v28  ;;  %v11144_v28 = vld [vmem:[%s22784_s3 + $0xca8] sm:$0xff]  ;;  %v11197_v26 = vld [vmem:[%s22784_s3 + $0xe50] sm:$0xff] }
 0xa93   :  { %14559 = vmatprep.mubr.f32.mxu1 %v11171_v45  ;;  %14586 = vmatpush3.msra.mxu0 %v6431_v46  ;;  %v6413_v6 = vpop.permute.xlu1 %6412  ;;  %v11210_v46 = vld [vmem:[%s22784_s3 + $0xeb8] sm:$0xff]  ;;  %v11211_v45 = vld [vmem:[%s22784_s3 + $0xec0] sm:$0xff] }
 0xa94   :  { %14507 = vmatmul.mubr.f32.gmra.mxu0 %v11142_v27  ;;  %14560 = vmatmul.mubr.f32.vlgmr.msra.gmra.mxu1 %v11172_v38  ;;  %v6627_v4 = vpop.permute.xlu0 %6626  ;;  %v11198_v27 = vld [vmem:[%s22784_s3 + $0xe58] sm:$0xff]  ;;  %v11212_v38 = vld [vmem:[%s22784_s3 + $0xec8] sm:$0xff] }
 0xa95   :  { %14587 = vmatprep.subr.mxu0 %v19836_v55  ;;  %14639 = vmatprep.subr.mxu1 %v19829_v41 }
 0xa96   :  { %14588 = vmatpush3.msra.mxu0 %v19836_v55  ;;  %14640 = vmatpush3.msra.mxu1 %v19829_v41  ;;  %v11153_v55 = vld [vmem:[%s22784_s3 + $0xcf0] sm:$0xff] }
 0xa97   :  { %14589 = vmatprep.subr.mxu0 %v19850_v36  ;;  %14641 = vmatprep.subr.mxu1 %v6641_v54  ;;  %v6411_v11 = vpop.permute.xlu1 %6410 }
 0xa98   :  { %14509 = vmatprep.mubr.f32.mxu0 %v11143_v31  ;;  %14562 = vmatprep.mubr.f32.mxu1 %v11173_v34  ;;  %v6625_v30 = vpop.permute.xlu0 %6624  ;;  %v11200_v31 = vld [vmem:[%s22784_s3 + $0xe68] sm:$0xff]  ;;  %v11214_v34 = vld [vmem:[%s22784_s3 + $0xed8] sm:$0xff] }
 0xa99   :  { %14590 = vmatpush3.msra.mxu0 %v19850_v36  ;;  %14642 = vmatpush3.msra.mxu1 %v6641_v54  ;;  %v11184_v36 = vld [vmem:[%s22784_s3 + $0xde8] sm:$0xff]  ;;  %v11199_v54 = vld [vmem:[%s22784_s3 + $0xe60] sm:$0xff] }
 0xa9a   :  { %14510 = vmatmul.mubr.f32.gmra.mxu0 %v11144_v28  ;;  %14563 = vmatmul.mubr.f32.gmra.mxu1 %v11174_v47  ;;  %v11201_v28 = vld [vmem:[%s22784_s3 + $0xe70] sm:$0xff]  ;;  %v11215_v47 = vld [vmem:[%s22784_s3 + $0xee0] sm:$0xff] }
 0xa9b   :  { %14591 = vmatprep.subr.mxu0 %v19865_v14  ;;  %14643 = vmatprep.subr.mxu1 %v19847_v61  ;;  %v6409_v40 = vpop.permute.xlu1 %6408 }
 0xa9c   :  { %14592 = vmatpush3.msra.mxu0 %v19865_v14  ;;  %14644 = vmatpush3.msra.mxu1 %v19847_v61  ;;  %v6623_v59 = vpop.permute.xlu0 %6622  ;;  %v11154_v61 = vld [vmem:[%s22784_s3 + $0xcf8] sm:$0xff]  ;;  %v11185_v14 = vld [vmem:[%s22784_s3 + $0xdf0] sm:$0xff] }
 0xa9d   :  { %14593 = vmatprep.subr.mxu0 %v19881_v52  ;;  %14645 = vmatprep.subr.mxu1 %v19871_v42 }
 0xa9e   :  { %14512 = vmatprep.mubr.f32.mxu0 %v11145_v16  ;;  %14565 = vmatprep.mubr.f32.mxu1 %v11175_v37  ;;  %v11217_v16 = vld [vmem:[%s22784_s3 + $0xef0] sm:$0xff]  ;;  %v11218_v37 = vld [vmem:[%s22784_s3 + $0xef8] sm:$0xff] }
 0xa9f   :  { %14594 = vmatpush3.msra.mxu0 %v19881_v52  ;;  %14646 = vmatpush3.msra.mxu1 %v19871_v42  ;;  %v6407_v10 = vpop.permute.xlu1 %6406  ;;  %v11186_v42 = vld [vmem:[%s22784_s3 + $0xdf8] sm:$0xff]  ;;  %v11189_v52 = vld [vmem:[%s22784_s3 + $0xe10] sm:$0xff] }
 0xaa0   :  { %14513 = vmatmul.mubr.f32.gmra.mxu0 %v11146_v8  ;;  %14566 = vmatmul.mubr.f32.gmra.mxu1 %v11176_v32  ;;  %v6621_v25 = vpop.permute.xlu0 %6620 }
 0xaa1   :  { %14595 = vmatprep.subr.mxu0 %v19898_v7  ;;  %14647 = vmatprep.subr.mxu1 %v19891_v62 }
 0xaa2   :  { %14596 = vmatpush3.msra.mxu0 %v19898_v7  ;;  %14648 = vmatpush3.msra.mxu1 %v19891_v62  ;;  %v11190_v7 = vld [vmem:[%s22784_s3 + $0xe18] sm:$0xff] }
 0xaa3   :  { %14597 = vmatprep.subr.mxu0 %v19917_v12  ;;  %14649 = vmatprep.subr.mxu1 %v19914_v23  ;;  %v6405_v51 = vpop.permute.xlu1 %6404 }
 0xaa4   :  { %14515 = vmatprep.mubr.f32.mxu0 %v11147_v44  ;;  %14568 = vmatprep.mubr.f32.mxu1 %v11177_v0  ;;  %v6619_v41 = vpop.permute.xlu0 %6618 }
 0xaa5   :  { %14598 = vmatpush3.msra.mxu0 %v19917_v12  ;;  %14650 = vmatpush3.msra.mxu1 %v19914_v23  ;;  %v11205_v23 = vld [vmem:[%s22784_s3 + $0xe90] sm:$0xff]  ;;  %v11192_v12 = vld [vmem:[%s22784_s3 + $0xe28] sm:$0xff] }
 0xaa6   :  { %14516 = vmatmul.mubr.f32.gmra.mxu0 %v11148_v29  ;;  %14569 = vmatmul.mubr.f32.gmra.mxu1 %v11178_v3 }
 0xaa7   :  { %14599 = vmatprep.subr.mxu0 %v19937_v1  ;;  %14651 = vmatprep.subr.mxu1 %v19933_v53  ;;  %v6403_v18 = vpop.permute.xlu1 %6402 }
 0xaa8   :  { %14600 = vmatpush3.msra.mxu0 %v19937_v1  ;;  %14652 = vmatpush3.msra.mxu1 %v19933_v53  ;;  %v6617_v21 = vpop.permute.xlu0 %6616  ;;  %v11207_v53 = vld [vmem:[%s22784_s3 + $0xea0] sm:$0xff]  ;;  %v11194_v1 = vld [vmem:[%s22784_s3 + $0xe38] sm:$0xff] }
 0xaa9   :  { %14601 = vmatprep.subr.mxu0 %v19976_v43  ;;  %14653 = vmatprep.subr.mxu1 %v19956_v15 }
 0xaaa   :  { %14518 = vmatprep.mubr.f32.mxu0 %v11149_v5  ;;  %14571 = vmatprep.mubr.f32.mxu1 %v11179_v22 }
 0xaab   :  { %14602 = vmatpush3.msra.mxu0 %v19976_v43  ;;  %14654 = vmatpush3.msra.mxu1 %v19956_v15  ;;  %v6613_v9 = vpop.permute.xlu1 %6612  ;;  %v11196_v15 = vld [vmem:[%s22784_s3 + $0xe48] sm:$0xff]  ;;  %v11213_v43 = vld [vmem:[%s22784_s3 + $0xed0] sm:$0xff] }
 0xaac   :  { %14519 = vmatmul.mubr.f32.gmra.mxu0 %v11150_v24  ;;  %14572 = vmatmul.mubr.f32.gmra.mxu1 %v11180_v60  ;;  %v6615_v62 = vpop.permute.xlu0 %6614 }
 0xaad   :  { %14603 = vmatprep.subr.mxu0 %v6413_v6  ;;  %14655 = vmatprep.subr.mxu1 %v6627_v4 }
 0xaae   :  { %14604 = vmatpush3.msra.mxu0 %v6413_v6  ;;  %14656 = vmatpush3.msra.mxu1 %v6627_v4  ;;  %v11202_v4 = vld [vmem:[%s22784_s3 + $0xe78] sm:$0xff]  ;;  %v11216_v6 = vld [vmem:[%s22784_s3 + $0xee8] sm:$0xff] }
 0xaaf   :  { %14605 = vmatprep.subr.mxu0 %v6411_v11  ;;  %14657 = vmatprep.subr.mxu1 %v6625_v30 }
 0xab0   :  { %14521 = vmatprep.mubr.f32.mxu0 %v11151_v63  ;;  %14574 = vmatprep.mubr.f32.mxu1 %v11181_v20 }
 0xab1   :  { %14606 = vmatpush3.msra.mxu0 %v6411_v11  ;;  %14658 = vmatpush3.msra.mxu1 %v6625_v30 }
 0xab2   :  { %14522 = vmatmul.mubr.f32.gmra.mxu0 %v11152_v48  ;;  %14575 = vmatmul.mubr.f32.gmra.mxu1 %v11182_v2 }
 0xab3   :  { %14607 = vmatprep.subr.mxu0 %v6409_v40  ;;  %14659 = vmatprep.subr.mxu1 %v6623_v59 }
 0xab4   :  { %14608 = vmatpush3.msra.mxu0 %v6409_v40  ;;  %14660 = vmatpush3.msra.mxu1 %v6623_v59 }
 0xab5   :  { %14609 = vmatprep.subr.mxu0 %v6407_v10  ;;  %14661 = vmatprep.subr.mxu1 %v6621_v25 }
 0xab6   :  { %14524 = vmatprep.mubr.f32.mxu0 %v11153_v55  ;;  %14577 = vmatprep.mubr.f32.mxu1 %v11183_v33 }
 0xab7   :  { %14610 = vmatpush3.msra.mxu0 %v6407_v10  ;;  %14662 = vmatpush3.msra.mxu1 %v6621_v25 }
 0xab8   :  { %14525 = vmatmul.mubr.f32.gmra.mxu0 %v11154_v61  ;;  %14578 = vmatmul.mubr.f32.gmra.mxu1 %v11184_v36  ;;  %v20210_v61 = vpop.permute.xlu0 %6916 }
 0xab9   :  { %14611 = vmatprep.subr.mxu0 %v6405_v51  ;;  %14663 = vmatprep.subr.mxu1 %v6619_v41  ;;  %22941 = vst [vmem:[#allocation5_spill] sm:$0xff] %v20210_v61 }
 0xaba   :  { %14612 = vmatpush3.msra.mxu0 %v6405_v51  ;;  %14664 = vmatpush3.msra.mxu1 %v6619_v41 }
 0xabb   :  { %14613 = vmatprep.subr.mxu0 %v6403_v18  ;;  %14665 = vmatprep.subr.mxu1 %v6617_v21 }
 0xabc   :  { %14580 = vmatprep.mubr.f32.mxu1 %v11185_v14  ;;  %14614 = vmatpush3.msra.mxu0 %v6403_v18  ;;  %v20212_v18 = vpop.permute.xlu1 %6911 }
 0xabd   :  { %14615 = vmatprep.mubr.f32.mxu0 %v11187_v13  ;;  %14666 = vmatpush3.msra.mxu1 %v6617_v21  ;;  %22942 = vst [vmem:[#allocation16_spill] sm:$0xff] %v20212_v18 }
 0xabe   :  { %14581 = vmatmul.mubr.f32.gmra.mxu1 %v11186_v42  ;;  %14616 = vmatmul.mubr.f32.vlgmr.msra.gmra.mxu0 %v11188_v17  ;;  %v20216_v42 = vpop.permute.xlu0 %6906 }
 0xabf   :  { %14667 = vmatprep.subr.mxu1 %v6615_v62  ;;  %14618 = vmatprep.mubr.f32.mxu0 %v11189_v52  ;;  %22943 = vst [vmem:[#allocation6_spill] sm:$0xff] %v20216_v42 }
 0xac0   :  { %14668 = vmatpush3.msra.mxu1 %v6615_v62  ;;  %14671 = vmatprep.mubr.f32.mxu1 %v11203_v57  ;;  %v20222_v57 = vpop.permute.xlu1 %6901 }
 0xac1   :  { %14669 = vmatprep.subr.mxu1 %v6613_v9  ;;  %22944 = vst [vmem:[#allocation13_spill] sm:$0xff] %v20222_v57 }
 0xac2   :  { %14670 = vmatpush3.msra.mxu1 %v6613_v9  ;;  %14619 = vmatmul.mubr.f32.gmra.mxu0 %v11190_v7  ;;  %v20228_v7 = vpop.permute.xlu0 %6896 }
 0xac3   :  { %14672 = vmatmul.mubr.f32.vlgmr.msra.gmra.mxu1 %v11204_v49  ;;  %14621 = vmatprep.mubr.f32.mxu0 %v11191_v39  ;;  %22945 = vst [vmem:[#allocation8_spill] sm:$0xff] %v20228_v7 }
 0xac4   :  { %14674 = vmatprep.mubr.f32.mxu1 %v11205_v23  ;;  %v20234_v23 = vpop.permute.xlu1 %6891 }
 0xac5   :  { %22946 = vst [vmem:[#allocation2_spill] sm:$0xff] %v20234_v23 }
 0xac6   :  { %14622 = vmatmul.mubr.f32.gmra.mxu0 %v11192_v12 }
 0xac7   :  { %14675 = vmatmul.mubr.f32.gmra.mxu1 %v11206_v58  ;;  %14624 = vmatprep.mubr.f32.mxu0 %v11193_v56  ;;  %v20240_v56 = vpop.permute.xlu0 %6886 }
 0xac8   :  { %14677 = vmatprep.mubr.f32.mxu1 %v11207_v53  ;;  %22947 = vst [vmem:[#allocation7_spill] sm:$0xff] %v20240_v56 }
 0xaca   :  { %14625 = vmatmul.mubr.f32.gmra.mxu0 %v11194_v1 }
 0xacb   :  { %14678 = vmatmul.mubr.f32.gmra.mxu1 %v11208_v50  ;;  %14627 = vmatprep.mubr.f32.mxu0 %v11195_v35  ;;  %v20246_v50 = vpop.permute.xlu1 %6881 }
 0xacc   :  { %14680 = vmatprep.mubr.f32.mxu1 %v11209_v19  ;;  %22948 = vst [vmem:[#allocation10_spill] sm:$0xff] %v20246_v50 }
 0xace   :  { %14628 = vmatmul.mubr.f32.gmra.mxu0 %v11196_v15  ;;  %v20252_v15 = vpop.permute.xlu0 %6876 }
 0xacf   :  { %14681 = vmatmul.mubr.f32.gmra.mxu1 %v11210_v46  ;;  %14630 = vmatprep.mubr.f32.mxu0 %v11197_v26 }
 0xad0   :  { %14683 = vmatprep.mubr.f32.mxu1 %v11211_v45  ;;  %v20258_v45 = vpop.permute.xlu1 %6871 }
 0xad2   :  { %14631 = vmatmul.mubr.f32.gmra.mxu0 %v11198_v27 }
 0xad3   :  { %14684 = vmatmul.mubr.f32.gmra.mxu1 %v11212_v38  ;;  %14633 = vmatprep.mubr.f32.mxu0 %v11199_v54  ;;  %v20264_v54 = vpop.permute.xlu0 %6866 }
 0xad4   :  { %14686 = vmatprep.mubr.f32.mxu1 %v11213_v43 }
 0xad6   :  { %14634 = vmatmul.mubr.f32.gmra.mxu0 %v11200_v31 }
 0xad7   :  { %14687 = vmatmul.mubr.f32.gmra.mxu1 %v11214_v34  ;;  %14636 = vmatprep.mubr.f32.mxu0 %v11201_v28  ;;  %v20270_v34 = vpop.permute.xlu1 %6861 }
 0xad8   :  { %14689 = vmatprep.mubr.f32.mxu1 %v11215_v47 }
 0xada   :  { %14637 = vmatmul.mubr.f32.gmra.mxu0 %v11202_v4 }
 0xadb   :  { %14690 = vmatmul.mubr.f32.gmra.mxu1 %v11216_v6  ;;  %v6857_v6 = vpop.permute.xlu0 %6856  ;;  %v6852_v57 = vpop.permute.xlu1 %6851 }
 0xadc   :  { %14692 = vmatprep.mubr.f32.mxu1 %v11217_v16 }
 0xadf   :  { %14693 = vmatmul.mubr.f32.gmra.mxu1 %v11218_v37 }
 0xb2b   :  { %v14449_v8 = vpop.f32.mrf.mxu1 }
 0xb2d   :  { %v6000_v32 = vpop.f32.mrf.mxu1 }
 0xb30   :  { %v20182_v30 = vpop.f32.mrf.mxu1 }
 0xb32   :  { %v20184_v11 = vpop.f32.mrf.mxu1 }
 0xb35   :  { %v20186_v44 = vpop.f32.mrf.mxu1 }
 0xb37   :  { %v20188_v0 = vpop.f32.mrf.mxu1 }
 0xb3a   :  { %v20190_v29 = vpop.f32.mrf.mxu1 }
 0xb3c   :  { %v20192_v3 = vpop.f32.mrf.mxu1 }
 0xb3f   :  { %v20194_v59 = vpop.f32.mrf.mxu1 }
 0xb41   :  { %v20196_v40 = vpop.f32.mrf.mxu1 }
 0xb44   :  { %v20198_v5 = vpop.f32.mrf.mxu1 }
 0xb46   :  { %v20200_v22 = vpop.f32.mrf.mxu1 }
 0xb49   :  { %v20202_v24 = vpop.f32.mrf.mxu1 }
 0xb4b   :  { %v20204_v60 = vpop.f32.mrf.mxu1 }
 0xb4e   :  { %v20206_v25 = vpop.f32.mrf.mxu1  ;;  %v14505_v10 = vpop.f32.mrf.mxu0 }
 0xb4f   :  { %22939 = vst [vmem:[#allocation15_spill] sm:$0xff] %v20206_v25  ;;  %v6151_v28 = vadd.f32 %v14505_v10, %v14449_v8  ;;  %v6847_v25 = vpop.permute.xlu0 %6846 }
 0xb50   :  { %v20208_v63 = vpop.f32.mrf.mxu1  ;;  %v6145_v20 = vpop.f32.mrf.mxu0 }
 0xb51   :  { %22940 = vst [vmem:[#allocation4_spill] sm:$0xff] %v20208_v63  ;;  %v6146_v16 = vadd.f32 %v6145_v20, %v6000_v32 }
 0xb54   :  { %v14508_v48 = vpop.f32.mrf.mxu0  ;;  %v14561_v2 = vpop.f32.mrf.mxu1 }
 0xb55   :  { %v6387_v37 = vadd.f32 %v14561_v2, %v6151_v28  ;;  %v6161_v42 = vadd.f32 %v14508_v48, %v20182_v30  ;;  %v6842_v30 = vpop.permute.xlu1 %6841 }
 0xb56   :  { %v6155_v41 = vpop.f32.mrf.mxu0  ;;  %v6307_v51 = vpop.f32.mrf.mxu1 }
 0xb57   :  { %v6386_v63 = vadd.f32 %v6307_v51, %v6146_v16 }
 0xb5a   :  { %v14511_v55 = vpop.f32.mrf.mxu0  ;;  %v14564_v33 = vpop.f32.mrf.mxu1 }
 0xb5b   :  { %v6171_v32 = vadd.f32 %v14511_v55, %v20186_v44 }
 0xb5c   :  { %v6165_v36 = vpop.f32.mrf.mxu0  ;;  %v6317_v21 = vpop.f32.mrf.mxu1 }
 0xb5d   :  { %v6166_v48 = vadd.f32 %v6165_v36, %v20188_v0 }
 0xb60   :  { %v20214_v14 = vpop.f32.mrf.mxu0  ;;  %v14567_v13 = vpop.f32.mrf.mxu1 }
 0xb61   :  { %v6391_v51 = vadd.f32 %v14567_v13, %v6171_v32  ;;  %v6181_v44 = vadd.f32 %v20214_v14, %v20190_v29 }
 0xb62   :  { %v20218_v17 = vpop.f32.mrf.mxu0  ;;  %v20220_v52 = vpop.f32.mrf.mxu1 }
 0xb63   :  { %v6390_v55 = vadd.f32 %v20220_v52, %v6166_v48  ;;  %v6176_v36 = vadd.f32 %v20218_v17, %v20192_v3 }
 0xb66   :  { %v20224_v62 = vpop.f32.mrf.mxu0  ;;  %v20226_v9 = vpop.f32.mrf.mxu1 }
 0xb68   :  { %v20230_v49 = vpop.f32.mrf.mxu0  ;;  %v20232_v39 = vpop.f32.mrf.mxu1 }
 0xb6c   :  { %v20236_v12 = vpop.f32.mrf.mxu0  ;;  %v20238_v58 = vpop.f32.mrf.mxu1 }
 0xb6e   :  { %v20242_v53 = vpop.f32.mrf.mxu0  ;;  %v20244_v1 = vpop.f32.mrf.mxu1 }
 0xb72   :  { %v20248_v35 = vpop.f32.mrf.mxu0  ;;  %v20250_v19 = vpop.f32.mrf.mxu1 }
 0xb74   :  { %v20254_v46 = vpop.f32.mrf.mxu0  ;;  %v20256_v26 = vpop.f32.mrf.mxu1 }
 0xb78   :  { %v20260_v27 = vpop.f32.mrf.mxu0  ;;  %v20262_v38 = vpop.f32.mrf.mxu1 }
 0xb79   :  { %22949 = vst [vmem:[#allocation12_spill] sm:$0xff] %v20260_v27  ;;  %v6389_v27 = vadd.f32 %v14564_v33, %v6161_v42 }
 0xb7a   :  { %v20266_v43 = vpop.f32.mrf.mxu0  ;;  %v20268_v31 = vpop.f32.mrf.mxu1 }
 0xb7b   :  { %22950 = vst [vmem:[#allocation11_spill] sm:$0xff] %v20266_v43  ;;  %22951 = vst [vmem:[#allocation14_spill] sm:$0xff] %v20268_v31  ;;  %v6156_v31 = vadd.f32 %v6155_v41, %v20184_v11 }
 0xb7d   :  { %v6388_v2 = vadd.f32 %v6317_v21, %v6156_v31 }
 0xb7e   :  { %v20272_v47 = vpop.f32.mrf.mxu1  ;;  %v14617_v4 = vpop.f32.mrf.mxu0 }
 0xb7f   :  { %22952 = vst [vmem:[#allocation9_spill] sm:$0xff] %v20272_v47  ;;  %v6597_v23 = vadd.f32 %v14617_v4, %v6387_v37 }
 0xb80   :  { %v20274_v18 = vpop.f32.mrf.mxu1  ;;  %v6517_v61 = vpop.f32.mrf.mxu0 }
 0xb81   :  { %22953 = vst [vmem:[#allocation3_spill] sm:$0xff] %v20274_v18  ;;  %v6596_v8 = vadd.f32 %v6517_v61, %v6386_v63 }
 0xb82   :  { %v14620_v43 = vpop.f32.mrf.mxu0 }
 0xb83   :  { %v14673_v7 = vpop.f32.mrf.mxu1  ;;  %v6599_v28 = vadd.f32 %v14620_v43, %v6389_v27  ;;  %v6392_v27 = vadd.f32 %v20232_v39, %v6176_v36  ;;  %v22957_v36 = vld [vmem:[#allocation12_spill] sm:$0xff] }
 0xb84   :  { %v6807_v10 = vadd.f32 %v14673_v7, %v6597_v23  ;;  %v6527_v47 = vpop.f32.mrf.mxu0 }
 0xb85   :  { %v6727_v20 = vpop.f32.mrf.mxu1  ;;  %v6598_v11 = vadd.f32 %v6527_v47, %v6388_v2 }
 0xb86   :  { %v6920_v18 = vadd.f32 %v6847_v25, %v6807_v10  ;;  %v6806_v50 = vadd.f32 %v6727_v20, %v6596_v8  ;;  %v14623_v56 = vpop.f32.mrf.mxu0  ;;  %v6201_v10 = vadd.f32 %v20236_v12, %v20198_v5 }
 0xb87   :  { %v14676_v4 = vpop.f32.mrf.mxu1  ;;  %v6601_v25 = vadd.f32 %v14623_v56, %v6391_v51  ;;  %v6191_v56 = vadd.f32 %v20224_v62, %v20194_v59 }
 0xb88   :  { %v20280_v16 = vmax.f32 %v6920_v18, 0.0  ;;  %v6919_v63 = vadd.f32 %v6842_v30, %v6806_v50  ;;  %v6809_v41 = vadd.f32 %v14676_v4, %v6599_v28  ;;  %v6537_v33 = vpop.f32.mrf.mxu0  ;;  %v6393_v18 = vadd.f32 %v20226_v9, %v6181_v44 }
 0xb89   :  { %v6737_v61 = vpop.f32.mrf.mxu1  ;;  %v6600_v13 = vadd.f32 %v6537_v33, %v6390_v55  ;;  %v6186_v9 = vadd.f32 %v20230_v49, %v20196_v40  ;;  %v6397_v2 = vadd.f32 %v20250_v19, %v6201_v10  ;;  %v6211_v4 = vadd.f32 %v20248_v35, %v20202_v24  ;;  %v22954_v33 = vld [vmem:[#allocation7_spill] sm:$0xff] }
 0xb8a   :  { %v6808_v21 = vadd.f32 %v6737_v61, %v6598_v11  ;;  %7002 = vrot.lane.b32.xlu0 %v20280_v16, %s15669_s1  ;;  %v14626_v0 = vpop.f32.mrf.mxu0  ;;  %v20290_v7 = vmax.f32 %v6919_v63, 0.0  ;;  %v6922_v23 = vadd.f32 %v6857_v6, %v6809_v41 }
 0xb8b   :  { %v14679_v42 = vpop.f32.mrf.mxu1  ;;  %v6603_v31 = vadd.f32 %v14626_v0, %v6393_v18  ;;  %v6394_v40 = vadd.f32 %v20244_v1, %v6186_v9  ;;  %v6399_v41 = vadd.f32 %v20262_v38, %v6211_v4  ;;  %v22956_v0 = vld [vmem:[#allocation15_spill] sm:$0xff] }
 0xb8c   :  { %v6921_v29 = vadd.f32 %v6852_v57, %v6808_v21  ;;  %v6811_v14 = vadd.f32 %v14679_v42, %v6601_v25  ;;  %v6547_v52 = vpop.f32.mrf.mxu0  ;;  %v6395_v57 = vadd.f32 %v20238_v58, %v6191_v56  ;;  %v20303_v59 = vmax.f32 %v6922_v23, 0.0 }
 0xb8d   :  { %v6747_v50 = vpop.f32.mrf.mxu1  ;;  %v6602_v62 = vadd.f32 %v6547_v52, %v6392_v27  ;;  %v6221_v18 = vadd.f32 %v22957_v36, %v22956_v0  ;;  %v22960_v27 = vld [vmem:[#allocation8_spill] sm:$0xff] }
 0xb8e   :  { %v20295_v43 = vmax.f32 %v6921_v29, 0.0  ;;  %v6810_v3 = vadd.f32 %v6747_v50, %v6600_v13  ;;  %7000 = vrot.lane.b32.xlu0 %v20290_v7, %s15669_s1  ;;  %v14629_v17 = vpop.f32.mrf.mxu0  ;;  %v6924_v47 = vadd.f32 %v20264_v54, %v6811_v14  ;;  %v22959_v29 = vld [vmem:[#allocation9_spill] sm:$0xff] }
 0xb8f   :  { %v14682_v6 = vpop.f32.mrf.mxu1  ;;  %v6605_v58 = vadd.f32 %v14629_v17, %v6395_v57  ;;  %v6401_v14 = vadd.f32 %v22959_v29, %v6221_v18  ;;  %v22961_v17 = vld [vmem:[#allocation2_spill] sm:$0xff]  ;;  %v11328_v18 = vld [vmem:[%s22785_s4 + $0x368] sm:$0xff] }
 0xb90   :  { %v6923_v39 = vadd.f32 %v20270_v34, %v6810_v3  ;;  %v6813_v37 = vadd.f32 %v14682_v6, %v6603_v31  ;;  %7004 = vrot.lane.b32.xlu1 %v20295_v43, %s15669_s1  ;;  %v6557_v8 = vpop.f32.mrf.mxu0  ;;  %v6196_v34 = vadd.f32 %v20242_v53, %v20200_v22  ;;  %v20318_v28 = vmax.f32 %v6924_v47, 0.0  ;;  %v11327_v29 = vld [vmem:[%s22785_s4 + $0x360] sm:$0xff] }
 0xb91   :  { %v6757_v32 = vpop.f32.mrf.mxu1  ;;  %v6604_v12 = vadd.f32 %v6557_v8, %v6394_v40  ;;  %v22963_v8 = vld [vmem:[#allocation11_spill] sm:$0xff] }
 0xb92   :  { %v20311_v49 = vmax.f32 %v6923_v39, 0.0  ;;  %v6812_v54 = vadd.f32 %v6757_v32, %v6602_v62  ;;  %7006 = vrot.lane.b32.xlu0 %v20303_v59, %s15669_s1  ;;  %v14632_v20 = vpop.f32.mrf.mxu0  ;;  %v6926_v5 = vadd.f32 %v20252_v15, %v6813_v37  ;;  %v6396_v22 = vadd.f32 %v20256_v26, %v6196_v34  ;;  %v22955_v26 = vld [vmem:[#allocation10_spill] sm:$0xff]  ;;  %v22962_v37 = vld [vmem:[#allocation4_spill] sm:$0xff] }
 0xb93   :  { %v14685_v30 = vpop.f32.mrf.mxu1  ;;  %v6607_v19 = vadd.f32 %v14632_v20, %v6397_v2  ;;  %v6216_v10 = vadd.f32 %v22963_v8, %v22962_v37  ;;  %v22965_v20 = vld [vmem:[#allocation13_spill] sm:$0xff] }
 0xb94   :  { %v6925_v1 = vadd.f32 %v20258_v45, %v6812_v54  ;;  %v6815_v48 = vadd.f32 %v14685_v30, %v6605_v58  ;;  %7008 = vrot.lane.b32.xlu1 %v20311_v49, %s15669_s1  ;;  %v6567_v51 = vpop.f32.mrf.mxu0  ;;  %v6206_v45 = vadd.f32 %v20254_v46, %v20204_v60  ;;  %v20335_v24 = vmax.f32 %v6926_v5, 0.0  ;;  %v22958_v60 = vld [vmem:[#allocation14_spill] sm:$0xff]  ;;  %v22966_v5 = vld [vmem:[#allocation3_spill] sm:$0xff]  ;;  %v11318_v8 = vld [vmem:[%s22785_s4 + $0x318] sm:$0xff] }
 0xb95   :  { %v6767_v11 = vpop.f32.mrf.mxu1  ;;  %v6606_v35 = vadd.f32 %v6567_v51, %v6396_v22  ;;  %v22964_v58 = vld [vmem:[#allocation6_spill] sm:$0xff] }
 0xb96   :  { %v20327_v53 = vmax.f32 %v6925_v1, 0.0  ;;  %v6814_v63 = vadd.f32 %v6767_v11, %v6604_v12  ;;  %7010 = vrot.lane.b32.xlu0 %v20318_v28, %s15669_s1  ;;  %v14635_v15 = vpop.f32.mrf.mxu0  ;;  %v6928_v44 = vadd.f32 %v22954_v33, %v6815_v48  ;;  %v6398_v46 = vadd.f32 %v22958_v60, %v6206_v45  ;;  %v22967_v11 = vld [vmem:[#allocation5_spill] sm:$0xff]  ;;  %v11251_v33 = vld [vmem:[%s22784_s3 + $0xf80] sm:$0xff]  ;;  %v11329_v60 = vld [vmem:[%s22785_s4 + $0x370] sm:$0xff] }
 0xb97   :  { %v14688_v55 = vpop.f32.mrf.mxu1  ;;  %v6609_v42 = vadd.f32 %v14635_v15, %v6399_v41  ;;  %v6400_v12 = vadd.f32 %v22966_v5, %v6216_v10  ;;  %v22968_v15 = vld [vmem:[#allocation16_spill] sm:$0xff]  ;;  %14727 = vmatprep.mubr.f32.mxu0 %v11251_v33  ;;  %v11315_v5 = vld [vmem:[%s22785_s4 + $0x300] sm:$0xff] }
 0xb98   :  { %v6927_v61 = vadd.f32 %v22955_v26, %v6814_v63  ;;  %v6817_v25 = vadd.f32 %v14688_v55, %v6607_v19  ;;  %7012 = vrot.lane.b32.xlu1 %v20327_v53, %s15669_s1  ;;  %v6577_v21 = vpop.f32.mrf.mxu0  ;;  %v20348_v52 = vmax.f32 %v6928_v44, 0.0  ;;  %v11235_v44 = vld [vmem:[%s22784_s3 + $0xf00] sm:$0xff] }
 0xb99   :  { %v6777_v13 = vpop.f32.mrf.mxu1  ;;  %v6608_v3 = vadd.f32 %v6577_v21, %v6398_v46  ;;  %14783 = vmatprep.mubr.f32.mxu1 %v11235_v44  ;;  %v11330_v21 = vld [vmem:[%s22785_s4 + $0x378] sm:$0xff] }
 0xb9a   :  { %v20343_v38 = vmax.f32 %v6927_v61, 0.0  ;;  %v6816_v23 = vadd.f32 %v6777_v13, %v6606_v35  ;;  %7014 = vrot.lane.b32.xlu0 %v20335_v24, %s15669_s1  ;;  %v14638_v56 = vpop.f32.mrf.mxu0  ;;  %v6930_v31 = vadd.f32 %v22960_v27, %v6817_v25  ;;  %v11325_v27 = vld [vmem:[%s22785_s4 + $0x350] sm:$0xff] }
 0xb9b   :  { %v14691_v50 = vpop.f32.mrf.mxu1  ;;  %v6611_v62 = vadd.f32 %v14638_v56, %v6401_v14  ;;  %v11324_v56 = vld [vmem:[%s22785_s4 + $0x348] sm:$0xff] }
 0xb9c   :  { %v6929_v9 = vadd.f32 %v22961_v17, %v6816_v23  ;;  %v6819_v57 = vadd.f32 %v14691_v50, %v6609_v42  ;;  %7016 = vrot.lane.b32.xlu1 %v20343_v38, %s15669_s1  ;;  %v20360_v40 = vmax.f32 %v6930_v31, 0.0  ;;  %v6587_v30 = vpop.f32.mrf.mxu0  ;;  %v11326_v42 = vld [vmem:[%s22785_s4 + $0x358] sm:$0xff] }
 0xb9d   :  { %v6787_v47 = vpop.f32.mrf.mxu1  ;;  %v6610_v4 = vadd.f32 %v6587_v30, %v6400_v12 }
 0xb9e   :  { %v20354_v6 = vmax.f32 %v6929_v9, 0.0  ;;  %v6818_v39 = vadd.f32 %v6787_v47, %v6608_v3  ;;  %7018 = vrot.lane.b32.xlu0 %v20348_v52, %s15669_s1  ;;  %v6932_v54 = vadd.f32 %v22964_v58, %v6819_v57  ;;  %v11322_v3 = vld [vmem:[%s22785_s4 + $0x338] sm:$0xff]  ;;  %v11323_v9 = vld [vmem:[%s22785_s4 + $0x340] sm:$0xff]  ;;  %v11320_v47 = vld [vmem:[%s22785_s4 + $0x328] sm:$0xff] }
 0xb9f   :  { %v14694_v32 = vpop.f32.mrf.mxu1 }
 0xba0   :  { %v6931_v34 = vadd.f32 %v22965_v20, %v6818_v39  ;;  %v6821_v2 = vadd.f32 %v14694_v32, %v6611_v62  ;;  %7020 = vrot.lane.b32.xlu1 %v20354_v6, %s15669_s1  ;;  %v20371_v51 = vmax.f32 %v6932_v54, 0.0  ;;  %v11321_v39 = vld [vmem:[%s22785_s4 + $0x330] sm:$0xff]  ;;  %v11319_v32 = vld [vmem:[%s22785_s4 + $0x320] sm:$0xff]  ;;  %v11316_v54 = vld [vmem:[%s22785_s4 + $0x308] sm:$0xff] }
 0xba1   :  { %v6797_v48 = vpop.f32.mrf.mxu1 }
 0xba2   :  { %v20367_v1 = vmax.f32 %v6931_v34, 0.0  ;;  %7022 = vrot.lane.b32.xlu0 %v20360_v40, %s15669_s1  ;;  %v6934_v22 = vadd.f32 %v22967_v11, %v6821_v2  ;;  %v6820_v19 = vadd.f32 %v6797_v48, %v6610_v4  ;;  %v11317_v34 = vld [vmem:[%s22785_s4 + $0x310] sm:$0xff] }
 0xba4   :  { %7024 = vrot.lane.b32.xlu1 %v20367_v1, %s15669_s1  ;;  %v20378_v63 = vmax.f32 %v6934_v22, 0.0  ;;  %v6933_v45 = vadd.f32 %v22968_v15, %v6820_v19 }
 0xba6   :  { %7026 = vrot.lane.b32.xlu0 %v20371_v51, %s15669_s1  ;;  %v20387_v41 = vmax.f32 %v6933_v45, 0.0 }
 0xba8   :  { %6975 = vrot.lane.b32.xlu1 %v20367_v1, %s15670_s12 }
 0xbaa   :  { %7030 = vrot.lane.b32.xlu0 %v20378_v63, %s15669_s1 }
 0xbac   :  { %6981 = vrot.lane.b32.xlu1 %v20378_v63, %s15670_s12 }
 0xbae   :  { %6977 = vrot.lane.b32.xlu0 %v20371_v51, %s15670_s12 }
 0xbb0   :  { %7028 = vrot.lane.b32.xlu1 %v20387_v41, %s15669_s1 }
 0xbb2   :  { %6973 = vrot.lane.b32.xlu0 %v20360_v40, %s15670_s12 }
 0xbb4   :  { %6971 = vrot.lane.b32.xlu1 %v20354_v6, %s15670_s12 }
 0xbb6   :  { %6969 = vrot.lane.b32.xlu0 %v20348_v52, %s15670_s12 }
 0xbb8   :  { %6967 = vrot.lane.b32.xlu1 %v20343_v38, %s15670_s12 }
 0xbba   :  { %6965 = vrot.lane.b32.xlu0 %v20335_v24, %s15670_s12 }
 0xbbc   :  { %6963 = vrot.lane.b32.xlu1 %v20327_v53, %s15670_s12 }
 0xbbe   :  { %6961 = vrot.lane.b32.xlu0 %v20318_v28, %s15670_s12 }
 0xbc0   :  { %6959 = vrot.lane.b32.xlu1 %v20311_v49, %s15670_s12 }
 0xbc2   :  { %6957 = vrot.lane.b32.xlu0 %v20303_v59, %s15670_s12 }
 0xbc4   :  { %6955 = vrot.lane.b32.xlu1 %v20295_v43, %s15670_s12 }
 0xbc6   :  { %6953 = vrot.lane.b32.xlu0 %v20280_v16, %s15670_s12 }
 0xbc8   :  { %6951 = vrot.lane.b32.xlu1 %v20290_v7, %s15670_s12 }
 0xbca   :  { %7547 = vrot.lane.b32.xlu0 %v20378_v63, %s15671_s15 }
 0xbcc   :  { %6979 = vrot.lane.b32.xlu1 %v20387_v41, %s15670_s12 }
 0xbce   :  { %7757 = vrot.lane.b32.xlu0 %v20378_v63, %s15672_s16 }
 0xbd0   :  { %7543 = vrot.lane.b32.xlu1 %v20371_v51, %s15671_s15 }
 0xbd2   :  { %7753 = vrot.lane.b32.xlu0 %v20371_v51, %s15672_s16 }
 0xbd4   :  { %7541 = vrot.lane.b32.xlu1 %v20367_v1, %s15671_s15 }
 0xbd6   :  { %7751 = vrot.lane.b32.xlu0 %v20367_v1, %s15672_s16 }
 0xbd8   :  { %7539 = vrot.lane.b32.xlu1 %v20360_v40, %s15671_s15 }
 0xbda   :  { %7749 = vrot.lane.b32.xlu0 %v20360_v40, %s15672_s16 }
 0xbdc   :  { %7537 = vrot.lane.b32.xlu1 %v20354_v6, %s15671_s15 }
 0xbde   :  { %7747 = vrot.lane.b32.xlu0 %v20354_v6, %s15672_s16 }
 0xbe0   :  { %7535 = vrot.lane.b32.xlu1 %v20348_v52, %s15671_s15 }
 0xbe2   :  { %7745 = vrot.lane.b32.xlu0 %v20348_v52, %s15672_s16 }
 0xbe4   :  { %7533 = vrot.lane.b32.xlu1 %v20343_v38, %s15671_s15 }
 0xbe6   :  { %7743 = vrot.lane.b32.xlu0 %v20343_v38, %s15672_s16 }
 0xbe8   :  { %7531 = vrot.lane.b32.xlu1 %v20335_v24, %s15671_s15 }
 0xbea   :  { %7755 = vrot.lane.b32.xlu0 %v20387_v41, %s15672_s16 }
 0xbec   :  { %7545 = vrot.lane.b32.xlu1 %v20387_v41, %s15671_s15 }
 0xbee   :  { %7741 = vrot.lane.b32.xlu0 %v20335_v24, %s15672_s16 }
 0xbf0   :  { %7529 = vrot.lane.b32.xlu1 %v20327_v53, %s15671_s15 }
 0xbf2   :  { %7739 = vrot.lane.b32.xlu0 %v20327_v53, %s15672_s16 }
 0xbf4   :  { %7527 = vrot.lane.b32.xlu1 %v20318_v28, %s15671_s15 }
 0xbf6   :  { %7737 = vrot.lane.b32.xlu0 %v20318_v28, %s15672_s16 }
 0xbf8   :  { %7525 = vrot.lane.b32.xlu1 %v20311_v49, %s15671_s15 }
 0xbfa   :  { %7735 = vrot.lane.b32.xlu0 %v20311_v49, %s15672_s16 }
 0xbfc   :  { %7523 = vrot.lane.b32.xlu1 %v20303_v59, %s15671_s15  ;;  %v20475_v55 = vpop.permute.xlu0 %7002 }
 0xbfe   :  { %7733 = vrot.lane.b32.xlu0 %v20303_v59, %s15672_s16 }
 0xc00   :  { %7521 = vrot.lane.b32.xlu1 %v20295_v43, %s15671_s15  ;;  %v20481_v35 = vpop.permute.xlu0 %7000 }
 0xc02   :  { %v20483_v26 = vpop.permute.xlu1 %7004  ;;  %7731 = vrot.lane.b32.xlu0 %v20295_v43, %s15672_s16 }
 0xc04   :  { %7519 = vrot.lane.b32.xlu1 %v20280_v16, %s15671_s15  ;;  %v20489_v61 = vpop.permute.xlu0 %7006 }
 0xc06   :  { %v20491_v25 = vpop.permute.xlu1 %7008  ;;  %7729 = vrot.lane.b32.xlu0 %v20280_v16, %s15672_s16 }
 0xc08   :  { %7517 = vrot.lane.b32.xlu1 %v20290_v7, %s15671_s15  ;;  %v20500_v0 = vpop.permute.xlu0 %7010 }
 0xc0a   :  { %v20502_v36 = vpop.permute.xlu1 %7012  ;;  %8031 = vperm.xlu0 %15666, %v11330_v21  }
 0xc0c   :  { %7727 = vrot.lane.b32.xlu1 %v20290_v7, %s15672_s16  ;;  %v20509_v13 = vpop.permute.xlu0 %7014 }
 0xc0e   :  { %v7017_v46 = vpop.permute.xlu1 %7016  ;;  %8021 = vperm.xlu0 %15666, %v11328_v18  }
 0xc10   :  { %8026 = vperm.xlu1 %15667, %v11329_v60   ;;  %v7019_v23 = vpop.permute.xlu0 %7018 }
 0xc12   :  { %v7021_v14 = vpop.permute.xlu1 %7020  ;;  %8011 = vperm.xlu0 %15666, %v11326_v42  }
 0xc14   :  { %8016 = vperm.xlu1 %15667, %v11327_v29   ;;  %v7023_v50 = vpop.permute.xlu0 %7022 }
 0xc16   :  { %v7025_v31 = vpop.permute.xlu1 %7024  ;;  %8001 = vperm.xlu0 %15666, %v11324_v56  }
 0xc18   :  { %8006 = vperm.xlu1 %15667, %v11325_v27   ;;  %v7027_v17 = vpop.permute.xlu0 %7026 }
 0xc1a   :  { %v20532_v57 = vpop.permute.xlu1 %6975  ;;  %7991 = vperm.xlu0 %15666, %v11322_v3   ;;  %v11238_v3 = vld [vmem:[%s22784_s3 + $0xf18] sm:$0xff] }
 0xc1c   :  { %7996 = vperm.xlu1 %15667, %v11323_v9   ;;  %v7031_v62 = vpop.permute.xlu0 %7030 }
 0xc1d   :  { %14695 = vmatprep.subr.mxu0 %v7031_v62 }
 0xc1e   :  { %v6982_v37 = vpop.permute.xlu1 %6981  ;;  %7981 = vperm.xlu0 %15666, %v11320_v47   ;;  %14696 = vmatpush3.msra.mxu0 %v7031_v62  ;;  %v11269_v47 = vld [vmem:[%s22784_s3 + $0x1010] sm:$0xff]  ;;  %v11270_v62 = vld [vmem:[%s22784_s3 + $0x1018] sm:$0xff] }
 0xc1f   :  { %14751 = vmatprep.subr.mxu1 %v6982_v37 }
 0xc20   :  { %14752 = vmatpush3.msra.mxu1 %v6982_v37  ;;  %7986 = vperm.xlu1 %15667, %v11321_v39   ;;  %v20543_v10 = vpop.permute.xlu0 %6977 }
 0xc22   :  { %v7029_v58 = vpop.permute.xlu1 %7028  ;;  %7971 = vperm.xlu0 %15666, %v11318_v8   ;;  %v11241_v8 = vld [vmem:[%s22784_s3 + $0xf30] sm:$0xff] }
 0xc23   :  { %14697 = vmatprep.subr.mxu0 %v7029_v58 }
 0xc24   :  { %7976 = vperm.xlu1 %15667, %v11319_v32   ;;  %14698 = vmatpush3.msra.mxu0 %v7029_v58  ;;  %v20551_v20 = vpop.permute.xlu0 %6973  ;;  %v11242_v32 = vld [vmem:[%s22784_s3 + $0xf38] sm:$0xff]  ;;  %v11272_v58 = vld [vmem:[%s22784_s3 + $0x1028] sm:$0xff] }
 0xc25   :  { %14699 = vmatprep.subr.mxu0 %v7027_v17 }
 0xc26   :  { %v20556_v2 = vpop.permute.xlu1 %6971  ;;  %7961 = vperm.xlu0 %15666, %v11316_v54   ;;  %14700 = vmatpush3.msra.mxu0 %v7027_v17  ;;  %v11268_v17 = vld [vmem:[%s22784_s3 + $0x1008] sm:$0xff] }
 0xc27   :  { %14701 = vmatprep.subr.mxu0 %v7025_v31 }
 0xc28   :  { %7966 = vperm.xlu1 %15667, %v11317_v34   ;;  %14702 = vmatpush3.msra.mxu0 %v7025_v31  ;;  %v20558_v30 = vpop.permute.xlu0 %6969  ;;  %v11237_v31 = vld [vmem:[%s22784_s3 + $0xf10] sm:$0xff]  ;;  %v11243_v34 = vld [vmem:[%s22784_s3 + $0xf40] sm:$0xff] }
 0xc29   :  { %14703 = vmatprep.subr.mxu0 %v7023_v50 }
 0xc2a   :  { %v20563_v12 = vpop.permute.xlu1 %6967  ;;  %14704 = vmatpush3.msra.mxu0 %v7023_v50  ;;  %v11236_v50 = vld [vmem:[%s22784_s3 + $0xf08] sm:$0xff] }
 0xc2b   :  { %14705 = vmatprep.subr.mxu0 %v7021_v14 }
 0xc2c   :  { %7956 = vperm.xlu1 %15667, %v11315_v5   ;;  %14706 = vmatpush3.msra.mxu0 %v7021_v14  ;;  %v20565_v48 = vpop.permute.xlu0 %6965  ;;  %v11264_v14 = vld [vmem:[%s22784_s3 + $0xfe8] sm:$0xff]  ;;  %v11274_v5 = vld [vmem:[%s22784_s3 + $0x1038] sm:$0xff] }
 0xc2d   :  { %14707 = vmatprep.subr.mxu0 %v7019_v23 }
 0xc2e   :  { %v20567_v4 = vpop.permute.xlu1 %6963  ;;  %14708 = vmatpush3.msra.mxu0 %v7019_v23  ;;  %v11262_v23 = vld [vmem:[%s22784_s3 + $0xfd8] sm:$0xff] }
 0xc2f   :  { %14709 = vmatprep.subr.mxu0 %v7017_v46 }
 0xc30   :  { %14710 = vmatpush3.msra.mxu0 %v7017_v46  ;;  %v20569_v11 = vpop.permute.xlu0 %6961 }
 0xc31   :  { %14711 = vmatprep.subr.mxu0 %v20509_v13 }
 0xc32   :  { %v20572_v22 = vpop.permute.xlu1 %6959  ;;  %14712 = vmatpush3.msra.mxu0 %v20509_v13 }
 0xc33   :  { %14713 = vmatprep.subr.mxu0 %v20502_v36 }
 0xc34   :  { %14714 = vmatpush3.msra.mxu0 %v20502_v36  ;;  %v20577_v19 = vpop.permute.xlu0 %6957 }
 0xc35   :  { %14715 = vmatprep.subr.mxu0 %v20500_v0 }
 0xc36   :  { %v20580_v15 = vpop.permute.xlu1 %6955  ;;  %14716 = vmatpush3.msra.mxu0 %v20500_v0 }
 0xc37   :  { %14717 = vmatprep.subr.mxu0 %v20491_v25 }
 0xc38   :  { %14718 = vmatpush3.msra.mxu0 %v20491_v25  ;;  %v20585_v45 = vpop.permute.xlu0 %6953  ;;  %v11252_v25 = vld [vmem:[%s22784_s3 + $0xf88] sm:$0xff] }
 0xc39   :  { %14719 = vmatprep.subr.mxu0 %v20489_v61 }
 0xc3a   :  { %v20588_v33 = vpop.permute.xlu1 %6951  ;;  %14720 = vmatpush3.msra.mxu0 %v20489_v61 }
 0xc3b   :  { %14721 = vmatprep.subr.mxu0 %v20483_v26 }
 0xc3c   :  { %14722 = vmatpush3.msra.mxu0 %v20483_v26  ;;  %v20593_v44 = vpop.permute.xlu0 %7547  ;;  %v11253_v26 = vld [vmem:[%s22784_s3 + $0xf90] sm:$0xff] }
 0xc3d   :  { %14723 = vmatprep.subr.mxu0 %v20475_v55 }
 0xc3e   :  { %v6980_v21 = vpop.permute.xlu1 %6979  ;;  %14724 = vmatpush3.msra.mxu0 %v20475_v55 }
 0xc3f   :  { %14725 = vmatprep.subr.mxu0 %v20481_v35  ;;  %14753 = vmatprep.subr.mxu1 %v6980_v21 }
 0xc40   :  { %14726 = vmatpush3.msra.mxu0 %v20481_v35  ;;  %14754 = vmatpush3.msra.mxu1 %v6980_v21  ;;  %v20602_v61 = vpop.permute.xlu0 %7757  ;;  %v11254_v35 = vld [vmem:[%s22784_s3 + $0xf98] sm:$0xff]  ;;  %v11248_v21 = vld [vmem:[%s22784_s3 + $0xf68] sm:$0xff] }
 0xc41   :  { %14728 = vmatmul.mubr.f32.vlgmr.msra.gmra.mxu0 %v11252_v25  ;;  %14755 = vmatprep.subr.mxu1 %v20543_v10  ;;  %v11278_v25 = vld [vmem:[%s22784_s3 + $0x1058] sm:$0xff] }
 0xc42   :  { %14807 = vmatprep.subr.mxu0 %v20378_v63  ;;  %v20609_v55 = vpop.permute.xlu1 %7543  ;;  %14756 = vmatpush3.msra.mxu1 %v20543_v10  ;;  %v11271_v10 = vld [vmem:[%s22784_s3 + $0x1020] sm:$0xff] }
 0xc43   :  { %14808 = vmatpush3.msra.mxu0 %v20378_v63  ;;  %14757 = vmatprep.subr.mxu1 %v20532_v57  ;;  %v11255_v63 = vld [vmem:[%s22784_s3 + $0xfa0] sm:$0xff] }
 0xc44   :  { %14809 = vmatprep.subr.mxu0 %v20387_v41  ;;  %14730 = vmatprep.mubr.f32.mxu0 %v11253_v26  ;;  %v20620_v0 = vpop.permute.xlu0 %7753 }
 0xc45   :  { %14758 = vmatpush3.msra.mxu1 %v20532_v57  ;;  %14810 = vmatpush3.msra.mxu0 %v20387_v41  ;;  %v11256_v41 = vld [vmem:[%s22784_s3 + $0xfa8] sm:$0xff]  ;;  %v11239_v57 = vld [vmem:[%s22784_s3 + $0xf20] sm:$0xff] }
 0xc46   :  { %14731 = vmatmul.mubr.f32.gmra.mxu0 %v11254_v35  ;;  %14759 = vmatprep.subr.mxu1 %v20551_v20  ;;  %v20623_v36 = vpop.permute.xlu1 %7541  ;;  %v11279_v35 = vld [vmem:[%s22784_s3 + $0x1060] sm:$0xff] }
 0xc47   :  { %14811 = vmatprep.subr.mxu0 %v20371_v51  ;;  %14760 = vmatpush3.msra.mxu1 %v20551_v20 }
 0xc48   :  { %14812 = vmatpush3.msra.mxu0 %v20371_v51  ;;  %14761 = vmatprep.subr.mxu1 %v20556_v2  ;;  %v11257_v51 = vld [vmem:[%s22784_s3 + $0xfb0] sm:$0xff]  ;;  %v20644_v13 = vpop.permute.xlu0 %7751 }
 0xc49   :  { %14813 = vmatprep.subr.mxu0 %v20367_v1  ;;  %14733 = vmatprep.mubr.f32.mxu0 %v11255_v63 }
 0xc4a   :  { %14762 = vmatpush3.msra.mxu1 %v20556_v2  ;;  %14814 = vmatpush3.msra.mxu0 %v20367_v1  ;;  %v20638_v18 = vpop.permute.xlu1 %7539  ;;  %v11258_v1 = vld [vmem:[%s22784_s3 + $0xfb8] sm:$0xff]  ;;  %v11273_v2 = vld [vmem:[%s22784_s3 + $0x1030] sm:$0xff] }
 0xc4b   :  { %14734 = vmatmul.mubr.f32.gmra.mxu0 %v11256_v41  ;;  %14763 = vmatprep.subr.mxu1 %v20558_v30 }
 0xc4c   :  { %14815 = vmatprep.subr.mxu0 %v20360_v40  ;;  %14764 = vmatpush3.msra.mxu1 %v20558_v30  ;;  %v20664_v46 = vpop.permute.xlu0 %7749  ;;  %v11244_v30 = vld [vmem:[%s22784_s3 + $0xf48] sm:$0xff] }
 0xc4d   :  { %14816 = vmatpush3.msra.mxu0 %v20360_v40  ;;  %14765 = vmatprep.subr.mxu1 %v20563_v12  ;;  %v11259_v40 = vld [vmem:[%s22784_s3 + $0xfc0] sm:$0xff] }
 0xc4e   :  { %14817 = vmatprep.subr.mxu0 %v20354_v6  ;;  %14736 = vmatprep.mubr.f32.mxu0 %v11257_v51  ;;  %v20654_v60 = vpop.permute.xlu1 %7537  ;;  %v11283_v51 = vld [vmem:[%s22784_s3 + $0x1080] sm:$0xff] }
 0xc4f   :  { %14766 = vmatpush3.msra.mxu1 %v20563_v12  ;;  %14818 = vmatpush3.msra.mxu0 %v20354_v6  ;;  %v11260_v6 = vld [vmem:[%s22784_s3 + $0xfc8] sm:$0xff] }
 0xc50   :  { %14737 = vmatmul.mubr.f32.gmra.mxu0 %v11258_v1  ;;  %14767 = vmatprep.subr.mxu1 %v20565_v48  ;;  %v11284_v1 = vld [vmem:[%s22784_s3 + $0x1088] sm:$0xff] }
 0xc51   :  { %14819 = vmatprep.subr.mxu0 %v20348_v52  ;;  %14768 = vmatpush3.msra.mxu1 %v20565_v48 }
 0xc52   :  { %14820 = vmatpush3.msra.mxu0 %v20348_v52  ;;  %14769 = vmatprep.subr.mxu1 %v20567_v4  ;;  %v20671_v42 = vpop.permute.xlu1 %7535  ;;  %v11261_v52 = vld [vmem:[%s22784_s3 + $0xfd0] sm:$0xff] }
 0xc53   :  { %14821 = vmatprep.subr.mxu0 %v20343_v38  ;;  %14739 = vmatprep.mubr.f32.mxu0 %v11259_v40  ;;  %v11299_v40 = vld [vmem:[%s22784_s3 + $0x1100] sm:$0xff] }
 0xc54   :  { %14770 = vmatpush3.msra.mxu1 %v20567_v4  ;;  %14822 = vmatpush3.msra.mxu0 %v20343_v38  ;;  %v20687_v38 = vpop.permute.xlu0 %7747  ;;  %v11245_v4 = vld [vmem:[%s22784_s3 + $0xf50] sm:$0xff] }
 0xc55   :  { %14740 = vmatmul.mubr.f32.gmra.mxu0 %v11260_v6  ;;  %14771 = vmatprep.subr.mxu1 %v20569_v11 }
 0xc56   :  { %14823 = vmatprep.subr.mxu0 %v20335_v24  ;;  %14772 = vmatpush3.msra.mxu1 %v20569_v11  ;;  %v20690_v29 = vpop.permute.xlu1 %7533  ;;  %v11275_v11 = vld [vmem:[%s22784_s3 + $0x1040] sm:$0xff] }
 0xc57   :  { %14824 = vmatpush3.msra.mxu0 %v20335_v24  ;;  %14773 = vmatprep.subr.mxu1 %v20572_v22  ;;  %v11263_v24 = vld [vmem:[%s22784_s3 + $0xfe0] sm:$0xff] }
 0xc58   :  { %14825 = vmatprep.subr.mxu0 %v20327_v53  ;;  %14742 = vmatprep.mubr.f32.mxu0 %v11261_v52  ;;  %v11300_v52 = vld [vmem:[%s22784_s3 + $0x1108] sm:$0xff] }
 0xc59   :  { %14774 = vmatpush3.msra.mxu1 %v20572_v22  ;;  %14826 = vmatpush3.msra.mxu0 %v20327_v53  ;;  %v20706_v53 = vpop.permute.xlu0 %7745  ;;  %v11246_v22 = vld [vmem:[%s22784_s3 + $0xf58] sm:$0xff] }
 0xc5a   :  { %14743 = vmatmul.mubr.f32.gmra.mxu0 %v11262_v23  ;;  %14775 = vmatprep.subr.mxu1 %v20577_v19  ;;  %v20710_v56 = vpop.permute.xlu1 %7531  ;;  %v11287_v23 = vld [vmem:[%s22784_s3 + $0x10a0] sm:$0xff] }
 0xc5b   :  { %14827 = vmatprep.subr.mxu0 %v20318_v28  ;;  %14776 = vmatpush3.msra.mxu1 %v20577_v19  ;;  %v11276_v19 = vld [vmem:[%s22784_s3 + $0x1048] sm:$0xff] }
 0xc5c   :  { %14828 = vmatpush3.msra.mxu0 %v20318_v28  ;;  %14777 = vmatprep.subr.mxu1 %v20580_v15  ;;  %v11265_v28 = vld [vmem:[%s22784_s3 + $0xff0] sm:$0xff] }
 0xc5d   :  { %14829 = vmatprep.subr.mxu0 %v20311_v49  ;;  %14745 = vmatprep.mubr.f32.mxu0 %v11263_v24  ;;  %v20729_v27 = vpop.permute.xlu0 %7743  ;;  %v11302_v24 = vld [vmem:[%s22784_s3 + $0x1118] sm:$0xff] }
 0xc5e   :  { %14778 = vmatpush3.msra.mxu1 %v20580_v15  ;;  %14830 = vmatpush3.msra.mxu0 %v20311_v49  ;;  %v11266_v49 = vld [vmem:[%s22784_s3 + $0xff8] sm:$0xff] }
 0xc5f   :  { %14746 = vmatmul.mubr.f32.gmra.mxu0 %v11264_v14  ;;  %14779 = vmatprep.subr.mxu1 %v20585_v45  ;;  %v11289_v14 = vld [vmem:[%s22784_s3 + $0x10b0] sm:$0xff] }
 0xc60   :  { %14831 = vmatprep.subr.mxu0 %v20303_v59  ;;  %14780 = vmatpush3.msra.mxu1 %v20585_v45 }
 0xc61   :  { %14832 = vmatpush3.msra.mxu0 %v20303_v59  ;;  %14781 = vmatprep.subr.mxu1 %v20588_v33  ;;  %v7546_v59 = vpop.permute.xlu1 %7545 }
 0xc62   :  { %14833 = vmatprep.subr.mxu0 %v20295_v43  ;;  %14748 = vmatprep.mubr.f32.mxu0 %v11265_v28  ;;  %v11304_v28 = vld [vmem:[%s22784_s3 + $0x1128] sm:$0xff] }
 0xc63   :  { %14782 = vmatpush3.msra.mxu1 %v20588_v33  ;;  %14834 = vmatpush3.msra.mxu0 %v20295_v43  ;;  %v11267_v43 = vld [vmem:[%s22784_s3 + $0x1000] sm:$0xff] }
 0xc64   :  { %14749 = vmatmul.mubr.f32.gmra.mxu0 %v11266_v49  ;;  %14784 = vmatmul.mubr.f32.vlgmr.msra.gmra.mxu1 %v11236_v50  ;;  %v11247_v33 = vld [vmem:[%s22784_s3 + $0xf60] sm:$0xff]  ;;  %v11305_v50 = vld [vmem:[%s22784_s3 + $0x1130] sm:$0xff] }
 0xc65   :  { %14835 = vmatprep.subr.mxu0 %v20280_v16  ;;  %14863 = vmatprep.subr.mxu1 %v20593_v44  ;;  %v20749_v9 = vpop.permute.xlu1 %7529  ;;  %v11291_v49 = vld [vmem:[%s22784_s3 + $0x10c0] sm:$0xff] }
 0xc66   :  { %14836 = vmatpush3.msra.mxu0 %v20280_v16  ;;  %14864 = vmatpush3.msra.mxu1 %v20593_v44  ;;  %v7756_v16 = vpop.permute.xlu0 %7755  ;;  %v11277_v44 = vld [vmem:[%s22784_s3 + $0x1050] sm:$0xff] }
 0xc67   :  { %14837 = vmatprep.subr.mxu0 %v20290_v7  ;;  %14865 = vmatprep.subr.mxu1 %v7546_v59 }
 0xc68   :  { %14786 = vmatprep.mubr.f32.mxu1 %v11237_v31  ;;  %14838 = vmatpush3.msra.mxu0 %v20290_v7  ;;  %v11240_v7 = vld [vmem:[%s22784_s3 + $0xf28] sm:$0xff]  ;;  %v11293_v31 = vld [vmem:[%s22784_s3 + $0x10d0] sm:$0xff] }
 0xc69   :  { %14839 = vmatprep.mubr.f32.mxu0 %v11267_v43  ;;  %14866 = vmatpush3.msra.mxu1 %v7546_v59  ;;  %v7528_v37 = vpop.permute.xlu1 %7527  ;;  %v11306_v59 = vld [vmem:[%s22784_s3 + $0x1138] sm:$0xff]  ;;  %v11307_v43 = vld [vmem:[%s22784_s3 + $0x1140] sm:$0xff] }
 0xc6a   :  { %14787 = vmatmul.mubr.f32.gmra.mxu1 %v11238_v3  ;;  %14840 = vmatmul.mubr.f32.vlgmr.msra.gmra.mxu0 %v11268_v17  ;;  %v7742_v39 = vpop.permute.xlu0 %7741  ;;  %v11294_v3 = vld [vmem:[%s22784_s3 + $0x10d8] sm:$0xff]  ;;  %v11308_v17 = vld [vmem:[%s22784_s3 + $0x1148] sm:$0xff] }
 0xc6b   :  { %14867 = vmatprep.subr.mxu1 %v20609_v55  ;;  %14919 = vmatprep.subr.mxu0 %v20602_v61 }
 0xc6c   :  { %14868 = vmatpush3.msra.mxu1 %v20609_v55  ;;  %14920 = vmatpush3.msra.mxu0 %v20602_v61  ;;  %v11249_v55 = vld [vmem:[%s22784_s3 + $0xf70] sm:$0xff] }
 0xc6d   :  { %14869 = vmatprep.subr.mxu1 %v20623_v36  ;;  %14921 = vmatprep.subr.mxu0 %v7756_v16  ;;  %v7526_v20 = vpop.permute.xlu1 %7525 }
 0xc6e   :  { %14789 = vmatprep.mubr.f32.mxu1 %v11239_v57  ;;  %14842 = vmatprep.mubr.f32.mxu0 %v11269_v47  ;;  %v7740_v54 = vpop.permute.xlu0 %7739  ;;  %v11296_v57 = vld [vmem:[%s22784_s3 + $0x10e8] sm:$0xff]  ;;  %v11310_v47 = vld [vmem:[%s22784_s3 + $0x1158] sm:$0xff] }
 0xc6f   :  { %14870 = vmatpush3.msra.mxu1 %v20623_v36  ;;  %14922 = vmatpush3.msra.mxu0 %v7756_v16  ;;  %v11280_v36 = vld [vmem:[%s22784_s3 + $0x1068] sm:$0xff]  ;;  %v11295_v16 = vld [vmem:[%s22784_s3 + $0x10e0] sm:$0xff] }
 0xc70   :  { %14790 = vmatmul.mubr.f32.gmra.mxu1 %v11240_v7  ;;  %14843 = vmatmul.mubr.f32.gmra.mxu0 %v11270_v62  ;;  %v11297_v7 = vld [vmem:[%s22784_s3 + $0x10f0] sm:$0xff]  ;;  %v11311_v62 = vld [vmem:[%s22784_s3 + $0x1160] sm:$0xff] }
 0xc71   :  { %14871 = vmatprep.subr.mxu1 %v20638_v18  ;;  %14923 = vmatprep.subr.mxu0 %v20620_v0  ;;  %v7524_v48 = vpop.permute.xlu1 %7523 }
 0xc72   :  { %14872 = vmatpush3.msra.mxu1 %v20638_v18  ;;  %14924 = vmatpush3.msra.mxu0 %v20620_v0  ;;  %v7738_v12 = vpop.permute.xlu0 %7737  ;;  %v11250_v0 = vld [vmem:[%s22784_s3 + $0xf78] sm:$0xff]  ;;  %v11281_v18 = vld [vmem:[%s22784_s3 + $0x1070] sm:$0xff] }
 0xc73   :  { %14873 = vmatprep.subr.mxu1 %v20654_v60  ;;  %14925 = vmatprep.subr.mxu0 %v20644_v13 }
 0xc74   :  { %14792 = vmatprep.mubr.f32.mxu1 %v11241_v8  ;;  %14845 = vmatprep.mubr.f32.mxu0 %v11271_v10  ;;  %v11313_v8 = vld [vmem:[%s22784_s3 + $0x1170] sm:$0xff]  ;;  %v11314_v10 = vld [vmem:[%s22784_s3 + $0x1178] sm:$0xff] }
 0xc75   :  { %14874 = vmatpush3.msra.mxu1 %v20654_v60  ;;  %14926 = vmatpush3.msra.mxu0 %v20644_v13  ;;  %v7522_v45 = vpop.permute.xlu1 %7521  ;;  %v11282_v13 = vld [vmem:[%s22784_s3 + $0x1078] sm:$0xff]  ;;  %v11285_v60 = vld [vmem:[%s22784_s3 + $0x1090] sm:$0xff] }
 0xc76   :  { %14793 = vmatmul.mubr.f32.gmra.mxu1 %v11242_v32  ;;  %14846 = vmatmul.mubr.f32.gmra.mxu0 %v11272_v58  ;;  %v7736_v15 = vpop.permute.xlu0 %7735 }
 0xc77   :  { %14875 = vmatprep.subr.mxu1 %v20671_v42  ;;  %14927 = vmatprep.subr.mxu0 %v20664_v46 }
 0xc78   :  { %14876 = vmatpush3.msra.mxu1 %v20671_v42  ;;  %14928 = vmatpush3.msra.mxu0 %v20664_v46  ;;  %v11286_v42 = vld [vmem:[%s22784_s3 + $0x1098] sm:$0xff] }
 0xc79   :  { %14877 = vmatprep.subr.mxu1 %v20690_v29  ;;  %14929 = vmatprep.subr.mxu0 %v20687_v38  ;;  %v7520_v26 = vpop.permute.xlu1 %7519 }
 0xc7a   :  { %14795 = vmatprep.mubr.f32.mxu1 %v11243_v34  ;;  %14848 = vmatprep.mubr.f32.mxu0 %v11273_v2  ;;  %v7734_v61 = vpop.permute.xlu0 %7733 }
 0xc7b   :  { %14878 = vmatpush3.msra.mxu1 %v20690_v29  ;;  %14930 = vmatpush3.msra.mxu0 %v20687_v38  ;;  %v11301_v38 = vld [vmem:[%s22784_s3 + $0x1110] sm:$0xff]  ;;  %v11288_v29 = vld [vmem:[%s22784_s3 + $0x10a8] sm:$0xff] }
 0xc7c   :  { %14796 = vmatmul.mubr.f32.gmra.mxu1 %v11244_v30  ;;  %14849 = vmatmul.mubr.f32.gmra.mxu0 %v11274_v5 }
 0xc7d   :  { %14879 = vmatprep.subr.mxu1 %v20710_v56  ;;  %14931 = vmatprep.subr.mxu0 %v20706_v53  ;;  %v7518_v41 = vpop.permute.xlu1 %7517 }
 0xc7e   :  { %14880 = vmatpush3.msra.mxu1 %v20710_v56  ;;  %14932 = vmatpush3.msra.mxu0 %v20706_v53  ;;  %v7732_v63 = vpop.permute.xlu0 %7731  ;;  %v11303_v53 = vld [vmem:[%s22784_s3 + $0x1120] sm:$0xff]  ;;  %v11290_v56 = vld [vmem:[%s22784_s3 + $0x10b8] sm:$0xff] }
 0xc7f   :  { %14881 = vmatprep.subr.mxu1 %v20749_v9  ;;  %14933 = vmatprep.subr.mxu0 %v20729_v27 }
 0xc80   :  { %14798 = vmatprep.mubr.f32.mxu1 %v11245_v4  ;;  %14851 = vmatprep.mubr.f32.mxu0 %v11275_v11 }
 0xc81   :  { %14882 = vmatpush3.msra.mxu1 %v20749_v9  ;;  %14934 = vmatpush3.msra.mxu0 %v20729_v27  ;;  %v7728_v6 = vpop.permute.xlu1 %7727  ;;  %v11292_v27 = vld [vmem:[%s22784_s3 + $0x10c8] sm:$0xff]  ;;  %v11309_v9 = vld [vmem:[%s22784_s3 + $0x1150] sm:$0xff] }
 0xc82   :  { %14799 = vmatmul.mubr.f32.gmra.mxu1 %v11246_v22  ;;  %14852 = vmatmul.mubr.f32.gmra.mxu0 %v11276_v19  ;;  %v7730_v46 = vpop.permute.xlu0 %7729 }
 0xc83   :  { %14883 = vmatprep.subr.mxu1 %v7528_v37  ;;  %14935 = vmatprep.subr.mxu0 %v7742_v39 }
 0xc84   :  { %14884 = vmatpush3.msra.mxu1 %v7528_v37  ;;  %14936 = vmatpush3.msra.mxu0 %v7742_v39  ;;  %v11298_v39 = vld [vmem:[%s22784_s3 + $0x10f8] sm:$0xff]  ;;  %v11312_v37 = vld [vmem:[%s22784_s3 + $0x1168] sm:$0xff] }
 0xc85   :  { %14885 = vmatprep.subr.mxu1 %v7526_v20  ;;  %14937 = vmatprep.subr.mxu0 %v7740_v54 }
 0xc86   :  { %14801 = vmatprep.mubr.f32.mxu1 %v11247_v33  ;;  %14854 = vmatprep.mubr.f32.mxu0 %v11277_v44 }
 0xc87   :  { %14886 = vmatpush3.msra.mxu1 %v7526_v20  ;;  %14938 = vmatpush3.msra.mxu0 %v7740_v54 }
 0xc88   :  { %14802 = vmatmul.mubr.f32.gmra.mxu1 %v11248_v21  ;;  %14855 = vmatmul.mubr.f32.gmra.mxu0 %v11278_v25 }
 0xc89   :  { %14887 = vmatprep.subr.mxu1 %v7524_v48  ;;  %14939 = vmatprep.subr.mxu0 %v7738_v12 }
 0xc8a   :  { %14888 = vmatpush3.msra.mxu1 %v7524_v48  ;;  %14940 = vmatpush3.msra.mxu0 %v7738_v12 }
 0xc8b   :  { %14889 = vmatprep.subr.mxu1 %v7522_v45  ;;  %14941 = vmatprep.subr.mxu0 %v7736_v15 }
 0xc8c   :  { %14804 = vmatprep.mubr.f32.mxu1 %v11249_v55  ;;  %14857 = vmatprep.mubr.f32.mxu0 %v11279_v35 }
 0xc8d   :  { %14890 = vmatpush3.msra.mxu1 %v7522_v45  ;;  %14942 = vmatpush3.msra.mxu0 %v7736_v15 }
 0xc8e   :  { %14805 = vmatmul.mubr.f32.gmra.mxu1 %v11250_v0  ;;  %14858 = vmatmul.mubr.f32.gmra.mxu0 %v11280_v36  ;;  %v20983_v0 = vpop.permute.xlu0 %8031 }
 0xc8f   :  { %14891 = vmatprep.subr.mxu1 %v7520_v26  ;;  %14943 = vmatprep.subr.mxu0 %v7734_v61  ;;  %22971 = vst [vmem:[#allocation15_spill] sm:$0xff] %v20983_v0 }
 0xc90   :  { %14892 = vmatpush3.msra.mxu1 %v7520_v26  ;;  %14944 = vmatpush3.msra.mxu0 %v7734_v61 }
 0xc91   :  { %14893 = vmatprep.subr.mxu1 %v7518_v41  ;;  %14945 = vmatprep.subr.mxu0 %v7732_v63 }
 0xc92   :  { %14860 = vmatprep.mubr.f32.mxu0 %v11281_v18  ;;  %14894 = vmatpush3.msra.mxu1 %v7518_v41  ;;  %v20985_v41 = vpop.permute.xlu1 %8026 }
 0xc93   :  { %14895 = vmatprep.mubr.f32.mxu1 %v11283_v51  ;;  %14946 = vmatpush3.msra.mxu0 %v7732_v63  ;;  %22972 = vst [vmem:[#allocation12_spill] sm:$0xff] %v20985_v41 }
 0xc94   :  { %14861 = vmatmul.mubr.f32.gmra.mxu0 %v11282_v13  ;;  %14896 = vmatmul.mubr.f32.vlgmr.msra.gmra.mxu1 %v11284_v1  ;;  %v20989_v13 = vpop.permute.xlu0 %8021 }
 0xc95   :  { %14947 = vmatprep.subr.mxu0 %v7730_v46  ;;  %14898 = vmatprep.mubr.f32.mxu1 %v11285_v60  ;;  %22973 = vst [vmem:[#allocation14_spill] sm:$0xff] %v20989_v13 }
 0xc96   :  { %14948 = vmatpush3.msra.mxu0 %v7730_v46  ;;  %14951 = vmatprep.mubr.f32.mxu0 %v11299_v40  ;;  %v20995_v40 = vpop.permute.xlu1 %8016 }
 0xc97   :  { %14949 = vmatprep.subr.mxu0 %v7728_v6  ;;  %22974 = vst [vmem:[#allocation9_spill] sm:$0xff] %v20995_v40 }
 0xc98   :  { %14950 = vmatpush3.msra.mxu0 %v7728_v6  ;;  %14899 = vmatmul.mubr.f32.gmra.mxu1 %v11286_v42  ;;  %v21001_v42 = vpop.permute.xlu0 %8011 }
 0xc99   :  { %14952 = vmatmul.mubr.f32.vlgmr.msra.gmra.mxu0 %v11300_v52  ;;  %14901 = vmatprep.mubr.f32.mxu1 %v11287_v23  ;;  %22975 = vst [vmem:[#allocation8_spill] sm:$0xff] %v21001_v42 }
 0xc9a   :  { %14954 = vmatprep.mubr.f32.mxu0 %v11301_v38  ;;  %v21007_v38 = vpop.permute.xlu1 %8006 }
 0xc9b   :  { %22976 = vst [vmem:[#allocation2_spill] sm:$0xff] %v21007_v38 }
 0xc9c   :  { %14902 = vmatmul.mubr.f32.gmra.mxu1 %v11288_v29 }
 0xc9d   :  { %14955 = vmatmul.mubr.f32.gmra.mxu0 %v11302_v24  ;;  %14904 = vmatprep.mubr.f32.mxu1 %v11289_v14  ;;  %v21013_v14 = vpop.permute.xlu0 %8001 }
 0xc9e   :  { %14957 = vmatprep.mubr.f32.mxu0 %v11303_v53  ;;  %22977 = vst [vmem:[#allocation4_spill] sm:$0xff] %v21013_v14 }
 0xca0   :  { %14905 = vmatmul.mubr.f32.gmra.mxu1 %v11290_v56 }
 0xca1   :  { %14958 = vmatmul.mubr.f32.gmra.mxu0 %v11304_v28  ;;  %14907 = vmatprep.mubr.f32.mxu1 %v11291_v49  ;;  %v21019_v28 = vpop.permute.xlu1 %7996 }
 0xca2   :  { %14960 = vmatprep.mubr.f32.mxu0 %v11305_v50  ;;  %22978 = vst [vmem:[#allocation11_spill] sm:$0xff] %v21019_v28 }
 0xca4   :  { %14908 = vmatmul.mubr.f32.gmra.mxu1 %v11292_v27  ;;  %v21025_v27 = vpop.permute.xlu0 %7991 }
 0xca5   :  { %14961 = vmatmul.mubr.f32.gmra.mxu0 %v11306_v59  ;;  %14910 = vmatprep.mubr.f32.mxu1 %v11293_v31 }
 0xca6   :  { %14963 = vmatprep.mubr.f32.mxu0 %v11307_v43  ;;  %v21031_v43 = vpop.permute.xlu1 %7986 }
 0xca8   :  { %14911 = vmatmul.mubr.f32.gmra.mxu1 %v11294_v3 }
 0xca9   :  { %14964 = vmatmul.mubr.f32.gmra.mxu0 %v11308_v17  ;;  %14913 = vmatprep.mubr.f32.mxu1 %v11295_v16  ;;  %v21037_v16 = vpop.permute.xlu0 %7981 }
 0xcaa   :  { %14966 = vmatprep.mubr.f32.mxu0 %v11309_v9 }
 0xcac   :  { %14914 = vmatmul.mubr.f32.gmra.mxu1 %v11296_v57 }
 0xcad   :  { %14967 = vmatmul.mubr.f32.gmra.mxu0 %v11310_v47  ;;  %14916 = vmatprep.mubr.f32.mxu1 %v11297_v7  ;;  %v21043_v47 = vpop.permute.xlu1 %7976 }
 0xcae   :  { %14969 = vmatprep.mubr.f32.mxu0 %v11311_v62 }
 0xcb0   :  { %14917 = vmatmul.mubr.f32.gmra.mxu1 %v11298_v39 }
 0xcb1   :  { %14970 = vmatmul.mubr.f32.gmra.mxu0 %v11312_v37  ;;  %v7972_v37 = vpop.permute.xlu0 %7971  ;;  %v7967_v40 = vpop.permute.xlu1 %7966 }
 0xcb2   :  { %14972 = vmatprep.mubr.f32.mxu0 %v11313_v8 }
 0xcb5   :  { %14973 = vmatmul.mubr.f32.gmra.mxu0 %v11314_v10 }
 0xd01   :  { %v14729_v32 = vpop.f32.mrf.mxu0 }
 0xd03   :  { %v7115_v58 = vpop.f32.mrf.mxu0 }
 0xd06   :  { %v20955_v54 = vpop.f32.mrf.mxu0 }
 0xd08   :  { %v20957_v20 = vpop.f32.mrf.mxu0 }
 0xd0b   :  { %v20959_v34 = vpop.f32.mrf.mxu0 }
 0xd0d   :  { %v20961_v2 = vpop.f32.mrf.mxu0 }
 0xd10   :  { %v20963_v30 = vpop.f32.mrf.mxu0 }
 0xd12   :  { %v20965_v5 = vpop.f32.mrf.mxu0 }
 0xd15   :  { %v20967_v12 = vpop.f32.mrf.mxu0 }
 0xd17   :  { %v20969_v48 = vpop.f32.mrf.mxu0 }
 0xd1a   :  { %v20971_v4 = vpop.f32.mrf.mxu0 }
 0xd1c   :  { %v20973_v11 = vpop.f32.mrf.mxu0 }
 0xd1f   :  { %v20975_v22 = vpop.f32.mrf.mxu0 }
 0xd21   :  { %v20977_v19 = vpop.f32.mrf.mxu0 }
 0xd24   :  { %v20979_v15 = vpop.f32.mrf.mxu0  ;;  %v14785_v45 = vpop.f32.mrf.mxu1 }
 0xd25   :  { %22969 = vst [vmem:[#allocation7_spill] sm:$0xff] %v20979_v15  ;;  %v7266_v7 = vadd.f32 %v14785_v45, %v14729_v32  ;;  %v7962_v15 = vpop.permute.xlu0 %7961 }
 0xd26   :  { %v20981_v33 = vpop.f32.mrf.mxu0  ;;  %v7260_v44 = vpop.f32.mrf.mxu1 }
 0xd27   :  { %22970 = vst [vmem:[#allocation10_spill] sm:$0xff] %v20981_v33  ;;  %v7261_v8 = vadd.f32 %v7260_v44, %v7115_v58 }
 0xd2a   :  { %v14788_v21 = vpop.f32.mrf.mxu1  ;;  %v14841_v25 = vpop.f32.mrf.mxu0 }
 0xd2b   :  { %v7502_v10 = vadd.f32 %v14841_v25, %v7266_v7  ;;  %v7276_v13 = vadd.f32 %v14788_v21, %v20955_v54  ;;  %v7957_v54 = vpop.permute.xlu1 %7956 }
 0xd2c   :  { %v7270_v61 = vpop.f32.mrf.mxu1  ;;  %v7422_v26 = vpop.f32.mrf.mxu0 }
 0xd2d   :  { %v7501_v33 = vadd.f32 %v7422_v26, %v7261_v8 }
 0xd30   :  { %v14791_v55 = vpop.f32.mrf.mxu1  ;;  %v14844_v35 = vpop.f32.mrf.mxu0 }
 0xd31   :  { %v7286_v58 = vadd.f32 %v14791_v55, %v20959_v34 }
 0xd32   :  { %v7280_v36 = vpop.f32.mrf.mxu1  ;;  %v7432_v63 = vpop.f32.mrf.mxu0 }
 0xd33   :  { %v7281_v21 = vadd.f32 %v7280_v36, %v20961_v2 }
 0xd36   :  { %v20987_v18 = vpop.f32.mrf.mxu1  ;;  %v14847_v51 = vpop.f32.mrf.mxu0 }
 0xd37   :  { %v7506_v26 = vadd.f32 %v14847_v51, %v7286_v58  ;;  %v7296_v34 = vadd.f32 %v20987_v18, %v20963_v30 }
 0xd38   :  { %v20991_v1 = vpop.f32.mrf.mxu1  ;;  %v20993_v60 = vpop.f32.mrf.mxu0 }
 0xd39   :  { %v7505_v55 = vadd.f32 %v20993_v60, %v7281_v21  ;;  %v7291_v36 = vadd.f32 %v20991_v1, %v20965_v5 }
 0xd3c   :  { %v20997_v46 = vpop.f32.mrf.mxu1  ;;  %v20999_v6 = vpop.f32.mrf.mxu0 }
 0xd3e   :  { %v21003_v52 = vpop.f32.mrf.mxu1  ;;  %v21005_v23 = vpop.f32.mrf.mxu0 }
 0xd42   :  { %v21009_v29 = vpop.f32.mrf.mxu1  ;;  %v21011_v24 = vpop.f32.mrf.mxu0 }
 0xd44   :  { %v21015_v53 = vpop.f32.mrf.mxu1  ;;  %v21017_v56 = vpop.f32.mrf.mxu0 }
 0xd48   :  { %v21021_v49 = vpop.f32.mrf.mxu1  ;;  %v21023_v50 = vpop.f32.mrf.mxu0 }
 0xd4a   :  { %v21027_v59 = vpop.f32.mrf.mxu1  ;;  %v21029_v31 = vpop.f32.mrf.mxu0 }
 0xd4e   :  { %v21033_v3 = vpop.f32.mrf.mxu1  ;;  %v21035_v17 = vpop.f32.mrf.mxu0 }
 0xd4f   :  { %22979 = vst [vmem:[#allocation6_spill] sm:$0xff] %v21033_v3  ;;  %v7504_v3 = vadd.f32 %v14844_v35, %v7276_v13 }
 0xd50   :  { %v21039_v9 = vpop.f32.mrf.mxu1  ;;  %v21041_v57 = vpop.f32.mrf.mxu0 }
 0xd51   :  { %22980 = vst [vmem:[#allocation13_spill] sm:$0xff] %v21039_v9  ;;  %22981 = vst [vmem:[#allocation3_spill] sm:$0xff] %v21041_v57  ;;  %v7271_v57 = vadd.f32 %v7270_v61, %v20957_v20 }
 0xd53   :  { %v7503_v25 = vadd.f32 %v7432_v63, %v7271_v57 }
 0xd54   :  { %v21045_v62 = vpop.f32.mrf.mxu0  ;;  %v14897_v39 = vpop.f32.mrf.mxu1 }
 0xd55   :  { %22982 = vst [vmem:[#allocation5_spill] sm:$0xff] %v21045_v62  ;;  %v7712_v38 = vadd.f32 %v14897_v39, %v7502_v10 }
 0xd56   :  { %v21047_v41 = vpop.f32.mrf.mxu0  ;;  %v7632_v0 = vpop.f32.mrf.mxu1 }
 0xd57   :  { %22983 = vst [vmem:[#allocation16_spill] sm:$0xff] %v21047_v41  ;;  %v7711_v32 = vadd.f32 %v7632_v0, %v7501_v33 }
 0xd58   :  { %v14900_v9 = vpop.f32.mrf.mxu1 }
 0xd59   :  { %v14953_v42 = vpop.f32.mrf.mxu0  ;;  %v7714_v7 = vadd.f32 %v14900_v9, %v7504_v3  ;;  %v7507_v3 = vadd.f32 %v21005_v23, %v7291_v36  ;;  %v22987_v36 = vld [vmem:[#allocation6_spill] sm:$0xff] }
 0xd5a   :  { %v7922_v45 = vadd.f32 %v14953_v42, %v7712_v38  ;;  %v7642_v62 = vpop.f32.mrf.mxu1 }
 0xd5b   :  { %v7842_v44 = vpop.f32.mrf.mxu0  ;;  %v7713_v20 = vadd.f32 %v7642_v62, %v7503_v25 }
 0xd5c   :  { %v8035_v41 = vadd.f32 %v7962_v15, %v7922_v45  ;;  %v7921_v28 = vadd.f32 %v7842_v44, %v7711_v32  ;;  %v14903_v14 = vpop.f32.mrf.mxu1  ;;  %v7316_v45 = vadd.f32 %v21009_v29, %v20971_v4 }
 0xd5d   :  { %v14956_v39 = vpop.f32.mrf.mxu0  ;;  %v7716_v15 = vadd.f32 %v14903_v14, %v7506_v26  ;;  %v7306_v14 = vadd.f32 %v20997_v46, %v20967_v12 }
 0xd5e   :  { %v21053_v8 = vmax.f32 %v8035_v41, 0.0  ;;  %v8034_v33 = vadd.f32 %v7957_v54, %v7921_v28  ;;  %v7924_v61 = vadd.f32 %v14956_v39, %v7714_v7  ;;  %v7652_v35 = vpop.f32.mrf.mxu1  ;;  %v7508_v41 = vadd.f32 %v20999_v6, %v7296_v34 }
 0xd5f   :  { %v7852_v0 = vpop.f32.mrf.mxu0  ;;  %v7715_v51 = vadd.f32 %v7652_v35, %v7505_v55  ;;  %v7301_v6 = vadd.f32 %v21003_v52, %v20969_v48  ;;  %v7512_v25 = vadd.f32 %v21023_v50, %v7316_v45  ;;  %v7326_v39 = vadd.f32 %v21021_v49, %v20975_v22  ;;  %v22984_v35 = vld [vmem:[#allocation4_spill] sm:$0xff] }
 0xd60   :  { %v7923_v63 = vadd.f32 %v7852_v0, %v7713_v20  ;;  %8117 = vrot.lane.b32.xlu0 %v21053_v8, %s15669_s1  ;;  %v14906_v2 = vpop.f32.mrf.mxu1  ;;  %v21063_v42 = vmax.f32 %v8034_v33, 0.0  ;;  %v8037_v38 = vadd.f32 %v7972_v37, %v7924_v61 }
 0xd61   :  { %v14959_v13 = vpop.f32.mrf.mxu0  ;;  %v7718_v57 = vadd.f32 %v14906_v2, %v7508_v41  ;;  %v7509_v48 = vadd.f32 %v21017_v56, %v7301_v6  ;;  %v7514_v61 = vadd.f32 %v21035_v17, %v7326_v39  ;;  %v22986_v2 = vld [vmem:[#allocation7_spill] sm:$0xff] }
 0xd62   :  { %v8036_v30 = vadd.f32 %v7967_v40, %v7923_v63  ;;  %v7926_v18 = vadd.f32 %v14959_v13, %v7716_v15  ;;  %v7662_v60 = vpop.f32.mrf.mxu1  ;;  %v7510_v40 = vadd.f32 %v21011_v24, %v7306_v14  ;;  %v21076_v12 = vmax.f32 %v8037_v38, 0.0 }
 0xd63   :  { %v7862_v28 = vpop.f32.mrf.mxu0  ;;  %v7717_v46 = vadd.f32 %v7662_v60, %v7507_v3  ;;  %v7336_v41 = vadd.f32 %v22987_v36, %v22986_v2  ;;  %v22990_v3 = vld [vmem:[#allocation8_spill] sm:$0xff] }
 0xd64   :  { %v21068_v9 = vmax.f32 %v8036_v30, 0.0  ;;  %v7925_v5 = vadd.f32 %v7862_v28, %v7715_v51  ;;  %8115 = vrot.lane.b32.xlu0 %v21063_v42, %s15669_s1  ;;  %v14909_v1 = vpop.f32.mrf.mxu1  ;;  %v8039_v62 = vadd.f32 %v21037_v16, %v7926_v18  ;;  %v22989_v30 = vld [vmem:[#allocation5_spill] sm:$0xff] }
 0xd65   :  { %v14962_v37 = vpop.f32.mrf.mxu0  ;;  %v7720_v24 = vadd.f32 %v14909_v1, %v7510_v40  ;;  %v7516_v18 = vadd.f32 %v22989_v30, %v7336_v41  ;;  %v22991_v1 = vld [vmem:[#allocation2_spill] sm:$0xff]  ;;  %v11424_v41 = vld [vmem:[%s22785_s4 + $0x3e8] sm:$0xff] }
 0xd66   :  { %v8038_v23 = vadd.f32 %v21043_v47, %v7925_v5  ;;  %v7928_v10 = vadd.f32 %v14962_v37, %v7718_v57  ;;  %8119 = vrot.lane.b32.xlu1 %v21068_v9, %s15669_s1  ;;  %v7672_v32 = vpop.f32.mrf.mxu1  ;;  %v7311_v47 = vadd.f32 %v21015_v53, %v20973_v11  ;;  %v21091_v7 = vmax.f32 %v8039_v62, 0.0  ;;  %v11423_v30 = vld [vmem:[%s22785_s4 + $0x3e0] sm:$0xff] }
 0xd67   :  { %v7872_v58 = vpop.f32.mrf.mxu0  ;;  %v7719_v29 = vadd.f32 %v7672_v32, %v7509_v48  ;;  %v22993_v32 = vld [vmem:[#allocation13_spill] sm:$0xff] }
 0xd68   :  { %v21084_v52 = vmax.f32 %v8038_v23, 0.0  ;;  %v7927_v16 = vadd.f32 %v7872_v58, %v7717_v46  ;;  %8121 = vrot.lane.b32.xlu0 %v21076_v12, %s15669_s1  ;;  %v14912_v44 = vpop.f32.mrf.mxu1  ;;  %v8041_v4 = vadd.f32 %v21025_v27, %v7928_v10  ;;  %v7511_v11 = vadd.f32 %v21029_v31, %v7311_v47  ;;  %v22985_v31 = vld [vmem:[#allocation11_spill] sm:$0xff]  ;;  %v22992_v10 = vld [vmem:[#allocation10_spill] sm:$0xff] }
 0xd69   :  { %v14965_v54 = vpop.f32.mrf.mxu0  ;;  %v7722_v50 = vadd.f32 %v14912_v44, %v7512_v25  ;;  %v7331_v45 = vadd.f32 %v22993_v32, %v22992_v10  ;;  %v22995_v44 = vld [vmem:[#allocation9_spill] sm:$0xff] }
 0xd6a   :  { %v8040_v56 = vadd.f32 %v21031_v43, %v7927_v16  ;;  %v7930_v21 = vadd.f32 %v14965_v54, %v7720_v24  ;;  %8123 = vrot.lane.b32.xlu1 %v21084_v52, %s15669_s1  ;;  %v7682_v26 = vpop.f32.mrf.mxu1  ;;  %v7321_v43 = vadd.f32 %v21027_v59, %v20977_v19  ;;  %v21108_v22 = vmax.f32 %v8041_v4, 0.0  ;;  %v22988_v19 = vld [vmem:[#allocation3_spill] sm:$0xff]  ;;  %v22994_v24 = vld [vmem:[#allocation14_spill] sm:$0xff]  ;;  %v22996_v4 = vld [vmem:[#allocation16_spill] sm:$0xff] }
 0xd6b   :  { %v7882_v20 = vpop.f32.mrf.mxu0  ;;  %v7721_v49 = vadd.f32 %v7682_v26, %v7511_v11  ;;  %v11414_v32 = vld [vmem:[%s22785_s4 + $0x398] sm:$0xff] }
 0xd6c   :  { %v21100_v53 = vmax.f32 %v8040_v56, 0.0  ;;  %v7929_v33 = vadd.f32 %v7882_v20, %v7719_v29  ;;  %8125 = vrot.lane.b32.xlu0 %v21091_v7, %s15669_s1  ;;  %v14915_v27 = vpop.f32.mrf.mxu1  ;;  %v8043_v34 = vadd.f32 %v22984_v35, %v7930_v21  ;;  %v7513_v59 = vadd.f32 %v22988_v19, %v7321_v43  ;;  %v22997_v20 = vld [vmem:[#allocation15_spill] sm:$0xff]  ;;  %v11347_v35 = vld [vmem:[%s22784_s3 + $0x1200] sm:$0xff]  ;;  %v11425_v19 = vld [vmem:[%s22785_s4 + $0x3f0] sm:$0xff] }
 0xd6d   :  { %v14968_v55 = vpop.f32.mrf.mxu0  ;;  %v7724_v13 = vadd.f32 %v14915_v27, %v7514_v61  ;;  %v7515_v29 = vadd.f32 %v22996_v4, %v7331_v45  ;;  %v22998_v27 = vld [vmem:[#allocation12_spill] sm:$0xff]  ;;  %15007 = vmatprep.mubr.f32.mxu1 %v11347_v35  ;;  %v11411_v4 = vld [vmem:[%s22785_s4 + $0x380] sm:$0xff] }
 0xd6e   :  { %v8042_v0 = vadd.f32 %v22985_v31, %v7929_v33  ;;  %v7932_v15 = vadd.f32 %v14968_v55, %v7722_v50  ;;  %8127 = vrot.lane.b32.xlu1 %v21100_v53, %s15669_s1  ;;  %v7692_v63 = vpop.f32.mrf.mxu1  ;;  %v21121_v60 = vmax.f32 %v8043_v34, 0.0  ;;  %v11331_v34 = vld [vmem:[%s22784_s3 + $0x1180] sm:$0xff] }
 0xd6f   :  { %v7892_v51 = vpop.f32.mrf.mxu0  ;;  %v7723_v5 = vadd.f32 %v7692_v63, %v7513_v59  ;;  %15063 = vmatprep.mubr.f32.mxu0 %v11331_v34  ;;  %v11426_v63 = vld [vmem:[%s22785_s4 + $0x3f8] sm:$0xff] }
 0xd70   :  { %v21116_v17 = vmax.f32 %v8042_v0, 0.0  ;;  %v7931_v38 = vadd.f32 %v7892_v51, %v7721_v49  ;;  %8129 = vrot.lane.b32.xlu0 %v21108_v22, %s15669_s1  ;;  %v14918_v14 = vpop.f32.mrf.mxu1  ;;  %v8045_v57 = vadd.f32 %v22990_v3, %v7932_v15  ;;  %v11421_v3 = vld [vmem:[%s22785_s4 + $0x3d0] sm:$0xff] }
 0xd71   :  { %v14971_v28 = vpop.f32.mrf.mxu0  ;;  %v7726_v46 = vadd.f32 %v14918_v14, %v7516_v18  ;;  %v11420_v14 = vld [vmem:[%s22785_s4 + $0x3c8] sm:$0xff] }
 0xd72   :  { %v8044_v6 = vadd.f32 %v22991_v1, %v7931_v38  ;;  %v7934_v40 = vadd.f32 %v14971_v28, %v7724_v13  ;;  %8131 = vrot.lane.b32.xlu1 %v21116_v17, %s15669_s1  ;;  %v21133_v48 = vmax.f32 %v8045_v57, 0.0  ;;  %v7702_v54 = vpop.f32.mrf.mxu1  ;;  %v11422_v13 = vld [vmem:[%s22785_s4 + $0x3d8] sm:$0xff] }
 0xd73   :  { %v7902_v62 = vpop.f32.mrf.mxu0  ;;  %v7725_v39 = vadd.f32 %v7702_v54, %v7515_v29 }
 0xd74   :  { %v21127_v37 = vmax.f32 %v8044_v6, 0.0  ;;  %v7933_v23 = vadd.f32 %v7902_v62, %v7723_v5  ;;  %8133 = vrot.lane.b32.xlu0 %v21121_v60, %s15669_s1  ;;  %v8047_v16 = vadd.f32 %v22994_v24, %v7934_v40  ;;  %v11418_v5 = vld [vmem:[%s22785_s4 + $0x3b8] sm:$0xff]  ;;  %v11419_v6 = vld [vmem:[%s22785_s4 + $0x3c0] sm:$0xff]  ;;  %v11416_v62 = vld [vmem:[%s22785_s4 + $0x3a8] sm:$0xff] }
 0xd75   :  { %v14974_v58 = vpop.f32.mrf.mxu0 }
 0xd76   :  { %v8046_v47 = vadd.f32 %v22995_v44, %v7933_v23  ;;  %v7936_v25 = vadd.f32 %v14974_v58, %v7726_v46  ;;  %8135 = vrot.lane.b32.xlu1 %v21127_v37, %s15669_s1  ;;  %v21144_v26 = vmax.f32 %v8047_v16, 0.0  ;;  %v11417_v23 = vld [vmem:[%s22785_s4 + $0x3b0] sm:$0xff]  ;;  %v11415_v58 = vld [vmem:[%s22785_s4 + $0x3a0] sm:$0xff]  ;;  %v11412_v16 = vld [vmem:[%s22785_s4 + $0x388] sm:$0xff] }
 0xd77   :  { %v7912_v21 = vpop.f32.mrf.mxu0 }
 0xd78   :  { %v21140_v56 = vmax.f32 %v8046_v47, 0.0  ;;  %8137 = vrot.lane.b32.xlu0 %v21133_v48, %s15669_s1  ;;  %v8049_v11 = vadd.f32 %v22997_v20, %v7936_v25  ;;  %v7935_v50 = vadd.f32 %v7912_v21, %v7725_v39  ;;  %v11413_v47 = vld [vmem:[%s22785_s4 + $0x390] sm:$0xff] }
 0xd7a   :  { %8139 = vrot.lane.b32.xlu1 %v21140_v56, %s15669_s1  ;;  %v21151_v33 = vmax.f32 %v8049_v11, 0.0  ;;  %v8048_v43 = vadd.f32 %v22998_v27, %v7935_v50 }
 0xd7c   :  { %8141 = vrot.lane.b32.xlu0 %v21144_v26, %s15669_s1  ;;  %v21160_v61 = vmax.f32 %v8048_v43, 0.0 }
 0xd7e   :  { %8090 = vrot.lane.b32.xlu1 %v21140_v56, %s15670_s12 }
 0xd80   :  { %8145 = vrot.lane.b32.xlu0 %v21151_v33, %s15669_s1 }
 0xd82   :  { %8096 = vrot.lane.b32.xlu1 %v21151_v33, %s15670_s12 }
 0xd84   :  { %8092 = vrot.lane.b32.xlu0 %v21144_v26, %s15670_s12 }
 0xd86   :  { %8143 = vrot.lane.b32.xlu1 %v21160_v61, %s15669_s1 }
 0xd88   :  { %8088 = vrot.lane.b32.xlu0 %v21133_v48, %s15670_s12 }
 0xd8a   :  { %8086 = vrot.lane.b32.xlu1 %v21127_v37, %s15670_s12 }
 0xd8c   :  { %8084 = vrot.lane.b32.xlu0 %v21121_v60, %s15670_s12 }
 0xd8e   :  { %8082 = vrot.lane.b32.xlu1 %v21116_v17, %s15670_s12 }
 0xd90   :  { %8080 = vrot.lane.b32.xlu0 %v21108_v22, %s15670_s12 }
 0xd92   :  { %8078 = vrot.lane.b32.xlu1 %v21100_v53, %s15670_s12 }
 0xd94   :  { %8076 = vrot.lane.b32.xlu0 %v21091_v7, %s15670_s12 }
 0xd96   :  { %8074 = vrot.lane.b32.xlu1 %v21084_v52, %s15670_s12 }
 0xd98   :  { %8072 = vrot.lane.b32.xlu0 %v21076_v12, %s15670_s12 }
 0xd9a   :  { %8070 = vrot.lane.b32.xlu1 %v21068_v9, %s15670_s12 }
 0xd9c   :  { %8068 = vrot.lane.b32.xlu0 %v21053_v8, %s15670_s12 }
 0xd9e   :  { %8066 = vrot.lane.b32.xlu1 %v21063_v42, %s15670_s12 }
 0xda0   :  { %8662 = vrot.lane.b32.xlu0 %v21151_v33, %s15671_s15 }
 0xda2   :  { %8094 = vrot.lane.b32.xlu1 %v21160_v61, %s15670_s12 }
 0xda4   :  { %8872 = vrot.lane.b32.xlu0 %v21151_v33, %s15672_s16 }
 0xda6   :  { %8658 = vrot.lane.b32.xlu1 %v21144_v26, %s15671_s15 }
 0xda8   :  { %8868 = vrot.lane.b32.xlu0 %v21144_v26, %s15672_s16 }
 0xdaa   :  { %8656 = vrot.lane.b32.xlu1 %v21140_v56, %s15671_s15 }
 0xdac   :  { %8866 = vrot.lane.b32.xlu0 %v21140_v56, %s15672_s16 }
 0xdae   :  { %8654 = vrot.lane.b32.xlu1 %v21133_v48, %s15671_s15 }
 0xdb0   :  { %8864 = vrot.lane.b32.xlu0 %v21133_v48, %s15672_s16 }
 0xdb2   :  { %8652 = vrot.lane.b32.xlu1 %v21127_v37, %s15671_s15 }
 0xdb4   :  { %8862 = vrot.lane.b32.xlu0 %v21127_v37, %s15672_s16 }
 0xdb6   :  { %8650 = vrot.lane.b32.xlu1 %v21121_v60, %s15671_s15 }
 0xdb8   :  { %8860 = vrot.lane.b32.xlu0 %v21121_v60, %s15672_s16 }
 0xdba   :  { %8648 = vrot.lane.b32.xlu1 %v21116_v17, %s15671_s15 }
 0xdbc   :  { %8858 = vrot.lane.b32.xlu0 %v21116_v17, %s15672_s16 }
 0xdbe   :  { %8646 = vrot.lane.b32.xlu1 %v21108_v22, %s15671_s15 }
 0xdc0   :  { %8870 = vrot.lane.b32.xlu0 %v21160_v61, %s15672_s16 }
 0xdc2   :  { %8660 = vrot.lane.b32.xlu1 %v21160_v61, %s15671_s15 }
 0xdc4   :  { %8856 = vrot.lane.b32.xlu0 %v21108_v22, %s15672_s16 }
 0xdc6   :  { %8644 = vrot.lane.b32.xlu1 %v21100_v53, %s15671_s15 }
 0xdc8   :  { %8854 = vrot.lane.b32.xlu0 %v21100_v53, %s15672_s16 }
 0xdca   :  { %8642 = vrot.lane.b32.xlu1 %v21091_v7, %s15671_s15 }
 0xdcc   :  { %8852 = vrot.lane.b32.xlu0 %v21091_v7, %s15672_s16 }
 0xdce   :  { %8640 = vrot.lane.b32.xlu1 %v21084_v52, %s15671_s15 }
 0xdd0   :  { %8850 = vrot.lane.b32.xlu0 %v21084_v52, %s15672_s16 }
 0xdd2   :  { %8638 = vrot.lane.b32.xlu1 %v21076_v12, %s15671_s15  ;;  %v21248_v55 = vpop.permute.xlu0 %8117 }
 0xdd4   :  { %8848 = vrot.lane.b32.xlu0 %v21076_v12, %s15672_s16 }
 0xdd6   :  { %8636 = vrot.lane.b32.xlu1 %v21068_v9, %s15671_s15  ;;  %v21254_v49 = vpop.permute.xlu0 %8115 }
 0xdd8   :  { %v21256_v31 = vpop.permute.xlu1 %8119  ;;  %8846 = vrot.lane.b32.xlu0 %v21068_v9, %s15672_s16 }
 0xdda   :  { %8634 = vrot.lane.b32.xlu1 %v21053_v8, %s15671_s15  ;;  %v21262_v0 = vpop.permute.xlu0 %8121 }
 0xddc   :  { %v21264_v15 = vpop.permute.xlu1 %8123  ;;  %8844 = vrot.lane.b32.xlu0 %v21053_v8, %s15672_s16 }
 0xdde   :  { %8632 = vrot.lane.b32.xlu1 %v21063_v42, %s15671_s15  ;;  %v21273_v2 = vpop.permute.xlu0 %8125 }
 0xde0   :  { %v21275_v36 = vpop.permute.xlu1 %8127  ;;  %9146 = vperm.xlu0 %15666, %v11426_v63  }
 0xde2   :  { %8842 = vrot.lane.b32.xlu1 %v21063_v42, %s15672_s16  ;;  %v21282_v51 = vpop.permute.xlu0 %8129 }
 0xde4   :  { %v8132_v59 = vpop.permute.xlu1 %8131  ;;  %9136 = vperm.xlu0 %15666, %v11424_v41  }
 0xde6   :  { %9141 = vperm.xlu1 %15667, %v11425_v19   ;;  %v8134_v38 = vpop.permute.xlu0 %8133 }
 0xde8   :  { %v8136_v18 = vpop.permute.xlu1 %8135  ;;  %9126 = vperm.xlu0 %15666, %v11422_v13  }
 0xdea   :  { %9131 = vperm.xlu1 %15667, %v11423_v30   ;;  %v8138_v28 = vpop.permute.xlu0 %8137 }
 0xdec   :  { %v8140_v57 = vpop.permute.xlu1 %8139  ;;  %9116 = vperm.xlu0 %15666, %v11420_v14  }
 0xdee   :  { %9121 = vperm.xlu1 %15667, %v11421_v3   ;;  %v8142_v1 = vpop.permute.xlu0 %8141 }
 0xdf0   :  { %v21305_v40 = vpop.permute.xlu1 %8090  ;;  %9106 = vperm.xlu0 %15666, %v11418_v5   ;;  %v11334_v5 = vld [vmem:[%s22784_s3 + $0x1198] sm:$0xff] }
 0xdf2   :  { %9111 = vperm.xlu1 %15667, %v11419_v6   ;;  %v8146_v46 = vpop.permute.xlu0 %8145 }
 0xdf3   :  { %14975 = vmatprep.subr.mxu1 %v8146_v46 }
 0xdf4   :  { %v8097_v10 = vpop.permute.xlu1 %8096  ;;  %9096 = vperm.xlu0 %15666, %v11416_v62   ;;  %14976 = vmatpush3.msra.mxu1 %v8146_v46  ;;  %v11365_v62 = vld [vmem:[%s22784_s3 + $0x1290] sm:$0xff]  ;;  %v11366_v46 = vld [vmem:[%s22784_s3 + $0x1298] sm:$0xff] }
 0xdf5   :  { %15031 = vmatprep.subr.mxu0 %v8097_v10 }
 0xdf6   :  { %15032 = vmatpush3.msra.mxu0 %v8097_v10  ;;  %9101 = vperm.xlu1 %15667, %v11417_v23   ;;  %v21316_v45 = vpop.permute.xlu0 %8092 }
 0xdf8   :  { %v8144_v24 = vpop.permute.xlu1 %8143  ;;  %9086 = vperm.xlu0 %15666, %v11414_v32   ;;  %v11337_v32 = vld [vmem:[%s22784_s3 + $0x11b0] sm:$0xff] }
 0xdf9   :  { %14977 = vmatprep.subr.mxu1 %v8144_v24 }
 0xdfa   :  { %9091 = vperm.xlu1 %15667, %v11415_v58   ;;  %14978 = vmatpush3.msra.mxu1 %v8144_v24  ;;  %v21324_v44 = vpop.permute.xlu0 %8088  ;;  %v11338_v58 = vld [vmem:[%s22784_s3 + $0x11b8] sm:$0xff]  ;;  %v11368_v24 = vld [vmem:[%s22784_s3 + $0x12a8] sm:$0xff] }
 0xdfb   :  { %14979 = vmatprep.subr.mxu1 %v8142_v1 }
 0xdfc   :  { %v21329_v25 = vpop.permute.xlu1 %8086  ;;  %9076 = vperm.xlu0 %15666, %v11412_v16   ;;  %14980 = vmatpush3.msra.mxu1 %v8142_v1  ;;  %v11364_v1 = vld [vmem:[%s22784_s3 + $0x1288] sm:$0xff] }
 0xdfd   :  { %14981 = vmatprep.subr.mxu1 %v8140_v57 }
 0xdfe   :  { %9081 = vperm.xlu1 %15667, %v11413_v47   ;;  %14982 = vmatpush3.msra.mxu1 %v8140_v57  ;;  %v21331_v54 = vpop.permute.xlu0 %8084  ;;  %v11333_v57 = vld [vmem:[%s22784_s3 + $0x1190] sm:$0xff]  ;;  %v11339_v47 = vld [vmem:[%s22784_s3 + $0x11c0] sm:$0xff] }
 0xdff   :  { %14983 = vmatprep.subr.mxu1 %v8138_v28 }
 0xe00   :  { %v21336_v29 = vpop.permute.xlu1 %8082  ;;  %14984 = vmatpush3.msra.mxu1 %v8138_v28  ;;  %v11332_v28 = vld [vmem:[%s22784_s3 + $0x1188] sm:$0xff] }
 0xe01   :  { %14985 = vmatprep.subr.mxu1 %v8136_v18 }
 0xe02   :  { %9071 = vperm.xlu1 %15667, %v11411_v4   ;;  %14986 = vmatpush3.msra.mxu1 %v8136_v18  ;;  %v21338_v21 = vpop.permute.xlu0 %8080  ;;  %v11360_v18 = vld [vmem:[%s22784_s3 + $0x1268] sm:$0xff]  ;;  %v11370_v4 = vld [vmem:[%s22784_s3 + $0x12b8] sm:$0xff] }
 0xe03   :  { %14987 = vmatprep.subr.mxu1 %v8134_v38 }
 0xe04   :  { %v21340_v39 = vpop.permute.xlu1 %8078  ;;  %14988 = vmatpush3.msra.mxu1 %v8134_v38  ;;  %v11358_v38 = vld [vmem:[%s22784_s3 + $0x1258] sm:$0xff] }
 0xe05   :  { %14989 = vmatprep.subr.mxu1 %v8132_v59 }
 0xe06   :  { %14990 = vmatpush3.msra.mxu1 %v8132_v59  ;;  %v21342_v20 = vpop.permute.xlu0 %8076 }
 0xe07   :  { %14991 = vmatprep.subr.mxu1 %v21282_v51 }
 0xe08   :  { %v21345_v11 = vpop.permute.xlu1 %8074  ;;  %14992 = vmatpush3.msra.mxu1 %v21282_v51 }
 0xe09   :  { %14993 = vmatprep.subr.mxu1 %v21275_v36 }
 0xe0a   :  { %14994 = vmatpush3.msra.mxu1 %v21275_v36  ;;  %v21350_v50 = vpop.permute.xlu0 %8072 }
 0xe0b   :  { %14995 = vmatprep.subr.mxu1 %v21273_v2 }
 0xe0c   :  { %v21353_v27 = vpop.permute.xlu1 %8070  ;;  %14996 = vmatpush3.msra.mxu1 %v21273_v2 }
 0xe0d   :  { %14997 = vmatprep.subr.mxu1 %v21264_v15 }
 0xe0e   :  { %14998 = vmatpush3.msra.mxu1 %v21264_v15  ;;  %v21358_v43 = vpop.permute.xlu0 %8068  ;;  %v11348_v15 = vld [vmem:[%s22784_s3 + $0x1208] sm:$0xff] }
 0xe0f   :  { %14999 = vmatprep.subr.mxu1 %v21262_v0 }
 0xe10   :  { %v21361_v35 = vpop.permute.xlu1 %8066  ;;  %15000 = vmatpush3.msra.mxu1 %v21262_v0 }
 0xe11   :  { %15001 = vmatprep.subr.mxu1 %v21256_v31 }
 0xe12   :  { %15002 = vmatpush3.msra.mxu1 %v21256_v31  ;;  %v21366_v34 = vpop.permute.xlu0 %8662  ;;  %v11349_v31 = vld [vmem:[%s22784_s3 + $0x1210] sm:$0xff] }
 0xe13   :  { %15003 = vmatprep.subr.mxu1 %v21248_v55 }
 0xe14   :  { %v8095_v63 = vpop.permute.xlu1 %8094  ;;  %15004 = vmatpush3.msra.mxu1 %v21248_v55 }
 0xe15   :  { %15005 = vmatprep.subr.mxu1 %v21254_v49  ;;  %15033 = vmatprep.subr.mxu0 %v8095_v63 }
 0xe16   :  { %15006 = vmatpush3.msra.mxu1 %v21254_v49  ;;  %15034 = vmatpush3.msra.mxu0 %v8095_v63  ;;  %v21375_v0 = vpop.permute.xlu0 %8872  ;;  %v11350_v49 = vld [vmem:[%s22784_s3 + $0x1218] sm:$0xff]  ;;  %v11344_v63 = vld [vmem:[%s22784_s3 + $0x11e8] sm:$0xff] }
 0xe17   :  { %15008 = vmatmul.mubr.f32.vlgmr.msra.gmra.mxu1 %v11348_v15  ;;  %15035 = vmatprep.subr.mxu0 %v21316_v45  ;;  %v11374_v15 = vld [vmem:[%s22784_s3 + $0x12d8] sm:$0xff] }
 0xe18   :  { %15087 = vmatprep.subr.mxu1 %v21151_v33  ;;  %v21382_v55 = vpop.permute.xlu1 %8658  ;;  %15036 = vmatpush3.msra.mxu0 %v21316_v45  ;;  %v11367_v45 = vld [vmem:[%s22784_s3 + $0x12a0] sm:$0xff] }
 0xe19   :  { %15088 = vmatpush3.msra.mxu1 %v21151_v33  ;;  %15037 = vmatprep.subr.mxu0 %v21305_v40  ;;  %v11351_v33 = vld [vmem:[%s22784_s3 + $0x1220] sm:$0xff] }
 0xe1a   :  { %15089 = vmatprep.subr.mxu1 %v21160_v61  ;;  %15010 = vmatprep.mubr.f32.mxu1 %v11349_v31  ;;  %v21393_v2 = vpop.permute.xlu0 %8868 }
 0xe1b   :  { %15038 = vmatpush3.msra.mxu0 %v21305_v40  ;;  %15090 = vmatpush3.msra.mxu1 %v21160_v61  ;;  %v11352_v61 = vld [vmem:[%s22784_s3 + $0x1228] sm:$0xff]  ;;  %v11335_v40 = vld [vmem:[%s22784_s3 + $0x11a0] sm:$0xff] }
 0xe1c   :  { %15011 = vmatmul.mubr.f32.gmra.mxu1 %v11350_v49  ;;  %15039 = vmatprep.subr.mxu0 %v21324_v44  ;;  %v21396_v36 = vpop.permute.xlu1 %8656  ;;  %v11375_v49 = vld [vmem:[%s22784_s3 + $0x12e0] sm:$0xff] }
 0xe1d   :  { %15091 = vmatprep.subr.mxu1 %v21144_v26  ;;  %15040 = vmatpush3.msra.mxu0 %v21324_v44 }
 0xe1e   :  { %15092 = vmatpush3.msra.mxu1 %v21144_v26  ;;  %15041 = vmatprep.subr.mxu0 %v21329_v25  ;;  %v11353_v26 = vld [vmem:[%s22784_s3 + $0x1230] sm:$0xff]  ;;  %v21417_v51 = vpop.permute.xlu0 %8866 }
 0xe1f   :  { %15093 = vmatprep.subr.mxu1 %v21140_v56  ;;  %15013 = vmatprep.mubr.f32.mxu1 %v11351_v33 }
 0xe20   :  { %15042 = vmatpush3.msra.mxu0 %v21329_v25  ;;  %15094 = vmatpush3.msra.mxu1 %v21140_v56  ;;  %v21411_v41 = vpop.permute.xlu1 %8654  ;;  %v11354_v56 = vld [vmem:[%s22784_s3 + $0x1238] sm:$0xff]  ;;  %v11369_v25 = vld [vmem:[%s22784_s3 + $0x12b0] sm:$0xff] }
 0xe21   :  { %15014 = vmatmul.mubr.f32.gmra.mxu1 %v11352_v61  ;;  %15043 = vmatprep.subr.mxu0 %v21331_v54 }
 0xe22   :  { %15095 = vmatprep.subr.mxu1 %v21133_v48  ;;  %15044 = vmatpush3.msra.mxu0 %v21331_v54  ;;  %v21437_v59 = vpop.permute.xlu0 %8864  ;;  %v11340_v54 = vld [vmem:[%s22784_s3 + $0x11c8] sm:$0xff] }
 0xe23   :  { %15096 = vmatpush3.msra.mxu1 %v21133_v48  ;;  %15045 = vmatprep.subr.mxu0 %v21336_v29  ;;  %v11355_v48 = vld [vmem:[%s22784_s3 + $0x1240] sm:$0xff] }
 0xe24   :  { %15097 = vmatprep.subr.mxu1 %v21127_v37  ;;  %15016 = vmatprep.mubr.f32.mxu1 %v11353_v26  ;;  %v21427_v19 = vpop.permute.xlu1 %8652  ;;  %v11379_v26 = vld [vmem:[%s22784_s3 + $0x1300] sm:$0xff] }
 0xe25   :  { %15046 = vmatpush3.msra.mxu0 %v21336_v29  ;;  %15098 = vmatpush3.msra.mxu1 %v21127_v37  ;;  %v11356_v37 = vld [vmem:[%s22784_s3 + $0x1248] sm:$0xff] }
 0xe26   :  { %15017 = vmatmul.mubr.f32.gmra.mxu1 %v11354_v56  ;;  %15047 = vmatprep.subr.mxu0 %v21338_v21  ;;  %v11380_v56 = vld [vmem:[%s22784_s3 + $0x1308] sm:$0xff] }
 0xe27   :  { %15099 = vmatprep.subr.mxu1 %v21121_v60  ;;  %15048 = vmatpush3.msra.mxu0 %v21338_v21 }
 0xe28   :  { %15100 = vmatpush3.msra.mxu1 %v21121_v60  ;;  %15049 = vmatprep.subr.mxu0 %v21340_v39  ;;  %v21444_v13 = vpop.permute.xlu1 %8650  ;;  %v11357_v60 = vld [vmem:[%s22784_s3 + $0x1250] sm:$0xff] }
 0xe29   :  { %15101 = vmatprep.subr.mxu1 %v21116_v17  ;;  %15019 = vmatprep.mubr.f32.mxu1 %v11355_v48  ;;  %v11395_v48 = vld [vmem:[%s22784_s3 + $0x1380] sm:$0xff] }
 0xe2a   :  { %15050 = vmatpush3.msra.mxu0 %v21340_v39  ;;  %15102 = vmatpush3.msra.mxu1 %v21116_v17  ;;  %v21460_v17 = vpop.permute.xlu0 %8862  ;;  %v11341_v39 = vld [vmem:[%s22784_s3 + $0x11d0] sm:$0xff] }
 0xe2b   :  { %15020 = vmatmul.mubr.f32.gmra.mxu1 %v11356_v37  ;;  %15051 = vmatprep.subr.mxu0 %v21342_v20 }
 0xe2c   :  { %15103 = vmatprep.subr.mxu1 %v21108_v22  ;;  %15052 = vmatpush3.msra.mxu0 %v21342_v20  ;;  %v21463_v30 = vpop.permute.xlu1 %8648  ;;  %v11371_v20 = vld [vmem:[%s22784_s3 + $0x12c0] sm:$0xff] }
 0xe2d   :  { %15104 = vmatpush3.msra.mxu1 %v21108_v22  ;;  %15053 = vmatprep.subr.mxu0 %v21345_v11  ;;  %v11359_v22 = vld [vmem:[%s22784_s3 + $0x1260] sm:$0xff] }
 0xe2e   :  { %15105 = vmatprep.subr.mxu1 %v21100_v53  ;;  %15022 = vmatprep.mubr.f32.mxu1 %v11357_v60  ;;  %v11396_v60 = vld [vmem:[%s22784_s3 + $0x1388] sm:$0xff] }
 0xe2f   :  { %15054 = vmatpush3.msra.mxu0 %v21345_v11  ;;  %15106 = vmatpush3.msra.mxu1 %v21100_v53  ;;  %v21479_v53 = vpop.permute.xlu0 %8860  ;;  %v11342_v11 = vld [vmem:[%s22784_s3 + $0x11d8] sm:$0xff] }
 0xe30   :  { %15023 = vmatmul.mubr.f32.gmra.mxu1 %v11358_v38  ;;  %15055 = vmatprep.subr.mxu0 %v21350_v50  ;;  %v21483_v14 = vpop.permute.xlu1 %8646  ;;  %v11383_v38 = vld [vmem:[%s22784_s3 + $0x1320] sm:$0xff] }
 0xe31   :  { %15107 = vmatprep.subr.mxu1 %v21091_v7  ;;  %15056 = vmatpush3.msra.mxu0 %v21350_v50  ;;  %v11372_v50 = vld [vmem:[%s22784_s3 + $0x12c8] sm:$0xff] }
 0xe32   :  { %15108 = vmatpush3.msra.mxu1 %v21091_v7  ;;  %15057 = vmatprep.subr.mxu0 %v21353_v27  ;;  %v11361_v7 = vld [vmem:[%s22784_s3 + $0x1270] sm:$0xff] }
 0xe33   :  { %15109 = vmatprep.subr.mxu1 %v21084_v52  ;;  %15025 = vmatprep.mubr.f32.mxu1 %v11359_v22  ;;  %v21502_v3 = vpop.permute.xlu0 %8858  ;;  %v11398_v22 = vld [vmem:[%s22784_s3 + $0x1398] sm:$0xff] }
 0xe34   :  { %15058 = vmatpush3.msra.mxu0 %v21353_v27  ;;  %15110 = vmatpush3.msra.mxu1 %v21084_v52  ;;  %v11362_v52 = vld [vmem:[%s22784_s3 + $0x1278] sm:$0xff] }
 0xe35   :  { %15026 = vmatmul.mubr.f32.gmra.mxu1 %v11360_v18  ;;  %15059 = vmatprep.subr.mxu0 %v21358_v43  ;;  %v11385_v18 = vld [vmem:[%s22784_s3 + $0x1330] sm:$0xff] }
 0xe36   :  { %15111 = vmatprep.subr.mxu1 %v21076_v12  ;;  %15060 = vmatpush3.msra.mxu0 %v21358_v43 }
 0xe37   :  { %15112 = vmatpush3.msra.mxu1 %v21076_v12  ;;  %15061 = vmatprep.subr.mxu0 %v21361_v35  ;;  %v8661_v12 = vpop.permute.xlu1 %8660 }
 0xe38   :  { %15113 = vmatprep.subr.mxu1 %v21068_v9  ;;  %15028 = vmatprep.mubr.f32.mxu1 %v11361_v7  ;;  %v11400_v7 = vld [vmem:[%s22784_s3 + $0x13a8] sm:$0xff] }
 0xe39   :  { %15062 = vmatpush3.msra.mxu0 %v21361_v35  ;;  %15114 = vmatpush3.msra.mxu1 %v21068_v9  ;;  %v11363_v9 = vld [vmem:[%s22784_s3 + $0x1280] sm:$0xff] }
 0xe3a   :  { %15029 = vmatmul.mubr.f32.gmra.mxu1 %v11362_v52  ;;  %15064 = vmatmul.mubr.f32.vlgmr.msra.gmra.mxu0 %v11332_v28  ;;  %v11343_v35 = vld [vmem:[%s22784_s3 + $0x11e0] sm:$0xff]  ;;  %v11401_v28 = vld [vmem:[%s22784_s3 + $0x13b0] sm:$0xff] }
 0xe3b   :  { %15115 = vmatprep.subr.mxu1 %v21053_v8  ;;  %15143 = vmatprep.subr.mxu0 %v21366_v34  ;;  %v21522_v6 = vpop.permute.xlu1 %8644  ;;  %v11387_v52 = vld [vmem:[%s22784_s3 + $0x1340] sm:$0xff] }
 0xe3c   :  { %15116 = vmatpush3.msra.mxu1 %v21053_v8  ;;  %15144 = vmatpush3.msra.mxu0 %v21366_v34  ;;  %v8871_v8 = vpop.permute.xlu0 %8870  ;;  %v11373_v34 = vld [vmem:[%s22784_s3 + $0x12d0] sm:$0xff] }
 0xe3d   :  { %15117 = vmatprep.subr.mxu1 %v21063_v42  ;;  %15145 = vmatprep.subr.mxu0 %v8661_v12 }
 0xe3e   :  { %15066 = vmatprep.mubr.f32.mxu0 %v11333_v57  ;;  %15118 = vmatpush3.msra.mxu1 %v21063_v42  ;;  %v11336_v42 = vld [vmem:[%s22784_s3 + $0x11a8] sm:$0xff]  ;;  %v11389_v57 = vld [vmem:[%s22784_s3 + $0x1350] sm:$0xff] }
 0xe3f   :  { %15119 = vmatprep.mubr.f32.mxu1 %v11363_v9  ;;  %15146 = vmatpush3.msra.mxu0 %v8661_v12  ;;  %v8643_v10 = vpop.permute.xlu1 %8642  ;;  %v11402_v12 = vld [vmem:[%s22784_s3 + $0x13b8] sm:$0xff]  ;;  %v11403_v9 = vld [vmem:[%s22784_s3 + $0x13c0] sm:$0xff] }
 0xe40   :  { %15067 = vmatmul.mubr.f32.gmra.mxu0 %v11334_v5  ;;  %15120 = vmatmul.mubr.f32.vlgmr.msra.gmra.mxu1 %v11364_v1  ;;  %v8857_v23 = vpop.permute.xlu0 %8856  ;;  %v11390_v5 = vld [vmem:[%s22784_s3 + $0x1358] sm:$0xff]  ;;  %v11404_v1 = vld [vmem:[%s22784_s3 + $0x13c8] sm:$0xff] }
 0xe41   :  { %15147 = vmatprep.subr.mxu0 %v21382_v55  ;;  %15199 = vmatprep.subr.mxu1 %v21375_v0 }
 0xe42   :  { %15148 = vmatpush3.msra.mxu0 %v21382_v55  ;;  %15200 = vmatpush3.msra.mxu1 %v21375_v0  ;;  %v11345_v55 = vld [vmem:[%s22784_s3 + $0x11f0] sm:$0xff] }
 0xe43   :  { %15149 = vmatprep.subr.mxu0 %v21396_v36  ;;  %15201 = vmatprep.subr.mxu1 %v8871_v8  ;;  %v8641_v44 = vpop.permute.xlu1 %8640 }
 0xe44   :  { %15069 = vmatprep.mubr.f32.mxu0 %v11335_v40  ;;  %15122 = vmatprep.mubr.f32.mxu1 %v11365_v62  ;;  %v8855_v16 = vpop.permute.xlu0 %8854  ;;  %v11392_v40 = vld [vmem:[%s22784_s3 + $0x1368] sm:$0xff]  ;;  %v11406_v62 = vld [vmem:[%s22784_s3 + $0x13d8] sm:$0xff] }
 0xe45   :  { %15150 = vmatpush3.msra.mxu0 %v21396_v36  ;;  %15202 = vmatpush3.msra.mxu1 %v8871_v8  ;;  %v11376_v36 = vld [vmem:[%s22784_s3 + $0x12e8] sm:$0xff]  ;;  %v11391_v8 = vld [vmem:[%s22784_s3 + $0x1360] sm:$0xff] }
 0xe46   :  { %15070 = vmatmul.mubr.f32.gmra.mxu0 %v11336_v42  ;;  %15123 = vmatmul.mubr.f32.gmra.mxu1 %v11366_v46  ;;  %v11393_v42 = vld [vmem:[%s22784_s3 + $0x1370] sm:$0xff]  ;;  %v11407_v46 = vld [vmem:[%s22784_s3 + $0x13e0] sm:$0xff] }
 0xe47   :  { %15151 = vmatprep.subr.mxu0 %v21411_v41  ;;  %15203 = vmatprep.subr.mxu1 %v21393_v2  ;;  %v8639_v21 = vpop.permute.xlu1 %8638 }
 0xe48   :  { %15152 = vmatpush3.msra.mxu0 %v21411_v41  ;;  %15204 = vmatpush3.msra.mxu1 %v21393_v2  ;;  %v8853_v29 = vpop.permute.xlu0 %8852  ;;  %v11346_v2 = vld [vmem:[%s22784_s3 + $0x11f8] sm:$0xff]  ;;  %v11377_v41 = vld [vmem:[%s22784_s3 + $0x12f0] sm:$0xff] }
 0xe49   :  { %15153 = vmatprep.subr.mxu0 %v21427_v19  ;;  %15205 = vmatprep.subr.mxu1 %v21417_v51 }
 0xe4a   :  { %15072 = vmatprep.mubr.f32.mxu0 %v11337_v32  ;;  %15125 = vmatprep.mubr.f32.mxu1 %v11367_v45  ;;  %v11409_v32 = vld [vmem:[%s22784_s3 + $0x13f0] sm:$0xff]  ;;  %v11410_v45 = vld [vmem:[%s22784_s3 + $0x13f8] sm:$0xff] }
 0xe4b   :  { %15154 = vmatpush3.msra.mxu0 %v21427_v19  ;;  %15206 = vmatpush3.msra.mxu1 %v21417_v51  ;;  %v8637_v43 = vpop.permute.xlu1 %8636  ;;  %v11378_v51 = vld [vmem:[%s22784_s3 + $0x12f8] sm:$0xff]  ;;  %v11381_v19 = vld [vmem:[%s22784_s3 + $0x1310] sm:$0xff] }
 0xe4c   :  { %15073 = vmatmul.mubr.f32.gmra.mxu0 %v11338_v58  ;;  %15126 = vmatmul.mubr.f32.gmra.mxu1 %v11368_v24  ;;  %v8851_v27 = vpop.permute.xlu0 %8850 }
 0xe4d   :  { %15155 = vmatprep.subr.mxu0 %v21444_v13  ;;  %15207 = vmatprep.subr.mxu1 %v21437_v59 }
 0xe4e   :  { %15156 = vmatpush3.msra.mxu0 %v21444_v13  ;;  %15208 = vmatpush3.msra.mxu1 %v21437_v59  ;;  %v11382_v13 = vld [vmem:[%s22784_s3 + $0x1318] sm:$0xff] }
 0xe4f   :  { %15157 = vmatprep.subr.mxu0 %v21463_v30  ;;  %15209 = vmatprep.subr.mxu1 %v21460_v17  ;;  %v8635_v31 = vpop.permute.xlu1 %8634 }
 0xe50   :  { %15075 = vmatprep.mubr.f32.mxu0 %v11339_v47  ;;  %15128 = vmatprep.mubr.f32.mxu1 %v11369_v25  ;;  %v8849_v0 = vpop.permute.xlu0 %8848 }
 0xe51   :  { %15158 = vmatpush3.msra.mxu0 %v21463_v30  ;;  %15210 = vmatpush3.msra.mxu1 %v21460_v17  ;;  %v11397_v17 = vld [vmem:[%s22784_s3 + $0x1390] sm:$0xff]  ;;  %v11384_v30 = vld [vmem:[%s22784_s3 + $0x1328] sm:$0xff] }
 0xe52   :  { %15076 = vmatmul.mubr.f32.gmra.mxu0 %v11340_v54  ;;  %15129 = vmatmul.mubr.f32.gmra.mxu1 %v11370_v4 }
 0xe53   :  { %15159 = vmatprep.subr.mxu0 %v21483_v14  ;;  %15211 = vmatprep.subr.mxu1 %v21479_v53  ;;  %v8633_v61 = vpop.permute.xlu1 %8632 }
 0xe54   :  { %15160 = vmatpush3.msra.mxu0 %v21483_v14  ;;  %15212 = vmatpush3.msra.mxu1 %v21479_v53  ;;  %v8847_v33 = vpop.permute.xlu0 %8846  ;;  %v11399_v53 = vld [vmem:[%s22784_s3 + $0x13a0] sm:$0xff]  ;;  %v11386_v14 = vld [vmem:[%s22784_s3 + $0x1338] sm:$0xff] }
 0xe55   :  { %15161 = vmatprep.subr.mxu0 %v21522_v6  ;;  %15213 = vmatprep.subr.mxu1 %v21502_v3 }
 0xe56   :  { %15078 = vmatprep.mubr.f32.mxu0 %v11341_v39  ;;  %15131 = vmatprep.mubr.f32.mxu1 %v11371_v20 }
 0xe57   :  { %15162 = vmatpush3.msra.mxu0 %v21522_v6  ;;  %15214 = vmatpush3.msra.mxu1 %v21502_v3  ;;  %v8843_v37 = vpop.permute.xlu1 %8842  ;;  %v11388_v3 = vld [vmem:[%s22784_s3 + $0x1348] sm:$0xff]  ;;  %v11405_v6 = vld [vmem:[%s22784_s3 + $0x13d0] sm:$0xff] }
 0xe58   :  { %15079 = vmatmul.mubr.f32.gmra.mxu0 %v11342_v11  ;;  %15132 = vmatmul.mubr.f32.gmra.mxu1 %v11372_v50  ;;  %v8845_v59 = vpop.permute.xlu0 %8844 }
 0xe59   :  { %15163 = vmatprep.subr.mxu0 %v8643_v10  ;;  %15215 = vmatprep.subr.mxu1 %v8857_v23 }
 0xe5a   :  { %15164 = vmatpush3.msra.mxu0 %v8643_v10  ;;  %15216 = vmatpush3.msra.mxu1 %v8857_v23  ;;  %v11394_v23 = vld [vmem:[%s22784_s3 + $0x1378] sm:$0xff]  ;;  %v11408_v10 = vld [vmem:[%s22784_s3 + $0x13e8] sm:$0xff] }
 0xe5b   :  { %15165 = vmatprep.subr.mxu0 %v8641_v44  ;;  %15217 = vmatprep.subr.mxu1 %v8855_v16 }
 0xe5c   :  { %15081 = vmatprep.mubr.f32.mxu0 %v11343_v35  ;;  %15134 = vmatprep.mubr.f32.mxu1 %v11373_v34 }
 0xe5d   :  { %15166 = vmatpush3.msra.mxu0 %v8641_v44  ;;  %15218 = vmatpush3.msra.mxu1 %v8855_v16 }
 0xe5e   :  { %15082 = vmatmul.mubr.f32.gmra.mxu0 %v11344_v63  ;;  %15135 = vmatmul.mubr.f32.gmra.mxu1 %v11374_v15 }
 0xe5f   :  { %15167 = vmatprep.subr.mxu0 %v8639_v21  ;;  %15219 = vmatprep.subr.mxu1 %v8853_v29 }
 0xe60   :  { %15168 = vmatpush3.msra.mxu0 %v8639_v21  ;;  %15220 = vmatpush3.msra.mxu1 %v8853_v29 }
 0xe61   :  { %15169 = vmatprep.subr.mxu0 %v8637_v43  ;;  %15221 = vmatprep.subr.mxu1 %v8851_v27 }
 0xe62   :  { %15084 = vmatprep.mubr.f32.mxu0 %v11345_v55  ;;  %15137 = vmatprep.mubr.f32.mxu1 %v11375_v49 }
 0xe63   :  { %15170 = vmatpush3.msra.mxu0 %v8637_v43  ;;  %15222 = vmatpush3.msra.mxu1 %v8851_v27 }
 0xe64   :  { %15085 = vmatmul.mubr.f32.gmra.mxu0 %v11346_v2  ;;  %15138 = vmatmul.mubr.f32.gmra.mxu1 %v11376_v36  ;;  %v21756_v2 = vpop.permute.xlu0 %9146 }
 0xe65   :  { %15171 = vmatprep.subr.mxu0 %v8635_v31  ;;  %15223 = vmatprep.subr.mxu1 %v8849_v0  ;;  %23001 = vst [vmem:[#allocation7_spill] sm:$0xff] %v21756_v2 }
 0xe66   :  { %15172 = vmatpush3.msra.mxu0 %v8635_v31  ;;  %15224 = vmatpush3.msra.mxu1 %v8849_v0 }
 0xe67   :  { %15173 = vmatprep.subr.mxu0 %v8633_v61  ;;  %15225 = vmatprep.subr.mxu1 %v8847_v33 }
 0xe68   :  { %15140 = vmatprep.mubr.f32.mxu1 %v11377_v41  ;;  %15174 = vmatpush3.msra.mxu0 %v8633_v61  ;;  %v21758_v61 = vpop.permute.xlu1 %9141 }
 0xe69   :  { %15175 = vmatprep.mubr.f32.mxu0 %v11379_v26  ;;  %15226 = vmatpush3.msra.mxu1 %v8847_v33  ;;  %23002 = vst [vmem:[#allocation6_spill] sm:$0xff] %v21758_v61 }
 0xe6a   :  { %15141 = vmatmul.mubr.f32.gmra.mxu1 %v11378_v51  ;;  %15176 = vmatmul.mubr.f32.vlgmr.msra.gmra.mxu0 %v11380_v56  ;;  %v21762_v51 = vpop.permute.xlu0 %9136 }
 0xe6b   :  { %15227 = vmatprep.subr.mxu1 %v8845_v59  ;;  %15178 = vmatprep.mubr.f32.mxu0 %v11381_v19  ;;  %23003 = vst [vmem:[#allocation3_spill] sm:$0xff] %v21762_v51 }
 0xe6c   :  { %15228 = vmatpush3.msra.mxu1 %v8845_v59  ;;  %15231 = vmatprep.mubr.f32.mxu1 %v11395_v48  ;;  %v21768_v48 = vpop.permute.xlu1 %9131 }
 0xe6d   :  { %15229 = vmatprep.subr.mxu1 %v8843_v37  ;;  %23004 = vst [vmem:[#allocation5_spill] sm:$0xff] %v21768_v48 }
 0xe6e   :  { %15230 = vmatpush3.msra.mxu1 %v8843_v37  ;;  %15179 = vmatmul.mubr.f32.gmra.mxu0 %v11382_v13  ;;  %v21774_v13 = vpop.permute.xlu0 %9126 }
 0xe6f   :  { %15232 = vmatmul.mubr.f32.vlgmr.msra.gmra.mxu1 %v11396_v60  ;;  %15181 = vmatprep.mubr.f32.mxu0 %v11383_v38  ;;  %23005 = vst [vmem:[#allocation8_spill] sm:$0xff] %v21774_v13 }
 0xe70   :  { %15234 = vmatprep.mubr.f32.mxu1 %v11397_v17  ;;  %v21780_v17 = vpop.permute.xlu1 %9121 }
 0xe71   :  { %23006 = vst [vmem:[#allocation2_spill] sm:$0xff] %v21780_v17 }
 0xe72   :  { %15182 = vmatmul.mubr.f32.gmra.mxu0 %v11384_v30 }
 0xe73   :  { %15235 = vmatmul.mubr.f32.gmra.mxu1 %v11398_v22  ;;  %15184 = vmatprep.mubr.f32.mxu0 %v11385_v18  ;;  %v21786_v18 = vpop.permute.xlu0 %9116 }
 0xe74   :  { %15237 = vmatprep.mubr.f32.mxu1 %v11399_v53  ;;  %23007 = vst [vmem:[#allocation10_spill] sm:$0xff] %v21786_v18 }
 0xe76   :  { %15185 = vmatmul.mubr.f32.gmra.mxu0 %v11386_v14 }
 0xe77   :  { %15238 = vmatmul.mubr.f32.gmra.mxu1 %v11400_v7  ;;  %15187 = vmatprep.mubr.f32.mxu0 %v11387_v52  ;;  %v21792_v7 = vpop.permute.xlu1 %9111 }
 0xe78   :  { %15240 = vmatprep.mubr.f32.mxu1 %v11401_v28  ;;  %23008 = vst [vmem:[#allocation13_spill] sm:$0xff] %v21792_v7 }
 0xe7a   :  { %15188 = vmatmul.mubr.f32.gmra.mxu0 %v11388_v3  ;;  %v21798_v3 = vpop.permute.xlu0 %9106 }
 0xe7b   :  { %15241 = vmatmul.mubr.f32.gmra.mxu1 %v11402_v12  ;;  %15190 = vmatprep.mubr.f32.mxu0 %v11389_v57 }
 0xe7c   :  { %15243 = vmatprep.mubr.f32.mxu1 %v11403_v9  ;;  %v21804_v9 = vpop.permute.xlu1 %9101 }
 0xe7e   :  { %15191 = vmatmul.mubr.f32.gmra.mxu0 %v11390_v5 }
 0xe7f   :  { %15244 = vmatmul.mubr.f32.gmra.mxu1 %v11404_v1  ;;  %15193 = vmatprep.mubr.f32.mxu0 %v11391_v8  ;;  %v21810_v8 = vpop.permute.xlu0 %9096 }
 0xe80   :  { %15246 = vmatprep.mubr.f32.mxu1 %v11405_v6 }
 0xe82   :  { %15194 = vmatmul.mubr.f32.gmra.mxu0 %v11392_v40 }
 0xe83   :  { %15247 = vmatmul.mubr.f32.gmra.mxu1 %v11406_v62  ;;  %15196 = vmatprep.mubr.f32.mxu0 %v11393_v42  ;;  %v21816_v62 = vpop.permute.xlu1 %9091 }
 0xe84   :  { %15249 = vmatprep.mubr.f32.mxu1 %v11407_v46 }
 0xe86   :  { %15197 = vmatmul.mubr.f32.gmra.mxu0 %v11394_v23 }
 0xe87   :  { %15250 = vmatmul.mubr.f32.gmra.mxu1 %v11408_v10  ;;  %v9087_v10 = vpop.permute.xlu0 %9086  ;;  %v9082_v48 = vpop.permute.xlu1 %9081 }
 0xe88   :  { %15252 = vmatprep.mubr.f32.mxu1 %v11409_v32 }
 0xe8b   :  { %15253 = vmatmul.mubr.f32.gmra.mxu1 %v11410_v45 }
 0xed7   :  { %v15009_v58 = vpop.f32.mrf.mxu1 }
 0xed9   :  { %v8230_v24 = vpop.f32.mrf.mxu1 }
 0xedc   :  { %v21728_v16 = vpop.f32.mrf.mxu1 }
 0xede   :  { %v21730_v44 = vpop.f32.mrf.mxu1 }
 0xee1   :  { %v21732_v47 = vpop.f32.mrf.mxu1 }
 0xee3   :  { %v21734_v25 = vpop.f32.mrf.mxu1 }
 0xee6   :  { %v21736_v54 = vpop.f32.mrf.mxu1 }
 0xee8   :  { %v21738_v4 = vpop.f32.mrf.mxu1 }
 0xeeb   :  { %v21740_v29 = vpop.f32.mrf.mxu1 }
 0xeed   :  { %v21742_v21 = vpop.f32.mrf.mxu1 }
 0xef0   :  { %v21744_v39 = vpop.f32.mrf.mxu1 }
 0xef2   :  { %v21746_v20 = vpop.f32.mrf.mxu1 }
 0xef5   :  { %v21748_v11 = vpop.f32.mrf.mxu1 }
 0xef7   :  { %v21750_v50 = vpop.f32.mrf.mxu1 }
 0xefa   :  { %v21752_v27 = vpop.f32.mrf.mxu1  ;;  %v15065_v43 = vpop.f32.mrf.mxu0 }
 0xefb   :  { %22999 = vst [vmem:[#allocation4_spill] sm:$0xff] %v21752_v27  ;;  %v8381_v42 = vadd.f32 %v15065_v43, %v15009_v58  ;;  %v9077_v27 = vpop.permute.xlu0 %9076 }
 0xefc   :  { %v21754_v35 = vpop.f32.mrf.mxu1  ;;  %v8375_v34 = vpop.f32.mrf.mxu0 }
 0xefd   :  { %23000 = vst [vmem:[#allocation11_spill] sm:$0xff] %v21754_v35  ;;  %v8376_v32 = vadd.f32 %v8375_v34, %v8230_v24 }
 0xf00   :  { %v15068_v63 = vpop.f32.mrf.mxu0  ;;  %v15121_v15 = vpop.f32.mrf.mxu1 }
 0xf01   :  { %v8617_v45 = vadd.f32 %v15121_v15, %v8381_v42  ;;  %v8391_v51 = vadd.f32 %v15068_v63, %v21728_v16  ;;  %v9072_v16 = vpop.permute.xlu1 %9071 }
 0xf02   :  { %v8385_v0 = vpop.f32.mrf.mxu0  ;;  %v8537_v31 = vpop.f32.mrf.mxu1 }
 0xf03   :  { %v8616_v35 = vadd.f32 %v8537_v31, %v8376_v32 }
 0xf06   :  { %v15071_v55 = vpop.f32.mrf.mxu0  ;;  %v15124_v49 = vpop.f32.mrf.mxu1 }
 0xf07   :  { %v8401_v24 = vadd.f32 %v15071_v55, %v21732_v47 }
 0xf08   :  { %v8395_v36 = vpop.f32.mrf.mxu0  ;;  %v8547_v33 = vpop.f32.mrf.mxu1 }
 0xf09   :  { %v8396_v63 = vadd.f32 %v8395_v36, %v21734_v25 }
 0xf0c   :  { %v21760_v41 = vpop.f32.mrf.mxu0  ;;  %v15127_v26 = vpop.f32.mrf.mxu1 }
 0xf0d   :  { %v8621_v31 = vadd.f32 %v15127_v26, %v8401_v24  ;;  %v8411_v47 = vadd.f32 %v21760_v41, %v21736_v54 }
 0xf0e   :  { %v21764_v56 = vpop.f32.mrf.mxu0  ;;  %v21766_v19 = vpop.f32.mrf.mxu1 }
 0xf0f   :  { %v8620_v55 = vadd.f32 %v21766_v19, %v8396_v63  ;;  %v8406_v36 = vadd.f32 %v21764_v56, %v21738_v4 }
 0xf12   :  { %v21770_v59 = vpop.f32.mrf.mxu0  ;;  %v21772_v37 = vpop.f32.mrf.mxu1 }
 0xf14   :  { %v21776_v60 = vpop.f32.mrf.mxu0  ;;  %v21778_v38 = vpop.f32.mrf.mxu1 }
 0xf18   :  { %v21782_v30 = vpop.f32.mrf.mxu0  ;;  %v21784_v22 = vpop.f32.mrf.mxu1 }
 0xf1a   :  { %v21788_v53 = vpop.f32.mrf.mxu0  ;;  %v21790_v14 = vpop.f32.mrf.mxu1 }
 0xf1e   :  { %v21794_v52 = vpop.f32.mrf.mxu0  ;;  %v21796_v28 = vpop.f32.mrf.mxu1 }
 0xf20   :  { %v21800_v12 = vpop.f32.mrf.mxu0  ;;  %v21802_v57 = vpop.f32.mrf.mxu1 }
 0xf24   :  { %v21806_v5 = vpop.f32.mrf.mxu0  ;;  %v21808_v1 = vpop.f32.mrf.mxu1 }
 0xf25   :  { %23009 = vst [vmem:[#allocation14_spill] sm:$0xff] %v21806_v5  ;;  %v8619_v5 = vadd.f32 %v15124_v49, %v8391_v51 }
 0xf26   :  { %v21812_v6 = vpop.f32.mrf.mxu0  ;;  %v21814_v40 = vpop.f32.mrf.mxu1 }
 0xf27   :  { %23010 = vst [vmem:[#allocation9_spill] sm:$0xff] %v21812_v6  ;;  %23011 = vst [vmem:[#allocation16_spill] sm:$0xff] %v21814_v40  ;;  %v8386_v40 = vadd.f32 %v8385_v0, %v21730_v44 }
 0xf29   :  { %v8618_v15 = vadd.f32 %v8547_v33, %v8386_v40 }
 0xf2a   :  { %v21818_v46 = vpop.f32.mrf.mxu1  ;;  %v15177_v23 = vpop.f32.mrf.mxu0 }
 0xf2b   :  { %23012 = vst [vmem:[#allocation15_spill] sm:$0xff] %v21818_v46  ;;  %v8827_v17 = vadd.f32 %v15177_v23, %v8617_v45 }
 0xf2c   :  { %v21820_v61 = vpop.f32.mrf.mxu1  ;;  %v8747_v2 = vpop.f32.mrf.mxu0 }
 0xf2d   :  { %23013 = vst [vmem:[#allocation12_spill] sm:$0xff] %v21820_v61  ;;  %v8826_v58 = vadd.f32 %v8747_v2, %v8616_v35 }
 0xf2e   :  { %v15180_v6 = vpop.f32.mrf.mxu0 }
 0xf2f   :  { %v15233_v13 = vpop.f32.mrf.mxu1  ;;  %v8829_v42 = vadd.f32 %v15180_v6, %v8619_v5  ;;  %v8622_v5 = vadd.f32 %v21778_v38, %v8406_v36  ;;  %v23017_v36 = vld [vmem:[#allocation14_spill] sm:$0xff] }
 0xf30   :  { %v9037_v43 = vadd.f32 %v15233_v13, %v8827_v17  ;;  %v8757_v46 = vpop.f32.mrf.mxu0 }
 0xf31   :  { %v8957_v34 = vpop.f32.mrf.mxu1  ;;  %v8828_v44 = vadd.f32 %v8757_v46, %v8618_v15 }
 0xf32   :  { %v9150_v61 = vadd.f32 %v9077_v27, %v9037_v43  ;;  %v9036_v7 = vadd.f32 %v8957_v34, %v8826_v58  ;;  %v15183_v18 = vpop.f32.mrf.mxu0  ;;  %v8431_v43 = vadd.f32 %v21782_v30, %v21744_v39 }
 0xf33   :  { %v15236_v23 = vpop.f32.mrf.mxu1  ;;  %v8831_v27 = vadd.f32 %v15183_v18, %v8621_v31  ;;  %v8421_v18 = vadd.f32 %v21770_v59, %v21740_v29 }
 0xf34   :  { %v21826_v32 = vmax.f32 %v9150_v61, 0.0  ;;  %v9149_v35 = vadd.f32 %v9072_v16, %v9036_v7  ;;  %v9039_v0 = vadd.f32 %v15236_v23, %v8829_v42  ;;  %v8767_v49 = vpop.f32.mrf.mxu0  ;;  %v8623_v61 = vadd.f32 %v21772_v37, %v8411_v47 }
 0xf35   :  { %v8967_v2 = vpop.f32.mrf.mxu1  ;;  %v8830_v26 = vadd.f32 %v8767_v49, %v8620_v55  ;;  %v8416_v37 = vadd.f32 %v21776_v60, %v21742_v21  ;;  %v8627_v15 = vadd.f32 %v21796_v28, %v8431_v43  ;;  %v8441_v23 = vadd.f32 %v21794_v52, %v21748_v11  ;;  %v23014_v49 = vld [vmem:[#allocation10_spill] sm:$0xff] }
 0xf36   :  { %v9038_v33 = vadd.f32 %v8967_v2, %v8828_v44  ;;  %9232 = vrot.lane.b32.xlu0 %v21826_v32, %s15669_s1  ;;  %v15186_v25 = vpop.f32.mrf.mxu0  ;;  %v21836_v13 = vmax.f32 %v9149_v35, 0.0  ;;  %v9152_v17 = vadd.f32 %v9087_v10, %v9039_v0 }
 0xf37   :  { %v15239_v51 = vpop.f32.mrf.mxu1  ;;  %v8833_v40 = vadd.f32 %v15186_v25, %v8623_v61  ;;  %v8624_v21 = vadd.f32 %v21790_v14, %v8416_v37  ;;  %v8629_v0 = vadd.f32 %v21808_v1, %v8441_v23  ;;  %v23016_v25 = vld [vmem:[#allocation4_spill] sm:$0xff] }
 0xf38   :  { %v9151_v54 = vadd.f32 %v9082_v48, %v9038_v33  ;;  %v9041_v41 = vadd.f32 %v15239_v51, %v8831_v27  ;;  %v8777_v19 = vpop.f32.mrf.mxu0  ;;  %v8625_v48 = vadd.f32 %v21784_v22, %v8421_v18  ;;  %v21849_v29 = vmax.f32 %v9152_v17, 0.0 }
 0xf39   :  { %v8977_v7 = vpop.f32.mrf.mxu1  ;;  %v8832_v59 = vadd.f32 %v8777_v19, %v8622_v5  ;;  %v8451_v61 = vadd.f32 %v23017_v36, %v23016_v25  ;;  %v23020_v5 = vld [vmem:[#allocation8_spill] sm:$0xff] }
 0xf3a   :  { %v21841_v6 = vmax.f32 %v9151_v54, 0.0  ;;  %v9040_v4 = vadd.f32 %v8977_v7, %v8830_v26  ;;  %9230 = vrot.lane.b32.xlu0 %v21836_v13, %s15669_s1  ;;  %v15189_v56 = vpop.f32.mrf.mxu0  ;;  %v9154_v46 = vadd.f32 %v21810_v8, %v9041_v41  ;;  %v23019_v54 = vld [vmem:[#allocation15_spill] sm:$0xff] }
 0xf3b   :  { %v15242_v10 = vpop.f32.mrf.mxu1  ;;  %v8835_v22 = vadd.f32 %v15189_v56, %v8625_v48  ;;  %v8631_v41 = vadd.f32 %v23019_v54, %v8451_v61  ;;  %v23021_v56 = vld [vmem:[#allocation2_spill] sm:$0xff]  ;;  %v11520_v61 = vld [vmem:[%s22785_s4 + $0x468] sm:$0xff] }
 0xf3c   :  { %v9153_v38 = vadd.f32 %v21816_v62, %v9040_v4  ;;  %v9043_v45 = vadd.f32 %v15242_v10, %v8833_v40  ;;  %9234 = vrot.lane.b32.xlu1 %v21841_v6, %s15669_s1  ;;  %v8787_v58 = vpop.f32.mrf.mxu0  ;;  %v8426_v62 = vadd.f32 %v21788_v53, %v21746_v20  ;;  %v21864_v42 = vmax.f32 %v9154_v46, 0.0  ;;  %v11519_v54 = vld [vmem:[%s22785_s4 + $0x460] sm:$0xff] }
 0xf3d   :  { %v8987_v24 = vpop.f32.mrf.mxu1  ;;  %v8834_v30 = vadd.f32 %v8787_v58, %v8624_v21  ;;  %v23023_v58 = vld [vmem:[#allocation9_spill] sm:$0xff] }
 0xf3e   :  { %v21857_v60 = vmax.f32 %v9153_v38, 0.0  ;;  %v9042_v8 = vadd.f32 %v8987_v24, %v8832_v59  ;;  %9236 = vrot.lane.b32.xlu0 %v21849_v29, %s15669_s1  ;;  %v15192_v34 = vpop.f32.mrf.mxu0  ;;  %v9156_v39 = vadd.f32 %v21798_v3, %v9043_v45  ;;  %v8626_v20 = vadd.f32 %v21802_v57, %v8426_v62  ;;  %v23015_v57 = vld [vmem:[#allocation13_spill] sm:$0xff]  ;;  %v23022_v45 = vld [vmem:[#allocation11_spill] sm:$0xff] }
 0xf3f   :  { %v15245_v16 = vpop.f32.mrf.mxu1  ;;  %v8837_v28 = vadd.f32 %v15192_v34, %v8627_v15  ;;  %v8446_v43 = vadd.f32 %v23023_v58, %v23022_v45  ;;  %v23025_v34 = vld [vmem:[#allocation5_spill] sm:$0xff] }
 0xf40   :  { %v9155_v14 = vadd.f32 %v21804_v9, %v9042_v8  ;;  %v9045_v63 = vadd.f32 %v15245_v16, %v8835_v22  ;;  %9238 = vrot.lane.b32.xlu1 %v21857_v60, %s15669_s1  ;;  %v8797_v31 = vpop.f32.mrf.mxu0  ;;  %v8436_v9 = vadd.f32 %v21800_v12, %v21750_v50  ;;  %v21881_v11 = vmax.f32 %v9156_v39, 0.0  ;;  %v23018_v50 = vld [vmem:[#allocation16_spill] sm:$0xff]  ;;  %v23024_v22 = vld [vmem:[#allocation3_spill] sm:$0xff]  ;;  %v11510_v58 = vld [vmem:[%s22785_s4 + $0x418] sm:$0xff] }
 0xf41   :  { %v8997_v44 = vpop.f32.mrf.mxu1  ;;  %v8836_v52 = vadd.f32 %v8797_v31, %v8626_v20  ;;  %v23026_v39 = vld [vmem:[#allocation12_spill] sm:$0xff] }
 0xf42   :  { %v21873_v53 = vmax.f32 %v9155_v14, 0.0  ;;  %v9044_v35 = vadd.f32 %v8997_v44, %v8834_v30  ;;  %9240 = vrot.lane.b32.xlu0 %v21864_v42, %s15669_s1  ;;  %v15195_v3 = vpop.f32.mrf.mxu0  ;;  %v9158_v47 = vadd.f32 %v23014_v49, %v9045_v63  ;;  %v8628_v12 = vadd.f32 %v23018_v50, %v8436_v9  ;;  %v23027_v44 = vld [vmem:[#allocation7_spill] sm:$0xff]  ;;  %v11443_v49 = vld [vmem:[%s22784_s3 + $0x1480] sm:$0xff]  ;;  %v11521_v50 = vld [vmem:[%s22785_s4 + $0x470] sm:$0xff] }
 0xf43   :  { %v15248_v55 = vpop.f32.mrf.mxu1  ;;  %v8839_v51 = vadd.f32 %v15195_v3, %v8629_v0  ;;  %v8630_v30 = vadd.f32 %v23026_v39, %v8446_v43  ;;  %v23028_v3 = vld [vmem:[#allocation6_spill] sm:$0xff]  ;;  %15287 = vmatprep.mubr.f32.mxu0 %v11443_v49 }
 0xf44   :  { %v9157_v2 = vadd.f32 %v23015_v57, %v9044_v35  ;;  %v9047_v27 = vadd.f32 %v15248_v55, %v8837_v28  ;;  %9242 = vrot.lane.b32.xlu1 %v21873_v53, %s15669_s1  ;;  %v8807_v33 = vpop.f32.mrf.mxu0  ;;  %v21894_v19 = vmax.f32 %v9158_v47, 0.0  ;;  %v11427_v47 = vld [vmem:[%s22784_s3 + $0x1400] sm:$0xff] }
 0xf45   :  { %v9007_v26 = vpop.f32.mrf.mxu1  ;;  %v8838_v4 = vadd.f32 %v8807_v33, %v8628_v12  ;;  %15343 = vmatprep.mubr.f32.mxu1 %v11427_v47  ;;  %v11522_v33 = vld [vmem:[%s22785_s4 + $0x478] sm:$0xff]  ;;  %v10324_v49 = vld [vmem:[%s22786_s6 + $0x60] sm:$0xff] }
 0xf46   :  { %v21889_v1 = vmax.f32 %v9157_v2, 0.0  ;;  %v9046_v17 = vadd.f32 %v9007_v26, %v8836_v52  ;;  %9244 = vrot.lane.b32.xlu0 %v21881_v11, %s15669_s1  ;;  %v15198_v18 = vpop.f32.mrf.mxu0  ;;  %v9160_v40 = vadd.f32 %v23020_v5, %v9047_v27  ;;  %v11517_v5 = vld [vmem:[%s22785_s4 + $0x450] sm:$0xff] }
 0xf47   :  { %v15251_v7 = vpop.f32.mrf.mxu1  ;;  %v8841_v59 = vadd.f32 %v15198_v18, %v8631_v41  ;;  %v11516_v18 = vld [vmem:[%s22785_s4 + $0x448] sm:$0xff] }
 0xf48   :  { %v9159_v37 = vadd.f32 %v23021_v56, %v9046_v17  ;;  %v9049_v48 = vadd.f32 %v15251_v7, %v8839_v51  ;;  %9246 = vrot.lane.b32.xlu1 %v21889_v1, %s15669_s1  ;;  %v21906_v21 = vmax.f32 %v9160_v40, 0.0  ;;  %v8817_v16 = vpop.f32.mrf.mxu0  ;;  %v11518_v51 = vld [vmem:[%s22785_s4 + $0x458] sm:$0xff] }
 0xf49   :  { %v9017_v46 = vpop.f32.mrf.mxu1  ;;  %v8840_v23 = vadd.f32 %v8817_v16, %v8630_v30  ;;  %v10327_v16 = vld [vmem:[%s22786_s6 + $0x78] sm:$0xff]  ;;  %v11507_v30 = vld [vmem:[%s22785_s4 + $0x400] sm:$0xff] }
 0xf4a   :  { %v21900_v10 = vmax.f32 %v9159_v37, 0.0  ;;  %v9048_v38 = vadd.f32 %v9017_v46, %v8838_v4  ;;  %9248 = vrot.lane.b32.xlu0 %v21894_v19, %s15669_s1  ;;  %v9162_v8 = vadd.f32 %v23024_v22, %v9049_v48  ;;  %v11514_v4 = vld [vmem:[%s22785_s4 + $0x438] sm:$0xff]  ;;  %v11515_v37 = vld [vmem:[%s22785_s4 + $0x440] sm:$0xff]  ;;  %v11512_v46 = vld [vmem:[%s22785_s4 + $0x428] sm:$0xff] }
 0xf4b   :  { %v15254_v24 = vpop.f32.mrf.mxu1 }
 0xf4c   :  { %v9161_v62 = vadd.f32 %v23025_v34, %v9048_v38  ;;  %v9051_v15 = vadd.f32 %v15254_v24, %v8841_v59  ;;  %9250 = vrot.lane.b32.xlu1 %v21900_v10, %s15669_s1  ;;  %v21917_v31 = vmax.f32 %v9162_v8, 0.0  ;;  %v11513_v38 = vld [vmem:[%s22785_s4 + $0x430] sm:$0xff]  ;;  %v11511_v24 = vld [vmem:[%s22785_s4 + $0x420] sm:$0xff]  ;;  %v11508_v8 = vld [vmem:[%s22785_s4 + $0x408] sm:$0xff] }
 0xf4d   :  { %v9027_v63 = vpop.f32.mrf.mxu1 }
 0xf4e   :  { %v21913_v14 = vmax.f32 %v9161_v62, 0.0  ;;  %9252 = vrot.lane.b32.xlu0 %v21906_v21, %s15669_s1  ;;  %v9164_v20 = vadd.f32 %v23027_v44, %v9051_v15  ;;  %v9050_v28 = vadd.f32 %v9027_v63, %v8840_v23  ;;  %v11509_v62 = vld [vmem:[%s22785_s4 + $0x410] sm:$0xff]  ;;  %v10325_v23 = vld [vmem:[%s22786_s6 + $0x68] sm:$0xff] }
 0xf50   :  { %9254 = vrot.lane.b32.xlu1 %v21913_v14, %s15669_s1  ;;  %v21924_v35 = vmax.f32 %v9164_v20, 0.0  ;;  %v9163_v9 = vadd.f32 %v23028_v3, %v9050_v28  ;;  %v10326_v20 = vld [vmem:[%s22786_s6 + $0x70] sm:$0xff]  ;;  %v10323_v3 = vld [vmem:[%s22786_s6 + $0x58] sm:$0xff] }
 0xf52   :  { %9256 = vrot.lane.b32.xlu0 %v21917_v31, %s15669_s1  ;;  %v21933_v0 = vmax.f32 %v9163_v9, 0.0 }
 0xf54   :  { %9205 = vrot.lane.b32.xlu1 %v21913_v14, %s15670_s12 }
 0xf56   :  { %9260 = vrot.lane.b32.xlu0 %v21924_v35, %s15669_s1 }
 0xf58   :  { %9211 = vrot.lane.b32.xlu1 %v21924_v35, %s15670_s12 }
 0xf5a   :  { %9207 = vrot.lane.b32.xlu0 %v21917_v31, %s15670_s12 }
 0xf5c   :  { %9258 = vrot.lane.b32.xlu1 %v21933_v0, %s15669_s1 }
 0xf5e   :  { %9203 = vrot.lane.b32.xlu0 %v21906_v21, %s15670_s12 }
 0xf60   :  { %9201 = vrot.lane.b32.xlu1 %v21900_v10, %s15670_s12 }
 0xf62   :  { %9199 = vrot.lane.b32.xlu0 %v21894_v19, %s15670_s12 }
 0xf64   :  { %9197 = vrot.lane.b32.xlu1 %v21889_v1, %s15670_s12 }
 0xf66   :  { %9195 = vrot.lane.b32.xlu0 %v21881_v11, %s15670_s12 }
 0xf68   :  { %9193 = vrot.lane.b32.xlu1 %v21873_v53, %s15670_s12 }
 0xf6a   :  { %9191 = vrot.lane.b32.xlu0 %v21864_v42, %s15670_s12 }
 0xf6c   :  { %9189 = vrot.lane.b32.xlu1 %v21857_v60, %s15670_s12 }
 0xf6e   :  { %9187 = vrot.lane.b32.xlu0 %v21849_v29, %s15670_s12 }
 0xf70   :  { %9185 = vrot.lane.b32.xlu1 %v21841_v6, %s15670_s12 }
 0xf72   :  { %9183 = vrot.lane.b32.xlu0 %v21826_v32, %s15670_s12 }
 0xf74   :  { %9181 = vrot.lane.b32.xlu1 %v21836_v13, %s15670_s12 }
 0xf76   :  { %9777 = vrot.lane.b32.xlu0 %v21924_v35, %s15671_s15 }
 0xf78   :  { %9209 = vrot.lane.b32.xlu1 %v21933_v0, %s15670_s12 }
 0xf7a   :  { %9987 = vrot.lane.b32.xlu0 %v21924_v35, %s15672_s16 }
 0xf7c   :  { %9773 = vrot.lane.b32.xlu1 %v21917_v31, %s15671_s15 }
 0xf7e   :  { %9983 = vrot.lane.b32.xlu0 %v21917_v31, %s15672_s16 }
 0xf80   :  { %9771 = vrot.lane.b32.xlu1 %v21913_v14, %s15671_s15 }
 0xf82   :  { %9981 = vrot.lane.b32.xlu0 %v21913_v14, %s15672_s16 }
 0xf84   :  { %9769 = vrot.lane.b32.xlu1 %v21906_v21, %s15671_s15 }
 0xf86   :  { %9979 = vrot.lane.b32.xlu0 %v21906_v21, %s15672_s16 }
 0xf88   :  { %9767 = vrot.lane.b32.xlu1 %v21900_v10, %s15671_s15 }
 0xf8a   :  { %9977 = vrot.lane.b32.xlu0 %v21900_v10, %s15672_s16 }
 0xf8c   :  { %9765 = vrot.lane.b32.xlu1 %v21894_v19, %s15671_s15 }
 0xf8e   :  { %9975 = vrot.lane.b32.xlu0 %v21894_v19, %s15672_s16 }
 0xf90   :  { %9763 = vrot.lane.b32.xlu1 %v21889_v1, %s15671_s15 }
 0xf92   :  { %9973 = vrot.lane.b32.xlu0 %v21889_v1, %s15672_s16 }
 0xf94   :  { %9761 = vrot.lane.b32.xlu1 %v21881_v11, %s15671_s15 }
 0xf96   :  { %9985 = vrot.lane.b32.xlu0 %v21933_v0, %s15672_s16 }
 0xf98   :  { %9775 = vrot.lane.b32.xlu1 %v21933_v0, %s15671_s15 }
 0xf9a   :  { %9971 = vrot.lane.b32.xlu0 %v21881_v11, %s15672_s16 }
 0xf9c   :  { %9759 = vrot.lane.b32.xlu1 %v21873_v53, %s15671_s15 }
 0xf9e   :  { %9969 = vrot.lane.b32.xlu0 %v21873_v53, %s15672_s16 }
 0xfa0   :  { %9757 = vrot.lane.b32.xlu1 %v21864_v42, %s15671_s15 }
 0xfa2   :  { %9967 = vrot.lane.b32.xlu0 %v21864_v42, %s15672_s16 }
 0xfa4   :  { %9755 = vrot.lane.b32.xlu1 %v21857_v60, %s15671_s15 }
 0xfa6   :  { %9965 = vrot.lane.b32.xlu0 %v21857_v60, %s15672_s16 }
 0xfa8   :  { %9753 = vrot.lane.b32.xlu1 %v21849_v29, %s15671_s15  ;;  %v22021_v55 = vpop.permute.xlu0 %9232 }
 0xfaa   :  { %9963 = vrot.lane.b32.xlu0 %v21849_v29, %s15672_s16 }
 0xfac   :  { %9751 = vrot.lane.b32.xlu1 %v21841_v6, %s15671_s15  ;;  %v22027_v52 = vpop.permute.xlu0 %9230 }
 0xfae   :  { %v22029_v57 = vpop.permute.xlu1 %9234  ;;  %9961 = vrot.lane.b32.xlu0 %v21841_v6, %s15672_s16 }
 0xfb0   :  { %9749 = vrot.lane.b32.xlu1 %v21826_v32, %s15671_s15  ;;  %v22035_v2 = vpop.permute.xlu0 %9236 }
 0xfb2   :  { %v22037_v27 = vpop.permute.xlu1 %9238  ;;  %9959 = vrot.lane.b32.xlu0 %v21826_v32, %s15672_s16 }
 0xfb4   :  { %9747 = vrot.lane.b32.xlu1 %v21836_v13, %s15671_s15  ;;  %v22046_v25 = vpop.permute.xlu0 %9240 }
 0xfb6   :  { %v22048_v36 = vpop.permute.xlu1 %9242  ;;  %10261 = vperm.xlu0 %15666, %v11522_v33   ;;  %v10321_v33 = vld [vmem:[%s22786_s6 + $0x48] sm:$0xff] }
 0xfb8   :  { %9957 = vrot.lane.b32.xlu1 %v21836_v13, %s15672_s16  ;;  %v22055_v26 = vpop.permute.xlu0 %9244 }
 0xfba   :  { %v22060_v12 = vpop.permute.xlu1 %9246  ;;  %10251 = vperm.xlu0 %15666, %v11520_v61  }
 0xfbc   :  { %10256 = vperm.xlu1 %15667, %v11521_v50   ;;  %v9249_v17 = vpop.permute.xlu0 %9248  ;;  %v10322_v50 = vld [vmem:[%s22786_s6 + $0x50] sm:$0xff] }
 0xfbe   :  { %v9251_v41 = vpop.permute.xlu1 %9250  ;;  %10241 = vperm.xlu0 %15666, %v11518_v51   ;;  %v10320_v51 = vld [vmem:[%s22786_s6 + $0x40] sm:$0xff] }
 0xfc0   :  { %10246 = vperm.xlu1 %15667, %v11519_v54   ;;  %v9253_v7 = vpop.permute.xlu0 %9252 }
 0xfc2   :  { %v9255_v40 = vpop.permute.xlu1 %9254  ;;  %10231 = vperm.xlu0 %15666, %v11516_v18   ;;  %v10316_v18 = vld [vmem:[%s22786_s6 + $0x20] sm:$0xff] }
 0xfc4   :  { %10236 = vperm.xlu1 %15667, %v11517_v5   ;;  %v9257_v56 = vpop.permute.xlu0 %9256  ;;  %v11446_v5 = vld [vmem:[%s22784_s3 + $0x1498] sm:$0xff] }
 0xfc6   :  { %v22080_v48 = vpop.permute.xlu1 %9205  ;;  %10221 = vperm.xlu0 %15666, %v11514_v4   ;;  %v10314_v4 = vld [vmem:[%s22786_s6 + $0x10] sm:$0xff] }
 0xfc8   :  { %10226 = vperm.xlu1 %15667, %v11515_v37   ;;  %v9261_v59 = vpop.permute.xlu0 %9260  ;;  %v11448_v37 = vld [vmem:[%s22784_s3 + $0x14a8] sm:$0xff] }
 0xfc9   :  { %15255 = vmatprep.subr.mxu0 %v9261_v59 }
 0xfca   :  { %v9212_v45 = vpop.permute.xlu1 %9211  ;;  %10211 = vperm.xlu0 %15666, %v11512_v46   ;;  %15256 = vmatpush3.msra.mxu0 %v9261_v59  ;;  %v10312_v46 = vld [vmem:[%s22786_s6] sm:$0xff]  ;;  %v11449_v59 = vld [vmem:[%s22784_s3 + $0x14b0] sm:$0xff] }
 0xfcb   :  { %15311 = vmatprep.subr.mxu1 %v9212_v45 }
 0xfcc   :  { %15312 = vmatpush3.msra.mxu1 %v9212_v45  ;;  %10216 = vperm.xlu1 %15667, %v11513_v38   ;;  %v22091_v43 = vpop.permute.xlu0 %9207  ;;  %v11450_v38 = vld [vmem:[%s22784_s3 + $0x14b8] sm:$0xff] }
 0xfce   :  { %v9259_v22 = vpop.permute.xlu1 %9258  ;;  %10201 = vperm.xlu0 %15666, %v11510_v58   ;;  %v10574_v58 = vld [vmem:[%s22787_s8 + $0x8] sm:$0xff] }
 0xfcf   :  { %15257 = vmatprep.subr.mxu0 %v9259_v22 }
 0xfd0   :  { %10206 = vperm.xlu1 %15667, %v11511_v24   ;;  %15258 = vmatpush3.msra.mxu0 %v9259_v22  ;;  %v22099_v34 = vpop.permute.xlu0 %9203  ;;  %v11452_v24 = vld [vmem:[%s22784_s3 + $0x14c8] sm:$0xff] }
 0xfd1   :  { %15259 = vmatprep.subr.mxu0 %v9257_v56 }
 0xfd2   :  { %v22104_v15 = vpop.permute.xlu1 %9201  ;;  %10191 = vperm.xlu0 %15666, %v11508_v8   ;;  %15260 = vmatpush3.msra.mxu0 %v9257_v56  ;;  %v11447_v56 = vld [vmem:[%s22784_s3 + $0x14a0] sm:$0xff]  ;;  %v11453_v8 = vld [vmem:[%s22784_s3 + $0x14d0] sm:$0xff] }
 0xfd3   :  { %15261 = vmatprep.subr.mxu0 %v9255_v40 }
 0xfd4   :  { %10196 = vperm.xlu1 %15667, %v11509_v62   ;;  %15262 = vmatpush3.msra.mxu0 %v9255_v40  ;;  %v22109_v39 = vpop.permute.xlu0 %9199 }
 0xfd5   :  { %15263 = vmatprep.subr.mxu0 %v9253_v7 }
 0xfd6   :  { %v22114_v63 = vpop.permute.xlu1 %9197  ;;  %10405 = vperm.xlu0 %15666, %v10327_v16   ;;  %15264 = vmatpush3.msra.mxu0 %v9253_v7  ;;  %v11445_v7 = vld [vmem:[%s22784_s3 + $0x1490] sm:$0xff] }
 0xfd7   :  { %15265 = vmatprep.subr.mxu0 %v9251_v41 }
 0xfd8   :  { %10186 = vperm.xlu1 %15667, %v11507_v30   ;;  %15266 = vmatpush3.msra.mxu0 %v9251_v41  ;;  %v22119_v44 = vpop.permute.xlu0 %9195  ;;  %v11444_v41 = vld [vmem:[%s22784_s3 + $0x1488] sm:$0xff] }
 0xfd9   :  { %15267 = vmatprep.subr.mxu0 %v9249_v17 }
 0xfda   :  { %v22124_v28 = vpop.permute.xlu1 %9193  ;;  %10395 = vperm.xlu0 %15666, %v10325_v23   ;;  %15268 = vmatpush3.msra.mxu0 %v9249_v17  ;;  %v11430_v23 = vld [vmem:[%s22784_s3 + $0x1418] sm:$0xff] }
 0xfdb   :  { %15269 = vmatprep.subr.mxu0 %v22060_v12 }
 0xfdc   :  { %10400 = vperm.xlu1 %15667, %v10326_v20   ;;  %15270 = vmatpush3.msra.mxu0 %v22060_v12  ;;  %v22131_v9 = vpop.permute.xlu0 %9191 }
 0xfdd   :  { %15271 = vmatprep.subr.mxu0 %v22055_v26 }
 0xfde   :  { %v22137_v47 = vpop.permute.xlu1 %9189  ;;  %10385 = vperm.xlu0 %15666, %v10323_v3   ;;  %15272 = vmatpush3.msra.mxu0 %v22055_v26  ;;  %v10319_v26 = vld [vmem:[%s22786_s6 + $0x38] sm:$0xff]  ;;  %v11461_v3 = vld [vmem:[%s22784_s3 + $0x1510] sm:$0xff] }
 0xfdf   :  { %15273 = vmatprep.subr.mxu0 %v22048_v36 }
 0xfe0   :  { %10390 = vperm.xlu1 %15667, %v10324_v49   ;;  %15274 = vmatpush3.msra.mxu0 %v22048_v36  ;;  %v22145_v61 = vpop.permute.xlu0 %9187 }
 0xfe1   :  { %15275 = vmatprep.subr.mxu0 %v22046_v25 }
 0xfe2   :  { %v22151_v12 = vpop.permute.xlu1 %9185  ;;  %10375 = vperm.xlu0 %15666, %v10321_v33   ;;  %15276 = vmatpush3.msra.mxu0 %v22046_v25  ;;  %v10317_v25 = vld [vmem:[%s22786_s6 + $0x28] sm:$0xff]  ;;  %v11433_v33 = vld [vmem:[%s22784_s3 + $0x1430] sm:$0xff] }
 0xfe3   :  { %15277 = vmatprep.subr.mxu0 %v22037_v27 }
 0xfe4   :  { %10380 = vperm.xlu1 %15667, %v10322_v50   ;;  %15278 = vmatpush3.msra.mxu0 %v22037_v27  ;;  %v22159_v36 = vpop.permute.xlu0 %9183  ;;  %v10318_v27 = vld [vmem:[%s22786_s6 + $0x30] sm:$0xff]  ;;  %v11434_v50 = vld [vmem:[%s22784_s3 + $0x1438] sm:$0xff] }
 0xfe5   :  { %15279 = vmatprep.subr.mxu0 %v22035_v2 }
 0xfe6   :  { %v22165_v17 = vpop.permute.xlu1 %9181  ;;  %10365 = vperm.xlu0 %15666, %v10319_v26   ;;  %15280 = vmatpush3.msra.mxu0 %v22035_v2 }
 0xfe7   :  { %15281 = vmatprep.subr.mxu0 %v22029_v57 }
 0xfe8   :  { %10370 = vperm.xlu1 %15667, %v10320_v51   ;;  %15282 = vmatpush3.msra.mxu0 %v22029_v57  ;;  %v22178_v2 = vpop.permute.xlu0 %9777  ;;  %v10315_v57 = vld [vmem:[%s22786_s6 + $0x18] sm:$0xff]  ;;  %v11435_v51 = vld [vmem:[%s22784_s3 + $0x1440] sm:$0xff] }
 0xfe9   :  { %15283 = vmatprep.subr.mxu0 %v22021_v55 }
 0xfea   :  { %v9210_v54 = vpop.permute.xlu1 %9209  ;;  %10355 = vperm.xlu0 %15666, %v10317_v25   ;;  %15284 = vmatpush3.msra.mxu0 %v22021_v55  ;;  %v11436_v25 = vld [vmem:[%s22784_s3 + $0x1448] sm:$0xff] }
 0xfeb   :  { %15285 = vmatprep.subr.mxu0 %v22027_v52  ;;  %15313 = vmatprep.subr.mxu1 %v9210_v54 }
 0xfec   :  { %15314 = vmatpush3.msra.mxu1 %v9210_v54  ;;  %10360 = vperm.xlu1 %15667, %v10318_v27   ;;  %v11466_v27 = vld [vmem:[%s22784_s3 + $0x1538] sm:$0xff] }
 0xfed   :  { %15286 = vmatpush3.msra.mxu0 %v22027_v52  ;;  %15315 = vmatprep.subr.mxu1 %v22091_v43  ;;  %v22201_v52 = vpop.permute.xlu0 %9987 }
 0xfee   :  { %15288 = vmatmul.mubr.f32.vlgmr.msra.gmra.mxu0 %v11444_v41  ;;  %15367 = vmatprep.subr.mxu0 %v21924_v35  ;;  %v22190_v55 = vpop.permute.xlu1 %9773  ;;  %v11437_v41 = vld [vmem:[%s22784_s3 + $0x1450] sm:$0xff] }
 0xfef   :  { %10345 = vperm.xlu0 %15666, %v10315_v57   ;;  %15316 = vmatpush3.msra.mxu1 %v22091_v43  ;;  %v11451_v43 = vld [vmem:[%s22784_s3 + $0x14c0] sm:$0xff] }
 0xff0   :  { %15368 = vmatpush3.msra.mxu0 %v21924_v35  ;;  %15317 = vmatprep.subr.mxu1 %v22080_v48  ;;  %v10313_v35 = vld [vmem:[%s22786_s6 + $0x8] sm:$0xff]  ;;  %v11467_v57 = vld [vmem:[%s22784_s3 + $0x1540] sm:$0xff] }
 0xff1   :  { %15369 = vmatprep.subr.mxu0 %v21933_v0  ;;  %10350 = vperm.xlu1 %15667, %v10316_v18   ;;  %v11468_v18 = vld [vmem:[%s22784_s3 + $0x1548] sm:$0xff] }
 0xff2   :  { %15290 = vmatprep.mubr.f32.mxu0 %v11445_v7  ;;  %15318 = vmatpush3.msra.mxu1 %v22080_v48  ;;  %v22208_v40 = vpop.permute.xlu1 %9771 }
 0xff3   :  { %15370 = vmatpush3.msra.mxu0 %v21933_v0  ;;  %15319 = vmatprep.subr.mxu1 %v22099_v34  ;;  %v22225_v0 = vpop.permute.xlu0 %9983 }
 0xff4   :  { %15291 = vmatmul.mubr.f32.gmra.mxu0 %v11446_v5  ;;  %15371 = vmatprep.subr.mxu0 %v21917_v31  ;;  %v11439_v5 = vld [vmem:[%s22784_s3 + $0x1460] sm:$0xff] }
 0xff5   :  { %10335 = vperm.xlu0 %15666, %v10313_v35   ;;  %15320 = vmatpush3.msra.mxu1 %v22099_v34  ;;  %v11440_v35 = vld [vmem:[%s22784_s3 + $0x1468] sm:$0xff] }
 0xff6   :  { %15372 = vmatpush3.msra.mxu0 %v21917_v31  ;;  %15321 = vmatprep.subr.mxu1 %v22104_v15  ;;  %v22231_v48 = vpop.permute.xlu1 %9769  ;;  %v10573_v31 = vld [vmem:[%s22787_s8] sm:$0xff] }
 0xff7   :  { %15373 = vmatprep.subr.mxu0 %v21913_v14  ;;  %10340 = vperm.xlu1 %15667, %v10314_v4   ;;  %v11470_v4 = vld [vmem:[%s22784_s3 + $0x1558] sm:$0xff] }
 0xff8   :  { %15293 = vmatprep.mubr.f32.mxu0 %v11447_v56  ;;  %15322 = vmatpush3.msra.mxu1 %v22104_v15  ;;  %v11456_v15 = vld [vmem:[%s22784_s3 + $0x14e8] sm:$0xff] }
 0xff9   :  { %15374 = vmatpush3.msra.mxu0 %v21913_v14  ;;  %15323 = vmatprep.subr.mxu1 %v22109_v39  ;;  %v22249_v14 = vpop.permute.xlu0 %9981 }
 0xffa   :  { %15294 = vmatmul.mubr.f32.gmra.mxu0 %v11448_v37  ;;  %15375 = vmatprep.subr.mxu0 %v21906_v21  ;;  %v22255_v45 = vpop.permute.xlu1 %9767  ;;  %v11441_v37 = vld [vmem:[%s22784_s3 + $0x1470] sm:$0xff] }
 0xffb   :  { %10579 = vperm.xlu0 %15666, %v10573_v31   ;;  %15324 = vmatpush3.msra.mxu1 %v22109_v39  ;;  %v11428_v39 = vld [vmem:[%s22784_s3 + $0x1408] sm:$0xff]  ;;  %v11442_v31 = vld [vmem:[%s22784_s3 + $0x1478] sm:$0xff] }
 0xffc   :  { %15376 = vmatpush3.msra.mxu0 %v21906_v21  ;;  %15325 = vmatprep.subr.mxu1 %v22114_v63  ;;  %v10575_v21 = vld [vmem:[%s22787_s8 + $0x10] sm:$0xff] }
 0xffd   :  { %15377 = vmatprep.subr.mxu0 %v21900_v10  ;;  %10330 = vperm.xlu1 %15667, %v10312_v46   ;;  %v11472_v46 = vld [vmem:[%s22784_s3 + $0x1568] sm:$0xff] }
 0xffe   :  { %15296 = vmatprep.mubr.f32.mxu0 %v11449_v59  ;;  %15326 = vmatpush3.msra.mxu1 %v22114_v63  ;;  %v22279_v22 = vpop.permute.xlu1 %9765  ;;  %v11429_v63 = vld [vmem:[%s22784_s3 + $0x1410] sm:$0xff] }
 0xfff   :  { %15378 = vmatpush3.msra.mxu0 %v21900_v10  ;;  %15327 = vmatprep.subr.mxu1 %v22119_v44  ;;  %v22273_v10 = vpop.permute.xlu0 %9979 }
0x1000   :  { %15297 = vmatmul.mubr.f32.gmra.mxu0 %v11450_v38  ;;  %15379 = vmatprep.subr.mxu0 %v21894_v19  ;;  %v11473_v38 = vld [vmem:[%s22784_s3 + $0x1570] sm:$0xff] }
0x1001   :  { %10589 = vperm.xlu0 %15666, %v10575_v21   ;;  %15328 = vmatpush3.msra.mxu1 %v22119_v44  ;;  %v11460_v44 = vld [vmem:[%s22784_s3 + $0x1508] sm:$0xff]  ;;  %v11474_v21 = vld [vmem:[%s22784_s3 + $0x1578] sm:$0xff] }
0x1002   :  { %15380 = vmatpush3.msra.mxu0 %v21894_v19  ;;  %15329 = vmatprep.subr.mxu1 %v22124_v28  ;;  %v10576_v19 = vld [vmem:[%s22787_s8 + $0x18] sm:$0xff]  ;;  %v22300_v62 = vpop.permute.xlu1 %9763 }
0x1003   :  { %15381 = vmatprep.subr.mxu0 %v21889_v1  ;;  %10584 = vperm.xlu1 %15667, %v10574_v58   ;;  %v22298_v34 = vpop.permute.xlu0 %9977  ;;  %v11476_v58 = vld [vmem:[%s22784_s3 + $0x1588] sm:$0xff] }
0x1004   :  { %15299 = vmatprep.mubr.f32.mxu0 %v11451_v43  ;;  %15330 = vmatpush3.msra.mxu1 %v22124_v28  ;;  %v11431_v28 = vld [vmem:[%s22784_s3 + $0x1420] sm:$0xff]  ;;  %v11477_v43 = vld [vmem:[%s22784_s3 + $0x1590] sm:$0xff] }
0x1005   :  { %15382 = vmatpush3.msra.mxu0 %v21889_v1  ;;  %15331 = vmatprep.subr.mxu1 %v22131_v9  ;;  %v11454_v1 = vld [vmem:[%s22784_s3 + $0x14d8] sm:$0xff] }
0x1006   :  { %15300 = vmatmul.mubr.f32.gmra.mxu0 %v11452_v24  ;;  %15383 = vmatprep.subr.mxu0 %v21881_v11  ;;  %v22320_v16 = vpop.permute.xlu1 %9761 }
0x1007   :  { %15332 = vmatpush3.msra.mxu1 %v22131_v9  ;;  %15384 = vmatpush3.msra.mxu0 %v21881_v11  ;;  %v11455_v11 = vld [vmem:[%s22784_s3 + $0x14e0] sm:$0xff]  ;;  %v11462_v9 = vld [vmem:[%s22784_s3 + $0x1518] sm:$0xff] }
0x1008   :  { %15333 = vmatprep.subr.mxu1 %v22137_v47  ;;  %15385 = vmatprep.subr.mxu0 %v21873_v53 }
0x1009   :  { %10594 = vperm.xlu1 %15667, %v10576_v19   ;;  %15302 = vmatprep.mubr.f32.mxu0 %v11453_v8  ;;  %v11478_v19 = vld [vmem:[%s22784_s3 + $0x1598] sm:$0xff]  ;;  %v11492_v8 = vld [vmem:[%s22784_s3 + $0x1608] sm:$0xff] }
0x100a   :  { %15334 = vmatpush3.msra.mxu1 %v22137_v47  ;;  %15386 = vmatpush3.msra.mxu0 %v21873_v53  ;;  %v22316_v53 = vpop.permute.xlu0 %9975 }
0x100b   :  { %15303 = vmatmul.mubr.f32.gmra.mxu0 %v11454_v1  ;;  %15335 = vmatprep.subr.mxu1 %v22145_v61  ;;  %v11479_v1 = vld [vmem:[%s22784_s3 + $0x15a0] sm:$0xff] }
0x100c   :  { %15387 = vmatprep.subr.mxu0 %v21864_v42  ;;  %15336 = vmatpush3.msra.mxu1 %v22145_v61  ;;  %v11463_v61 = vld [vmem:[%s22784_s3 + $0x1520] sm:$0xff] }
0x100d   :  { %15388 = vmatpush3.msra.mxu0 %v21864_v42  ;;  %15337 = vmatprep.subr.mxu1 %v22151_v12  ;;  %v11457_v42 = vld [vmem:[%s22784_s3 + $0x14f0] sm:$0xff] }
0x100e   :  { %15389 = vmatprep.subr.mxu0 %v21857_v60  ;;  %15305 = vmatprep.mubr.f32.mxu0 %v11455_v11  ;;  %v22339_v30 = vpop.permute.xlu0 %9973  ;;  %v11494_v11 = vld [vmem:[%s22784_s3 + $0x1618] sm:$0xff] }
0x100f   :  { %15338 = vmatpush3.msra.mxu1 %v22151_v12  ;;  %15390 = vmatpush3.msra.mxu0 %v21857_v60  ;;  %v11458_v60 = vld [vmem:[%s22784_s3 + $0x14f8] sm:$0xff]  ;;  %v11464_v12 = vld [vmem:[%s22784_s3 + $0x1528] sm:$0xff] }
0x1010   :  { %15306 = vmatmul.mubr.f32.gmra.mxu0 %v11456_v15  ;;  %15339 = vmatprep.subr.mxu1 %v22159_v36  ;;  %v11481_v15 = vld [vmem:[%s22784_s3 + $0x15b0] sm:$0xff] }
0x1011   :  { %15391 = vmatprep.subr.mxu0 %v21849_v29  ;;  %15340 = vmatpush3.msra.mxu1 %v22159_v36 }
0x1012   :  { %15392 = vmatpush3.msra.mxu0 %v21849_v29  ;;  %15341 = vmatprep.subr.mxu1 %v22165_v17  ;;  %v9776_v29 = vpop.permute.xlu1 %9775 }
0x1013   :  { %15393 = vmatprep.subr.mxu0 %v21841_v6  ;;  %15308 = vmatprep.mubr.f32.mxu0 %v11457_v42  ;;  %v11496_v42 = vld [vmem:[%s22784_s3 + $0x1628] sm:$0xff] }
0x1014   :  { %15342 = vmatpush3.msra.mxu1 %v22165_v17  ;;  %15394 = vmatpush3.msra.mxu0 %v21841_v6  ;;  %v11459_v6 = vld [vmem:[%s22784_s3 + $0x1500] sm:$0xff]  ;;  %v11465_v17 = vld [vmem:[%s22784_s3 + $0x1530] sm:$0xff] }
0x1015   :  { %15309 = vmatmul.mubr.f32.gmra.mxu0 %v11458_v60  ;;  %15344 = vmatmul.mubr.f32.vlgmr.msra.gmra.mxu1 %v11428_v39  ;;  %v11483_v60 = vld [vmem:[%s22784_s3 + $0x15c0] sm:$0xff]  ;;  %v11497_v39 = vld [vmem:[%s22784_s3 + $0x1630] sm:$0xff] }
0x1016   :  { %15395 = vmatprep.subr.mxu0 %v21826_v32  ;;  %15423 = vmatprep.subr.mxu1 %v22178_v2  ;;  %v22359_v20 = vpop.permute.xlu1 %9759 }
0x1017   :  { %15396 = vmatpush3.msra.mxu0 %v21826_v32  ;;  %15424 = vmatpush3.msra.mxu1 %v22178_v2  ;;  %v9986_v32 = vpop.permute.xlu0 %9985 }
0x1018   :  { %15397 = vmatprep.subr.mxu0 %v21836_v13  ;;  %15425 = vmatprep.subr.mxu1 %v9776_v29 }
0x1019   :  { %15346 = vmatprep.mubr.f32.mxu1 %v11429_v63  ;;  %15398 = vmatpush3.msra.mxu0 %v21836_v13  ;;  %v11432_v13 = vld [vmem:[%s22784_s3 + $0x1428] sm:$0xff]  ;;  %v11485_v63 = vld [vmem:[%s22784_s3 + $0x15d0] sm:$0xff] }
0x101a   :  { %15399 = vmatprep.mubr.f32.mxu0 %v11459_v6  ;;  %15426 = vmatpush3.msra.mxu1 %v9776_v29  ;;  %v9758_v47 = vpop.permute.xlu1 %9757  ;;  %v11498_v29 = vld [vmem:[%s22784_s3 + $0x1638] sm:$0xff]  ;;  %v11499_v6 = vld [vmem:[%s22784_s3 + $0x1640] sm:$0xff] }
0x101b   :  { %15347 = vmatmul.mubr.f32.gmra.mxu1 %v11430_v23  ;;  %15400 = vmatmul.mubr.f32.vlgmr.msra.gmra.mxu0 %v11460_v44  ;;  %v9972_v49 = vpop.permute.xlu0 %9971  ;;  %v11486_v23 = vld [vmem:[%s22784_s3 + $0x15d8] sm:$0xff]  ;;  %v11500_v44 = vld [vmem:[%s22784_s3 + $0x1648] sm:$0xff] }
0x101c   :  { %15427 = vmatprep.subr.mxu1 %v22190_v55  ;;  %15479 = vmatprep.subr.mxu0 %v22201_v52 }
0x101d   :  { %15428 = vmatpush3.msra.mxu1 %v22190_v55  ;;  %15480 = vmatpush3.msra.mxu0 %v22201_v52  ;;  %v11438_v55 = vld [vmem:[%s22784_s3 + $0x1458] sm:$0xff] }
0x101e   :  { %15429 = vmatprep.subr.mxu1 %v22208_v40  ;;  %15481 = vmatprep.subr.mxu0 %v9986_v32  ;;  %v9756_v36 = vpop.permute.xlu1 %9755 }
0x101f   :  { %15349 = vmatprep.mubr.f32.mxu1 %v11431_v28  ;;  %15402 = vmatprep.mubr.f32.mxu0 %v11461_v3  ;;  %v9970_v26 = vpop.permute.xlu0 %9969  ;;  %v11488_v28 = vld [vmem:[%s22784_s3 + $0x15e8] sm:$0xff]  ;;  %v11502_v3 = vld [vmem:[%s22784_s3 + $0x1658] sm:$0xff] }
0x1020   :  { %15430 = vmatpush3.msra.mxu1 %v22208_v40  ;;  %15482 = vmatpush3.msra.mxu0 %v9986_v32  ;;  %v11469_v40 = vld [vmem:[%s22784_s3 + $0x1550] sm:$0xff]  ;;  %v11487_v32 = vld [vmem:[%s22784_s3 + $0x15e0] sm:$0xff] }
0x1021   :  { %15350 = vmatmul.mubr.f32.gmra.mxu1 %v11432_v13  ;;  %15403 = vmatmul.mubr.f32.gmra.mxu0 %v11462_v9  ;;  %v11489_v13 = vld [vmem:[%s22784_s3 + $0x15f0] sm:$0xff]  ;;  %v11503_v9 = vld [vmem:[%s22784_s3 + $0x1660] sm:$0xff] }
0x1022   :  { %15431 = vmatprep.subr.mxu1 %v22231_v48  ;;  %15483 = vmatprep.subr.mxu0 %v22225_v0  ;;  %v9754_v2 = vpop.permute.xlu1 %9753 }
0x1023   :  { %15432 = vmatpush3.msra.mxu1 %v22231_v48  ;;  %15484 = vmatpush3.msra.mxu0 %v22225_v0  ;;  %v9968_v54 = vpop.permute.xlu0 %9967  ;;  %v11471_v48 = vld [vmem:[%s22784_s3 + $0x1560] sm:$0xff] }
0x1024   :  { %15433 = vmatprep.subr.mxu1 %v22255_v45  ;;  %15485 = vmatprep.subr.mxu0 %v22249_v14 }
0x1025   :  { %15352 = vmatprep.mubr.f32.mxu1 %v11433_v33  ;;  %15405 = vmatprep.mubr.f32.mxu0 %v11463_v61  ;;  %v11505_v33 = vld [vmem:[%s22784_s3 + $0x1670] sm:$0xff]  ;;  %v11506_v61 = vld [vmem:[%s22784_s3 + $0x1678] sm:$0xff] }
0x1026   :  { %15434 = vmatpush3.msra.mxu1 %v22255_v45  ;;  %15486 = vmatpush3.msra.mxu0 %v22249_v14  ;;  %v9752_v52 = vpop.permute.xlu1 %9751  ;;  %v11475_v45 = vld [vmem:[%s22784_s3 + $0x1580] sm:$0xff] }
0x1027   :  { %15353 = vmatmul.mubr.f32.gmra.mxu1 %v11434_v50  ;;  %15406 = vmatmul.mubr.f32.gmra.mxu0 %v11464_v12  ;;  %v9966_v7 = vpop.permute.xlu0 %9965 }
0x1028   :  { %15435 = vmatprep.subr.mxu1 %v22279_v22  ;;  %15487 = vmatprep.subr.mxu0 %v22273_v10 }
0x1029   :  { %15436 = vmatpush3.msra.mxu1 %v22279_v22  ;;  %15488 = vmatpush3.msra.mxu0 %v22273_v10  ;;  %v11491_v10 = vld [vmem:[%s22784_s3 + $0x1600] sm:$0xff] }
0x102a   :  { %15437 = vmatprep.subr.mxu1 %v22300_v62  ;;  %15489 = vmatprep.subr.mxu0 %v22298_v34  ;;  %v9750_v0 = vpop.permute.xlu1 %9749 }
0x102b   :  { %15355 = vmatprep.mubr.f32.mxu1 %v11435_v51  ;;  %15408 = vmatprep.mubr.f32.mxu0 %v11465_v17  ;;  %v9964_v56 = vpop.permute.xlu0 %9963 }
0x102c   :  { %15438 = vmatpush3.msra.mxu1 %v22300_v62  ;;  %15490 = vmatpush3.msra.mxu0 %v22298_v34  ;;  %v11493_v34 = vld [vmem:[%s22784_s3 + $0x1610] sm:$0xff]  ;;  %v11480_v62 = vld [vmem:[%s22784_s3 + $0x15a8] sm:$0xff] }
0x102d   :  { %15356 = vmatmul.mubr.f32.gmra.mxu1 %v11436_v25  ;;  %15409 = vmatmul.mubr.f32.gmra.mxu0 %v11466_v27 }
0x102e   :  { %15439 = vmatprep.subr.mxu1 %v22320_v16  ;;  %15491 = vmatprep.subr.mxu0 %v22316_v53  ;;  %v9748_v14 = vpop.permute.xlu1 %9747 }
0x102f   :  { %15440 = vmatpush3.msra.mxu1 %v22320_v16  ;;  %15492 = vmatpush3.msra.mxu0 %v22316_v53  ;;  %v9962_v59 = vpop.permute.xlu0 %9961  ;;  %v11495_v53 = vld [vmem:[%s22784_s3 + $0x1620] sm:$0xff]  ;;  %v11482_v16 = vld [vmem:[%s22784_s3 + $0x15b8] sm:$0xff] }
0x1030   :  { %15441 = vmatprep.subr.mxu1 %v22359_v20  ;;  %15493 = vmatprep.subr.mxu0 %v22339_v30 }
0x1031   :  { %15358 = vmatprep.mubr.f32.mxu1 %v11437_v41  ;;  %15411 = vmatprep.mubr.f32.mxu0 %v11467_v57  ;;  %v10296_v57 = vld [vmem:[%s22788_s5] sm:$0xff] }
0x1032   :  { %15442 = vmatpush3.msra.mxu1 %v22359_v20  ;;  %15494 = vmatpush3.msra.mxu0 %v22339_v30  ;;  %v9958_v22 = vpop.permute.xlu1 %9957  ;;  %v11484_v30 = vld [vmem:[%s22784_s3 + $0x15c8] sm:$0xff]  ;;  %v11501_v20 = vld [vmem:[%s22784_s3 + $0x1650] sm:$0xff] }
0x1033   :  { %15359 = vmatmul.mubr.f32.gmra.mxu1 %v11438_v55  ;;  %15412 = vmatmul.mubr.f32.gmra.mxu0 %v11468_v18  ;;  %v9960_v24 = vpop.permute.xlu0 %9959 }
0x1034   :  { %15443 = vmatprep.subr.mxu1 %v9758_v47  ;;  %15495 = vmatprep.subr.mxu0 %v9972_v49 }
0x1035   :  { %15444 = vmatpush3.msra.mxu1 %v9758_v47  ;;  %15496 = vmatpush3.msra.mxu0 %v9972_v49  ;;  %v11490_v49 = vld [vmem:[%s22784_s3 + $0x15f8] sm:$0xff]  ;;  %v11504_v47 = vld [vmem:[%s22784_s3 + $0x1668] sm:$0xff] }
0x1036   :  { %15445 = vmatprep.subr.mxu1 %v9756_v36  ;;  %15497 = vmatprep.subr.mxu0 %v9970_v26 }
0x1037   :  { %15361 = vmatprep.mubr.f32.mxu1 %v11439_v5  ;;  %15414 = vmatprep.mubr.f32.mxu0 %v11469_v40 }
0x1038   :  { %15446 = vmatpush3.msra.mxu1 %v9756_v36  ;;  %15498 = vmatpush3.msra.mxu0 %v9970_v26 }
0x1039   :  { %15362 = vmatmul.mubr.f32.gmra.mxu1 %v11440_v35  ;;  %15415 = vmatmul.mubr.f32.gmra.mxu0 %v11470_v4 }
0x103a   :  { %15447 = vmatprep.subr.mxu1 %v9754_v2  ;;  %15499 = vmatprep.subr.mxu0 %v9968_v54 }
0x103b   :  { %15448 = vmatpush3.msra.mxu1 %v9754_v2  ;;  %15500 = vmatpush3.msra.mxu0 %v9968_v54 }
0x103c   :  { %15449 = vmatprep.subr.mxu1 %v9752_v52  ;;  %15501 = vmatprep.subr.mxu0 %v9966_v7 }
0x103d   :  { %15364 = vmatprep.mubr.f32.mxu1 %v11441_v37  ;;  %15417 = vmatprep.mubr.f32.mxu0 %v11471_v48 }
0x103e   :  { %15450 = vmatpush3.msra.mxu1 %v9752_v52  ;;  %15502 = vmatpush3.msra.mxu0 %v9966_v7 }
0x103f   :  { %15365 = vmatmul.mubr.f32.gmra.mxu1 %v11442_v31  ;;  %15418 = vmatmul.mubr.f32.gmra.mxu0 %v11472_v46 }
0x1040   :  { %15451 = vmatprep.subr.mxu1 %v9750_v0  ;;  %15503 = vmatprep.subr.mxu0 %v9964_v56 }
0x1041   :  { %15452 = vmatpush3.msra.mxu1 %v9750_v0  ;;  %15504 = vmatpush3.msra.mxu0 %v9964_v56 }
0x1042   :  { %15453 = vmatprep.subr.mxu1 %v9748_v14  ;;  %15505 = vmatprep.subr.mxu0 %v9962_v59 }
0x1043   :  { %15420 = vmatprep.mubr.f32.mxu0 %v11473_v38  ;;  %15454 = vmatpush3.msra.mxu1 %v9748_v14 }
0x1044   :  { %15455 = vmatprep.mubr.f32.mxu1 %v11475_v45  ;;  %15506 = vmatpush3.msra.mxu0 %v9962_v59 }
0x1045   :  { %15421 = vmatmul.mubr.f32.gmra.mxu0 %v11474_v21  ;;  %15456 = vmatmul.mubr.f32.vlgmr.msra.gmra.mxu1 %v11476_v58 }
0x1046   :  { %15507 = vmatprep.subr.mxu0 %v9960_v24  ;;  %15458 = vmatprep.mubr.f32.mxu1 %v11477_v43 }
0x1047   :  { %15508 = vmatpush3.msra.mxu0 %v9960_v24  ;;  %15511 = vmatprep.mubr.f32.mxu0 %v11491_v10 }
0x1048   :  { %15509 = vmatprep.subr.mxu0 %v9958_v22 }
0x1049   :  { %15510 = vmatpush3.msra.mxu0 %v9958_v22  ;;  %15459 = vmatmul.mubr.f32.gmra.mxu1 %v11478_v19 }
0x104a   :  { %15512 = vmatmul.mubr.f32.vlgmr.msra.gmra.mxu0 %v11492_v8  ;;  %15461 = vmatprep.mubr.f32.mxu1 %v11479_v1 }
0x104b   :  { %15514 = vmatprep.mubr.f32.mxu0 %v11493_v34 }
0x104d   :  { %15462 = vmatmul.mubr.f32.gmra.mxu1 %v11480_v62 }
0x104e   :  { %15515 = vmatmul.mubr.f32.gmra.mxu0 %v11494_v11  ;;  %15464 = vmatprep.mubr.f32.mxu1 %v11481_v15 }
0x104f   :  { %15517 = vmatprep.mubr.f32.mxu0 %v11495_v53 }
0x1051   :  { %15465 = vmatmul.mubr.f32.gmra.mxu1 %v11482_v16 }
0x1052   :  { %15518 = vmatmul.mubr.f32.gmra.mxu0 %v11496_v42  ;;  %15467 = vmatprep.mubr.f32.mxu1 %v11483_v60 }
0x1053   :  { %15520 = vmatprep.mubr.f32.mxu0 %v11497_v39 }
0x1055   :  { %15468 = vmatmul.mubr.f32.gmra.mxu1 %v11484_v30 }
0x1056   :  { %15521 = vmatmul.mubr.f32.gmra.mxu0 %v11498_v29  ;;  %15470 = vmatprep.mubr.f32.mxu1 %v11485_v63 }
0x1057   :  { %15523 = vmatprep.mubr.f32.mxu0 %v11499_v6 }
0x1059   :  { %15471 = vmatmul.mubr.f32.gmra.mxu1 %v11486_v23 }
0x105a   :  { %15524 = vmatmul.mubr.f32.gmra.mxu0 %v11500_v44  ;;  %15473 = vmatprep.mubr.f32.mxu1 %v11487_v32 }
0x105b   :  { %15526 = vmatprep.mubr.f32.mxu0 %v11501_v20 }
0x105d   :  { %15474 = vmatmul.mubr.f32.gmra.mxu1 %v11488_v28 }
0x105e   :  { %15527 = vmatmul.mubr.f32.gmra.mxu0 %v11502_v3  ;;  %15476 = vmatprep.mubr.f32.mxu1 %v11489_v13 }
0x105f   :  { %15529 = vmatprep.mubr.f32.mxu0 %v11503_v9 }
0x1061   :  { %15477 = vmatmul.mubr.f32.gmra.mxu1 %v11490_v49 }
0x1062   :  { %15530 = vmatmul.mubr.f32.gmra.mxu0 %v11504_v47  ;;  %15567 = vmatprep.mubr.f32.mxu1 %v10296_v57 }
0x1063   :  { %15532 = vmatprep.mubr.f32.mxu0 %v11505_v33 }
0x1066   :  { %15533 = vmatmul.mubr.f32.gmra.mxu0 %v11506_v61 }
0x10ae   :  { %v15289_v50 = vpop.f32.mrf.mxu0 }
0x10b0   :  { %v9345_v12 = vpop.f32.mrf.mxu0 }
0x10b4   :  { %v15292_v26 = vpop.f32.mrf.mxu0 }
0x10b6   :  { %v9355_v36 = vpop.f32.mrf.mxu0 }
0x10ba   :  { %v15295_v51 = vpop.f32.mrf.mxu0 }
0x10bc   :  { %v9365_v17 = vpop.f32.mrf.mxu0 }
0x10c0   :  { %v22565_v25 = vpop.f32.mrf.mxu0 }
0x10c2   :  { %v22567_v27 = vpop.f32.mrf.mxu0 }
0x10c6   :  { %v22569_v54 = vpop.f32.mrf.mxu0 }
0x10c8   :  { %v22571_v2 = vpop.f32.mrf.mxu0 }
0x10cb   :  { %v22573_v41 = vpop.f32.mrf.mxu0 }
0x10cd   :  { %v22578_v55 = vpop.f32.mrf.mxu0 }
0x10d0   :  { %v22580_v18 = vpop.f32.mrf.mxu0 }
0x10d2   :  { %v22582_v7 = vpop.f32.mrf.mxu0 }
0x10d5   :  { %v22584_v52 = vpop.f32.mrf.mxu0  ;;  %v15345_v5 = vpop.f32.mrf.mxu1 }
0x10d6   :  { %v9496_v40 = vadd.f32 %v15345_v5, %v15289_v50 }
0x10d7   :  { %v22586_v35 = vpop.f32.mrf.mxu0  ;;  %v9490_v4 = vpop.f32.mrf.mxu1 }
0x10d8   :  { %v9491_v56 = vadd.f32 %v9490_v4, %v9345_v12 }
0x10db   :  { %v15348_v0 = vpop.f32.mrf.mxu1  ;;  %v15401_v37 = vpop.f32.mrf.mxu0 }
0x10dc   :  { %v9506_v48 = vadd.f32 %v15348_v0, %v15292_v26  ;;  %v22588_v31 = vadd.f32 %v15401_v37, %v9496_v40 }
0x10dd   :  { %v9500_v46 = vpop.f32.mrf.mxu1  ;;  %v9652_v59 = vpop.f32.mrf.mxu0 }
0x10de   :  { %23029 = vst [vmem:[#allocation10_spill] sm:$0xff] %v22588_v31  ;;  %v9501_v14 = vadd.f32 %v9500_v46, %v9355_v36  ;;  %v22590_v38 = vadd.f32 %v9652_v59, %v9491_v56 }
0x10e0   :  { %23030 = vst [vmem:[#allocation13_spill] sm:$0xff] %v22590_v38 }
0x10e1   :  { %v15351_v45 = vpop.f32.mrf.mxu1  ;;  %v15404_v21 = vpop.f32.mrf.mxu0 }
0x10e2   :  { %v9516_v58 = vadd.f32 %v15351_v45, %v15295_v51  ;;  %v22592_v43 = vadd.f32 %v15404_v21, %v9506_v48  ;;  %v10262_v48 = vpop.permute.xlu0 %10261  ;;  %v10257_v45 = vpop.permute.xlu1 %10256 }
0x10e3   :  { %v9510_v10 = vpop.f32.mrf.mxu1  ;;  %v9662_v24 = vpop.f32.mrf.mxu0 }
0x10e4   :  { %23031 = vst [vmem:[#allocation4_spill] sm:$0xff] %v22592_v43  ;;  %v9511_v22 = vadd.f32 %v9510_v10, %v9365_v17  ;;  %v22594_v19 = vadd.f32 %v9662_v24, %v9501_v14 }
0x10e6   :  { %23032 = vst [vmem:[#allocation14_spill] sm:$0xff] %v22594_v19  ;;  %v10252_v24 = vpop.permute.xlu0 %10251 }
0x10e7   :  { %v22596_v8 = vpop.f32.mrf.mxu1  ;;  %v15407_v1 = vpop.f32.mrf.mxu0 }
0x10e8   :  { %v22598_v34 = vadd.f32 %v15407_v1, %v9516_v58 }
0x10e9   :  { %v22600_v62 = vpop.f32.mrf.mxu1  ;;  %v9672_v11 = vpop.f32.mrf.mxu0 }
0x10ea   :  { %23033 = vst [vmem:[#allocation16_spill] sm:$0xff] %v22598_v34  ;;  %v22602_v15 = vadd.f32 %v9672_v11, %v9511_v22  ;;  %v10242_v31 = vpop.permute.xlu0 %10241 }
0x10ec   :  { %23034 = vst [vmem:[#allocation15_spill] sm:$0xff] %v22602_v15 }
0x10ed   :  { %v22604_v53 = vpop.f32.mrf.mxu1  ;;  %v22606_v16 = vpop.f32.mrf.mxu0 }
0x10ef   :  { %v22608_v42 = vpop.f32.mrf.mxu1  ;;  %v22610_v60 = vpop.f32.mrf.mxu0 }
0x10f3   :  { %v15360_v39 = vpop.f32.mrf.mxu1  ;;  %v22612_v30 = vpop.f32.mrf.mxu0 }
0x10f5   :  { %v9540_v29 = vpop.f32.mrf.mxu1  ;;  %v22614_v63 = vpop.f32.mrf.mxu0 }
0x10f9   :  { %v15363_v6 = vpop.f32.mrf.mxu1  ;;  %v15416_v23 = vpop.f32.mrf.mxu0 }
0x10fb   :  { %v9550_v44 = vpop.f32.mrf.mxu1  ;;  %v9702_v32 = vpop.f32.mrf.mxu0 }
0x10ff   :  { %v15366_v20 = vpop.f32.mrf.mxu1  ;;  %v15419_v28 = vpop.f32.mrf.mxu0 }
0x1100   :  { %v9566_v38 = vadd.f32 %v15366_v20, %v22584_v52  ;;  %v9541_v52 = vadd.f32 %v9540_v29, %v22578_v55 }
0x1101   :  { %v9560_v3 = vpop.f32.mrf.mxu1  ;;  %v9712_v13 = vpop.f32.mrf.mxu0 }
0x1102   :  { %v9561_v19 = vadd.f32 %v9560_v3, %v22586_v35  ;;  %v9536_v35 = vadd.f32 %v22604_v53, %v22569_v54  ;;  %v9526_v54 = vadd.f32 %v22596_v8, %v22565_v25 }
0x1104   :  { %v9740_v55 = vadd.f32 %v22612_v30, %v9536_v35 }
0x1105   :  { %v15422_v9 = vpop.f32.mrf.mxu0  ;;  %v22616_v49 = vpop.f32.mrf.mxu1 }
0x1106   :  { %23035 = vst [vmem:[#allocation8_spill] sm:$0xff] %v22616_v49 }
0x1107   :  { %v9722_v47 = vpop.f32.mrf.mxu0  ;;  %v22618_v33 = vpop.f32.mrf.mxu1 }
0x1108   :  { %23036 = vst [vmem:[#allocation2_spill] sm:$0xff] %v22618_v33  ;;  %v9556_v33 = vadd.f32 %v15363_v6, %v22580_v18  ;;  %v9745_v15 = vadd.f32 %v9722_v47, %v9561_v19 }
0x1109   :  { %v22620_v61 = vpop.f32.mrf.mxu1 }
0x110a   :  { %23037 = vst [vmem:[#allocation11_spill] sm:$0xff] %v22620_v61  ;;  %v22622_v50 = vpop.f32.mrf.mxu0  ;;  %v9546_v61 = vadd.f32 %v15360_v39, %v22573_v41 }
0x110b   :  { %23038 = vst [vmem:[#allocation9_spill] sm:$0xff] %v22622_v50  ;;  %v22624_v12 = vpop.f32.mrf.mxu1 }
0x110c   :  { %23039 = vst [vmem:[#allocation3_spill] sm:$0xff] %v22624_v12  ;;  %v22626_v26 = vpop.f32.mrf.mxu0  ;;  %v9744_v12 = vadd.f32 %v15419_v28, %v9556_v33  ;;  %v9742_v6 = vadd.f32 %v15416_v23, %v9546_v61 }
0x110d   :  { %23040 = vst [vmem:[#allocation5_spill] sm:$0xff] %v22626_v26  ;;  %v22628_v36 = vpop.f32.mrf.mxu1  ;;  %v10247_v26 = vpop.permute.xlu1 %10246 }
0x110e   :  { %23041 = vst [vmem:[#allocation12_spill] sm:$0xff] %v22628_v36  ;;  %v22630_v51 = vpop.f32.mrf.mxu0 }
0x110f   :  { %23042 = vst [vmem:[#allocation7_spill] sm:$0xff] %v22630_v51  ;;  %v22632_v17 = vpop.f32.mrf.mxu1  ;;  %v9551_v51 = vadd.f32 %v9550_v44, %v22582_v7 }
0x1110   :  { %23043 = vst [vmem:[#allocation6_spill] sm:$0xff] %v22632_v17  ;;  %v22634_v57 = vpop.f32.mrf.mxu0 }
0x1111   :  { %23044 = vst [vmem:[#allocation17_spill] sm:$0xff] %v22634_v57  ;;  %v22636_v5 = vpop.f32.mrf.mxu1  ;;  %v9743_v17 = vadd.f32 %v9712_v13, %v9551_v51  ;;  %v10237_v18 = vpop.permute.xlu1 %10236 }
0x1112   :  { %v22638_v40 = vpop.f32.mrf.mxu0  ;;  %v10232_v13 = vpop.permute.xlu0 %10231 }
0x1113   :  { %23045 = vst [vmem:[#allocation18_spill] sm:$0xff] %v22638_v40  ;;  %v22640_v4 = vpop.f32.mrf.mxu1  ;;  %v23060_v35 = vld [vmem:[#allocation3_spill] sm:$0xff] }
0x1114   :  { %v22642_v56 = vpop.f32.mrf.mxu0 }
0x1115   :  { %23046 = vst [vmem:[#allocation19_spill] sm:$0xff] %v22642_v56  ;;  %v15469_v0 = vpop.f32.mrf.mxu1  ;;  %v9746_v56 = vadd.f32 %v15422_v9, %v9566_v38  ;;  %v9741_v38 = vadd.f32 %v9702_v32, %v9541_v52  ;;  %v9531_v9 = vadd.f32 %v22608_v42, %v22571_v2  ;;  %v10227_v47 = vpop.permute.xlu1 %10226  ;;  %v9521_v2 = vadd.f32 %v22600_v62, %v22567_v27 }
0x1116   :  { %v22644_v37 = vpop.f32.mrf.mxu0  ;;  %v9738_v42 = vadd.f32 %v22606_v16, %v9526_v54  ;;  %v10222_v25 = vpop.permute.xlu0 %10221  ;;  %v23066_v54 = vld [vmem:[#allocation2_spill] sm:$0xff] }
0x1117   :  { %23047 = vst [vmem:[#allocation20_spill] sm:$0xff] %v22644_v37  ;;  %v22646_v46 = vpop.f32.mrf.mxu1  ;;  %v9739_v53 = vadd.f32 %v22614_v63, %v9531_v9  ;;  %v9737_v8 = vadd.f32 %v22610_v60, %v9521_v2  ;;  %v23051_v60 = vld [vmem:[#allocation12_spill] sm:$0xff]  ;;  %v23068_v2 = vld [vmem:[#allocation5_spill] sm:$0xff] }
0x1118   :  { %v22648_v59 = vpop.f32.mrf.mxu0  ;;  %v9948_v63 = vadd.f32 %v22636_v5, %v9738_v42  ;;  %v23063_v9 = vld [vmem:[#allocation8_spill] sm:$0xff] }
0x1119   :  { %23048 = vst [vmem:[#allocation21_spill] sm:$0xff] %v22648_v59  ;;  %v15472_v14 = vpop.f32.mrf.mxu1  ;;  %v9949_v30 = vadd.f32 %v22646_v46, %v9739_v53  ;;  %v10217_v27 = vpop.permute.xlu1 %10216  ;;  %v9947_v62 = vadd.f32 %v22640_v4, %v9737_v8 }
0x111a   :  { %v15525_v21 = vpop.f32.mrf.mxu0  ;;  %v9952_v39 = vadd.f32 %v15472_v14, %v9742_v6  ;;  %v23053_v14 = vld [vmem:[#allocation15_spill] sm:$0xff]  ;;  %v23055_v4 = vld [vmem:[#allocation18_spill] sm:$0xff] }
0x111b   :  { %v9912_v58 = vpop.f32.mrf.mxu1 }
0x111c   :  { %v22650_v10 = vpop.f32.mrf.mxu0  ;;  %v9951_v29 = vadd.f32 %v9912_v58, %v9741_v38  ;;  %v23058_v52 = vld [vmem:[#allocation19_spill] sm:$0xff] }
0x111d   :  { %v15475_v22 = vpop.f32.mrf.mxu1 }
0x111e   :  { %v15528_v1 = vpop.f32.mrf.mxu0  ;;  %v9954_v59 = vadd.f32 %v15475_v22, %v9744_v12  ;;  %v23049_v16 = vld [vmem:[#allocation20_spill] sm:$0xff]  ;;  %v10207_v22 = vpop.permute.xlu1 %10206 }
0x111f   :  { %v9922_v11 = vpop.f32.mrf.mxu1  ;;  %v10162_v23 = vadd.f32 %v15528_v1, %v9952_v39  ;;  %v23056_v1 = vld [vmem:[#allocation4_spill] sm:$0xff] }
0x1120   :  { %v10122_v50 = vpop.f32.mrf.mxu0  ;;  %v9953_v34 = vadd.f32 %v9922_v11, %v9743_v17  ;;  %v23057_v11 = vld [vmem:[#allocation11_spill] sm:$0xff] }
0x1121   :  { %v15478_v57 = vpop.f32.mrf.mxu1  ;;  %v10161_v32 = vadd.f32 %v10122_v50, %v9951_v29  ;;  %v10159_v50 = vadd.f32 %v22650_v10, %v9949_v30  ;;  %v23064_v29 = vld [vmem:[#allocation17_spill] sm:$0xff] }
0x1122   :  { %v15531_v49 = vpop.f32.mrf.mxu0  ;;  %v9956_v36 = vadd.f32 %v15478_v57, %v9746_v56  ;;  %v10158_v57 = vadd.f32 %v23049_v16, %v9948_v63  ;;  %v23050_v56 = vld [vmem:[#allocation16_spill] sm:$0xff]  ;;  %v10299_v16 = vld [vmem:[%s22788_s5 + $0x18] sm:$0xff] }
0x1123   :  { %v9932_v43 = vpop.f32.mrf.mxu1  ;;  %v10164_v37 = vadd.f32 %v15531_v49, %v9954_v59  ;;  %v10212_v59 = vpop.permute.xlu0 %10211 }
0x1124   :  { %v10132_v40 = vpop.f32.mrf.mxu0  ;;  %v9955_v7 = vadd.f32 %v9932_v43, %v9745_v15  ;;  %v10271_v10 = vadd.f32 %v10222_v25, %v10158_v57  ;;  %v10300_v57 = vld [vmem:[%s22788_s5 + $0x20] sm:$0xff] }
0x1125   :  { %v10163_v28 = vadd.f32 %v10132_v40, %v9953_v34  ;;  %v10277_v49 = vadd.f32 %v10252_v24, %v10164_v37  ;;  %v9950_v34 = vadd.f32 %v15469_v0, %v9740_v55  ;;  %v9946_v0 = vadd.f32 %v23051_v60, %v23050_v56  ;;  %v23052_v37 = vld [vmem:[#allocation21_spill] sm:$0xff]  ;;  %v10304_v60 = vld [vmem:[%s22788_s5 + $0x40] sm:$0xff] }
0x1126   :  { %v15534_v20 = vpop.f32.mrf.mxu0  ;;  %v10157_v5 = vadd.f32 %v23052_v37, %v9947_v62  ;;  %v10298_v62 = vld [vmem:[%s22788_s5 + $0x10] sm:$0xff]  ;;  %v10303_v56 = vld [vmem:[%s22788_s5 + $0x38] sm:$0xff] }
0x1127   :  { %v10166_v44 = vadd.f32 %v15534_v20, %v9956_v36  ;;  %v10276_v33 = vadd.f32 %v10247_v26, %v10163_v28  ;;  %v10160_v12 = vadd.f32 %v15525_v21, %v9950_v34  ;;  %v10275_v36 = vadd.f32 %v10242_v31, %v10162_v23  ;;  %v23067_v34 = vld [vmem:[#allocation9_spill] sm:$0xff]  ;;  %v10306_v37 = vld [vmem:[%s22788_s5 + $0x50] sm:$0xff] }
0x1128   :  { %v10142_v41 = vpop.f32.mrf.mxu0  ;;  %v10293_v51 = vmax.f32 %v10277_v49, 0.0  ;;  %v10274_v26 = vadd.f32 %v10237_v18, %v10161_v32  ;;  %v10156_v58 = vadd.f32 %v23055_v4, %v9946_v0  ;;  %v9944_v18 = vadd.f32 %v23057_v11, %v23056_v1  ;;  %v10305_v0 = vld [vmem:[%s22788_s5 + $0x48] sm:$0xff] }
0x1129   :  { %v10279_v3 = vadd.f32 %v10262_v48, %v10166_v44  ;;  %v10165_v19 = vadd.f32 %v10142_v41, %v9955_v7  ;;  %v10292_v17 = vmax.f32 %v10276_v33, 0.0  ;;  %v10273_v31 = vadd.f32 %v10232_v13, %v10160_v12  ;;  %v23059_v44 = vld [vmem:[#allocation14_spill] sm:$0xff]  ;;  %v23061_v41 = vld [vmem:[#allocation7_spill] sm:$0xff] }
0x112a   :  { %v10291_v40 = vmax.f32 %v10275_v36, 0.0  ;;  %v10272_v48 = vadd.f32 %v10227_v47, %v10159_v50  ;;  %v10290_v46 = vmax.f32 %v10274_v26, 0.0  ;;  %v10270_v20 = vadd.f32 %v10217_v27, %v10157_v5  ;;  %v23062_v13 = vld [vmem:[#allocation10_spill] sm:$0xff]  ;;  %v23065_v47 = vld [vmem:[#allocation13_spill] sm:$0xff]  ;;  %v10297_v27 = vld [vmem:[%s22788_s5 + $0x8] sm:$0xff] }
0x112b   :  { %v10295_v43 = vmax.f32 %v10279_v3, 0.0  ;;  %v10278_v15 = vadd.f32 %v10257_v45, %v10165_v19  ;;  %v23054_v45 = vld [vmem:[#allocation6_spill] sm:$0xff]  ;;  %v10289_v24 = vmax.f32 %v10273_v31, 0.0  ;;  %v9943_v38 = vadd.f32 %v23060_v35, %v23059_v44  ;;  %v10202_v19 = vpop.permute.xlu0 %10201  ;;  %v10301_v31 = vld [vmem:[%s22788_s5 + $0x28] sm:$0xff]  ;;  %v10307_v5 = vld [vmem:[%s22788_s5 + $0x58] sm:$0xff] }
0x112c   :  { %v9945_v21 = vadd.f32 %v23054_v45, %v23053_v14  ;;  %v10288_v7 = vmax.f32 %v10272_v48, 0.0  ;;  %v10154_v39 = vadd.f32 %v23061_v41, %v9944_v18  ;;  %v10269_v28 = vadd.f32 %v10212_v59, %v10156_v58  ;;  %v10308_v48 = vld [vmem:[%s22788_s5 + $0x60] sm:$0xff]  ;;  %v10310_v59 = vld [vmem:[%s22788_s5 + $0x70] sm:$0xff]  ;;  %v10311_v14 = vld [vmem:[%s22788_s5 + $0x78] sm:$0xff] }
0x112d   :  { %v10294_v61 = vmax.f32 %v10278_v15, 0.0  ;;  %15535 = vmatprep.subr.mxu1 %v10295_v43  ;;  %v10287_v3 = vmax.f32 %v10271_v10, 0.0  ;;  %v9942_v55 = vadd.f32 %v23063_v9, %v23062_v13  ;;  %v10153_v23 = vadd.f32 %v23064_v29, %v9943_v38  ;;  %v10197_v15 = vpop.permute.xlu1 %10196  ;;  %v10569_v45 = vld [vmem:[%s22789_s7] sm:$0xff] }
0x112e   :  { %15536 = vmatpush3.msra.mxu1 %v10295_v43  ;;  %v10155_v6 = vadd.f32 %v23058_v52, %v9945_v21  ;;  %v10286_v43 = vmax.f32 %v10270_v20, 0.0  ;;  %v9941_v53 = vadd.f32 %v23066_v54, %v23065_v47  ;;  %v10267_v33 = vadd.f32 %v10202_v19, %v10154_v39  ;;  %v10571_v21 = vld [vmem:[%s22789_s7 + $0x10] sm:$0xff]  ;;  %15623 = vmatprep.mubr.f32.mxu0 %v10569_v45 }
0x112f   :  { %15537 = vmatprep.subr.mxu1 %v10294_v61  ;;  %v10152_v32 = vadd.f32 %v23067_v34, %v9942_v55  ;;  %v10266_v30 = vadd.f32 %v10197_v15, %v10153_v23  ;;  %v10192_v36 = vpop.permute.xlu0 %10191 }
0x1130   :  { %15538 = vmatpush3.msra.mxu1 %v10294_v61  ;;  %v10268_v49 = vadd.f32 %v10207_v22, %v10155_v6  ;;  %v10285_v61 = vmax.f32 %v10269_v28, 0.0  ;;  %v10151_v42 = vadd.f32 %v23068_v2, %v9941_v53  ;;  %v10283_v25 = vmax.f32 %v10267_v33, 0.0 }
0x1131   :  { %15539 = vmatprep.subr.mxu1 %v10293_v51  ;;  %v10187_v8 = vpop.permute.xlu1 %10186  ;;  %v10282_v50 = vmax.f32 %v10266_v30, 0.0 }
0x1132   :  { %15540 = vmatpush3.msra.mxu1 %v10293_v51  ;;  %v10284_v12 = vmax.f32 %v10268_v49, 0.0  ;;  %v10265_v51 = vadd.f32 %v10192_v36, %v10152_v32  ;;  %v10264_v63 = vadd.f32 %v10187_v8, %v10151_v42 }
0x1133   :  { %15541 = vmatprep.subr.mxu1 %v10292_v17  ;;  %v10406_v11 = vpop.permute.xlu0 %10405 }
0x1134   :  { %15542 = vmatpush3.msra.mxu1 %v10292_v17  ;;  %v10281_v26 = vmax.f32 %v10265_v51, 0.0  ;;  %v10280_v17 = vmax.f32 %v10264_v63, 0.0 }
0x1135   :  { %15543 = vmatprep.subr.mxu1 %v10291_v40  ;;  %v10401_v52 = vpop.permute.xlu1 %10400 }
0x1136   :  { %15544 = vmatpush3.msra.mxu1 %v10291_v40  ;;  %v10302_v40 = vld [vmem:[%s22788_s5 + $0x30] sm:$0xff] }
0x1137   :  { %15545 = vmatprep.subr.mxu1 %v10290_v46 }
0x1138   :  { %15546 = vmatpush3.msra.mxu1 %v10290_v46  ;;  %v10309_v46 = vld [vmem:[%s22788_s5 + $0x68] sm:$0xff] }
0x1139   :  { %15547 = vmatprep.subr.mxu1 %v10289_v24  ;;  %v10391_v35 = vpop.permute.xlu1 %10390 }
0x113a   :  { %15548 = vmatpush3.msra.mxu1 %v10289_v24 }
0x113b   :  { %15549 = vmatprep.subr.mxu1 %v10288_v7 }
0x113c   :  { %15550 = vmatpush3.msra.mxu1 %v10288_v7  ;;  %v10396_v7 = vpop.permute.xlu0 %10395 }
0x113d   :  { %15551 = vmatprep.subr.mxu1 %v10287_v3 }
0x113e   :  { %15552 = vmatpush3.msra.mxu1 %v10287_v3  ;;  %v10381_v3 = vpop.permute.xlu1 %10380 }
0x113f   :  { %15553 = vmatprep.subr.mxu1 %v10286_v43 }
0x1140   :  { %15554 = vmatpush3.msra.mxu1 %v10286_v43  ;;  %v10386_v39 = vpop.permute.xlu0 %10385 }
0x1141   :  { %15555 = vmatprep.subr.mxu1 %v10285_v61 }
0x1142   :  { %15556 = vmatpush3.msra.mxu1 %v10285_v61  ;;  %v10371_v15 = vpop.permute.xlu1 %10370 }
0x1143   :  { %15557 = vmatprep.subr.mxu1 %v10284_v12 }
0x1144   :  { %15558 = vmatpush3.msra.mxu1 %v10284_v12  ;;  %v10376_v55 = vpop.permute.xlu0 %10375 }
0x1145   :  { %15559 = vmatprep.subr.mxu1 %v10283_v25 }
0x1146   :  { %15560 = vmatpush3.msra.mxu1 %v10283_v25  ;;  %v10361_v2 = vpop.permute.xlu1 %10360 }
0x1147   :  { %15561 = vmatprep.subr.mxu1 %v10282_v50 }
0x1148   :  { %15562 = vmatpush3.msra.mxu1 %v10282_v50  ;;  %v10366_v32 = vpop.permute.xlu0 %10365 }
0x1149   :  { %15563 = vmatprep.subr.mxu1 %v10281_v26 }
0x114a   :  { %15564 = vmatpush3.msra.mxu1 %v10281_v26  ;;  %v10351_v63 = vpop.permute.xlu1 %10350 }
0x114b   :  { %15565 = vmatprep.subr.mxu1 %v10280_v17 }
0x114c   :  { %15566 = vmatpush3.msra.mxu1 %v10280_v17  ;;  %v10356_v51 = vpop.permute.xlu0 %10355 }
0x114d   :  { %15568 = vmatmul.mubr.f32.vlgmr.msra.gmra.mxu1 %v10297_v27 }
0x114e   :  { %15570 = vmatprep.mubr.f32.mxu1 %v10298_v62 }
0x1150   :  { %v10346_v62 = vpop.permute.xlu0 %10345 }
0x1151   :  { %15571 = vmatmul.mubr.f32.gmra.mxu1 %v10299_v16 }
0x1152   :  { %15573 = vmatprep.mubr.f32.mxu1 %v10300_v57 }
0x1155   :  { %15574 = vmatmul.mubr.f32.gmra.mxu1 %v10301_v31  ;;  %v10341_v31 = vpop.permute.xlu1 %10340 }
0x1156   :  { %15576 = vmatprep.mubr.f32.mxu1 %v10302_v40 }
0x1159   :  { %15577 = vmatmul.mubr.f32.gmra.mxu1 %v10303_v56 }
0x115a   :  { %15579 = vmatprep.mubr.f32.mxu1 %v10304_v60 }
0x115d   :  { %15580 = vmatmul.mubr.f32.gmra.mxu1 %v10305_v0 }
0x115e   :  { %15582 = vmatprep.mubr.f32.mxu1 %v10306_v37  ;;  %v10336_v37 = vpop.permute.xlu0 %10335 }
0x1161   :  { %15583 = vmatmul.mubr.f32.gmra.mxu1 %v10307_v5 }
0x1162   :  { %15585 = vmatprep.mubr.f32.mxu1 %v10308_v48 }
0x1165   :  { %15586 = vmatmul.mubr.f32.gmra.mxu1 %v10309_v46  ;;  %v10331_v46 = vpop.permute.xlu1 %10330 }
0x1166   :  { %15588 = vmatprep.mubr.f32.mxu1 %v10310_v59 }
0x1169   :  { %15589 = vmatmul.mubr.f32.gmra.mxu1 %v10311_v14 }
0x116a   :  { %15626 = vmatprep.mubr.f32.mxu1 %v10571_v21 }
0x120d   :  { %v22745_v4 = vpop.f32.mrf.mxu1 }
0x120e   :  { %v10480_v5 = vadd.f32 %v22745_v4, %v10336_v37  ;;  %v10570_v4 = vld [vmem:[%s22789_s7 + $0x8] sm:$0xff] }
0x120f   :  { %v22747_v58 = vpop.f32.mrf.mxu1 }
0x1210   :  { %v10475_v59 = vadd.f32 %v22747_v58, %v10331_v46  ;;  %v10554_v45 = vmax.f32 %v10480_v5, 0.0  ;;  %v10572_v58 = vld [vmem:[%s22789_s7 + $0x18] sm:$0xff] }
0x1211   :  { %v22749_v10 = vpop.f32.mrf.mxu1 }
0x1212   :  { %v10490_v40 = vadd.f32 %v22749_v10, %v10346_v62  ;;  %v10553_v21 = vmax.f32 %v10475_v59, 0.0  ;;  %v10585_v10 = vpop.permute.xlu1 %10584 }
0x1213   :  { %v22751_v24 = vpop.f32.mrf.mxu1 }
0x1214   :  { %v10485_v60 = vadd.f32 %v22751_v24, %v10341_v31  ;;  %v10556_v48 = vmax.f32 %v10490_v40, 0.0  ;;  %v10580_v24 = vpop.permute.xlu0 %10579 }
0x1215   :  { %v22753_v22 = vpop.f32.mrf.mxu1 }
0x1216   :  { %v10500_v17 = vadd.f32 %v22753_v22, %v10356_v51  ;;  %v10555_v14 = vmax.f32 %v10485_v60, 0.0  ;;  %v10595_v22 = vpop.permute.xlu1 %10594 }
0x1217   :  { %v22755_v1 = vpop.f32.mrf.mxu1 }
0x1218   :  { %v10495_v16 = vadd.f32 %v22755_v1, %v10351_v63  ;;  %v10558_v56 = vmax.f32 %v10500_v17, 0.0 }
0x1219   :  { %v15578_v18 = vpop.f32.mrf.mxu1 }
0x121a   :  { %v10510_v25 = vadd.f32 %v15578_v18, %v10366_v32  ;;  %v10557_v0 = vmax.f32 %v10495_v16, 0.0  ;;  %v10590_v18 = vpop.permute.xlu0 %10589 }
0x121b   :  { %v10504_v6 = vpop.f32.mrf.mxu1 }
0x121c   :  { %v10505_v50 = vadd.f32 %v10504_v6, %v10361_v2  ;;  %v10560_v27 = vmax.f32 %v10510_v25, 0.0 }
0x121d   :  { %v15581_v20 = vpop.f32.mrf.mxu1 }
0x121e   :  { %v10520_v42 = vadd.f32 %v15581_v20, %v10376_v55  ;;  %v10559_v57 = vmax.f32 %v10505_v50, 0.0 }
0x121f   :  { %v10514_v44 = vpop.f32.mrf.mxu1 }
0x1220   :  { %v10515_v12 = vadd.f32 %v10514_v44, %v10371_v15  ;;  %v10562_v8 = vmax.f32 %v10520_v42, 0.0 }
0x1221   :  { %v15584_v38 = vpop.f32.mrf.mxu1 }
0x1222   :  { %v10530_v53 = vadd.f32 %v15584_v38, %v10386_v39  ;;  %v10561_v26 = vmax.f32 %v10515_v12, 0.0 }
0x1223   :  { %v10524_v41 = vpop.f32.mrf.mxu1 }
0x1224   :  { %v10525_v33 = vadd.f32 %v10524_v41, %v10381_v3  ;;  %v10564_v30 = vmax.f32 %v10530_v53, 0.0 }
0x1225   :  { %v15587_v28 = vpop.f32.mrf.mxu1 }
0x1226   :  { %v10540_v23 = vadd.f32 %v15587_v28, %v10396_v7  ;;  %v10563_v36 = vmax.f32 %v10525_v33, 0.0 }
0x1227   :  { %v10534_v19 = vpop.f32.mrf.mxu1 }
0x1228   :  { %v10535_v47 = vadd.f32 %v10534_v19, %v10391_v35  ;;  %v10566_v34 = vmax.f32 %v10540_v23, 0.0 }
0x1229   :  { %v15590_v13 = vpop.f32.mrf.mxu1 }
0x122a   :  { %v10550_v9 = vadd.f32 %v15590_v13, %v10406_v11  ;;  %v10565_v61 = vmax.f32 %v10535_v47, 0.0 }
0x122b   :  { %v10544_v29 = vpop.f32.mrf.mxu1 }
0x122c   :  { %v10568_v49 = vmax.f32 %v10550_v9, 0.0  ;;  %v10545_v43 = vadd.f32 %v10544_v29, %v10401_v52 }
0x122e   :  { %v10567_v54 = vmax.f32 %v10545_v43, 0.0  ;;  %15591 = vmatprep.subr.mxu0 %v10568_v49  ;;  %15629 = vmatprep.subr.mxu1 %v10568_v49 }
0x122f   :  { %15592 = vmatpush3.msra.mxu0 %v10568_v49  ;;  %15645 = vmatpush3.msra.mxu1 %v10568_v49 }
0x1230   :  { %15593 = vmatprep.subr.mxu0 %v10567_v54  ;;  %15630 = vmatprep.subr.mxu1 %v10567_v54 }
0x1231   :  { %15594 = vmatpush3.msra.mxu0 %v10567_v54  ;;  %15646 = vmatpush3.msra.mxu1 %v10567_v54 }
0x1232   :  { %15595 = vmatprep.subr.mxu0 %v10566_v34  ;;  %15631 = vmatprep.subr.mxu1 %v10566_v34 }
0x1233   :  { %15596 = vmatpush3.msra.mxu0 %v10566_v34  ;;  %15647 = vmatpush3.msra.mxu1 %v10566_v34 }
0x1234   :  { %15597 = vmatprep.subr.mxu0 %v10565_v61  ;;  %15632 = vmatprep.subr.mxu1 %v10565_v61 }
0x1235   :  { %15598 = vmatpush3.msra.mxu0 %v10565_v61  ;;  %15648 = vmatpush3.msra.mxu1 %v10565_v61 }
0x1236   :  { %15599 = vmatprep.subr.mxu0 %v10564_v30  ;;  %15633 = vmatprep.subr.mxu1 %v10564_v30 }
0x1237   :  { %15600 = vmatpush3.msra.mxu0 %v10564_v30  ;;  %15649 = vmatpush3.msra.mxu1 %v10564_v30 }
0x1238   :  { %15601 = vmatprep.subr.mxu0 %v10563_v36  ;;  %15634 = vmatprep.subr.mxu1 %v10563_v36 }
0x1239   :  { %15602 = vmatpush3.msra.mxu0 %v10563_v36  ;;  %15650 = vmatpush3.msra.mxu1 %v10563_v36 }
0x123a   :  { %15603 = vmatprep.subr.mxu0 %v10562_v8  ;;  %15635 = vmatprep.subr.mxu1 %v10562_v8 }
0x123b   :  { %15604 = vmatpush3.msra.mxu0 %v10562_v8  ;;  %15651 = vmatpush3.msra.mxu1 %v10562_v8 }
0x123c   :  { %15605 = vmatprep.subr.mxu0 %v10561_v26  ;;  %15636 = vmatprep.subr.mxu1 %v10561_v26 }
0x123d   :  { %15606 = vmatpush3.msra.mxu0 %v10561_v26  ;;  %15652 = vmatpush3.msra.mxu1 %v10561_v26 }
0x123e   :  { %15607 = vmatprep.subr.mxu0 %v10560_v27  ;;  %15637 = vmatprep.subr.mxu1 %v10560_v27 }
0x123f   :  { %15608 = vmatpush3.msra.mxu0 %v10560_v27  ;;  %15653 = vmatpush3.msra.mxu1 %v10560_v27 }
0x1240   :  { %15609 = vmatprep.subr.mxu0 %v10559_v57  ;;  %15638 = vmatprep.subr.mxu1 %v10559_v57 }
0x1241   :  { %15610 = vmatpush3.msra.mxu0 %v10559_v57  ;;  %15654 = vmatpush3.msra.mxu1 %v10559_v57 }
0x1242   :  { %15611 = vmatprep.subr.mxu0 %v10558_v56  ;;  %15639 = vmatprep.subr.mxu1 %v10558_v56 }
0x1243   :  { %15612 = vmatpush3.msra.mxu0 %v10558_v56  ;;  %15655 = vmatpush3.msra.mxu1 %v10558_v56 }
0x1244   :  { %15613 = vmatprep.subr.mxu0 %v10557_v0  ;;  %15640 = vmatprep.subr.mxu1 %v10557_v0 }
0x1245   :  { %15614 = vmatpush3.msra.mxu0 %v10557_v0  ;;  %15656 = vmatpush3.msra.mxu1 %v10557_v0 }
0x1246   :  { %15615 = vmatprep.subr.mxu0 %v10556_v48  ;;  %15641 = vmatprep.subr.mxu1 %v10556_v48 }
0x1247   :  { %15616 = vmatpush3.msra.mxu0 %v10556_v48  ;;  %15657 = vmatpush3.msra.mxu1 %v10556_v48 }
0x1248   :  { %15617 = vmatprep.subr.mxu0 %v10555_v14  ;;  %15642 = vmatprep.subr.mxu1 %v10555_v14 }
0x1249   :  { %15618 = vmatpush3.msra.mxu0 %v10555_v14  ;;  %15658 = vmatpush3.msra.mxu1 %v10555_v14 }
0x124a   :  { %15619 = vmatprep.subr.mxu0 %v10554_v45  ;;  %15643 = vmatprep.subr.mxu1 %v10554_v45 }
0x124b   :  { %15620 = vmatpush3.msra.mxu0 %v10554_v45  ;;  %15659 = vmatpush3.msra.mxu1 %v10554_v45 }
0x124c   :  { %15621 = vmatprep.subr.mxu0 %v10553_v21  ;;  %15644 = vmatprep.subr.mxu1 %v10553_v21 }
0x124d   :  { %15622 = vmatpush3.msra.mxu0 %v10553_v21  ;;  %15660 = vmatpush3.msra.mxu1 %v10553_v21 }
0x124e   :  { %15624 = vmatmul.mubr.f32.vlgmr.msra.gmra.mxu0 %v10570_v4  ;;  %15627 = vmatmul.mubr.f32.vlgmr.msra.gmra.mxu1 %v10572_v58 }
0x130e   :  { %v15625_v1 = vpop.f32.mrf.mxu0  ;;  %v15628_v11 = vpop.f32.mrf.mxu1 }
0x130f   :  { %v10669_v52 = vadd.f32 %v15625_v1, %v10585_v10  ;;  %v10679_v6 = vadd.f32 %v15628_v11, %v10595_v22 }
0x1310   :  { %v10663_v20 = vpop.f32.mrf.mxu0  ;;  %v10673_v7 = vpop.f32.mrf.mxu1 }
0x1311   :  { %10683 = vst [vmem:[%s22790_s9 + $0x8] sm:$0xff] %v10669_v52  ;;  %10685 = vst [vmem:[%s22790_s9 + $0x18] sm:$0xff] %v10679_v6  ;;  %v10664_v44 = vadd.f32 %v10663_v20, %v10580_v24  ;;  %v10674_v35 = vadd.f32 %v10673_v7, %v10590_v18 }
0x1313   :  { %10682 = vst [vmem:[%s22790_s9] sm:$0xff] %v10664_v44  ;;  %10684 = vst [vmem:[%s22790_s9 + $0x10] sm:$0xff] %v10674_v35 }

</bundles_post_ra>
